<compile_context>
chip_gen: v7x
topology: tpu7x:2x2x1
jax: 0.10.0
libtpu: 0.0.40
codegen_flags: <defaults>
</compile_context>

<pallas_src>
import functools

import numpy as np

import jax
import jax.numpy as jnp
from jax.experimental import pallas as pl
from jax.experimental.pallas import tpu as pltpu


# ------------------------------ configuration ------------------------------
CHANNELS = 3
FEATURES = 32
IMG = 32            # input spatial size (32x32 -> final 4x4 valid conv -> 1x1)
K = 4               # conv kernel size
CP = 128            # padded channel width (lane-dense)
NEG_SLOPE = 0.2
BN_EPS = 1e-5

H1, H2, H3 = IMG // 2, IMG // 4, IMG // 8       # 16, 8, 4
P1, P2, P3 = H1 * H1, H2 * H2, H3 * H3          # per-image positions: 256, 64, 16

assert FEATURES * 4 == CP, "layer-3/4 channel count must equal the lane width"


# ------------------------------ kernel helpers ------------------------------
def _leaky(x):
    return jnp.where(x > 0, x, NEG_SLOPE * x)


def _bn_leaky(x, g, b):
    # training-mode BatchNorm over the M = N*H*W axis, two-pass variance (f32).
    # NOTE: padded channel columns stay exactly 0 only because the padded
    # weight columns and the padded beta entries are exactly 0 (mean=var=0).
    mean = jnp.mean(x, axis=0, keepdims=True)
    var = jnp.mean(jnp.square(x - mean), axis=0, keepdims=True)
    y = (x - mean) * jax.lax.rsqrt(var + BN_EPS) * g + b
    return _leaky(y)


# ------------------------------ fused kernel --------------------------------
def discriminator_kernel(col1_ref, w1_ref, g2_ref, b2_ref, g3_ref, b3_ref, w4_ref,
                         s2_hbm, w2_hbm, s3_hbm, w3_hbm,
                         out_ref,
                         s2_buf, w2_buf, s3_buf, w3_buf, sem, *, n):
    f32, bf16 = jnp.float32, jnp.bfloat16

    # Kick off DMA of the later-layer operands immediately so they stream in
    # behind layer-1 / gather compute instead of serializing ahead of the body.
    cp_s2 = pltpu.make_async_copy(s2_hbm, s2_buf, sem.at[0])
    cp_w2 = pltpu.make_async_copy(w2_hbm, w2_buf, sem.at[1])
    cp_s3 = pltpu.make_async_copy(s3_hbm, s3_buf, sem.at[2])
    cp_w3 = pltpu.make_async_copy(w3_hbm, w3_buf, sem.at[3])
    cp_s2.start(); cp_w2.start(); cp_s3.start(); cp_w3.start()

    # ---- layer 1: Conv(3->32, k4 s2 p1) + LeakyReLU -------------------------
    act1 = _leaky(jnp.dot(col1_ref[...], w1_ref[...],
                          preferred_element_type=f32)).astype(bf16)   # (n*256,128)

    # ---- layer 2: Conv(32->64, k4 s2 p1) + BN + LeakyReLU --------------------
    cp_s2.wait()
    # Per-image 0/1-selection gather (exact in bf16): (1024,256)@(256,128).
    col2 = [jnp.dot(s2_buf[...], act1[i * P1:(i + 1) * P1, :],
                    preferred_element_type=f32).astype(bf16)          # (1024,128)
            for i in range(n)]
    # Lane-concatenate the 16 tap blocks (images row-concatenated) so the conv
    # becomes ONE deep-K matmul: (n*64, 16*128) @ (16*128, 128).
    col2_wide = jnp.concatenate(
        [jnp.concatenate([col2[i][t * P2:(t + 1) * P2, :] for i in range(n)],
                         axis=0)
         for t in range(K * K)], axis=1)                              # (n*64,2048)
    cp_w2.wait()
    acc2 = jnp.dot(col2_wide, w2_buf[...], preferred_element_type=f32)
    act2 = _bn_leaky(acc2, g2_ref[...], b2_ref[...]).astype(bf16)     # (n*64,128)

    # ---- layer 3: Conv(64->128, k4 s2 p1) + BN + LeakyReLU -------------------
    cp_s3.wait()
    col3 = [jnp.dot(s3_buf[...], act2[i * P2:(i + 1) * P2, :],
                    preferred_element_type=f32).astype(bf16)          # (256,128)
            for i in range(n)]
    col3_wide = jnp.concatenate(
        [jnp.concatenate([col3[i][t * P3:(t + 1) * P3, :] for i in range(n)],
                         axis=0)
         for t in range(K * K)], axis=1)                              # (n*16,2048)
    cp_w3.wait()
    acc3 = jnp.dot(col3_wide, w3_buf[...], preferred_element_type=f32)
    act3 = _bn_leaky(acc3, g3_ref[...], b3_ref[...])                  # (n*16,128) f32

    # ---- layer 4: Conv(128->1, k4 s1 p0) as a per-image VPU reduction --------
    # out[i] = sum_{h,w,c} act3[i,h,w,c] * w4[0,c,h,w]
    outs = []
    for i in range(n):
        blk = act3[i * P3:(i + 1) * P3, :] * w4_ref[...]              # (16,128)
        outs.append(jnp.sum(blk, axis=0, keepdims=True))              # (1,128)
    per_img = jnp.concatenate(outs, axis=0)                           # (n,128)
    out_ref[...] = jnp.sum(per_img, axis=1, keepdims=True)            # (n,1)


# ------------------------------ host-side prep ------------------------------
def _im2col_select(h, w, ho, wo, k, stride, pad):
    """Per-image 0/1 selection matrix of shape (k*k*ho*wo, h*w).

    Row t*(ho*wo) + m holds a single 1 at the flat input-position feeding tap t
    of output position m (an all-zero row == zero padding).
    """
    m_total = ho * wo
    s = np.zeros((k * k * m_total, h * w), np.float32)
    for t in range(k * k):
        dy, dx = divmod(t, k)
        for oy in range(ho):
            iy = stride * oy + dy - pad
            if not (0 <= iy < h):
                continue
            for ox in range(wo):
                ix = stride * ox + dx - pad
                if not (0 <= ix < w):
                    continue
                s[t * m_total + oy * wo + ox, iy * w + ix] = 1.0
    return s


def _conv_w_to_tap_matrix(w, cin_pad, cout_pad):
    """(Cout, Cin, K, K) -> (K*K*cin_pad, cout_pad), rows ordered (dy, dx, cin)."""
    cout, cin, k, _ = w.shape
    wt = jnp.transpose(w, (2, 3, 1, 0))                    # (k, k, cin, cout)
    wt = jnp.pad(wt, ((0, 0), (0, 0), (0, cin_pad - cin), (0, cout_pad - cout)))
    return wt.reshape(k * k * cin_pad, cout_pad)


def prepare_params(params):
    """Kernel-ready weights / selection matrices.  Batch-size INDEPENDENT."""
    f = FEATURES
    return {
        "w1": _conv_w_to_tap_matrix(params["w1"], 8, CP).astype(jnp.bfloat16),
        "w2": _conv_w_to_tap_matrix(params["w2"], CP, CP).astype(jnp.bfloat16),
        "w3": _conv_w_to_tap_matrix(params["w3"], CP, CP).astype(jnp.bfloat16),
        # per-image im2col selection matrices (block-diagonal structure exploited)
        "s2": jnp.asarray(_im2col_select(H1, H1, H2, H2, K, 2, 1), jnp.bfloat16),
        "s3": jnp.asarray(_im2col_select(H2, H2, H3, H3, K, 2, 1), jnp.bfloat16),
        "g2": jnp.pad(params["g2"], (0, CP - 2 * f),
                      constant_values=1.0).reshape(1, CP).astype(jnp.float32),
        "b2": jnp.pad(params["b2"], (0, CP - 2 * f)).reshape(1, CP).astype(jnp.float32),
        "g3": jnp.pad(params["g3"], (0, CP - 4 * f),
                      constant_values=1.0).reshape(1, CP).astype(jnp.float32),
        "b3": jnp.pad(params["b3"], (0, CP - 4 * f)).reshape(1, CP).astype(jnp.float32),
        # final 4x4 valid conv as a per-position weight map, stored ONCE
        "w4": jnp.transpose(params["w4"][0], (1, 2, 0)).reshape(P3, 4 * f)
                 .astype(jnp.float32),
    }


def _build_col1(x_nchw):
    """im2col of the network input (layer 1 only), K padded to 128, bf16.

    Cheap host-side glue (~128 KiB), fused by XLA inside the same jit.
    """
    n = x_nchw.shape[0]
    x = jnp.transpose(x_nchw, (0, 2, 3, 1))                # NHWC (input boundary)
    x = jnp.pad(x, ((0, 0), (1, 1), (1, 1), (0, 0)))       # spatial pad = 1
    taps = []
    for dy in range(K):
        for dx in range(K):
            taps.append(x[:, dy:dy + 2 * H1 - 1:2, dx:dx + 2 * H1 - 1:2, :])
    col = jnp.stack(taps, axis=3)                          # (n, h1, w1, 16, cin)
    col = jnp.pad(col, ((0, 0), (0, 0), (0, 0), (0, 0), (0, 8 - CHANNELS)))
    return col.reshape(n * P1, K * K * 8).astype(jnp.bfloat16)    # (n*256, 128)


# ------------------------------ forward pass --------------------------------
def discriminator_forward(x_nchw, prep):
    n = x_nchw.shape[0]
    col1 = _build_col1(x_nchw)

    vmem = lambda: pl.BlockSpec(memory_space=pltpu.MemorySpace.VMEM)
    hbm = lambda: pl.BlockSpec(memory_space=pl.ANY)

    out = pl.pallas_call(
        functools.partial(discriminator_kernel, n=n),
        out_shape=jax.ShapeDtypeStruct((n, 1), jnp.float32),
        in_specs=[vmem(), vmem(), vmem(), vmem(), vmem(), vmem(), vmem(),
                  hbm(), hbm(), hbm(), hbm()],
        out_specs=vmem(),
        scratch_shapes=[
            pltpu.VMEM((K * K * P2, P1), jnp.bfloat16),    # s2 buffer (1024, 256)
            pltpu.VMEM((K * K * CP, CP), jnp.bfloat16),    # w2 buffer (2048, 128)
            pltpu.VMEM((K * K * P3, P2), jnp.bfloat16),    # s3 buffer (256, 64)
            pltpu.VMEM((K * K * CP, CP), jnp.bfloat16),    # w3 buffer (2048, 128)
            pltpu.SemaphoreType.DMA((4,)),
        ],
        compiler_params=pltpu.CompilerParams(vmem_limit_bytes=32 * 1024 * 1024),
    )(col1, prep["w1"], prep["g2"], prep["b2"], prep["g3"], prep["b3"], prep["w4"],
      prep["s2"], prep["w2"], prep["s3"], prep["w3"])

    return out.reshape(n, 1, 1, 1)                         # match PyTorch (N,1,1,1)


# ------------------------------ reference (pure JAX) -------------------------
def reference_forward(x_nchw, params):
    def conv(x, w, stride, pad, cast=True):
        if cast:
            x = x.astype(jnp.bfloat16)
            w = w.astype(jnp.bfloat16)
        wt = jnp.transpose(w, (2, 3, 1, 0))                # HWIO
        return jax.lax.conv_general_dilated(
            x, wt, (stride, stride), ((pad, pad), (pad, pad)),
            dimension_numbers=("NHWC", "HWIO", "NHWC"),
            preferred_element_type=jnp.float32)

    def bn_leaky(x, g, b):
        mean = jnp.mean(x, axis=(0, 1, 2), keepdims=True)
        var = jnp.mean(jnp.square(x - mean), axis=(0, 1, 2), keepdims=True)
        y = (x - mean) * jax.lax.rsqrt(var + BN_EPS) * g + b
        return jnp.where(y > 0, y, NEG_SLOPE * y)

    x = jnp.transpose(x_nchw, (0, 2, 3, 1)).astype(jnp.float32)
    h = conv(x, params["w1"], 2, 1)
    h = jnp.where(h > 0, h, NEG_SLOPE * h)
    h = conv(h, params["w2"], 2, 1)
    h = bn_leaky(h, params["g2"], params["b2"])
    h = conv(h, params["w3"], 2, 1)
    h = bn_leaky(h, params["g3"], params["b3"])
    h = conv(h, params["w4"], 1, 0, cast=False)
    return jnp.transpose(h, (0, 3, 1, 2))                  # (N, 1, 1, 1)


# ------------------------------ params --------------------------------------
def init_params(key, channels, features):
    ks = jax.random.split(key, 6)
    std = 0.02
    return {
        "w1": std * jax.random.normal(ks[0], (features, channels, 4, 4), jnp.float32),
        "w2": std * jax.random.normal(ks[1], (features * 2, features, 4, 4), jnp.float32),
        "w3": std * jax.random.normal(ks[2], (features * 4, features * 2, 4, 4), jnp.float32),
        "w4": std * jax.random.normal(ks[3], (1, features * 4, 4, 4), jnp.float32),
        # BatchNorm: weight ~ N(1, 0.02), bias = 0  (per weights_init)
        "g2": 1.0 + std * jax.random.normal(ks[4], (features * 2,), jnp.float32),
        "b2": jnp.zeros((features * 2,), jnp.float32),
        "g3": 1.0 + std * jax.random.normal(ks[5], (features * 4,), jnp.float32),
        "b3": jnp.zeros((features * 4,), jnp.float32),
    }


if __name__ == "__main__":
    key = jax.random.PRNGKey(0)
    k_param, k_x = jax.random.split(key)

    N = 2
    params = init_params(k_param, CHANNELS, FEATURES)
    x = jax.random.normal(k_x, (N, CHANNELS, IMG, IMG), jnp.float32)   # NCHW

    prep = prepare_params(params)                          # batch-independent, off hot path

    fwd = jax.jit(discriminator_forward)
    out = fwd(x, prep)
    jax.block_until_ready(out)

    assert out.shape == (N, 1, 1, 1), out.shape
    assert out.dtype == jnp.float32

    ref = jax.jit(reference_forward)(x, params)
    jax.block_until_ready(ref)
    np.testing.assert_allclose(np.asarray(out), np.asarray(ref),
                               rtol=2e-2, atol=2e-2)

    print("KERNEL_OK")
</pallas_src>

<mosaic_0001>
module attributes {stable_mosaic.version = 11 : i64} {
  func.func @discriminator_kernel(%arg0: memref<512x128xbf16, #tpu.memory_space<vmem>>, %arg1: memref<128x128xbf16, #tpu.memory_space<vmem>>, %arg2: memref<1x128xf32, #tpu.memory_space<vmem>>, %arg3: memref<1x128xf32, #tpu.memory_space<vmem>>, %arg4: memref<1x128xf32, #tpu.memory_space<vmem>>, %arg5: memref<1x128xf32, #tpu.memory_space<vmem>>, %arg6: memref<16x128xf32, #tpu.memory_space<vmem>>, %arg7: memref<1024x256xbf16, #tpu.memory_space<any>>, %arg8: memref<2048x128xbf16, #tpu.memory_space<any>>, %arg9: memref<256x64xbf16, #tpu.memory_space<any>>, %arg10: memref<2048x128xbf16, #tpu.memory_space<any>>, %arg11: memref<2x1xf32, #tpu.memory_space<vmem>>, %arg12: memref<1024x256xbf16, #tpu.memory_space<vmem>>, %arg13: memref<2048x128xbf16, #tpu.memory_space<vmem>>, %arg14: memref<256x64xbf16, #tpu.memory_space<vmem>>, %arg15: memref<2048x128xbf16, #tpu.memory_space<vmem>>, %arg16: memref<4x!tpu.dma_semaphore, #tpu.memory_space<semaphore_mem>>) attributes {dimension_semantics = [], scalar_prefetch = 0 : i64, scratch_operands = 5 : i64, tpu.core_type = #tpu.core_type<tc>} {
    %c0_i32 = arith.constant 0 : i32
    %0 = tpu.memref_slice %arg16[%c0_i32] : memref<4x!tpu.dma_semaphore, #tpu.memory_space<semaphore_mem>> -> memref<1x!tpu.dma_semaphore, #tpu.memory_space<semaphore_mem>>
    %1 = tpu.memref_squeeze %0 : memref<1x!tpu.dma_semaphore, #tpu.memory_space<semaphore_mem>> -> memref<!tpu.dma_semaphore, #tpu.memory_space<semaphore_mem>>
    tpu.enqueue_dma source(%arg7 : memref<1024x256xbf16, #tpu.memory_space<any>>) target(%arg12 : memref<1024x256xbf16, #tpu.memory_space<vmem>>) target_semaphore(%1 : memref<!tpu.dma_semaphore, #tpu.memory_space<semaphore_mem>>)
    %c1_i32 = arith.constant 1 : i32
    %2 = tpu.memref_slice %arg16[%c1_i32] : memref<4x!tpu.dma_semaphore, #tpu.memory_space<semaphore_mem>> -> memref<1x!tpu.dma_semaphore, #tpu.memory_space<semaphore_mem>>
    %3 = tpu.memref_squeeze %2 : memref<1x!tpu.dma_semaphore, #tpu.memory_space<semaphore_mem>> -> memref<!tpu.dma_semaphore, #tpu.memory_space<semaphore_mem>>
    tpu.enqueue_dma source(%arg8 : memref<2048x128xbf16, #tpu.memory_space<any>>) target(%arg13 : memref<2048x128xbf16, #tpu.memory_space<vmem>>) target_semaphore(%3 : memref<!tpu.dma_semaphore, #tpu.memory_space<semaphore_mem>>)
    %c2_i32 = arith.constant 2 : i32
    %4 = tpu.memref_slice %arg16[%c2_i32] : memref<4x!tpu.dma_semaphore, #tpu.memory_space<semaphore_mem>> -> memref<1x!tpu.dma_semaphore, #tpu.memory_space<semaphore_mem>>
    %5 = tpu.memref_squeeze %4 : memref<1x!tpu.dma_semaphore, #tpu.memory_space<semaphore_mem>> -> memref<!tpu.dma_semaphore, #tpu.memory_space<semaphore_mem>>
    tpu.enqueue_dma source(%arg9 : memref<256x64xbf16, #tpu.memory_space<any>>) target(%arg14 : memref<256x64xbf16, #tpu.memory_space<vmem>>) target_semaphore(%5 : memref<!tpu.dma_semaphore, #tpu.memory_space<semaphore_mem>>)
    %c3_i32 = arith.constant 3 : i32
    %6 = tpu.memref_slice %arg16[%c3_i32] : memref<4x!tpu.dma_semaphore, #tpu.memory_space<semaphore_mem>> -> memref<1x!tpu.dma_semaphore, #tpu.memory_space<semaphore_mem>>
    %7 = tpu.memref_squeeze %6 : memref<1x!tpu.dma_semaphore, #tpu.memory_space<semaphore_mem>> -> memref<!tpu.dma_semaphore, #tpu.memory_space<semaphore_mem>>
    tpu.enqueue_dma source(%arg10 : memref<2048x128xbf16, #tpu.memory_space<any>>) target(%arg15 : memref<2048x128xbf16, #tpu.memory_space<vmem>>) target_semaphore(%7 : memref<!tpu.dma_semaphore, #tpu.memory_space<semaphore_mem>>)
    %c0 = arith.constant 0 : index
    %c0_0 = arith.constant 0 : index
    %8 = vector.load %arg0[%c0, %c0_0] : memref<512x128xbf16, #tpu.memory_space<vmem>>, vector<512x128xbf16>
    %c0_1 = arith.constant 0 : index
    %c0_2 = arith.constant 0 : index
    %9 = vector.load %arg1[%c0_1, %c0_2] : memref<128x128xbf16, #tpu.memory_space<vmem>>, vector<128x128xbf16>
    %cst = arith.constant dense<0.000000e+00> : vector<512x128xf32>
    %10 = tpu.matmul %8, %9, %cst {dimension_numbers = #tpu.dot_dimension_numbers<[1], [0], [0], [1], [0, 0, 1, 1], [], []>} : vector<512x128xbf16>, vector<128x128xbf16>, vector<512x128xf32> -> vector<512x128xf32>
    %cst_3 = arith.constant 0.000000e+00 : f32
    %11 = vector.broadcast %cst_3 : f32 to vector<512x128xf32>
    %12 = arith.cmpf ogt, %10, %11 : vector<512x128xf32>
    %cst_4 = arith.constant 2.000000e-01 : f32
    %13 = vector.broadcast %cst_4 : f32 to vector<512x128xf32>
    %14 = arith.mulf %13, %10 : vector<512x128xf32>
    %15 = arith.select %12, %10, %14 : vector<512x128xi1>, vector<512x128xf32>
    %16 = arith.truncf %15 : vector<512x128xf32> to vector<512x128xbf16>
    %c0_i32_5 = arith.constant 0 : i32
    %17 = tpu.memref_slice %arg16[%c0_i32_5] : memref<4x!tpu.dma_semaphore, #tpu.memory_space<semaphore_mem>> -> memref<1x!tpu.dma_semaphore, #tpu.memory_space<semaphore_mem>>
    %18 = tpu.memref_squeeze %17 : memref<1x!tpu.dma_semaphore, #tpu.memory_space<semaphore_mem>> -> memref<!tpu.dma_semaphore, #tpu.memory_space<semaphore_mem>>
    tpu.wait_dma2 semaphore(%18 : memref<!tpu.dma_semaphore, #tpu.memory_space<semaphore_mem>>) src(%arg7 : memref<1024x256xbf16, #tpu.memory_space<any>>) dst(%arg12 : memref<1024x256xbf16, #tpu.memory_space<vmem>>)
    %c0_6 = arith.constant 0 : index
    %c0_7 = arith.constant 0 : index
    %19 = vector.load %arg12[%c0_6, %c0_7] : memref<1024x256xbf16, #tpu.memory_space<vmem>>, vector<1024x256xbf16>
    %20 = vector.extract_strided_slice %16 {offsets = [0, 0], sizes = [256, 128], strides = [1, 1]} : vector<512x128xbf16> to vector<256x128xbf16>
    %cst_8 = arith.constant dense<0.000000e+00> : vector<1024x128xf32>
    %21 = tpu.matmul %19, %20, %cst_8 {dimension_numbers = #tpu.dot_dimension_numbers<[1], [0], [0], [1], [0, 0, 1, 1], [], []>} : vector<1024x256xbf16>, vector<256x128xbf16>, vector<1024x128xf32> -> vector<1024x128xf32>
    %22 = arith.truncf %21 : vector<1024x128xf32> to vector<1024x128xbf16>
    %c0_9 = arith.constant 0 : index
    %c0_10 = arith.constant 0 : index
    %23 = vector.load %arg12[%c0_9, %c0_10] : memref<1024x256xbf16, #tpu.memory_space<vmem>>, vector<1024x256xbf16>
    %24 = vector.extract_strided_slice %16 {offsets = [256, 0], sizes = [256, 128], strides = [1, 1]} : vector<512x128xbf16> to vector<256x128xbf16>
    %cst_11 = arith.constant dense<0.000000e+00> : vector<1024x128xf32>
    %25 = tpu.matmul %23, %24, %cst_11 {dimension_numbers = #tpu.dot_dimension_numbers<[1], [0], [0], [1], [0, 0, 1, 1], [], []>} : vector<1024x256xbf16>, vector<256x128xbf16>, vector<1024x128xf32> -> vector<1024x128xf32>
    %26 = arith.truncf %25 : vector<1024x128xf32> to vector<1024x128xbf16>
    %27 = vector.extract_strided_slice %22 {offsets = [0, 0], sizes = [64, 128], strides = [1, 1]} : vector<1024x128xbf16> to vector<64x128xbf16>
    %28 = vector.extract_strided_slice %26 {offsets = [0, 0], sizes = [64, 128], strides = [1, 1]} : vector<1024x128xbf16> to vector<64x128xbf16>
    %29 = tpu.concatenate %27, %28 in 0 : vector<64x128xbf16>, vector<64x128xbf16> -> vector<128x128xbf16>
    %30 = vector.extract_strided_slice %22 {offsets = [64, 0], sizes = [64, 128], strides = [1, 1]} : vector<1024x128xbf16> to vector<64x128xbf16>
    %31 = vector.extract_strided_slice %26 {offsets = [64, 0], sizes = [64, 128], strides = [1, 1]} : vector<1024x128xbf16> to vector<64x128xbf16>
    %32 = tpu.concatenate %30, %31 in 0 : vector<64x128xbf16>, vector<64x128xbf16> -> vector<128x128xbf16>
    %33 = vector.extract_strided_slice %22 {offsets = [128, 0], sizes = [64, 128], strides = [1, 1]} : vector<1024x128xbf16> to vector<64x128xbf16>
    %34 = vector.extract_strided_slice %26 {offsets = [128, 0], sizes = [64, 128], strides = [1, 1]} : vector<1024x128xbf16> to vector<64x128xbf16>
    %35 = tpu.concatenate %33, %34 in 0 : vector<64x128xbf16>, vector<64x128xbf16> -> vector<128x128xbf16>
    %36 = vector.extract_strided_slice %22 {offsets = [192, 0], sizes = [64, 128], strides = [1, 1]} : vector<1024x128xbf16> to vector<64x128xbf16>
    %37 = vector.extract_strided_slice %26 {offsets = [192, 0], sizes = [64, 128], strides = [1, 1]} : vector<1024x128xbf16> to vector<64x128xbf16>
    %38 = tpu.concatenate %36, %37 in 0 : vector<64x128xbf16>, vector<64x128xbf16> -> vector<128x128xbf16>
    %39 = vector.extract_strided_slice %22 {offsets = [256, 0], sizes = [64, 128], strides = [1, 1]} : vector<1024x128xbf16> to vector<64x128xbf16>
    %40 = vector.extract_strided_slice %26 {offsets = [256, 0], sizes = [64, 128], strides = [1, 1]} : vector<1024x128xbf16> to vector<64x128xbf16>
    %41 = tpu.concatenate %39, %40 in 0 : vector<64x128xbf16>, vector<64x128xbf16> -> vector<128x128xbf16>
    %42 = vector.extract_strided_slice %22 {offsets = [320, 0], sizes = [64, 128], strides = [1, 1]} : vector<1024x128xbf16> to vector<64x128xbf16>
    %43 = vector.extract_strided_slice %26 {offsets = [320, 0], sizes = [64, 128], strides = [1, 1]} : vector<1024x128xbf16> to vector<64x128xbf16>
    %44 = tpu.concatenate %42, %43 in 0 : vector<64x128xbf16>, vector<64x128xbf16> -> vector<128x128xbf16>
    %45 = vector.extract_strided_slice %22 {offsets = [384, 0], sizes = [64, 128], strides = [1, 1]} : vector<1024x128xbf16> to vector<64x128xbf16>
    %46 = vector.extract_strided_slice %26 {offsets = [384, 0], sizes = [64, 128], strides = [1, 1]} : vector<1024x128xbf16> to vector<64x128xbf16>
    %47 = tpu.concatenate %45, %46 in 0 : vector<64x128xbf16>, vector<64x128xbf16> -> vector<128x128xbf16>
    %48 = vector.extract_strided_slice %22 {offsets = [448, 0], sizes = [64, 128], strides = [1, 1]} : vector<1024x128xbf16> to vector<64x128xbf16>
    %49 = vector.extract_strided_slice %26 {offsets = [448, 0], sizes = [64, 128], strides = [1, 1]} : vector<1024x128xbf16> to vector<64x128xbf16>
    %50 = tpu.concatenate %48, %49 in 0 : vector<64x128xbf16>, vector<64x128xbf16> -> vector<128x128xbf16>
    %51 = vector.extract_strided_slice %22 {offsets = [512, 0], sizes = [64, 128], strides = [1, 1]} : vector<1024x128xbf16> to vector<64x128xbf16>
    %52 = vector.extract_strided_slice %26 {offsets = [512, 0], sizes = [64, 128], strides = [1, 1]} : vector<1024x128xbf16> to vector<64x128xbf16>
    %53 = tpu.concatenate %51, %52 in 0 : vector<64x128xbf16>, vector<64x128xbf16> -> vector<128x128xbf16>
    %54 = vector.extract_strided_slice %22 {offsets = [576, 0], sizes = [64, 128], strides = [1, 1]} : vector<1024x128xbf16> to vector<64x128xbf16>
    %55 = vector.extract_strided_slice %26 {offsets = [576, 0], sizes = [64, 128], strides = [1, 1]} : vector<1024x128xbf16> to vector<64x128xbf16>
    %56 = tpu.concatenate %54, %55 in 0 : vector<64x128xbf16>, vector<64x128xbf16> -> vector<128x128xbf16>
    %57 = vector.extract_strided_slice %22 {offsets = [640, 0], sizes = [64, 128], strides = [1, 1]} : vector<1024x128xbf16> to vector<64x128xbf16>
    %58 = vector.extract_strided_slice %26 {offsets = [640, 0], sizes = [64, 128], strides = [1, 1]} : vector<1024x128xbf16> to vector<64x128xbf16>
    %59 = tpu.concatenate %57, %58 in 0 : vector<64x128xbf16>, vector<64x128xbf16> -> vector<128x128xbf16>
    %60 = vector.extract_strided_slice %22 {offsets = [704, 0], sizes = [64, 128], strides = [1, 1]} : vector<1024x128xbf16> to vector<64x128xbf16>
    %61 = vector.extract_strided_slice %26 {offsets = [704, 0], sizes = [64, 128], strides = [1, 1]} : vector<1024x128xbf16> to vector<64x128xbf16>
    %62 = tpu.concatenate %60, %61 in 0 : vector<64x128xbf16>, vector<64x128xbf16> -> vector<128x128xbf16>
    %63 = vector.extract_strided_slice %22 {offsets = [768, 0], sizes = [64, 128], strides = [1, 1]} : vector<1024x128xbf16> to vector<64x128xbf16>
    %64 = vector.extract_strided_slice %26 {offsets = [768, 0], sizes = [64, 128], strides = [1, 1]} : vector<1024x128xbf16> to vector<64x128xbf16>
    %65 = tpu.concatenate %63, %64 in 0 : vector<64x128xbf16>, vector<64x128xbf16> -> vector<128x128xbf16>
    %66 = vector.extract_strided_slice %22 {offsets = [832, 0], sizes = [64, 128], strides = [1, 1]} : vector<1024x128xbf16> to vector<64x128xbf16>
    %67 = vector.extract_strided_slice %26 {offsets = [832, 0], sizes = [64, 128], strides = [1, 1]} : vector<1024x128xbf16> to vector<64x128xbf16>
    %68 = tpu.concatenate %66, %67 in 0 : vector<64x128xbf16>, vector<64x128xbf16> -> vector<128x128xbf16>
    %69 = vector.extract_strided_slice %22 {offsets = [896, 0], sizes = [64, 128], strides = [1, 1]} : vector<1024x128xbf16> to vector<64x128xbf16>
    %70 = vector.extract_strided_slice %26 {offsets = [896, 0], sizes = [64, 128], strides = [1, 1]} : vector<1024x128xbf16> to vector<64x128xbf16>
    %71 = tpu.concatenate %69, %70 in 0 : vector<64x128xbf16>, vector<64x128xbf16> -> vector<128x128xbf16>
    %72 = vector.extract_strided_slice %22 {offsets = [960, 0], sizes = [64, 128], strides = [1, 1]} : vector<1024x128xbf16> to vector<64x128xbf16>
    %73 = vector.extract_strided_slice %26 {offsets = [960, 0], sizes = [64, 128], strides = [1, 1]} : vector<1024x128xbf16> to vector<64x128xbf16>
    %74 = tpu.concatenate %72, %73 in 0 : vector<64x128xbf16>, vector<64x128xbf16> -> vector<128x128xbf16>
    %75 = tpu.concatenate %29, %32, %35, %38, %41, %44, %47, %50, %53, %56, %59, %62, %65, %68, %71, %74 in 1 : vector<128x128xbf16>, vector<128x128xbf16>, vector<128x128xbf16>, vector<128x128xbf16>, vector<128x128xbf16>, vector<128x128xbf16>, vector<128x128xbf16>, vector<128x128xbf16>, vector<128x128xbf16>, vector<128x128xbf16>, vector<128x128xbf16>, vector<128x128xbf16>, vector<128x128xbf16>, vector<128x128xbf16>, vector<128x128xbf16>, vector<128x128xbf16> -> vector<128x2048xbf16>
    %c1_i32_12 = arith.constant 1 : i32
    %76 = tpu.memref_slice %arg16[%c1_i32_12] : memref<4x!tpu.dma_semaphore, #tpu.memory_space<semaphore_mem>> -> memref<1x!tpu.dma_semaphore, #tpu.memory_space<semaphore_mem>>
    %77 = tpu.memref_squeeze %76 : memref<1x!tpu.dma_semaphore, #tpu.memory_space<semaphore_mem>> -> memref<!tpu.dma_semaphore, #tpu.memory_space<semaphore_mem>>
    tpu.wait_dma2 semaphore(%77 : memref<!tpu.dma_semaphore, #tpu.memory_space<semaphore_mem>>) src(%arg8 : memref<2048x128xbf16, #tpu.memory_space<any>>) dst(%arg13 : memref<2048x128xbf16, #tpu.memory_space<vmem>>)
    %c0_13 = arith.constant 0 : index
    %c0_14 = arith.constant 0 : index
    %78 = vector.load %arg13[%c0_13, %c0_14] : memref<2048x128xbf16, #tpu.memory_space<vmem>>, vector<2048x128xbf16>
    %cst_15 = arith.constant dense<0.000000e+00> : vector<128x128xf32>
    %79 = tpu.matmul %75, %78, %cst_15 {dimension_numbers = #tpu.dot_dimension_numbers<[1], [0], [0], [1], [0, 0, 1, 1], [], []>} : vector<128x2048xbf16>, vector<2048x128xbf16>, vector<128x128xf32> -> vector<128x128xf32>
    %c0_16 = arith.constant 0 : index
    %c0_17 = arith.constant 0 : index
    %80 = vector.load %arg2[%c0_16, %c0_17] : memref<1x128xf32, #tpu.memory_space<vmem>>, vector<1x128xf32>
    %c0_18 = arith.constant 0 : index
    %c0_19 = arith.constant 0 : index
    %81 = vector.load %arg3[%c0_18, %c0_19] : memref<1x128xf32, #tpu.memory_space<vmem>>, vector<1x128xf32>
    %cst_20 = arith.constant dense<0.000000e+00> : vector<128xf32>
    %82 = vector.multi_reduction <add>, %79, %cst_20 [0] : vector<128x128xf32> to vector<128xf32>
    %83 = vector.shape_cast %82 : vector<128xf32> to vector<1x128xf32>
    %cst_21 = arith.constant 1.280000e+02 : f32
    %84 = vector.broadcast %cst_21 : f32 to vector<1x128xf32>
    %85 = arith.divf %83, %84 : vector<1x128xf32>
    %86 = vector.broadcast %85 : vector<1x128xf32> to vector<128x128xf32>
    %87 = arith.subf %79, %86 : vector<128x128xf32>
    %88 = arith.mulf %87, %87 : vector<128x128xf32>
    %cst_22 = arith.constant dense<0.000000e+00> : vector<128xf32>
    %89 = vector.multi_reduction <add>, %88, %cst_22 [0] : vector<128x128xf32> to vector<128xf32>
    %90 = vector.shape_cast %89 : vector<128xf32> to vector<1x128xf32>
    %cst_23 = arith.constant 1.280000e+02 : f32
    %91 = vector.broadcast %cst_23 : f32 to vector<1x128xf32>
    %92 = arith.divf %90, %91 : vector<1x128xf32>
    %93 = vector.broadcast %85 : vector<1x128xf32> to vector<128x128xf32>
    %94 = arith.subf %79, %93 : vector<128x128xf32>
    %cst_24 = arith.constant 9.99999974E-6 : f32
    %95 = vector.broadcast %cst_24 : f32 to vector<1x128xf32>
    %96 = arith.addf %92, %95 : vector<1x128xf32>
    %97 = math.rsqrt %96 : vector<1x128xf32>
    %98 = vector.broadcast %97 : vector<1x128xf32> to vector<128x128xf32>
    %99 = arith.mulf %94, %98 : vector<128x128xf32>
    %100 = vector.broadcast %80 : vector<1x128xf32> to vector<128x128xf32>
    %101 = arith.mulf %99, %100 : vector<128x128xf32>
    %102 = vector.broadcast %81 : vector<1x128xf32> to vector<128x128xf32>
    %103 = arith.addf %101, %102 : vector<128x128xf32>
    %cst_25 = arith.constant 0.000000e+00 : f32
    %104 = vector.broadcast %cst_25 : f32 to vector<128x128xf32>
    %105 = arith.cmpf ogt, %103, %104 : vector<128x128xf32>
    %cst_26 = arith.constant 2.000000e-01 : f32
    %106 = vector.broadcast %cst_26 : f32 to vector<128x128xf32>
    %107 = arith.mulf %106, %103 : vector<128x128xf32>
    %108 = arith.select %105, %103, %107 : vector<128x128xi1>, vector<128x128xf32>
    %109 = arith.truncf %108 : vector<128x128xf32> to vector<128x128xbf16>
    %c2_i32_27 = arith.constant 2 : i32
    %110 = tpu.memref_slice %arg16[%c2_i32_27] : memref<4x!tpu.dma_semaphore, #tpu.memory_space<semaphore_mem>> -> memref<1x!tpu.dma_semaphore, #tpu.memory_space<semaphore_mem>>
    %111 = tpu.memref_squeeze %110 : memref<1x!tpu.dma_semaphore, #tpu.memory_space<semaphore_mem>> -> memref<!tpu.dma_semaphore, #tpu.memory_space<semaphore_mem>>
    tpu.wait_dma2 semaphore(%111 : memref<!tpu.dma_semaphore, #tpu.memory_space<semaphore_mem>>) src(%arg9 : memref<256x64xbf16, #tpu.memory_space<any>>) dst(%arg14 : memref<256x64xbf16, #tpu.memory_space<vmem>>)
    %c0_28 = arith.constant 0 : index
    %c0_29 = arith.constant 0 : index
    %112 = vector.load %arg14[%c0_28, %c0_29] : memref<256x64xbf16, #tpu.memory_space<vmem>>, vector<256x64xbf16>
    %113 = vector.extract_strided_slice %109 {offsets = [0, 0], sizes = [64, 128], strides = [1, 1]} : vector<128x128xbf16> to vector<64x128xbf16>
    %cst_30 = arith.constant dense<0.000000e+00> : vector<256x128xf32>
    %114 = tpu.matmul %112, %113, %cst_30 {dimension_numbers = #tpu.dot_dimension_numbers<[1], [0], [0], [1], [0, 0, 1, 1], [], []>} : vector<256x64xbf16>, vector<64x128xbf16>, vector<256x128xf32> -> vector<256x128xf32>
    %115 = arith.truncf %114 : vector<256x128xf32> to vector<256x128xbf16>
    %c0_31 = arith.constant 0 : index
    %c0_32 = arith.constant 0 : index
    %116 = vector.load %arg14[%c0_31, %c0_32] : memref<256x64xbf16, #tpu.memory_space<vmem>>, vector<256x64xbf16>
    %117 = vector.extract_strided_slice %109 {offsets = [64, 0], sizes = [64, 128], strides = [1, 1]} : vector<128x128xbf16> to vector<64x128xbf16>
    %cst_33 = arith.constant dense<0.000000e+00> : vector<256x128xf32>
    %118 = tpu.matmul %116, %117, %cst_33 {dimension_numbers = #tpu.dot_dimension_numbers<[1], [0], [0], [1], [0, 0, 1, 1], [], []>} : vector<256x64xbf16>, vector<64x128xbf16>, vector<256x128xf32> -> vector<256x128xf32>
    %119 = arith.truncf %118 : vector<256x128xf32> to vector<256x128xbf16>
    %120 = vector.extract_strided_slice %115 {offsets = [0, 0], sizes = [16, 128], strides = [1, 1]} : vector<256x128xbf16> to vector<16x128xbf16>
    %121 = vector.extract_strided_slice %119 {offsets = [0, 0], sizes = [16, 128], strides = [1, 1]} : vector<256x128xbf16> to vector<16x128xbf16>
    %122 = tpu.concatenate %120, %121 in 0 : vector<16x128xbf16>, vector<16x128xbf16> -> vector<32x128xbf16>
    %123 = vector.extract_strided_slice %115 {offsets = [16, 0], sizes = [16, 128], strides = [1, 1]} : vector<256x128xbf16> to vector<16x128xbf16>
    %124 = vector.extract_strided_slice %119 {offsets = [16, 0], sizes = [16, 128], strides = [1, 1]} : vector<256x128xbf16> to vector<16x128xbf16>
    %125 = tpu.concatenate %123, %124 in 0 : vector<16x128xbf16>, vector<16x128xbf16> -> vector<32x128xbf16>
    %126 = vector.extract_strided_slice %115 {offsets = [32, 0], sizes = [16, 128], strides = [1, 1]} : vector<256x128xbf16> to vector<16x128xbf16>
    %127 = vector.extract_strided_slice %119 {offsets = [32, 0], sizes = [16, 128], strides = [1, 1]} : vector<256x128xbf16> to vector<16x128xbf16>
    %128 = tpu.concatenate %126, %127 in 0 : vector<16x128xbf16>, vector<16x128xbf16> -> vector<32x128xbf16>
    %129 = vector.extract_strided_slice %115 {offsets = [48, 0], sizes = [16, 128], strides = [1, 1]} : vector<256x128xbf16> to vector<16x128xbf16>
    %130 = vector.extract_strided_slice %119 {offsets = [48, 0], sizes = [16, 128], strides = [1, 1]} : vector<256x128xbf16> to vector<16x128xbf16>
    %131 = tpu.concatenate %129, %130 in 0 : vector<16x128xbf16>, vector<16x128xbf16> -> vector<32x128xbf16>
    %132 = vector.extract_strided_slice %115 {offsets = [64, 0], sizes = [16, 128], strides = [1, 1]} : vector<256x128xbf16> to vector<16x128xbf16>
    %133 = vector.extract_strided_slice %119 {offsets = [64, 0], sizes = [16, 128], strides = [1, 1]} : vector<256x128xbf16> to vector<16x128xbf16>
    %134 = tpu.concatenate %132, %133 in 0 : vector<16x128xbf16>, vector<16x128xbf16> -> vector<32x128xbf16>
    %135 = vector.extract_strided_slice %115 {offsets = [80, 0], sizes = [16, 128], strides = [1, 1]} : vector<256x128xbf16> to vector<16x128xbf16>
    %136 = vector.extract_strided_slice %119 {offsets = [80, 0], sizes = [16, 128], strides = [1, 1]} : vector<256x128xbf16> to vector<16x128xbf16>
    %137 = tpu.concatenate %135, %136 in 0 : vector<16x128xbf16>, vector<16x128xbf16> -> vector<32x128xbf16>
    %138 = vector.extract_strided_slice %115 {offsets = [96, 0], sizes = [16, 128], strides = [1, 1]} : vector<256x128xbf16> to vector<16x128xbf16>
    %139 = vector.extract_strided_slice %119 {offsets = [96, 0], sizes = [16, 128], strides = [1, 1]} : vector<256x128xbf16> to vector<16x128xbf16>
    %140 = tpu.concatenate %138, %139 in 0 : vector<16x128xbf16>, vector<16x128xbf16> -> vector<32x128xbf16>
    %141 = vector.extract_strided_slice %115 {offsets = [112, 0], sizes = [16, 128], strides = [1, 1]} : vector<256x128xbf16> to vector<16x128xbf16>
    %142 = vector.extract_strided_slice %119 {offsets = [112, 0], sizes = [16, 128], strides = [1, 1]} : vector<256x128xbf16> to vector<16x128xbf16>
    %143 = tpu.concatenate %141, %142 in 0 : vector<16x128xbf16>, vector<16x128xbf16> -> vector<32x128xbf16>
    %144 = vector.extract_strided_slice %115 {offsets = [128, 0], sizes = [16, 128], strides = [1, 1]} : vector<256x128xbf16> to vector<16x128xbf16>
    %145 = vector.extract_strided_slice %119 {offsets = [128, 0], sizes = [16, 128], strides = [1, 1]} : vector<256x128xbf16> to vector<16x128xbf16>
    %146 = tpu.concatenate %144, %145 in 0 : vector<16x128xbf16>, vector<16x128xbf16> -> vector<32x128xbf16>
    %147 = vector.extract_strided_slice %115 {offsets = [144, 0], sizes = [16, 128], strides = [1, 1]} : vector<256x128xbf16> to vector<16x128xbf16>
    %148 = vector.extract_strided_slice %119 {offsets = [144, 0], sizes = [16, 128], strides = [1, 1]} : vector<256x128xbf16> to vector<16x128xbf16>
    %149 = tpu.concatenate %147, %148 in 0 : vector<16x128xbf16>, vector<16x128xbf16> -> vector<32x128xbf16>
    %150 = vector.extract_strided_slice %115 {offsets = [160, 0], sizes = [16, 128], strides = [1, 1]} : vector<256x128xbf16> to vector<16x128xbf16>
    %151 = vector.extract_strided_slice %119 {offsets = [160, 0], sizes = [16, 128], strides = [1, 1]} : vector<256x128xbf16> to vector<16x128xbf16>
    %152 = tpu.concatenate %150, %151 in 0 : vector<16x128xbf16>, vector<16x128xbf16> -> vector<32x128xbf16>
    %153 = vector.extract_strided_slice %115 {offsets = [176, 0], sizes = [16, 128], strides = [1, 1]} : vector<256x128xbf16> to vector<16x128xbf16>
    %154 = vector.extract_strided_slice %119 {offsets = [176, 0], sizes = [16, 128], strides = [1, 1]} : vector<256x128xbf16> to vector<16x128xbf16>
    %155 = tpu.concatenate %153, %154 in 0 : vector<16x128xbf16>, vector<16x128xbf16> -> vector<32x128xbf16>
    %156 = vector.extract_strided_slice %115 {offsets = [192, 0], sizes = [16, 128], strides = [1, 1]} : vector<256x128xbf16> to vector<16x128xbf16>
    %157 = vector.extract_strided_slice %119 {offsets = [192, 0], sizes = [16, 128], strides = [1, 1]} : vector<256x128xbf16> to vector<16x128xbf16>
    %158 = tpu.concatenate %156, %157 in 0 : vector<16x128xbf16>, vector<16x128xbf16> -> vector<32x128xbf16>
    %159 = vector.extract_strided_slice %115 {offsets = [208, 0], sizes = [16, 128], strides = [1, 1]} : vector<256x128xbf16> to vector<16x128xbf16>
    %160 = vector.extract_strided_slice %119 {offsets = [208, 0], sizes = [16, 128], strides = [1, 1]} : vector<256x128xbf16> to vector<16x128xbf16>
    %161 = tpu.concatenate %159, %160 in 0 : vector<16x128xbf16>, vector<16x128xbf16> -> vector<32x128xbf16>
    %162 = vector.extract_strided_slice %115 {offsets = [224, 0], sizes = [16, 128], strides = [1, 1]} : vector<256x128xbf16> to vector<16x128xbf16>
    %163 = vector.extract_strided_slice %119 {offsets = [224, 0], sizes = [16, 128], strides = [1, 1]} : vector<256x128xbf16> to vector<16x128xbf16>
    %164 = tpu.concatenate %162, %163 in 0 : vector<16x128xbf16>, vector<16x128xbf16> -> vector<32x128xbf16>
    %165 = vector.extract_strided_slice %115 {offsets = [240, 0], sizes = [16, 128], strides = [1, 1]} : vector<256x128xbf16> to vector<16x128xbf16>
    %166 = vector.extract_strided_slice %119 {offsets = [240, 0], sizes = [16, 128], strides = [1, 1]} : vector<256x128xbf16> to vector<16x128xbf16>
    %167 = tpu.concatenate %165, %166 in 0 : vector<16x128xbf16>, vector<16x128xbf16> -> vector<32x128xbf16>
    %168 = tpu.concatenate %122, %125, %128, %131, %134, %137, %140, %143, %146, %149, %152, %155, %158, %161, %164, %167 in 1 : vector<32x128xbf16>, vector<32x128xbf16>, vector<32x128xbf16>, vector<32x128xbf16>, vector<32x128xbf16>, vector<32x128xbf16>, vector<32x128xbf16>, vector<32x128xbf16>, vector<32x128xbf16>, vector<32x128xbf16>, vector<32x128xbf16>, vector<32x128xbf16>, vector<32x128xbf16>, vector<32x128xbf16>, vector<32x128xbf16>, vector<32x128xbf16> -> vector<32x2048xbf16>
    %c3_i32_34 = arith.constant 3 : i32
    %169 = tpu.memref_slice %arg16[%c3_i32_34] : memref<4x!tpu.dma_semaphore, #tpu.memory_space<semaphore_mem>> -> memref<1x!tpu.dma_semaphore, #tpu.memory_space<semaphore_mem>>
    %170 = tpu.memref_squeeze %169 : memref<1x!tpu.dma_semaphore, #tpu.memory_space<semaphore_mem>> -> memref<!tpu.dma_semaphore, #tpu.memory_space<semaphore_mem>>
    tpu.wait_dma2 semaphore(%170 : memref<!tpu.dma_semaphore, #tpu.memory_space<semaphore_mem>>) src(%arg10 : memref<2048x128xbf16, #tpu.memory_space<any>>) dst(%arg15 : memref<2048x128xbf16, #tpu.memory_space<vmem>>)
    %c0_35 = arith.constant 0 : index
    %c0_36 = arith.constant 0 : index
    %171 = vector.load %arg15[%c0_35, %c0_36] : memref<2048x128xbf16, #tpu.memory_space<vmem>>, vector<2048x128xbf16>
    %cst_37 = arith.constant dense<0.000000e+00> : vector<32x128xf32>
    %172 = tpu.matmul %168, %171, %cst_37 {dimension_numbers = #tpu.dot_dimension_numbers<[1], [0], [0], [1], [0, 0, 1, 1], [], []>} : vector<32x2048xbf16>, vector<2048x128xbf16>, vector<32x128xf32> -> vector<32x128xf32>
    %c0_38 = arith.constant 0 : index
    %c0_39 = arith.constant 0 : index
    %173 = vector.load %arg4[%c0_38, %c0_39] : memref<1x128xf32, #tpu.memory_space<vmem>>, vector<1x128xf32>
    %c0_40 = arith.constant 0 : index
    %c0_41 = arith.constant 0 : index
    %174 = vector.load %arg5[%c0_40, %c0_41] : memref<1x128xf32, #tpu.memory_space<vmem>>, vector<1x128xf32>
    %cst_42 = arith.constant dense<0.000000e+00> : vector<128xf32>
    %175 = vector.multi_reduction <add>, %172, %cst_42 [0] : vector<32x128xf32> to vector<128xf32>
    %176 = vector.shape_cast %175 : vector<128xf32> to vector<1x128xf32>
    %cst_43 = arith.constant 3.200000e+01 : f32
    %177 = vector.broadcast %cst_43 : f32 to vector<1x128xf32>
    %178 = arith.divf %176, %177 : vector<1x128xf32>
    %179 = vector.broadcast %178 : vector<1x128xf32> to vector<32x128xf32>
    %180 = arith.subf %172, %179 : vector<32x128xf32>
    %181 = arith.mulf %180, %180 : vector<32x128xf32>
    %cst_44 = arith.constant dense<0.000000e+00> : vector<128xf32>
    %182 = vector.multi_reduction <add>, %181, %cst_44 [0] : vector<32x128xf32> to vector<128xf32>
    %183 = vector.shape_cast %182 : vector<128xf32> to vector<1x128xf32>
    %cst_45 = arith.constant 3.200000e+01 : f32
    %184 = vector.broadcast %cst_45 : f32 to vector<1x128xf32>
    %185 = arith.divf %183, %184 : vector<1x128xf32>
    %186 = vector.broadcast %178 : vector<1x128xf32> to vector<32x128xf32>
    %187 = arith.subf %172, %186 : vector<32x128xf32>
    %cst_46 = arith.constant 9.99999974E-6 : f32
    %188 = vector.broadcast %cst_46 : f32 to vector<1x128xf32>
    %189 = arith.addf %185, %188 : vector<1x128xf32>
    %190 = math.rsqrt %189 : vector<1x128xf32>
    %191 = vector.broadcast %190 : vector<1x128xf32> to vector<32x128xf32>
    %192 = arith.mulf %187, %191 : vector<32x128xf32>
    %193 = vector.broadcast %173 : vector<1x128xf32> to vector<32x128xf32>
    %194 = arith.mulf %192, %193 : vector<32x128xf32>
    %195 = vector.broadcast %174 : vector<1x128xf32> to vector<32x128xf32>
    %196 = arith.addf %194, %195 : vector<32x128xf32>
    %cst_47 = arith.constant 0.000000e+00 : f32
    %197 = vector.broadcast %cst_47 : f32 to vector<32x128xf32>
    %198 = arith.cmpf ogt, %196, %197 : vector<32x128xf32>
    %cst_48 = arith.constant 2.000000e-01 : f32
    %199 = vector.broadcast %cst_48 : f32 to vector<32x128xf32>
    %200 = arith.mulf %199, %196 : vector<32x128xf32>
    %201 = arith.select %198, %196, %200 : vector<32x128xi1>, vector<32x128xf32>
    %202 = vector.extract_strided_slice %201 {offsets = [0, 0], sizes = [16, 128], strides = [1, 1]} : vector<32x128xf32> to vector<16x128xf32>
    %c0_49 = arith.constant 0 : index
    %c0_50 = arith.constant 0 : index
    %203 = vector.load %arg6[%c0_49, %c0_50] : memref<16x128xf32, #tpu.memory_space<vmem>>, vector<16x128xf32>
    %204 = arith.mulf %202, %203 : vector<16x128xf32>
    %cst_51 = arith.constant dense<0.000000e+00> : vector<128xf32>
    %205 = vector.multi_reduction <add>, %204, %cst_51 [0] : vector<16x128xf32> to vector<128xf32>
    %206 = vector.shape_cast %205 : vector<128xf32> to vector<1x128xf32>
    %207 = vector.extract_strided_slice %201 {offsets = [16, 0], sizes = [16, 128], strides = [1, 1]} : vector<32x128xf32> to vector<16x128xf32>
    %c0_52 = arith.constant 0 : index
    %c0_53 = arith.constant 0 : index
    %208 = vector.load %arg6[%c0_52, %c0_53] : memref<16x128xf32, #tpu.memory_space<vmem>>, vector<16x128xf32>
    %209 = arith.mulf %207, %208 : vector<16x128xf32>
    %cst_54 = arith.constant dense<0.000000e+00> : vector<128xf32>
    %210 = vector.multi_reduction <add>, %209, %cst_54 [0] : vector<16x128xf32> to vector<128xf32>
    %211 = vector.shape_cast %210 : vector<128xf32> to vector<1x128xf32>
    %212 = tpu.concatenate %206, %211 in 0 : vector<1x128xf32>, vector<1x128xf32> -> vector<2x128xf32>
    %cst_55 = arith.constant dense<0.000000e+00> : vector<2xf32>
    %213 = vector.multi_reduction <add>, %212, %cst_55 [1] : vector<2x128xf32> to vector<2xf32>
    %214 = vector.shape_cast %213 : vector<2xf32> to vector<2x1xf32>
    %c0_56 = arith.constant 0 : index
    %c0_57 = arith.constant 0 : index
    %215 = vector.load %arg11[%c0_56, %c0_57] : memref<2x1xf32, #tpu.memory_space<vmem>>, vector<2x1xf32>
    tpu.vector_store %arg11[%c0_56, %c0_57], %214 {strides = array<i32>} : memref<2x1xf32, #tpu.memory_space<vmem>>, vector<2x1xf32>,
    return
  }
}

</mosaic_0001>

<bundles_post_ra>
// kernel: discriminator_forward.1
= control target key start
LH: loop header
LB: loop body
LE: loop exit
PB: predicated region body
PF: predicated region fallthrough
CT: control target
= control target key end

     0   :  { %s11883_s0 = inlined_call_operand.vmem [shape: bf16[512,128], index: 0, kind: input, shape index: {}]   ;;  %s11884_s1 = inlined_call_operand.vmem [shape: bf16[128,128], index: 1, kind: input, shape index: {}]   ;;  %s11885_s2 = inlined_call_operand.vmem [shape: f32[1,128], index: 2, kind: input, shape index: {}]   ;;  %s11886_s3 = inlined_call_operand.vmem [shape: f32[1,128], index: 3, kind: input, shape index: {}]   ;;  %s11887_s4 = inlined_call_operand.vmem [shape: f32[1,128], index: 4, kind: input, shape index: {}]   ;;  %s11888_s5 = inlined_call_operand.vmem [shape: f32[1,128], index: 5, kind: input, shape index: {}]   ;;  %s11889_s6 = inlined_call_operand.vmem [shape: f32[16,128], index: 6, kind: input, shape index: {}]   ;;  %s11890_s7 = inlined_call_operand.vmem [shape: bf16[1024,256], index: 7, kind: input, shape index: {}]   ;;  %s11891_s8 = inlined_call_operand.vmem [shape: bf16[2048,128], index: 8, kind: input, shape index: {}]   ;;  %s11892_s9 = inlined_call_operand.vmem [shape: bf16[256,64], index: 9, kind: input, shape index: {}]   ;;  %s11893_s10 = inlined_call_operand.vmem [shape: bf16[2048,128], index: 10, kind: input, shape index: {}]   ;;  %s11894_s11 = inlined_call_operand.vmem [shape: f32[2,1], index: 11, kind: output, shape index: {}]  }
   0x1   :  { %v48_v0 = vld [vmem:[%s11890_s7] sm:$0xf]  ;;  %v50_v1 = vld [vmem:[%s11890_s7 + $0x8] sm:$0xf]  ;;  %v52_v2 = vld [vmem:[%s11890_s7 + $0x4] sm:$0xf] }
   0x2   :  { %49 = vst [vmem:[#allocation2] sm:$0xf] %v48_v0  ;;  %51 = vst [vmem:[#allocation2 + $0x4] sm:$0xf] %v50_v1  ;;  %v54_v3 = vld [vmem:[%s11890_s7 + $0xc] sm:$0xff]   ;;  %v62_v6 = vld [vmem:[%s11890_s7 + $0x1c] sm:$0xff]  }
   0x3   :  { %53 = vst [vmem:[#allocation2 + $0x8] sm:$0xf] %v52_v2  ;;  %v58_v4 = vld [vmem:[%s11890_s7 + $0x18] sm:$0xf]  ;;  %v60_v5 = vld [vmem:[%s11890_s7 + $0x14] sm:$0xf] }
   0x4   :  { %55 = vst [vmem:[#allocation2 + $0xc] sm:$0xff] %v54_v3   ;;  %59 = vst [vmem:[#allocation2 + $0x14] sm:$0xf] %v58_v4  ;;  %v66_v7 = vld [vmem:[%s11890_s7 + $0x28] sm:$0xf]  ;;  %v70_v9 = vld [vmem:[%s11890_s7 + $0x2c] sm:$0xff]  }
   0x5   :  { %61 = vst [vmem:[#allocation2 + $0x18] sm:$0xf] %v60_v5  ;;  %v68_v8 = vld [vmem:[%s11890_s7 + $0x24] sm:$0xf]  ;;  %63 = vst [vmem:[#allocation2 + $0x1c] sm:$0xff] %v62_v6   ;;  %v78_v12 = vld [vmem:[%s11890_s7 + $0x3c] sm:$0xff]  }
   0x6   :  { %67 = vst [vmem:[#allocation2 + $0x24] sm:$0xf] %v66_v7  ;;  %69 = vst [vmem:[#allocation2 + $0x28] sm:$0xf] %v68_v8  ;;  %v74_v10 = vld [vmem:[%s11890_s7 + $0x38] sm:$0xf] }
   0x7   :  { %v76_v11 = vld [vmem:[%s11890_s7 + $0x34] sm:$0xf]  ;;  %71 = vst [vmem:[#allocation2 + $0x2c] sm:$0xff] %v70_v9   ;;  %75 = vst [vmem:[#allocation2 + $0x34] sm:$0xf] %v74_v10  ;;  %v86_v15 = vld [vmem:[%s11890_s7 + $0x4c] sm:$0xff]  }
   0x8   :  { %77 = vst [vmem:[#allocation2 + $0x38] sm:$0xf] %v76_v11  ;;  %v82_v13 = vld [vmem:[%s11890_s7 + $0x48] sm:$0xf]  ;;  %v84_v14 = vld [vmem:[%s11890_s7 + $0x44] sm:$0xf] }
   0x9   :  { %79 = vst [vmem:[#allocation2 + $0x3c] sm:$0xff] %v78_v12   ;;  %83 = vst [vmem:[#allocation2 + $0x44] sm:$0xf] %v82_v13  ;;  %v90_v16 = vld [vmem:[%s11890_s7 + $0x58] sm:$0xf]  ;;  %v94_v18 = vld [vmem:[%s11890_s7 + $0x5c] sm:$0xff]  }
   0xa   :  { %85 = vst [vmem:[#allocation2 + $0x48] sm:$0xf] %v84_v14  ;;  %v92_v17 = vld [vmem:[%s11890_s7 + $0x54] sm:$0xf]  ;;  %87 = vst [vmem:[#allocation2 + $0x4c] sm:$0xff] %v86_v15   ;;  %v102_v21 = vld [vmem:[%s11890_s7 + $0x6c] sm:$0xff]  }
   0xb   :  { %91 = vst [vmem:[#allocation2 + $0x54] sm:$0xf] %v90_v16  ;;  %93 = vst [vmem:[#allocation2 + $0x58] sm:$0xf] %v92_v17  ;;  %v98_v19 = vld [vmem:[%s11890_s7 + $0x68] sm:$0xf] }
   0xc   :  { %v100_v20 = vld [vmem:[%s11890_s7 + $0x64] sm:$0xf]  ;;  %95 = vst [vmem:[#allocation2 + $0x5c] sm:$0xff] %v94_v18   ;;  %99 = vst [vmem:[#allocation2 + $0x64] sm:$0xf] %v98_v19  ;;  %v110_v24 = vld [vmem:[%s11890_s7 + $0x7c] sm:$0xff]  }
   0xd   :  { %101 = vst [vmem:[#allocation2 + $0x68] sm:$0xf] %v100_v20  ;;  %v106_v22 = vld [vmem:[%s11890_s7 + $0x78] sm:$0xf]  ;;  %v108_v23 = vld [vmem:[%s11890_s7 + $0x74] sm:$0xf] }
   0xe   :  { %103 = vst [vmem:[#allocation2 + $0x6c] sm:$0xff] %v102_v21   ;;  %107 = vst [vmem:[#allocation2 + $0x74] sm:$0xf] %v106_v22  ;;  %v114_v25 = vld [vmem:[%s11890_s7 + $0x88] sm:$0xf]  ;;  %v118_v27 = vld [vmem:[%s11890_s7 + $0x8c] sm:$0xff]  }
   0xf   :  { %109 = vst [vmem:[#allocation2 + $0x78] sm:$0xf] %v108_v23  ;;  %v116_v26 = vld [vmem:[%s11890_s7 + $0x84] sm:$0xf]  ;;  %111 = vst [vmem:[#allocation2 + $0x7c] sm:$0xff] %v110_v24   ;;  %v126_v30 = vld [vmem:[%s11890_s7 + $0x9c] sm:$0xff]  }
  0x10   :  { %115 = vst [vmem:[#allocation2 + $0x84] sm:$0xf] %v114_v25  ;;  %117 = vst [vmem:[#allocation2 + $0x88] sm:$0xf] %v116_v26  ;;  %v122_v28 = vld [vmem:[%s11890_s7 + $0x98] sm:$0xf] }
  0x11   :  { %v124_v29 = vld [vmem:[%s11890_s7 + $0x94] sm:$0xf]  ;;  %119 = vst [vmem:[#allocation2 + $0x8c] sm:$0xff] %v118_v27   ;;  %123 = vst [vmem:[#allocation2 + $0x94] sm:$0xf] %v122_v28  ;;  %v134_v33 = vld [vmem:[%s11890_s7 + $0xac] sm:$0xff]  }
  0x12   :  { %125 = vst [vmem:[#allocation2 + $0x98] sm:$0xf] %v124_v29  ;;  %v130_v31 = vld [vmem:[%s11890_s7 + $0xa8] sm:$0xf]  ;;  %v132_v32 = vld [vmem:[%s11890_s7 + $0xa4] sm:$0xf] }
  0x13   :  { %127 = vst [vmem:[#allocation2 + $0x9c] sm:$0xff] %v126_v30   ;;  %131 = vst [vmem:[#allocation2 + $0xa4] sm:$0xf] %v130_v31  ;;  %v138_v34 = vld [vmem:[%s11890_s7 + $0xb8] sm:$0xf]  ;;  %v142_v36 = vld [vmem:[%s11890_s7 + $0xbc] sm:$0xff]  }
  0x14   :  { %133 = vst [vmem:[#allocation2 + $0xa8] sm:$0xf] %v132_v32  ;;  %v140_v35 = vld [vmem:[%s11890_s7 + $0xb4] sm:$0xf]  ;;  %135 = vst [vmem:[#allocation2 + $0xac] sm:$0xff] %v134_v33   ;;  %v150_v39 = vld [vmem:[%s11890_s7 + $0xcc] sm:$0xff]  }
  0x15   :  { %139 = vst [vmem:[#allocation2 + $0xb4] sm:$0xf] %v138_v34  ;;  %141 = vst [vmem:[#allocation2 + $0xb8] sm:$0xf] %v140_v35  ;;  %v146_v37 = vld [vmem:[%s11890_s7 + $0xc8] sm:$0xf] }
  0x16   :  { %v148_v38 = vld [vmem:[%s11890_s7 + $0xc4] sm:$0xf]  ;;  %143 = vst [vmem:[#allocation2 + $0xbc] sm:$0xff] %v142_v36   ;;  %147 = vst [vmem:[#allocation2 + $0xc4] sm:$0xf] %v146_v37  ;;  %v158_v42 = vld [vmem:[%s11890_s7 + $0xdc] sm:$0xff]  }
  0x17   :  { %149 = vst [vmem:[#allocation2 + $0xc8] sm:$0xf] %v148_v38  ;;  %v154_v40 = vld [vmem:[%s11890_s7 + $0xd8] sm:$0xf]  ;;  %v156_v41 = vld [vmem:[%s11890_s7 + $0xd4] sm:$0xf] }
  0x18   :  { %151 = vst [vmem:[#allocation2 + $0xcc] sm:$0xff] %v150_v39   ;;  %155 = vst [vmem:[#allocation2 + $0xd4] sm:$0xf] %v154_v40  ;;  %v162_v43 = vld [vmem:[%s11890_s7 + $0xe8] sm:$0xf]  ;;  %v166_v45 = vld [vmem:[%s11890_s7 + $0xec] sm:$0xff]  }
  0x19   :  { %157 = vst [vmem:[#allocation2 + $0xd8] sm:$0xf] %v156_v41  ;;  %v164_v44 = vld [vmem:[%s11890_s7 + $0xe4] sm:$0xf]  ;;  %159 = vst [vmem:[#allocation2 + $0xdc] sm:$0xff] %v158_v42   ;;  %v174_v48 = vld [vmem:[%s11890_s7 + $0xfc] sm:$0xff]  }
  0x1a   :  { %163 = vst [vmem:[#allocation2 + $0xe4] sm:$0xf] %v162_v43  ;;  %165 = vst [vmem:[#allocation2 + $0xe8] sm:$0xf] %v164_v44  ;;  %v170_v46 = vld [vmem:[%s11890_s7 + $0xf8] sm:$0xf] }
  0x1b   :  { %v172_v47 = vld [vmem:[%s11890_s7 + $0xf4] sm:$0xf]  ;;  %167 = vst [vmem:[#allocation2 + $0xec] sm:$0xff] %v166_v45   ;;  %171 = vst [vmem:[#allocation2 + $0xf4] sm:$0xf] %v170_v46  ;;  %v182_v51 = vld [vmem:[%s11890_s7 + $0x10c] sm:$0xff]  }
  0x1c   :  { %173 = vst [vmem:[#allocation2 + $0xf8] sm:$0xf] %v172_v47  ;;  %v178_v49 = vld [vmem:[%s11890_s7 + $0x108] sm:$0xf]  ;;  %v180_v50 = vld [vmem:[%s11890_s7 + $0x104] sm:$0xf] }
  0x1d   :  { %175 = vst [vmem:[#allocation2 + $0xfc] sm:$0xff] %v174_v48   ;;  %179 = vst [vmem:[#allocation2 + $0x104] sm:$0xf] %v178_v49  ;;  %v186_v52 = vld [vmem:[%s11890_s7 + $0x118] sm:$0xf]  ;;  %v190_v54 = vld [vmem:[%s11890_s7 + $0x11c] sm:$0xff]  }
  0x1e   :  { %181 = vst [vmem:[#allocation2 + $0x108] sm:$0xf] %v180_v50  ;;  %v188_v53 = vld [vmem:[%s11890_s7 + $0x114] sm:$0xf]  ;;  %183 = vst [vmem:[#allocation2 + $0x10c] sm:$0xff] %v182_v51   ;;  %v198_v57 = vld [vmem:[%s11890_s7 + $0x12c] sm:$0xff]  }
  0x1f   :  { %187 = vst [vmem:[#allocation2 + $0x114] sm:$0xf] %v186_v52  ;;  %189 = vst [vmem:[#allocation2 + $0x118] sm:$0xf] %v188_v53  ;;  %v194_v55 = vld [vmem:[%s11890_s7 + $0x128] sm:$0xf] }
  0x20   :  { %v196_v56 = vld [vmem:[%s11890_s7 + $0x124] sm:$0xf]  ;;  %191 = vst [vmem:[#allocation2 + $0x11c] sm:$0xff] %v190_v54   ;;  %195 = vst [vmem:[#allocation2 + $0x124] sm:$0xf] %v194_v55  ;;  %v206_v60 = vld [vmem:[%s11890_s7 + $0x13c] sm:$0xff]  }
  0x21   :  { %197 = vst [vmem:[#allocation2 + $0x128] sm:$0xf] %v196_v56  ;;  %v202_v58 = vld [vmem:[%s11890_s7 + $0x138] sm:$0xf]  ;;  %v204_v59 = vld [vmem:[%s11890_s7 + $0x134] sm:$0xf] }
  0x22   :  { %199 = vst [vmem:[#allocation2 + $0x12c] sm:$0xff] %v198_v57   ;;  %203 = vst [vmem:[#allocation2 + $0x134] sm:$0xf] %v202_v58  ;;  %v210_v61 = vld [vmem:[%s11890_s7 + $0x148] sm:$0xf]  ;;  %v214_v63 = vld [vmem:[%s11890_s7 + $0x14c] sm:$0xff]  }
  0x23   :  { %205 = vst [vmem:[#allocation2 + $0x138] sm:$0xf] %v204_v59  ;;  %v212_v62 = vld [vmem:[%s11890_s7 + $0x144] sm:$0xf]  ;;  %207 = vst [vmem:[#allocation2 + $0x13c] sm:$0xff] %v206_v60   ;;  %v222_v2 = vld [vmem:[%s11890_s7 + $0x15c] sm:$0xff]  }
  0x24   :  { %211 = vst [vmem:[#allocation2 + $0x144] sm:$0xf] %v210_v61  ;;  %213 = vst [vmem:[#allocation2 + $0x148] sm:$0xf] %v212_v62  ;;  %v218_v0 = vld [vmem:[%s11890_s7 + $0x158] sm:$0xf] }
  0x25   :  { %v220_v1 = vld [vmem:[%s11890_s7 + $0x154] sm:$0xf]  ;;  %215 = vst [vmem:[#allocation2 + $0x14c] sm:$0xff] %v214_v63   ;;  %219 = vst [vmem:[#allocation2 + $0x154] sm:$0xf] %v218_v0  ;;  %v230_v5 = vld [vmem:[%s11890_s7 + $0x16c] sm:$0xff]  }
  0x26   :  { %221 = vst [vmem:[#allocation2 + $0x158] sm:$0xf] %v220_v1  ;;  %v226_v3 = vld [vmem:[%s11890_s7 + $0x168] sm:$0xf]  ;;  %v228_v4 = vld [vmem:[%s11890_s7 + $0x164] sm:$0xf] }
  0x27   :  { %223 = vst [vmem:[#allocation2 + $0x15c] sm:$0xff] %v222_v2   ;;  %227 = vst [vmem:[#allocation2 + $0x164] sm:$0xf] %v226_v3  ;;  %v234_v6 = vld [vmem:[%s11890_s7 + $0x178] sm:$0xf]  ;;  %v238_v8 = vld [vmem:[%s11890_s7 + $0x17c] sm:$0xff]  }
  0x28   :  { %229 = vst [vmem:[#allocation2 + $0x168] sm:$0xf] %v228_v4  ;;  %v236_v7 = vld [vmem:[%s11890_s7 + $0x174] sm:$0xf]  ;;  %231 = vst [vmem:[#allocation2 + $0x16c] sm:$0xff] %v230_v5   ;;  %v246_v11 = vld [vmem:[%s11890_s7 + $0x18c] sm:$0xff]  }
  0x29   :  { %235 = vst [vmem:[#allocation2 + $0x174] sm:$0xf] %v234_v6  ;;  %237 = vst [vmem:[#allocation2 + $0x178] sm:$0xf] %v236_v7  ;;  %v242_v9 = vld [vmem:[%s11890_s7 + $0x188] sm:$0xf] }
  0x2a   :  { %v244_v10 = vld [vmem:[%s11890_s7 + $0x184] sm:$0xf]  ;;  %239 = vst [vmem:[#allocation2 + $0x17c] sm:$0xff] %v238_v8   ;;  %243 = vst [vmem:[#allocation2 + $0x184] sm:$0xf] %v242_v9  ;;  %v254_v14 = vld [vmem:[%s11890_s7 + $0x19c] sm:$0xff]  }
  0x2b   :  { %245 = vst [vmem:[#allocation2 + $0x188] sm:$0xf] %v244_v10  ;;  %v250_v12 = vld [vmem:[%s11890_s7 + $0x198] sm:$0xf]  ;;  %v252_v13 = vld [vmem:[%s11890_s7 + $0x194] sm:$0xf] }
  0x2c   :  { %247 = vst [vmem:[#allocation2 + $0x18c] sm:$0xff] %v246_v11   ;;  %251 = vst [vmem:[#allocation2 + $0x194] sm:$0xf] %v250_v12  ;;  %v258_v15 = vld [vmem:[%s11890_s7 + $0x1a8] sm:$0xf]  ;;  %v262_v17 = vld [vmem:[%s11890_s7 + $0x1ac] sm:$0xff]  }
  0x2d   :  { %253 = vst [vmem:[#allocation2 + $0x198] sm:$0xf] %v252_v13  ;;  %v260_v16 = vld [vmem:[%s11890_s7 + $0x1a4] sm:$0xf]  ;;  %255 = vst [vmem:[#allocation2 + $0x19c] sm:$0xff] %v254_v14   ;;  %v270_v20 = vld [vmem:[%s11890_s7 + $0x1bc] sm:$0xff]  }
  0x2e   :  { %259 = vst [vmem:[#allocation2 + $0x1a4] sm:$0xf] %v258_v15  ;;  %261 = vst [vmem:[#allocation2 + $0x1a8] sm:$0xf] %v260_v16  ;;  %v266_v18 = vld [vmem:[%s11890_s7 + $0x1b8] sm:$0xf] }
  0x2f   :  { %v268_v19 = vld [vmem:[%s11890_s7 + $0x1b4] sm:$0xf]  ;;  %263 = vst [vmem:[#allocation2 + $0x1ac] sm:$0xff] %v262_v17   ;;  %267 = vst [vmem:[#allocation2 + $0x1b4] sm:$0xf] %v266_v18  ;;  %v278_v23 = vld [vmem:[%s11890_s7 + $0x1cc] sm:$0xff]  }
  0x30   :  { %269 = vst [vmem:[#allocation2 + $0x1b8] sm:$0xf] %v268_v19  ;;  %v274_v21 = vld [vmem:[%s11890_s7 + $0x1c8] sm:$0xf]  ;;  %v276_v22 = vld [vmem:[%s11890_s7 + $0x1c4] sm:$0xf] }
  0x31   :  { %271 = vst [vmem:[#allocation2 + $0x1bc] sm:$0xff] %v270_v20   ;;  %275 = vst [vmem:[#allocation2 + $0x1c4] sm:$0xf] %v274_v21  ;;  %v282_v24 = vld [vmem:[%s11890_s7 + $0x1d8] sm:$0xf]  ;;  %v286_v26 = vld [vmem:[%s11890_s7 + $0x1dc] sm:$0xff]  }
  0x32   :  { %277 = vst [vmem:[#allocation2 + $0x1c8] sm:$0xf] %v276_v22  ;;  %v284_v25 = vld [vmem:[%s11890_s7 + $0x1d4] sm:$0xf]  ;;  %279 = vst [vmem:[#allocation2 + $0x1cc] sm:$0xff] %v278_v23   ;;  %v294_v29 = vld [vmem:[%s11890_s7 + $0x1ec] sm:$0xff]  }
  0x33   :  { %283 = vst [vmem:[#allocation2 + $0x1d4] sm:$0xf] %v282_v24  ;;  %285 = vst [vmem:[#allocation2 + $0x1d8] sm:$0xf] %v284_v25  ;;  %v290_v27 = vld [vmem:[%s11890_s7 + $0x1e8] sm:$0xf] }
  0x34   :  { %v292_v28 = vld [vmem:[%s11890_s7 + $0x1e4] sm:$0xf]  ;;  %287 = vst [vmem:[#allocation2 + $0x1dc] sm:$0xff] %v286_v26   ;;  %291 = vst [vmem:[#allocation2 + $0x1e4] sm:$0xf] %v290_v27  ;;  %v302_v32 = vld [vmem:[%s11890_s7 + $0x1fc] sm:$0xff]  }
  0x35   :  { %293 = vst [vmem:[#allocation2 + $0x1e8] sm:$0xf] %v292_v28  ;;  %v298_v30 = vld [vmem:[%s11890_s7 + $0x1f8] sm:$0xf]  ;;  %v300_v31 = vld [vmem:[%s11890_s7 + $0x1f4] sm:$0xf] }
  0x36   :  { %295 = vst [vmem:[#allocation2 + $0x1ec] sm:$0xff] %v294_v29   ;;  %299 = vst [vmem:[#allocation2 + $0x1f4] sm:$0xf] %v298_v30  ;;  %v306_v33 = vld [vmem:[%s11890_s7 + $0x208] sm:$0xf]  ;;  %v310_v35 = vld [vmem:[%s11890_s7 + $0x20c] sm:$0xff]  }
  0x37   :  { %301 = vst [vmem:[#allocation2 + $0x1f8] sm:$0xf] %v300_v31  ;;  %v308_v34 = vld [vmem:[%s11890_s7 + $0x204] sm:$0xf]  ;;  %303 = vst [vmem:[#allocation2 + $0x1fc] sm:$0xff] %v302_v32   ;;  %v318_v38 = vld [vmem:[%s11890_s7 + $0x21c] sm:$0xff]  }
  0x38   :  { %307 = vst [vmem:[#allocation2 + $0x204] sm:$0xf] %v306_v33  ;;  %309 = vst [vmem:[#allocation2 + $0x208] sm:$0xf] %v308_v34  ;;  %v314_v36 = vld [vmem:[%s11890_s7 + $0x218] sm:$0xf] }
  0x39   :  { %v316_v37 = vld [vmem:[%s11890_s7 + $0x214] sm:$0xf]  ;;  %311 = vst [vmem:[#allocation2 + $0x20c] sm:$0xff] %v310_v35   ;;  %315 = vst [vmem:[#allocation2 + $0x214] sm:$0xf] %v314_v36  ;;  %v326_v41 = vld [vmem:[%s11890_s7 + $0x22c] sm:$0xff]  }
  0x3a   :  { %317 = vst [vmem:[#allocation2 + $0x218] sm:$0xf] %v316_v37  ;;  %v322_v39 = vld [vmem:[%s11890_s7 + $0x228] sm:$0xf]  ;;  %v324_v40 = vld [vmem:[%s11890_s7 + $0x224] sm:$0xf] }
  0x3b   :  { %319 = vst [vmem:[#allocation2 + $0x21c] sm:$0xff] %v318_v38   ;;  %323 = vst [vmem:[#allocation2 + $0x224] sm:$0xf] %v322_v39  ;;  %v330_v42 = vld [vmem:[%s11890_s7 + $0x238] sm:$0xf]  ;;  %v334_v44 = vld [vmem:[%s11890_s7 + $0x23c] sm:$0xff]  }
  0x3c   :  { %325 = vst [vmem:[#allocation2 + $0x228] sm:$0xf] %v324_v40  ;;  %v332_v43 = vld [vmem:[%s11890_s7 + $0x234] sm:$0xf]  ;;  %327 = vst [vmem:[#allocation2 + $0x22c] sm:$0xff] %v326_v41   ;;  %v342_v47 = vld [vmem:[%s11890_s7 + $0x24c] sm:$0xff]  }
  0x3d   :  { %331 = vst [vmem:[#allocation2 + $0x234] sm:$0xf] %v330_v42  ;;  %333 = vst [vmem:[#allocation2 + $0x238] sm:$0xf] %v332_v43  ;;  %v338_v45 = vld [vmem:[%s11890_s7 + $0x248] sm:$0xf] }
  0x3e   :  { %v340_v46 = vld [vmem:[%s11890_s7 + $0x244] sm:$0xf]  ;;  %335 = vst [vmem:[#allocation2 + $0x23c] sm:$0xff] %v334_v44   ;;  %339 = vst [vmem:[#allocation2 + $0x244] sm:$0xf] %v338_v45  ;;  %v350_v50 = vld [vmem:[%s11890_s7 + $0x25c] sm:$0xff]  }
  0x3f   :  { %341 = vst [vmem:[#allocation2 + $0x248] sm:$0xf] %v340_v46  ;;  %v346_v48 = vld [vmem:[%s11890_s7 + $0x258] sm:$0xf]  ;;  %v348_v49 = vld [vmem:[%s11890_s7 + $0x254] sm:$0xf] }
  0x40   :  { %343 = vst [vmem:[#allocation2 + $0x24c] sm:$0xff] %v342_v47   ;;  %347 = vst [vmem:[#allocation2 + $0x254] sm:$0xf] %v346_v48  ;;  %v354_v51 = vld [vmem:[%s11890_s7 + $0x268] sm:$0xf]  ;;  %v358_v53 = vld [vmem:[%s11890_s7 + $0x26c] sm:$0xff]  }
  0x41   :  { %349 = vst [vmem:[#allocation2 + $0x258] sm:$0xf] %v348_v49  ;;  %v356_v52 = vld [vmem:[%s11890_s7 + $0x264] sm:$0xf]  ;;  %351 = vst [vmem:[#allocation2 + $0x25c] sm:$0xff] %v350_v50   ;;  %v366_v56 = vld [vmem:[%s11890_s7 + $0x27c] sm:$0xff]  }
  0x42   :  { %355 = vst [vmem:[#allocation2 + $0x264] sm:$0xf] %v354_v51  ;;  %357 = vst [vmem:[#allocation2 + $0x268] sm:$0xf] %v356_v52  ;;  %v362_v54 = vld [vmem:[%s11890_s7 + $0x278] sm:$0xf] }
  0x43   :  { %v364_v55 = vld [vmem:[%s11890_s7 + $0x274] sm:$0xf]  ;;  %359 = vst [vmem:[#allocation2 + $0x26c] sm:$0xff] %v358_v53   ;;  %363 = vst [vmem:[#allocation2 + $0x274] sm:$0xf] %v362_v54  ;;  %v374_v59 = vld [vmem:[%s11890_s7 + $0x28c] sm:$0xff]  }
  0x44   :  { %365 = vst [vmem:[#allocation2 + $0x278] sm:$0xf] %v364_v55  ;;  %v370_v57 = vld [vmem:[%s11890_s7 + $0x288] sm:$0xf]  ;;  %v372_v58 = vld [vmem:[%s11890_s7 + $0x284] sm:$0xf] }
  0x45   :  { %367 = vst [vmem:[#allocation2 + $0x27c] sm:$0xff] %v366_v56   ;;  %371 = vst [vmem:[#allocation2 + $0x284] sm:$0xf] %v370_v57  ;;  %v378_v60 = vld [vmem:[%s11890_s7 + $0x298] sm:$0xf]  ;;  %v382_v62 = vld [vmem:[%s11890_s7 + $0x29c] sm:$0xff]  }
  0x46   :  { %373 = vst [vmem:[#allocation2 + $0x288] sm:$0xf] %v372_v58  ;;  %v380_v61 = vld [vmem:[%s11890_s7 + $0x294] sm:$0xf]  ;;  %375 = vst [vmem:[#allocation2 + $0x28c] sm:$0xff] %v374_v59   ;;  %v390_v1 = vld [vmem:[%s11890_s7 + $0x2ac] sm:$0xff]  }
  0x47   :  { %379 = vst [vmem:[#allocation2 + $0x294] sm:$0xf] %v378_v60  ;;  %381 = vst [vmem:[#allocation2 + $0x298] sm:$0xf] %v380_v61  ;;  %v386_v63 = vld [vmem:[%s11890_s7 + $0x2a8] sm:$0xf] }
  0x48   :  { %v388_v0 = vld [vmem:[%s11890_s7 + $0x2a4] sm:$0xf]  ;;  %383 = vst [vmem:[#allocation2 + $0x29c] sm:$0xff] %v382_v62   ;;  %387 = vst [vmem:[#allocation2 + $0x2a4] sm:$0xf] %v386_v63  ;;  %v398_v4 = vld [vmem:[%s11890_s7 + $0x2bc] sm:$0xff]  }
  0x49   :  { %389 = vst [vmem:[#allocation2 + $0x2a8] sm:$0xf] %v388_v0  ;;  %v394_v2 = vld [vmem:[%s11890_s7 + $0x2b8] sm:$0xf]  ;;  %v396_v3 = vld [vmem:[%s11890_s7 + $0x2b4] sm:$0xf] }
  0x4a   :  { %391 = vst [vmem:[#allocation2 + $0x2ac] sm:$0xff] %v390_v1   ;;  %395 = vst [vmem:[#allocation2 + $0x2b4] sm:$0xf] %v394_v2  ;;  %v402_v5 = vld [vmem:[%s11890_s7 + $0x2c8] sm:$0xf]  ;;  %v406_v7 = vld [vmem:[%s11890_s7 + $0x2cc] sm:$0xff]  }
  0x4b   :  { %397 = vst [vmem:[#allocation2 + $0x2b8] sm:$0xf] %v396_v3  ;;  %v404_v6 = vld [vmem:[%s11890_s7 + $0x2c4] sm:$0xf]  ;;  %399 = vst [vmem:[#allocation2 + $0x2bc] sm:$0xff] %v398_v4   ;;  %v414_v10 = vld [vmem:[%s11890_s7 + $0x2dc] sm:$0xff]  }
  0x4c   :  { %403 = vst [vmem:[#allocation2 + $0x2c4] sm:$0xf] %v402_v5  ;;  %405 = vst [vmem:[#allocation2 + $0x2c8] sm:$0xf] %v404_v6  ;;  %v410_v8 = vld [vmem:[%s11890_s7 + $0x2d8] sm:$0xf] }
  0x4d   :  { %v412_v9 = vld [vmem:[%s11890_s7 + $0x2d4] sm:$0xf]  ;;  %407 = vst [vmem:[#allocation2 + $0x2cc] sm:$0xff] %v406_v7   ;;  %411 = vst [vmem:[#allocation2 + $0x2d4] sm:$0xf] %v410_v8  ;;  %v422_v13 = vld [vmem:[%s11890_s7 + $0x2ec] sm:$0xff]  }
  0x4e   :  { %413 = vst [vmem:[#allocation2 + $0x2d8] sm:$0xf] %v412_v9  ;;  %v418_v11 = vld [vmem:[%s11890_s7 + $0x2e8] sm:$0xf]  ;;  %v420_v12 = vld [vmem:[%s11890_s7 + $0x2e4] sm:$0xf] }
  0x4f   :  { %415 = vst [vmem:[#allocation2 + $0x2dc] sm:$0xff] %v414_v10   ;;  %419 = vst [vmem:[#allocation2 + $0x2e4] sm:$0xf] %v418_v11  ;;  %v426_v14 = vld [vmem:[%s11890_s7 + $0x2f8] sm:$0xf]  ;;  %v430_v16 = vld [vmem:[%s11890_s7 + $0x2fc] sm:$0xff]  }
  0x50   :  { %421 = vst [vmem:[#allocation2 + $0x2e8] sm:$0xf] %v420_v12  ;;  %v428_v15 = vld [vmem:[%s11890_s7 + $0x2f4] sm:$0xf]  ;;  %423 = vst [vmem:[#allocation2 + $0x2ec] sm:$0xff] %v422_v13   ;;  %v438_v19 = vld [vmem:[%s11890_s7 + $0x30c] sm:$0xff]  }
  0x51   :  { %427 = vst [vmem:[#allocation2 + $0x2f4] sm:$0xf] %v426_v14  ;;  %429 = vst [vmem:[#allocation2 + $0x2f8] sm:$0xf] %v428_v15  ;;  %v434_v17 = vld [vmem:[%s11890_s7 + $0x308] sm:$0xf] }
  0x52   :  { %v436_v18 = vld [vmem:[%s11890_s7 + $0x304] sm:$0xf]  ;;  %431 = vst [vmem:[#allocation2 + $0x2fc] sm:$0xff] %v430_v16   ;;  %435 = vst [vmem:[#allocation2 + $0x304] sm:$0xf] %v434_v17  ;;  %v446_v22 = vld [vmem:[%s11890_s7 + $0x31c] sm:$0xff]  }
  0x53   :  { %437 = vst [vmem:[#allocation2 + $0x308] sm:$0xf] %v436_v18  ;;  %v442_v20 = vld [vmem:[%s11890_s7 + $0x318] sm:$0xf]  ;;  %v444_v21 = vld [vmem:[%s11890_s7 + $0x314] sm:$0xf] }
  0x54   :  { %439 = vst [vmem:[#allocation2 + $0x30c] sm:$0xff] %v438_v19   ;;  %443 = vst [vmem:[#allocation2 + $0x314] sm:$0xf] %v442_v20  ;;  %v450_v23 = vld [vmem:[%s11890_s7 + $0x328] sm:$0xf]  ;;  %v454_v25 = vld [vmem:[%s11890_s7 + $0x32c] sm:$0xff]  }
  0x55   :  { %445 = vst [vmem:[#allocation2 + $0x318] sm:$0xf] %v444_v21  ;;  %v452_v24 = vld [vmem:[%s11890_s7 + $0x324] sm:$0xf]  ;;  %447 = vst [vmem:[#allocation2 + $0x31c] sm:$0xff] %v446_v22   ;;  %v462_v28 = vld [vmem:[%s11890_s7 + $0x33c] sm:$0xff]  }
  0x56   :  { %451 = vst [vmem:[#allocation2 + $0x324] sm:$0xf] %v450_v23  ;;  %453 = vst [vmem:[#allocation2 + $0x328] sm:$0xf] %v452_v24  ;;  %v458_v26 = vld [vmem:[%s11890_s7 + $0x338] sm:$0xf] }
  0x57   :  { %v460_v27 = vld [vmem:[%s11890_s7 + $0x334] sm:$0xf]  ;;  %455 = vst [vmem:[#allocation2 + $0x32c] sm:$0xff] %v454_v25   ;;  %459 = vst [vmem:[#allocation2 + $0x334] sm:$0xf] %v458_v26  ;;  %v470_v31 = vld [vmem:[%s11890_s7 + $0x34c] sm:$0xff]  }
  0x58   :  { %461 = vst [vmem:[#allocation2 + $0x338] sm:$0xf] %v460_v27  ;;  %v466_v29 = vld [vmem:[%s11890_s7 + $0x348] sm:$0xf]  ;;  %v468_v30 = vld [vmem:[%s11890_s7 + $0x344] sm:$0xf] }
  0x59   :  { %463 = vst [vmem:[#allocation2 + $0x33c] sm:$0xff] %v462_v28   ;;  %467 = vst [vmem:[#allocation2 + $0x344] sm:$0xf] %v466_v29  ;;  %v474_v32 = vld [vmem:[%s11890_s7 + $0x358] sm:$0xf]  ;;  %v478_v34 = vld [vmem:[%s11890_s7 + $0x35c] sm:$0xff]  }
  0x5a   :  { %469 = vst [vmem:[#allocation2 + $0x348] sm:$0xf] %v468_v30  ;;  %v476_v33 = vld [vmem:[%s11890_s7 + $0x354] sm:$0xf]  ;;  %471 = vst [vmem:[#allocation2 + $0x34c] sm:$0xff] %v470_v31   ;;  %v486_v37 = vld [vmem:[%s11890_s7 + $0x36c] sm:$0xff]  }
  0x5b   :  { %475 = vst [vmem:[#allocation2 + $0x354] sm:$0xf] %v474_v32  ;;  %477 = vst [vmem:[#allocation2 + $0x358] sm:$0xf] %v476_v33  ;;  %v482_v35 = vld [vmem:[%s11890_s7 + $0x368] sm:$0xf] }
  0x5c   :  { %v484_v36 = vld [vmem:[%s11890_s7 + $0x364] sm:$0xf]  ;;  %479 = vst [vmem:[#allocation2 + $0x35c] sm:$0xff] %v478_v34   ;;  %483 = vst [vmem:[#allocation2 + $0x364] sm:$0xf] %v482_v35  ;;  %v494_v40 = vld [vmem:[%s11890_s7 + $0x37c] sm:$0xff]  }
  0x5d   :  { %485 = vst [vmem:[#allocation2 + $0x368] sm:$0xf] %v484_v36  ;;  %v490_v38 = vld [vmem:[%s11890_s7 + $0x378] sm:$0xf]  ;;  %v492_v39 = vld [vmem:[%s11890_s7 + $0x374] sm:$0xf] }
  0x5e   :  { %487 = vst [vmem:[#allocation2 + $0x36c] sm:$0xff] %v486_v37   ;;  %491 = vst [vmem:[#allocation2 + $0x374] sm:$0xf] %v490_v38  ;;  %v498_v41 = vld [vmem:[%s11890_s7 + $0x388] sm:$0xf]  ;;  %v502_v43 = vld [vmem:[%s11890_s7 + $0x38c] sm:$0xff]  }
  0x5f   :  { %493 = vst [vmem:[#allocation2 + $0x378] sm:$0xf] %v492_v39  ;;  %v500_v42 = vld [vmem:[%s11890_s7 + $0x384] sm:$0xf]  ;;  %495 = vst [vmem:[#allocation2 + $0x37c] sm:$0xff] %v494_v40   ;;  %v510_v46 = vld [vmem:[%s11890_s7 + $0x39c] sm:$0xff]  }
  0x60   :  { %499 = vst [vmem:[#allocation2 + $0x384] sm:$0xf] %v498_v41  ;;  %501 = vst [vmem:[#allocation2 + $0x388] sm:$0xf] %v500_v42  ;;  %v506_v44 = vld [vmem:[%s11890_s7 + $0x398] sm:$0xf] }
  0x61   :  { %v508_v45 = vld [vmem:[%s11890_s7 + $0x394] sm:$0xf]  ;;  %503 = vst [vmem:[#allocation2 + $0x38c] sm:$0xff] %v502_v43   ;;  %507 = vst [vmem:[#allocation2 + $0x394] sm:$0xf] %v506_v44  ;;  %v518_v49 = vld [vmem:[%s11890_s7 + $0x3ac] sm:$0xff]  }
  0x62   :  { %509 = vst [vmem:[#allocation2 + $0x398] sm:$0xf] %v508_v45  ;;  %v514_v47 = vld [vmem:[%s11890_s7 + $0x3a8] sm:$0xf]  ;;  %v516_v48 = vld [vmem:[%s11890_s7 + $0x3a4] sm:$0xf] }
  0x63   :  { %511 = vst [vmem:[#allocation2 + $0x39c] sm:$0xff] %v510_v46   ;;  %515 = vst [vmem:[#allocation2 + $0x3a4] sm:$0xf] %v514_v47  ;;  %v522_v50 = vld [vmem:[%s11890_s7 + $0x3b8] sm:$0xf]  ;;  %v526_v52 = vld [vmem:[%s11890_s7 + $0x3bc] sm:$0xff]  }
  0x64   :  { %517 = vst [vmem:[#allocation2 + $0x3a8] sm:$0xf] %v516_v48  ;;  %v524_v51 = vld [vmem:[%s11890_s7 + $0x3b4] sm:$0xf]  ;;  %519 = vst [vmem:[#allocation2 + $0x3ac] sm:$0xff] %v518_v49   ;;  %v534_v55 = vld [vmem:[%s11890_s7 + $0x3cc] sm:$0xff]  }
  0x65   :  { %523 = vst [vmem:[#allocation2 + $0x3b4] sm:$0xf] %v522_v50  ;;  %525 = vst [vmem:[#allocation2 + $0x3b8] sm:$0xf] %v524_v51  ;;  %v530_v53 = vld [vmem:[%s11890_s7 + $0x3c8] sm:$0xf] }
  0x66   :  { %v532_v54 = vld [vmem:[%s11890_s7 + $0x3c4] sm:$0xf]  ;;  %527 = vst [vmem:[#allocation2 + $0x3bc] sm:$0xff] %v526_v52   ;;  %531 = vst [vmem:[#allocation2 + $0x3c4] sm:$0xf] %v530_v53  ;;  %v542_v58 = vld [vmem:[%s11890_s7 + $0x3dc] sm:$0xff]  }
  0x67   :  { %533 = vst [vmem:[#allocation2 + $0x3c8] sm:$0xf] %v532_v54  ;;  %v538_v56 = vld [vmem:[%s11890_s7 + $0x3d8] sm:$0xf]  ;;  %v540_v57 = vld [vmem:[%s11890_s7 + $0x3d4] sm:$0xf] }
  0x68   :  { %535 = vst [vmem:[#allocation2 + $0x3cc] sm:$0xff] %v534_v55   ;;  %539 = vst [vmem:[#allocation2 + $0x3d4] sm:$0xf] %v538_v56  ;;  %v546_v59 = vld [vmem:[%s11890_s7 + $0x3e8] sm:$0xf]  ;;  %v550_v61 = vld [vmem:[%s11890_s7 + $0x3ec] sm:$0xff]  }
  0x69   :  { %541 = vst [vmem:[#allocation2 + $0x3d8] sm:$0xf] %v540_v57  ;;  %v548_v60 = vld [vmem:[%s11890_s7 + $0x3e4] sm:$0xf]  ;;  %543 = vst [vmem:[#allocation2 + $0x3dc] sm:$0xff] %v542_v58  }
  0x6a   :  { %547 = vst [vmem:[#allocation2 + $0x3e4] sm:$0xf] %v546_v59  ;;  %549 = vst [vmem:[#allocation2 + $0x3e8] sm:$0xf] %v548_v60  ;;  %v554_v62 = vld [vmem:[%s11890_s7 + $0x3f8] sm:$0xf] }
  0x6b   :  { %v556_v63 = vld [vmem:[%s11890_s7 + $0x3f4] sm:$0xf]  ;;  %551 = vst [vmem:[#allocation2 + $0x3ec] sm:$0xff] %v550_v61   ;;  %555 = vst [vmem:[#allocation2 + $0x3f4] sm:$0xf] %v554_v62 }
  0x6c   :  { %557 = vst [vmem:[#allocation2 + $0x3f8] sm:$0xf] %v556_v63  ;;  %v558_v0 = vld [vmem:[%s11890_s7 + $0x3fc] sm:$0xf] }
  0x6d   :  { %559 = vst [vmem:[#allocation2 + $0x3fc] sm:$0xf] %v558_v0 }
  0x6e   :  { %1102 = vsyncadd [#allocation6], 16384  ;;  %v7929_v1 = vld [vmem:[%s11891_s8] sm:$0xff]  ;;  %v7934_v2 = vld [vmem:[%s11891_s8 + $0x8] sm:$0xff] }
  0x6f   :  { %12132 = vst [vmem:[#allocation15_spill] sm:$0xff] %v7929_v1  ;;  %12133 = vst [vmem:[#allocation16_spill] sm:$0xff] %v7934_v2  ;;  %v7939_v3 = vld [vmem:[%s11891_s8 + $0x10] sm:$0xff]  ;;  %v7944_v4 = vld [vmem:[%s11891_s8 + $0x18] sm:$0xff] }
  0x70   :  { %12134 = vst [vmem:[#allocation17_spill] sm:$0xff] %v7939_v3  ;;  %12135 = vst [vmem:[#allocation18_spill] sm:$0xff] %v7944_v4  ;;  %v7949_v5 = vld [vmem:[%s11891_s8 + $0x20] sm:$0xff]  ;;  %v7954_v6 = vld [vmem:[%s11891_s8 + $0x28] sm:$0xff] }
  0x71   :  { %12136 = vst [vmem:[#allocation19_spill] sm:$0xff] %v7949_v5  ;;  %12137 = vst [vmem:[#allocation20_spill] sm:$0xff] %v7954_v6  ;;  %v7959_v7 = vld [vmem:[%s11891_s8 + $0x30] sm:$0xff]  ;;  %v7964_v8 = vld [vmem:[%s11891_s8 + $0x38] sm:$0xff] }
  0x72   :  { %12138 = vst [vmem:[#allocation21_spill] sm:$0xff] %v7959_v7  ;;  %12139 = vst [vmem:[#allocation22_spill] sm:$0xff] %v7964_v8  ;;  %v7969_v9 = vld [vmem:[%s11891_s8 + $0x40] sm:$0xff]  ;;  %v7974_v10 = vld [vmem:[%s11891_s8 + $0x48] sm:$0xff] }
  0x73   :  { %12140 = vst [vmem:[#allocation23_spill] sm:$0xff] %v7969_v9  ;;  %12141 = vst [vmem:[#allocation24_spill] sm:$0xff] %v7974_v10  ;;  %v7979_v11 = vld [vmem:[%s11891_s8 + $0x50] sm:$0xff]  ;;  %v7984_v12 = vld [vmem:[%s11891_s8 + $0x58] sm:$0xff] }
  0x74   :  { %12142 = vst [vmem:[#allocation25_spill] sm:$0xff] %v7979_v11  ;;  %12143 = vst [vmem:[#allocation26_spill] sm:$0xff] %v7984_v12  ;;  %v7989_v13 = vld [vmem:[%s11891_s8 + $0x60] sm:$0xff]  ;;  %v7994_v14 = vld [vmem:[%s11891_s8 + $0x68] sm:$0xff] }
  0x75   :  { %12144 = vst [vmem:[#allocation27_spill] sm:$0xff] %v7989_v13  ;;  %12145 = vst [vmem:[#allocation28_spill] sm:$0xff] %v7994_v14  ;;  %v7999_v15 = vld [vmem:[%s11891_s8 + $0x70] sm:$0xff]  ;;  %v8004_v16 = vld [vmem:[%s11891_s8 + $0x78] sm:$0xff] }
  0x76   :  { %12146 = vst [vmem:[#allocation29_spill] sm:$0xff] %v7999_v15  ;;  %12147 = vst [vmem:[#allocation30_spill] sm:$0xff] %v8004_v16  ;;  %v8009_v17 = vld [vmem:[%s11891_s8 + $0x80] sm:$0xff]  ;;  %v8014_v18 = vld [vmem:[%s11891_s8 + $0x88] sm:$0xff] }
  0x77   :  { %12148 = vst [vmem:[#allocation31_spill] sm:$0xff] %v8009_v17  ;;  %12149 = vst [vmem:[#allocation32_spill] sm:$0xff] %v8014_v18  ;;  %v8019_v19 = vld [vmem:[%s11891_s8 + $0x90] sm:$0xff]  ;;  %v8024_v20 = vld [vmem:[%s11891_s8 + $0x98] sm:$0xff] }
  0x78   :  { %12150 = vst [vmem:[#allocation33_spill] sm:$0xff] %v8019_v19  ;;  %12151 = vst [vmem:[#allocation34_spill] sm:$0xff] %v8024_v20  ;;  %v8029_v21 = vld [vmem:[%s11891_s8 + $0xa0] sm:$0xff]  ;;  %v8034_v22 = vld [vmem:[%s11891_s8 + $0xa8] sm:$0xff] }
  0x79   :  { %12152 = vst [vmem:[#allocation35_spill] sm:$0xff] %v8029_v21  ;;  %12153 = vst [vmem:[#allocation36_spill] sm:$0xff] %v8034_v22  ;;  %v8039_v23 = vld [vmem:[%s11891_s8 + $0xb0] sm:$0xff]  ;;  %v8044_v24 = vld [vmem:[%s11891_s8 + $0xb8] sm:$0xff] }
  0x7a   :  { %12154 = vst [vmem:[#allocation37_spill] sm:$0xff] %v8039_v23  ;;  %12155 = vst [vmem:[#allocation38_spill] sm:$0xff] %v8044_v24  ;;  %v8049_v25 = vld [vmem:[%s11891_s8 + $0xc0] sm:$0xff]  ;;  %v8054_v26 = vld [vmem:[%s11891_s8 + $0xc8] sm:$0xff] }
  0x7b   :  { %12156 = vst [vmem:[#allocation39_spill] sm:$0xff] %v8049_v25  ;;  %12157 = vst [vmem:[#allocation40_spill] sm:$0xff] %v8054_v26  ;;  %v8059_v27 = vld [vmem:[%s11891_s8 + $0xd0] sm:$0xff]  ;;  %v8064_v28 = vld [vmem:[%s11891_s8 + $0xd8] sm:$0xff] }
  0x7c   :  { %12158 = vst [vmem:[#allocation41_spill] sm:$0xff] %v8059_v27  ;;  %12159 = vst [vmem:[#allocation42_spill] sm:$0xff] %v8064_v28  ;;  %v8069_v29 = vld [vmem:[%s11891_s8 + $0xe0] sm:$0xff]  ;;  %v8074_v30 = vld [vmem:[%s11891_s8 + $0xe8] sm:$0xff] }
  0x7d   :  { %12160 = vst [vmem:[#allocation43_spill] sm:$0xff] %v8069_v29  ;;  %12161 = vst [vmem:[#allocation44_spill] sm:$0xff] %v8074_v30  ;;  %v8079_v31 = vld [vmem:[%s11891_s8 + $0xf0] sm:$0xff]  ;;  %v8084_v32 = vld [vmem:[%s11891_s8 + $0xf8] sm:$0xff] }
  0x7e   :  { %12162 = vst [vmem:[#allocation45_spill] sm:$0xff] %v8079_v31  ;;  %12163 = vst [vmem:[#allocation46_spill] sm:$0xff] %v8084_v32  ;;  %v8089_v33 = vld [vmem:[%s11891_s8 + $0x100] sm:$0xff]  ;;  %v8094_v34 = vld [vmem:[%s11891_s8 + $0x108] sm:$0xff] }
  0x7f   :  { %12164 = vst [vmem:[#allocation47_spill] sm:$0xff] %v8089_v33  ;;  %12165 = vst [vmem:[#allocation48_spill] sm:$0xff] %v8094_v34  ;;  %v8099_v35 = vld [vmem:[%s11891_s8 + $0x110] sm:$0xff]  ;;  %v8104_v36 = vld [vmem:[%s11891_s8 + $0x118] sm:$0xff] }
  0x80   :  { %12166 = vst [vmem:[#allocation49_spill] sm:$0xff] %v8099_v35  ;;  %12167 = vst [vmem:[#allocation50_spill] sm:$0xff] %v8104_v36  ;;  %v8109_v37 = vld [vmem:[%s11891_s8 + $0x120] sm:$0xff]  ;;  %v8114_v38 = vld [vmem:[%s11891_s8 + $0x128] sm:$0xff] }
  0x81   :  { %12168 = vst [vmem:[#allocation51_spill] sm:$0xff] %v8109_v37  ;;  %12169 = vst [vmem:[#allocation52_spill] sm:$0xff] %v8114_v38  ;;  %v8119_v39 = vld [vmem:[%s11891_s8 + $0x130] sm:$0xff]  ;;  %v8124_v40 = vld [vmem:[%s11891_s8 + $0x138] sm:$0xff] }
  0x82   :  { %12170 = vst [vmem:[#allocation53_spill] sm:$0xff] %v8119_v39  ;;  %12171 = vst [vmem:[#allocation54_spill] sm:$0xff] %v8124_v40  ;;  %v8129_v41 = vld [vmem:[%s11891_s8 + $0x140] sm:$0xff]  ;;  %v8134_v42 = vld [vmem:[%s11891_s8 + $0x148] sm:$0xff] }
  0x83   :  { %12172 = vst [vmem:[#allocation55_spill] sm:$0xff] %v8129_v41  ;;  %12173 = vst [vmem:[#allocation56_spill] sm:$0xff] %v8134_v42  ;;  %v8139_v43 = vld [vmem:[%s11891_s8 + $0x150] sm:$0xff]  ;;  %v8144_v44 = vld [vmem:[%s11891_s8 + $0x158] sm:$0xff] }
  0x84   :  { %12174 = vst [vmem:[#allocation57_spill] sm:$0xff] %v8139_v43  ;;  %12175 = vst [vmem:[#allocation58_spill] sm:$0xff] %v8144_v44  ;;  %v8149_v45 = vld [vmem:[%s11891_s8 + $0x160] sm:$0xff]  ;;  %v8154_v46 = vld [vmem:[%s11891_s8 + $0x168] sm:$0xff] }
  0x85   :  { %12176 = vst [vmem:[#allocation59_spill] sm:$0xff] %v8149_v45  ;;  %12177 = vst [vmem:[#allocation60_spill] sm:$0xff] %v8154_v46  ;;  %v8159_v47 = vld [vmem:[%s11891_s8 + $0x170] sm:$0xff]  ;;  %v8164_v48 = vld [vmem:[%s11891_s8 + $0x178] sm:$0xff] }
  0x86   :  { %12178 = vst [vmem:[#allocation61_spill] sm:$0xff] %v8159_v47  ;;  %12179 = vst [vmem:[#allocation62_spill] sm:$0xff] %v8164_v48  ;;  %v8169_v49 = vld [vmem:[%s11891_s8 + $0x180] sm:$0xff]  ;;  %v8174_v50 = vld [vmem:[%s11891_s8 + $0x188] sm:$0xff] }
  0x87   :  { %12180 = vst [vmem:[#allocation63_spill] sm:$0xff] %v8169_v49  ;;  %12181 = vst [vmem:[#allocation64_spill] sm:$0xff] %v8174_v50  ;;  %v8179_v51 = vld [vmem:[%s11891_s8 + $0x190] sm:$0xff]  ;;  %v8184_v52 = vld [vmem:[%s11891_s8 + $0x198] sm:$0xff] }
  0x88   :  { %12182 = vst [vmem:[#allocation65_spill] sm:$0xff] %v8179_v51  ;;  %12183 = vst [vmem:[#allocation66_spill] sm:$0xff] %v8184_v52  ;;  %v8189_v53 = vld [vmem:[%s11891_s8 + $0x1a0] sm:$0xff]  ;;  %v8194_v54 = vld [vmem:[%s11891_s8 + $0x1a8] sm:$0xff] }
  0x89   :  { %12184 = vst [vmem:[#allocation67_spill] sm:$0xff] %v8189_v53  ;;  %12185 = vst [vmem:[#allocation68_spill] sm:$0xff] %v8194_v54  ;;  %v8199_v55 = vld [vmem:[%s11891_s8 + $0x1b0] sm:$0xff]  ;;  %v8204_v56 = vld [vmem:[%s11891_s8 + $0x1b8] sm:$0xff] }
  0x8a   :  { %12186 = vst [vmem:[#allocation69_spill] sm:$0xff] %v8199_v55  ;;  %12187 = vst [vmem:[#allocation70_spill] sm:$0xff] %v8204_v56  ;;  %v8209_v57 = vld [vmem:[%s11891_s8 + $0x1c0] sm:$0xff]  ;;  %v8214_v58 = vld [vmem:[%s11891_s8 + $0x1c8] sm:$0xff] }
  0x8b   :  { %12188 = vst [vmem:[#allocation71_spill] sm:$0xff] %v8209_v57  ;;  %12189 = vst [vmem:[#allocation72_spill] sm:$0xff] %v8214_v58  ;;  %v8219_v59 = vld [vmem:[%s11891_s8 + $0x1d0] sm:$0xff]  ;;  %v8224_v60 = vld [vmem:[%s11891_s8 + $0x1d8] sm:$0xff] }
  0x8c   :  { %12190 = vst [vmem:[#allocation73_spill] sm:$0xff] %v8219_v59  ;;  %12191 = vst [vmem:[#allocation74_spill] sm:$0xff] %v8224_v60  ;;  %v8229_v61 = vld [vmem:[%s11891_s8 + $0x1e0] sm:$0xff]  ;;  %v8234_v62 = vld [vmem:[%s11891_s8 + $0x1e8] sm:$0xff] }
  0x8d   :  { %12192 = vst [vmem:[#allocation75_spill] sm:$0xff] %v8229_v61  ;;  %12193 = vst [vmem:[#allocation76_spill] sm:$0xff] %v8234_v62  ;;  %v8239_v63 = vld [vmem:[%s11891_s8 + $0x1f0] sm:$0xff]  ;;  %v8244_v0 = vld [vmem:[%s11891_s8 + $0x1f8] sm:$0xff] }
  0x8e   :  { %12194 = vst [vmem:[#allocation77_spill] sm:$0xff] %v8239_v63  ;;  %12195 = vst [vmem:[#allocation78_spill] sm:$0xff] %v8244_v0  ;;  %v8249_v56 = vld [vmem:[%s11891_s8 + $0x200] sm:$0xff]  ;;  %v8254_v55 = vld [vmem:[%s11891_s8 + $0x208] sm:$0xff] }
  0x8f   :  { %12196 = vst [vmem:[#allocation79_spill] sm:$0xff] %v8249_v56  ;;  %12197 = vst [vmem:[#allocation80_spill] sm:$0xff] %v8254_v55  ;;  %v8259_v54 = vld [vmem:[%s11891_s8 + $0x210] sm:$0xff]  ;;  %v8264_v63 = vld [vmem:[%s11891_s8 + $0x218] sm:$0xff] }
  0x90   :  { %12198 = vst [vmem:[#allocation81_spill] sm:$0xff] %v8259_v54  ;;  %12199 = vst [vmem:[#allocation82_spill] sm:$0xff] %v8264_v63  ;;  %v8269_v0 = vld [vmem:[%s11891_s8 + $0x220] sm:$0xff]  ;;  %v8274_v62 = vld [vmem:[%s11891_s8 + $0x228] sm:$0xff] }
  0x91   :  { %12200 = vst [vmem:[#allocation83_spill] sm:$0xff] %v8269_v0  ;;  %12201 = vst [vmem:[#allocation84_spill] sm:$0xff] %v8274_v62  ;;  %v8279_v53 = vld [vmem:[%s11891_s8 + $0x230] sm:$0xff]  ;;  %v8284_v61 = vld [vmem:[%s11891_s8 + $0x238] sm:$0xff] }
  0x92   :  { %12202 = vst [vmem:[#allocation85_spill] sm:$0xff] %v8279_v53  ;;  %12203 = vst [vmem:[#allocation86_spill] sm:$0xff] %v8284_v61  ;;  %v8289_v52 = vld [vmem:[%s11891_s8 + $0x240] sm:$0xff]  ;;  %v8294_v60 = vld [vmem:[%s11891_s8 + $0x248] sm:$0xff] }
  0x93   :  { %12204 = vst [vmem:[#allocation87_spill] sm:$0xff] %v8289_v52  ;;  %12205 = vst [vmem:[#allocation88_spill] sm:$0xff] %v8294_v60  ;;  %v8299_v51 = vld [vmem:[%s11891_s8 + $0x250] sm:$0xff]  ;;  %v8304_v59 = vld [vmem:[%s11891_s8 + $0x258] sm:$0xff] }
  0x94   :  { %12206 = vst [vmem:[#allocation89_spill] sm:$0xff] %v8299_v51  ;;  %12207 = vst [vmem:[#allocation90_spill] sm:$0xff] %v8304_v59  ;;  %v8309_v50 = vld [vmem:[%s11891_s8 + $0x260] sm:$0xff]  ;;  %v8314_v58 = vld [vmem:[%s11891_s8 + $0x268] sm:$0xff] }
  0x95   :  { %12208 = vst [vmem:[#allocation91_spill] sm:$0xff] %v8309_v50  ;;  %12209 = vst [vmem:[#allocation92_spill] sm:$0xff] %v8314_v58  ;;  %v8319_v49 = vld [vmem:[%s11891_s8 + $0x270] sm:$0xff]  ;;  %v8324_v61 = vld [vmem:[%s11891_s8 + $0x278] sm:$0xff] }
  0x96   :  { %12210 = vst [vmem:[#allocation93_spill] sm:$0xff] %v8319_v49  ;;  %12211 = vst [vmem:[#allocation94_spill] sm:$0xff] %v8324_v61  ;;  %v8329_v57 = vld [vmem:[%s11891_s8 + $0x280] sm:$0xff]  ;;  %v8334_v24 = vld [vmem:[%s11891_s8 + $0x288] sm:$0xff] }
  0x97   :  { %12212 = vst [vmem:[#allocation95_spill] sm:$0xff] %v8329_v57  ;;  %12213 = vst [vmem:[#allocation96_spill] sm:$0xff] %v8334_v24  ;;  %v8339_v53 = vld [vmem:[%s11891_s8 + $0x290] sm:$0xff]  ;;  %v8344_v32 = vld [vmem:[%s11891_s8 + $0x298] sm:$0xff] }
  0x98   :  { %12214 = vst [vmem:[#allocation97_spill] sm:$0xff] %v8339_v53  ;;  %12215 = vst [vmem:[#allocation98_spill] sm:$0xff] %v8344_v32  ;;  %v8349_v61 = vld [vmem:[%s11891_s8 + $0x2a0] sm:$0xff]  ;;  %v8354_v57 = vld [vmem:[%s11891_s8 + $0x2a8] sm:$0xff] }
  0x99   :  { %12216 = vst [vmem:[#allocation99_spill] sm:$0xff] %v8349_v61  ;;  %12217 = vst [vmem:[#allocation100_spill] sm:$0xff] %v8354_v57  ;;  %v8359_v24 = vld [vmem:[%s11891_s8 + $0x2b0] sm:$0xff]  ;;  %v8364_v53 = vld [vmem:[%s11891_s8 + $0x2b8] sm:$0xff] }
  0x9a   :  { %12218 = vst [vmem:[#allocation101_spill] sm:$0xff] %v8359_v24  ;;  %12219 = vst [vmem:[#allocation102_spill] sm:$0xff] %v8364_v53  ;;  %v8369_v32 = vld [vmem:[%s11891_s8 + $0x2c0] sm:$0xff]  ;;  %v8374_v61 = vld [vmem:[%s11891_s8 + $0x2c8] sm:$0xff] }
  0x9b   :  { %12220 = vst [vmem:[#allocation103_spill] sm:$0xff] %v8369_v32  ;;  %12221 = vst [vmem:[#allocation104_spill] sm:$0xff] %v8374_v61  ;;  %v8379_v57 = vld [vmem:[%s11891_s8 + $0x2d0] sm:$0xff]  ;;  %v8384_v24 = vld [vmem:[%s11891_s8 + $0x2d8] sm:$0xff] }
  0x9c   :  { %12222 = vst [vmem:[#allocation105_spill] sm:$0xff] %v8379_v57  ;;  %12223 = vst [vmem:[#allocation106_spill] sm:$0xff] %v8384_v24  ;;  %v8389_v53 = vld [vmem:[%s11891_s8 + $0x2e0] sm:$0xff]  ;;  %v8394_v32 = vld [vmem:[%s11891_s8 + $0x2e8] sm:$0xff] }
  0x9d   :  { %12224 = vst [vmem:[#allocation107_spill] sm:$0xff] %v8389_v53  ;;  %12225 = vst [vmem:[#allocation108_spill] sm:$0xff] %v8394_v32  ;;  %v8399_v61 = vld [vmem:[%s11891_s8 + $0x2f0] sm:$0xff]  ;;  %v8404_v57 = vld [vmem:[%s11891_s8 + $0x2f8] sm:$0xff] }
  0x9e   :  { %12226 = vst [vmem:[#allocation109_spill] sm:$0xff] %v8399_v61  ;;  %12227 = vst [vmem:[#allocation110_spill] sm:$0xff] %v8404_v57  ;;  %v8409_v24 = vld [vmem:[%s11891_s8 + $0x300] sm:$0xff]  ;;  %v8414_v53 = vld [vmem:[%s11891_s8 + $0x308] sm:$0xff] }
  0x9f   :  { %12228 = vst [vmem:[#allocation111_spill] sm:$0xff] %v8409_v24  ;;  %12229 = vst [vmem:[#allocation112_spill] sm:$0xff] %v8414_v53  ;;  %v8419_v32 = vld [vmem:[%s11891_s8 + $0x310] sm:$0xff]  ;;  %v8424_v61 = vld [vmem:[%s11891_s8 + $0x318] sm:$0xff] }
  0xa0   :  { %12230 = vst [vmem:[#allocation113_spill] sm:$0xff] %v8419_v32  ;;  %12231 = vst [vmem:[#allocation114_spill] sm:$0xff] %v8424_v61  ;;  %v8429_v57 = vld [vmem:[%s11891_s8 + $0x320] sm:$0xff]  ;;  %v8434_v24 = vld [vmem:[%s11891_s8 + $0x328] sm:$0xff] }
  0xa1   :  { %12232 = vst [vmem:[#allocation115_spill] sm:$0xff] %v8429_v57  ;;  %12233 = vst [vmem:[#allocation116_spill] sm:$0xff] %v8434_v24  ;;  %v8439_v53 = vld [vmem:[%s11891_s8 + $0x330] sm:$0xff]  ;;  %v8444_v32 = vld [vmem:[%s11891_s8 + $0x338] sm:$0xff] }
  0xa2   :  { %12234 = vst [vmem:[#allocation117_spill] sm:$0xff] %v8439_v53  ;;  %12235 = vst [vmem:[#allocation118_spill] sm:$0xff] %v8444_v32  ;;  %v8449_v61 = vld [vmem:[%s11891_s8 + $0x340] sm:$0xff]  ;;  %v8454_v57 = vld [vmem:[%s11891_s8 + $0x348] sm:$0xff] }
  0xa3   :  { %12236 = vst [vmem:[#allocation119_spill] sm:$0xff] %v8449_v61  ;;  %12237 = vst [vmem:[#allocation120_spill] sm:$0xff] %v8454_v57  ;;  %v8459_v24 = vld [vmem:[%s11891_s8 + $0x350] sm:$0xff]  ;;  %v8464_v53 = vld [vmem:[%s11891_s8 + $0x358] sm:$0xff] }
  0xa4   :  { %12238 = vst [vmem:[#allocation121_spill] sm:$0xff] %v8459_v24  ;;  %12239 = vst [vmem:[#allocation122_spill] sm:$0xff] %v8464_v53  ;;  %v8469_v32 = vld [vmem:[%s11891_s8 + $0x360] sm:$0xff]  ;;  %v8474_v61 = vld [vmem:[%s11891_s8 + $0x368] sm:$0xff] }
  0xa5   :  { %12240 = vst [vmem:[#allocation123_spill] sm:$0xff] %v8469_v32  ;;  %12241 = vst [vmem:[#allocation124_spill] sm:$0xff] %v8474_v61  ;;  %v8479_v57 = vld [vmem:[%s11891_s8 + $0x370] sm:$0xff]  ;;  %v8484_v24 = vld [vmem:[%s11891_s8 + $0x378] sm:$0xff] }
  0xa6   :  { %12242 = vst [vmem:[#allocation125_spill] sm:$0xff] %v8479_v57  ;;  %12243 = vst [vmem:[#allocation126_spill] sm:$0xff] %v8484_v24  ;;  %v8489_v53 = vld [vmem:[%s11891_s8 + $0x380] sm:$0xff]  ;;  %v8494_v32 = vld [vmem:[%s11891_s8 + $0x388] sm:$0xff] }
  0xa7   :  { %12244 = vst [vmem:[#allocation127_spill] sm:$0xff] %v8489_v53  ;;  %12245 = vst [vmem:[#allocation128_spill] sm:$0xff] %v8494_v32  ;;  %v8499_v61 = vld [vmem:[%s11891_s8 + $0x390] sm:$0xff]  ;;  %v8504_v57 = vld [vmem:[%s11891_s8 + $0x398] sm:$0xff] }
  0xa8   :  { %12246 = vst [vmem:[#allocation129_spill] sm:$0xff] %v8499_v61  ;;  %12247 = vst [vmem:[#allocation130_spill] sm:$0xff] %v8504_v57  ;;  %v8509_v24 = vld [vmem:[%s11891_s8 + $0x3a0] sm:$0xff]  ;;  %v8514_v53 = vld [vmem:[%s11891_s8 + $0x3a8] sm:$0xff] }
  0xa9   :  { %12248 = vst [vmem:[#allocation131_spill] sm:$0xff] %v8509_v24  ;;  %12249 = vst [vmem:[#allocation132_spill] sm:$0xff] %v8514_v53  ;;  %v8519_v32 = vld [vmem:[%s11891_s8 + $0x3b0] sm:$0xff]  ;;  %v8524_v61 = vld [vmem:[%s11891_s8 + $0x3b8] sm:$0xff] }
  0xaa   :  { %12250 = vst [vmem:[#allocation133_spill] sm:$0xff] %v8519_v32  ;;  %12251 = vst [vmem:[#allocation134_spill] sm:$0xff] %v8524_v61  ;;  %v8529_v57 = vld [vmem:[%s11891_s8 + $0x3c0] sm:$0xff]  ;;  %v8534_v24 = vld [vmem:[%s11891_s8 + $0x3c8] sm:$0xff] }
  0xab   :  { %12252 = vst [vmem:[#allocation135_spill] sm:$0xff] %v8529_v57  ;;  %12253 = vst [vmem:[#allocation136_spill] sm:$0xff] %v8534_v24  ;;  %v8539_v53 = vld [vmem:[%s11891_s8 + $0x3d0] sm:$0xff]  ;;  %v8544_v32 = vld [vmem:[%s11891_s8 + $0x3d8] sm:$0xff] }
  0xac   :  { %12254 = vst [vmem:[#allocation137_spill] sm:$0xff] %v8539_v53  ;;  %12255 = vst [vmem:[#allocation138_spill] sm:$0xff] %v8544_v32  ;;  %v8549_v61 = vld [vmem:[%s11891_s8 + $0x3e0] sm:$0xff]  ;;  %v8554_v57 = vld [vmem:[%s11891_s8 + $0x3e8] sm:$0xff] }
  0xad   :  { %12256 = vst [vmem:[#allocation139_spill] sm:$0xff] %v8549_v61  ;;  %12257 = vst [vmem:[#allocation140_spill] sm:$0xff] %v8554_v57  ;;  %v8559_v24 = vld [vmem:[%s11891_s8 + $0x3f0] sm:$0xff]  ;;  %v8564_v53 = vld [vmem:[%s11891_s8 + $0x3f8] sm:$0xff] }
  0xae   :  { %12258 = vst [vmem:[#allocation141_spill] sm:$0xff] %v8559_v24  ;;  %12259 = vst [vmem:[#allocation142_spill] sm:$0xff] %v8564_v53 }
  0xaf   :  { %1399 = vsyncadd [#allocation6 + $0x1], 16384  ;;  %v8569_v61 = vld [vmem:[%s11892_s9] sm:$0xff]  ;;  %v8574_v57 = vld [vmem:[%s11892_s9 + $0x8] sm:$0xff] }
  0xb0   :  { %12260 = vst [vmem:[#allocation143_spill] sm:$0xff] %v8569_v61  ;;  %12261 = vst [vmem:[#allocation144_spill] sm:$0xff] %v8574_v57  ;;  %v8579_v24 = vld [vmem:[%s11892_s9 + $0x10] sm:$0xff]  ;;  %v8584_v53 = vld [vmem:[%s11892_s9 + $0x18] sm:$0xff] }
  0xb1   :  { %12262 = vst [vmem:[#allocation145_spill] sm:$0xff] %v8579_v24  ;;  %12263 = vst [vmem:[#allocation146_spill] sm:$0xff] %v8584_v53  ;;  %v8589_v32 = vld [vmem:[%s11892_s9 + $0x20] sm:$0xff]  ;;  %v8594_v61 = vld [vmem:[%s11892_s9 + $0x28] sm:$0xff] }
  0xb2   :  { %12264 = vst [vmem:[#allocation147_spill] sm:$0xff] %v8589_v32  ;;  %12265 = vst [vmem:[#allocation148_spill] sm:$0xff] %v8594_v61  ;;  %v8599_v57 = vld [vmem:[%s11892_s9 + $0x30] sm:$0xff]  ;;  %v8604_v24 = vld [vmem:[%s11892_s9 + $0x38] sm:$0xff] }
  0xb3   :  { %12266 = vst [vmem:[#allocation149_spill] sm:$0xff] %v8599_v57  ;;  %12267 = vst [vmem:[#allocation150_spill] sm:$0xff] %v8604_v24  ;;  %v8609_v53 = vld [vmem:[%s11892_s9 + $0x40] sm:$0xff]  ;;  %v8614_v32 = vld [vmem:[%s11892_s9 + $0x48] sm:$0xff] }
  0xb4   :  { %12268 = vst [vmem:[#allocation151_spill] sm:$0xff] %v8609_v53  ;;  %12269 = vst [vmem:[#allocation152_spill] sm:$0xff] %v8614_v32  ;;  %v8619_v61 = vld [vmem:[%s11892_s9 + $0x50] sm:$0xff]  ;;  %v8624_v57 = vld [vmem:[%s11892_s9 + $0x58] sm:$0xff] }
  0xb5   :  { %12270 = vst [vmem:[#allocation153_spill] sm:$0xff] %v8619_v61  ;;  %12271 = vst [vmem:[#allocation154_spill] sm:$0xff] %v8624_v57  ;;  %v8629_v24 = vld [vmem:[%s11892_s9 + $0x60] sm:$0xff]  ;;  %v8634_v53 = vld [vmem:[%s11892_s9 + $0x68] sm:$0xff] }
  0xb6   :  { %12272 = vst [vmem:[#allocation155_spill] sm:$0xff] %v8629_v24  ;;  %12273 = vst [vmem:[#allocation156_spill] sm:$0xff] %v8634_v53  ;;  %v8639_v32 = vld [vmem:[%s11892_s9 + $0x70] sm:$0xff]  ;;  %v8644_v61 = vld [vmem:[%s11892_s9 + $0x78] sm:$0xff] }
  0xb7   :  { %12274 = vst [vmem:[#allocation157_spill] sm:$0xff] %v8639_v32  ;;  %12275 = vst [vmem:[#allocation158_spill] sm:$0xff] %v8644_v61 }
  0xb8   :  { %1472 = vsyncadd [#allocation6 + $0x2], 2048  ;;  %v8649_v57 = vld [vmem:[%s11893_s10] sm:$0xff]  ;;  %v8654_v53 = vld [vmem:[%s11893_s10 + $0x8] sm:$0xff] }
  0xb9   :  { %12276 = vst [vmem:[#allocation159_spill] sm:$0xff] %v8649_v57  ;;  %12277 = vst [vmem:[#allocation160_spill] sm:$0xff] %v8654_v53  ;;  %v8659_v32 = vld [vmem:[%s11893_s10 + $0x10] sm:$0xff]  ;;  %v8664_v61 = vld [vmem:[%s11893_s10 + $0x18] sm:$0xff] }
  0xba   :  { %12278 = vst [vmem:[#allocation161_spill] sm:$0xff] %v8659_v32  ;;  %12279 = vst [vmem:[#allocation162_spill] sm:$0xff] %v8664_v61  ;;  %v8669_v24 = vld [vmem:[%s11893_s10 + $0x20] sm:$0xff]  ;;  %v8674_v57 = vld [vmem:[%s11893_s10 + $0x28] sm:$0xff] }
  0xbb   :  { %12280 = vst [vmem:[#allocation163_spill] sm:$0xff] %v8669_v24  ;;  %12281 = vst [vmem:[#allocation164_spill] sm:$0xff] %v8674_v57  ;;  %v8679_v53 = vld [vmem:[%s11893_s10 + $0x30] sm:$0xff]  ;;  %v8684_v32 = vld [vmem:[%s11893_s10 + $0x38] sm:$0xff] }
  0xbc   :  { %12282 = vst [vmem:[#allocation165_spill] sm:$0xff] %v8679_v53  ;;  %12283 = vst [vmem:[#allocation166_spill] sm:$0xff] %v8684_v32  ;;  %v8689_v61 = vld [vmem:[%s11893_s10 + $0x40] sm:$0xff]  ;;  %v8694_v24 = vld [vmem:[%s11893_s10 + $0x48] sm:$0xff] }
  0xbd   :  { %12284 = vst [vmem:[#allocation167_spill] sm:$0xff] %v8689_v61  ;;  %12285 = vst [vmem:[#allocation168_spill] sm:$0xff] %v8694_v24  ;;  %v8699_v57 = vld [vmem:[%s11893_s10 + $0x50] sm:$0xff]  ;;  %v8704_v53 = vld [vmem:[%s11893_s10 + $0x58] sm:$0xff] }
  0xbe   :  { %12286 = vst [vmem:[#allocation169_spill] sm:$0xff] %v8699_v57  ;;  %12287 = vst [vmem:[#allocation170_spill] sm:$0xff] %v8704_v53  ;;  %v8709_v32 = vld [vmem:[%s11893_s10 + $0x60] sm:$0xff]  ;;  %v8714_v61 = vld [vmem:[%s11893_s10 + $0x68] sm:$0xff] }
  0xbf   :  { %12288 = vst [vmem:[#allocation171_spill] sm:$0xff] %v8709_v32  ;;  %12289 = vst [vmem:[#allocation172_spill] sm:$0xff] %v8714_v61  ;;  %v8719_v24 = vld [vmem:[%s11893_s10 + $0x70] sm:$0xff]  ;;  %v8724_v57 = vld [vmem:[%s11893_s10 + $0x78] sm:$0xff] }
  0xc0   :  { %12290 = vst [vmem:[#allocation173_spill] sm:$0xff] %v8719_v24  ;;  %12291 = vst [vmem:[#allocation174_spill] sm:$0xff] %v8724_v57  ;;  %v8729_v53 = vld [vmem:[%s11893_s10 + $0x80] sm:$0xff]  ;;  %v8734_v32 = vld [vmem:[%s11893_s10 + $0x88] sm:$0xff] }
  0xc1   :  { %12292 = vst [vmem:[#allocation175_spill] sm:$0xff] %v8729_v53  ;;  %12293 = vst [vmem:[#allocation176_spill] sm:$0xff] %v8734_v32  ;;  %v8739_v61 = vld [vmem:[%s11893_s10 + $0x90] sm:$0xff]  ;;  %v8744_v24 = vld [vmem:[%s11893_s10 + $0x98] sm:$0xff] }
  0xc2   :  { %12294 = vst [vmem:[#allocation177_spill] sm:$0xff] %v8739_v61  ;;  %12295 = vst [vmem:[#allocation178_spill] sm:$0xff] %v8744_v24  ;;  %v8749_v57 = vld [vmem:[%s11893_s10 + $0xa0] sm:$0xff]  ;;  %v8754_v53 = vld [vmem:[%s11893_s10 + $0xa8] sm:$0xff] }
  0xc3   :  { %12296 = vst [vmem:[#allocation179_spill] sm:$0xff] %v8749_v57  ;;  %12297 = vst [vmem:[#allocation180_spill] sm:$0xff] %v8754_v53  ;;  %v8759_v32 = vld [vmem:[%s11893_s10 + $0xb0] sm:$0xff]  ;;  %v8764_v61 = vld [vmem:[%s11893_s10 + $0xb8] sm:$0xff] }
  0xc4   :  { %12298 = vst [vmem:[#allocation181_spill] sm:$0xff] %v8759_v32  ;;  %12299 = vst [vmem:[#allocation182_spill] sm:$0xff] %v8764_v61  ;;  %v8769_v24 = vld [vmem:[%s11893_s10 + $0xc0] sm:$0xff]  ;;  %v8774_v57 = vld [vmem:[%s11893_s10 + $0xc8] sm:$0xff] }
  0xc5   :  { %12300 = vst [vmem:[#allocation183_spill] sm:$0xff] %v8769_v24  ;;  %12301 = vst [vmem:[#allocation184_spill] sm:$0xff] %v8774_v57  ;;  %v8779_v53 = vld [vmem:[%s11893_s10 + $0xd0] sm:$0xff]  ;;  %v8784_v32 = vld [vmem:[%s11893_s10 + $0xd8] sm:$0xff] }
  0xc6   :  { %12302 = vst [vmem:[#allocation185_spill] sm:$0xff] %v8779_v53  ;;  %12303 = vst [vmem:[#allocation186_spill] sm:$0xff] %v8784_v32  ;;  %v8789_v61 = vld [vmem:[%s11893_s10 + $0xe0] sm:$0xff]  ;;  %v8794_v24 = vld [vmem:[%s11893_s10 + $0xe8] sm:$0xff] }
  0xc7   :  { %12304 = vst [vmem:[#allocation187_spill] sm:$0xff] %v8789_v61  ;;  %12305 = vst [vmem:[#allocation188_spill] sm:$0xff] %v8794_v24  ;;  %v8799_v57 = vld [vmem:[%s11893_s10 + $0xf0] sm:$0xff]  ;;  %v8804_v53 = vld [vmem:[%s11893_s10 + $0xf8] sm:$0xff] }
  0xc8   :  { %12306 = vst [vmem:[#allocation189_spill] sm:$0xff] %v8799_v57  ;;  %12307 = vst [vmem:[#allocation190_spill] sm:$0xff] %v8804_v53  ;;  %v8809_v32 = vld [vmem:[%s11893_s10 + $0x100] sm:$0xff]  ;;  %v8814_v61 = vld [vmem:[%s11893_s10 + $0x108] sm:$0xff] }
  0xc9   :  { %12308 = vst [vmem:[#allocation191_spill] sm:$0xff] %v8809_v32  ;;  %12309 = vst [vmem:[#allocation192_spill] sm:$0xff] %v8814_v61  ;;  %v8819_v24 = vld [vmem:[%s11893_s10 + $0x110] sm:$0xff]  ;;  %v8824_v57 = vld [vmem:[%s11893_s10 + $0x118] sm:$0xff] }
  0xca   :  { %12310 = vst [vmem:[#allocation193_spill] sm:$0xff] %v8819_v24  ;;  %12311 = vst [vmem:[#allocation194_spill] sm:$0xff] %v8824_v57  ;;  %v8829_v53 = vld [vmem:[%s11893_s10 + $0x120] sm:$0xff]  ;;  %v8834_v32 = vld [vmem:[%s11893_s10 + $0x128] sm:$0xff] }
  0xcb   :  { %12312 = vst [vmem:[#allocation195_spill] sm:$0xff] %v8829_v53  ;;  %12313 = vst [vmem:[#allocation196_spill] sm:$0xff] %v8834_v32  ;;  %v8839_v61 = vld [vmem:[%s11893_s10 + $0x130] sm:$0xff]  ;;  %v8844_v24 = vld [vmem:[%s11893_s10 + $0x138] sm:$0xff] }
  0xcc   :  { %12314 = vst [vmem:[#allocation197_spill] sm:$0xff] %v8839_v61  ;;  %12315 = vst [vmem:[#allocation198_spill] sm:$0xff] %v8844_v24  ;;  %v8849_v57 = vld [vmem:[%s11893_s10 + $0x140] sm:$0xff]  ;;  %v8854_v53 = vld [vmem:[%s11893_s10 + $0x148] sm:$0xff] }
  0xcd   :  { %12316 = vst [vmem:[#allocation199_spill] sm:$0xff] %v8849_v57  ;;  %12317 = vst [vmem:[#allocation200_spill] sm:$0xff] %v8854_v53  ;;  %v8859_v32 = vld [vmem:[%s11893_s10 + $0x150] sm:$0xff]  ;;  %v8864_v61 = vld [vmem:[%s11893_s10 + $0x158] sm:$0xff] }
  0xce   :  { %12318 = vst [vmem:[#allocation201_spill] sm:$0xff] %v8859_v32  ;;  %12319 = vst [vmem:[#allocation202_spill] sm:$0xff] %v8864_v61  ;;  %v8869_v24 = vld [vmem:[%s11893_s10 + $0x160] sm:$0xff]  ;;  %v8874_v57 = vld [vmem:[%s11893_s10 + $0x168] sm:$0xff] }
  0xcf   :  { %12320 = vst [vmem:[#allocation203_spill] sm:$0xff] %v8869_v24  ;;  %12321 = vst [vmem:[#allocation204_spill] sm:$0xff] %v8874_v57  ;;  %v8879_v53 = vld [vmem:[%s11893_s10 + $0x170] sm:$0xff]  ;;  %v8884_v32 = vld [vmem:[%s11893_s10 + $0x178] sm:$0xff] }
  0xd0   :  { %12322 = vst [vmem:[#allocation205_spill] sm:$0xff] %v8879_v53  ;;  %12323 = vst [vmem:[#allocation206_spill] sm:$0xff] %v8884_v32  ;;  %v8889_v61 = vld [vmem:[%s11893_s10 + $0x180] sm:$0xff]  ;;  %v8894_v24 = vld [vmem:[%s11893_s10 + $0x188] sm:$0xff] }
  0xd1   :  { %12324 = vst [vmem:[#allocation207_spill] sm:$0xff] %v8889_v61  ;;  %12325 = vst [vmem:[#allocation208_spill] sm:$0xff] %v8894_v24  ;;  %v8899_v57 = vld [vmem:[%s11893_s10 + $0x190] sm:$0xff]  ;;  %v8904_v53 = vld [vmem:[%s11893_s10 + $0x198] sm:$0xff] }
  0xd2   :  { %12326 = vst [vmem:[#allocation209_spill] sm:$0xff] %v8899_v57  ;;  %12327 = vst [vmem:[#allocation210_spill] sm:$0xff] %v8904_v53  ;;  %v8909_v32 = vld [vmem:[%s11893_s10 + $0x1a0] sm:$0xff]  ;;  %v8914_v61 = vld [vmem:[%s11893_s10 + $0x1a8] sm:$0xff] }
  0xd3   :  { %12328 = vst [vmem:[#allocation211_spill] sm:$0xff] %v8909_v32  ;;  %12329 = vst [vmem:[#allocation212_spill] sm:$0xff] %v8914_v61  ;;  %v8919_v24 = vld [vmem:[%s11893_s10 + $0x1b0] sm:$0xff]  ;;  %v8924_v57 = vld [vmem:[%s11893_s10 + $0x1b8] sm:$0xff] }
  0xd4   :  { %12330 = vst [vmem:[#allocation213_spill] sm:$0xff] %v8919_v24  ;;  %12331 = vst [vmem:[#allocation214_spill] sm:$0xff] %v8924_v57  ;;  %v8929_v53 = vld [vmem:[%s11893_s10 + $0x1c0] sm:$0xff]  ;;  %v8934_v32 = vld [vmem:[%s11893_s10 + $0x1c8] sm:$0xff] }
  0xd5   :  { %12332 = vst [vmem:[#allocation215_spill] sm:$0xff] %v8929_v53  ;;  %12333 = vst [vmem:[#allocation216_spill] sm:$0xff] %v8934_v32  ;;  %v8939_v61 = vld [vmem:[%s11893_s10 + $0x1d0] sm:$0xff]  ;;  %v8944_v24 = vld [vmem:[%s11893_s10 + $0x1d8] sm:$0xff] }
  0xd6   :  { %12334 = vst [vmem:[#allocation217_spill] sm:$0xff] %v8939_v61  ;;  %12335 = vst [vmem:[#allocation218_spill] sm:$0xff] %v8944_v24  ;;  %v8949_v57 = vld [vmem:[%s11893_s10 + $0x1e0] sm:$0xff]  ;;  %v8954_v53 = vld [vmem:[%s11893_s10 + $0x1e8] sm:$0xff] }
  0xd7   :  { %12336 = vst [vmem:[#allocation219_spill] sm:$0xff] %v8949_v57  ;;  %12337 = vst [vmem:[#allocation220_spill] sm:$0xff] %v8954_v53  ;;  %v8959_v32 = vld [vmem:[%s11893_s10 + $0x1f0] sm:$0xff]  ;;  %v8964_v61 = vld [vmem:[%s11893_s10 + $0x1f8] sm:$0xff] }
  0xd8   :  { %12338 = vst [vmem:[#allocation221_spill] sm:$0xff] %v8959_v32  ;;  %12339 = vst [vmem:[#allocation222_spill] sm:$0xff] %v8964_v61  ;;  %v8969_v24 = vld [vmem:[%s11893_s10 + $0x200] sm:$0xff]  ;;  %v8974_v57 = vld [vmem:[%s11893_s10 + $0x208] sm:$0xff] }
  0xd9   :  { %12340 = vst [vmem:[#allocation223_spill] sm:$0xff] %v8969_v24  ;;  %12341 = vst [vmem:[#allocation224_spill] sm:$0xff] %v8974_v57  ;;  %v8979_v53 = vld [vmem:[%s11893_s10 + $0x210] sm:$0xff]  ;;  %v8984_v32 = vld [vmem:[%s11893_s10 + $0x218] sm:$0xff] }
  0xda   :  { %12342 = vst [vmem:[#allocation225_spill] sm:$0xff] %v8979_v53  ;;  %12343 = vst [vmem:[#allocation226_spill] sm:$0xff] %v8984_v32  ;;  %v8989_v61 = vld [vmem:[%s11893_s10 + $0x220] sm:$0xff]  ;;  %v8994_v24 = vld [vmem:[%s11893_s10 + $0x228] sm:$0xff] }
  0xdb   :  { %12344 = vst [vmem:[#allocation227_spill] sm:$0xff] %v8989_v61  ;;  %12345 = vst [vmem:[#allocation228_spill] sm:$0xff] %v8994_v24  ;;  %v8999_v57 = vld [vmem:[%s11893_s10 + $0x230] sm:$0xff]  ;;  %v9004_v53 = vld [vmem:[%s11893_s10 + $0x238] sm:$0xff] }
  0xdc   :  { %12346 = vst [vmem:[#allocation229_spill] sm:$0xff] %v8999_v57  ;;  %12347 = vst [vmem:[#allocation230_spill] sm:$0xff] %v9004_v53  ;;  %v9009_v32 = vld [vmem:[%s11893_s10 + $0x240] sm:$0xff]  ;;  %v9014_v61 = vld [vmem:[%s11893_s10 + $0x248] sm:$0xff] }
  0xdd   :  { %12348 = vst [vmem:[#allocation231_spill] sm:$0xff] %v9009_v32  ;;  %12349 = vst [vmem:[#allocation232_spill] sm:$0xff] %v9014_v61  ;;  %v9019_v24 = vld [vmem:[%s11893_s10 + $0x250] sm:$0xff]  ;;  %v9024_v57 = vld [vmem:[%s11893_s10 + $0x258] sm:$0xff] }
  0xde   :  { %12350 = vst [vmem:[#allocation233_spill] sm:$0xff] %v9019_v24  ;;  %12351 = vst [vmem:[#allocation234_spill] sm:$0xff] %v9024_v57  ;;  %v9029_v53 = vld [vmem:[%s11893_s10 + $0x260] sm:$0xff]  ;;  %v9034_v32 = vld [vmem:[%s11893_s10 + $0x268] sm:$0xff] }
  0xdf   :  { %12352 = vst [vmem:[#allocation235_spill] sm:$0xff] %v9029_v53  ;;  %12353 = vst [vmem:[#allocation236_spill] sm:$0xff] %v9034_v32  ;;  %v9039_v61 = vld [vmem:[%s11893_s10 + $0x270] sm:$0xff]  ;;  %v9044_v24 = vld [vmem:[%s11893_s10 + $0x278] sm:$0xff] }
  0xe0   :  { %12354 = vst [vmem:[#allocation237_spill] sm:$0xff] %v9039_v61  ;;  %12355 = vst [vmem:[#allocation238_spill] sm:$0xff] %v9044_v24  ;;  %v9049_v57 = vld [vmem:[%s11893_s10 + $0x280] sm:$0xff]  ;;  %v9054_v53 = vld [vmem:[%s11893_s10 + $0x288] sm:$0xff] }
  0xe1   :  { %12356 = vst [vmem:[#allocation239_spill] sm:$0xff] %v9049_v57  ;;  %12357 = vst [vmem:[#allocation240_spill] sm:$0xff] %v9054_v53  ;;  %v9059_v32 = vld [vmem:[%s11893_s10 + $0x290] sm:$0xff]  ;;  %v9064_v61 = vld [vmem:[%s11893_s10 + $0x298] sm:$0xff] }
  0xe2   :  { %12358 = vst [vmem:[#allocation241_spill] sm:$0xff] %v9059_v32  ;;  %12359 = vst [vmem:[#allocation242_spill] sm:$0xff] %v9064_v61  ;;  %v9069_v24 = vld [vmem:[%s11893_s10 + $0x2a0] sm:$0xff]  ;;  %v9074_v57 = vld [vmem:[%s11893_s10 + $0x2a8] sm:$0xff] }
  0xe3   :  { %12360 = vst [vmem:[#allocation243_spill] sm:$0xff] %v9069_v24  ;;  %12361 = vst [vmem:[#allocation244_spill] sm:$0xff] %v9074_v57  ;;  %v9079_v53 = vld [vmem:[%s11893_s10 + $0x2b0] sm:$0xff]  ;;  %v9084_v32 = vld [vmem:[%s11893_s10 + $0x2b8] sm:$0xff] }
  0xe4   :  { %12362 = vst [vmem:[#allocation245_spill] sm:$0xff] %v9079_v53  ;;  %12363 = vst [vmem:[#allocation246_spill] sm:$0xff] %v9084_v32  ;;  %v9089_v61 = vld [vmem:[%s11893_s10 + $0x2c0] sm:$0xff]  ;;  %v9094_v24 = vld [vmem:[%s11893_s10 + $0x2c8] sm:$0xff] }
  0xe5   :  { %12364 = vst [vmem:[#allocation247_spill] sm:$0xff] %v9089_v61  ;;  %12365 = vst [vmem:[#allocation248_spill] sm:$0xff] %v9094_v24  ;;  %v9099_v57 = vld [vmem:[%s11893_s10 + $0x2d0] sm:$0xff]  ;;  %v9104_v53 = vld [vmem:[%s11893_s10 + $0x2d8] sm:$0xff] }
  0xe6   :  { %12366 = vst [vmem:[#allocation249_spill] sm:$0xff] %v9099_v57  ;;  %12367 = vst [vmem:[#allocation250_spill] sm:$0xff] %v9104_v53  ;;  %v9109_v32 = vld [vmem:[%s11893_s10 + $0x2e0] sm:$0xff]  ;;  %v9114_v61 = vld [vmem:[%s11893_s10 + $0x2e8] sm:$0xff] }
  0xe7   :  { %12368 = vst [vmem:[#allocation251_spill] sm:$0xff] %v9109_v32  ;;  %12369 = vst [vmem:[#allocation252_spill] sm:$0xff] %v9114_v61  ;;  %v9119_v24 = vld [vmem:[%s11893_s10 + $0x2f0] sm:$0xff]  ;;  %v9124_v57 = vld [vmem:[%s11893_s10 + $0x2f8] sm:$0xff] }
  0xe8   :  { %12370 = vst [vmem:[#allocation253_spill] sm:$0xff] %v9119_v24  ;;  %12371 = vst [vmem:[#allocation254_spill] sm:$0xff] %v9124_v57  ;;  %v9129_v53 = vld [vmem:[%s11893_s10 + $0x300] sm:$0xff]  ;;  %v9134_v32 = vld [vmem:[%s11893_s10 + $0x308] sm:$0xff] }
  0xe9   :  { %12372 = vst [vmem:[#allocation255_spill] sm:$0xff] %v9129_v53  ;;  %12373 = vst [vmem:[#allocation256_spill] sm:$0xff] %v9134_v32  ;;  %v9139_v61 = vld [vmem:[%s11893_s10 + $0x310] sm:$0xff]  ;;  %v9144_v24 = vld [vmem:[%s11893_s10 + $0x318] sm:$0xff] }
  0xea   :  { %12374 = vst [vmem:[#allocation257_spill] sm:$0xff] %v9139_v61  ;;  %12375 = vst [vmem:[#allocation258_spill] sm:$0xff] %v9144_v24  ;;  %v9149_v57 = vld [vmem:[%s11893_s10 + $0x320] sm:$0xff]  ;;  %v9154_v53 = vld [vmem:[%s11893_s10 + $0x328] sm:$0xff] }
  0xeb   :  { %12376 = vst [vmem:[#allocation259_spill] sm:$0xff] %v9149_v57  ;;  %12377 = vst [vmem:[#allocation260_spill] sm:$0xff] %v9154_v53  ;;  %v9159_v32 = vld [vmem:[%s11893_s10 + $0x330] sm:$0xff]  ;;  %v9164_v61 = vld [vmem:[%s11893_s10 + $0x338] sm:$0xff] }
  0xec   :  { %12378 = vst [vmem:[#allocation261_spill] sm:$0xff] %v9159_v32  ;;  %12379 = vst [vmem:[#allocation262_spill] sm:$0xff] %v9164_v61  ;;  %v9169_v24 = vld [vmem:[%s11893_s10 + $0x340] sm:$0xff]  ;;  %v9174_v57 = vld [vmem:[%s11893_s10 + $0x348] sm:$0xff] }
  0xed   :  { %12380 = vst [vmem:[#allocation263_spill] sm:$0xff] %v9169_v24  ;;  %12381 = vst [vmem:[#allocation264_spill] sm:$0xff] %v9174_v57  ;;  %v9179_v53 = vld [vmem:[%s11893_s10 + $0x350] sm:$0xff]  ;;  %v9184_v32 = vld [vmem:[%s11893_s10 + $0x358] sm:$0xff] }
  0xee   :  { %12382 = vst [vmem:[#allocation265_spill] sm:$0xff] %v9179_v53  ;;  %12383 = vst [vmem:[#allocation266_spill] sm:$0xff] %v9184_v32  ;;  %v9189_v61 = vld [vmem:[%s11893_s10 + $0x360] sm:$0xff]  ;;  %v9194_v24 = vld [vmem:[%s11893_s10 + $0x368] sm:$0xff] }
  0xef   :  { %12384 = vst [vmem:[#allocation267_spill] sm:$0xff] %v9189_v61  ;;  %12385 = vst [vmem:[#allocation268_spill] sm:$0xff] %v9194_v24  ;;  %v9199_v57 = vld [vmem:[%s11893_s10 + $0x370] sm:$0xff]  ;;  %v9204_v53 = vld [vmem:[%s11893_s10 + $0x378] sm:$0xff] }
  0xf0   :  { %12386 = vst [vmem:[#allocation269_spill] sm:$0xff] %v9199_v57  ;;  %12387 = vst [vmem:[#allocation270_spill] sm:$0xff] %v9204_v53  ;;  %v9209_v32 = vld [vmem:[%s11893_s10 + $0x380] sm:$0xff]  ;;  %v9214_v61 = vld [vmem:[%s11893_s10 + $0x388] sm:$0xff] }
  0xf1   :  { %12388 = vst [vmem:[#allocation271_spill] sm:$0xff] %v9209_v32  ;;  %12389 = vst [vmem:[#allocation272_spill] sm:$0xff] %v9214_v61  ;;  %v9219_v24 = vld [vmem:[%s11893_s10 + $0x390] sm:$0xff]  ;;  %v9224_v57 = vld [vmem:[%s11893_s10 + $0x398] sm:$0xff] }
  0xf2   :  { %12390 = vst [vmem:[#allocation273_spill] sm:$0xff] %v9219_v24  ;;  %12391 = vst [vmem:[#allocation274_spill] sm:$0xff] %v9224_v57  ;;  %v9229_v53 = vld [vmem:[%s11893_s10 + $0x3a0] sm:$0xff]  ;;  %v9234_v32 = vld [vmem:[%s11893_s10 + $0x3a8] sm:$0xff] }
  0xf3   :  { %12392 = vst [vmem:[#allocation275_spill] sm:$0xff] %v9229_v53  ;;  %12393 = vst [vmem:[#allocation276_spill] sm:$0xff] %v9234_v32  ;;  %v9239_v61 = vld [vmem:[%s11893_s10 + $0x3b0] sm:$0xff]  ;;  %v9244_v24 = vld [vmem:[%s11893_s10 + $0x3b8] sm:$0xff] }
  0xf4   :  { %12394 = vst [vmem:[#allocation277_spill] sm:$0xff] %v9239_v61  ;;  %12395 = vst [vmem:[#allocation278_spill] sm:$0xff] %v9244_v24  ;;  %v9249_v57 = vld [vmem:[%s11893_s10 + $0x3c0] sm:$0xff]  ;;  %v9254_v53 = vld [vmem:[%s11893_s10 + $0x3c8] sm:$0xff] }
  0xf5   :  { %12396 = vst [vmem:[#allocation279_spill] sm:$0xff] %v9249_v57  ;;  %12397 = vst [vmem:[#allocation280_spill] sm:$0xff] %v9254_v53  ;;  %v9259_v32 = vld [vmem:[%s11893_s10 + $0x3d0] sm:$0xff]  ;;  %v9264_v61 = vld [vmem:[%s11893_s10 + $0x3d8] sm:$0xff] }
  0xf6   :  { %12398 = vst [vmem:[#allocation281_spill] sm:$0xff] %v9259_v32  ;;  %12399 = vst [vmem:[#allocation282_spill] sm:$0xff] %v9264_v61  ;;  %v9269_v24 = vld [vmem:[%s11893_s10 + $0x3e0] sm:$0xff]  ;;  %v9274_v57 = vld [vmem:[%s11893_s10 + $0x3e8] sm:$0xff] }
  0xf7   :  { %12400 = vst [vmem:[#allocation283_spill] sm:$0xff] %v9269_v24  ;;  %12401 = vst [vmem:[#allocation284_spill] sm:$0xff] %v9274_v57  ;;  %v9279_v53 = vld [vmem:[%s11893_s10 + $0x3f0] sm:$0xff]  ;;  %v9284_v32 = vld [vmem:[%s11893_s10 + $0x3f8] sm:$0xff] }
  0xf8   :  { %12402 = vst [vmem:[#allocation285_spill] sm:$0xff] %v9279_v53  ;;  %12403 = vst [vmem:[#allocation286_spill] sm:$0xff] %v9284_v32 }
  0xf9   :  { %1769 = vsyncadd [#allocation6 + $0x3], 16384  ;;  %v7234_v24 = vld [vmem:[%s11884_s1] sm:$0xff]   ;;  %v7235_v61 = vld [vmem:[%s11884_s1 + $0x8] sm:$0xff]  }
  0xfa   :  { %7065 = vmatprep.subr.bf16.mxu0 %v7234_v24  ;;  %v7236_v53 = vld [vmem:[%s11884_s1 + $0x10] sm:$0xff]   ;;  %v7237_v32 = vld [vmem:[%s11884_s1 + $0x18] sm:$0xff]   ;;  %v7242_v57 = vld [vmem:[%s11883_s0] sm:$0xff]  }
  0xfb   :  { %7066 = vmatpush3.bf16.msra.mxu0 %v7234_v24  ;;  %7081 = vmatprep.mubr.bf16.mxu0 %v7242_v57  ;;  %v7238_v24 = vld [vmem:[%s11884_s1 + $0x20] sm:$0xff]   ;;  %v7240_v23 = vld [vmem:[%s11884_s1 + $0x30] sm:$0xff]  }
  0xfc   :  { %7067 = vmatprep.subr.bf16.mxu0 %v7235_v61  ;;  %v7244_v57 = vld [vmem:[%s11883_s0 + $0x10] sm:$0xff]  }
  0xff   :  { %7068 = vmatpush3.bf16.msra.mxu0 %v7235_v61  ;;  %v7239_v61 = vld [vmem:[%s11884_s1 + $0x28] sm:$0xff]  }
 0x100   :  { %7069 = vmatprep.subr.bf16.mxu0 %v7236_v53 }
 0x103   :  { %7070 = vmatpush3.bf16.msra.mxu0 %v7236_v53  ;;  %v7241_v53 = vld [vmem:[%s11884_s1 + $0x38] sm:$0xff]  }
 0x104   :  { %7071 = vmatprep.subr.bf16.mxu0 %v7237_v32 }
 0x107   :  { %7072 = vmatpush3.bf16.msra.mxu0 %v7237_v32  ;;  %v7243_v32 = vld [vmem:[%s11883_s0 + $0x8] sm:$0xff]  }
 0x108   :  { %7073 = vmatprep.subr.bf16.mxu0 %v7238_v24 }
 0x10b   :  { %7074 = vmatpush3.bf16.msra.mxu0 %v7238_v24  ;;  %v7245_v24 = vld [vmem:[%s11883_s0 + $0x18] sm:$0xff]  }
 0x10c   :  { %7075 = vmatprep.subr.bf16.mxu0 %v7239_v61 }
 0x10f   :  { %7076 = vmatpush3.bf16.msra.mxu0 %v7239_v61  ;;  %v7247_v61 = vld [vmem:[%s11883_s0 + $0x28] sm:$0xff]  }
 0x110   :  { %7077 = vmatprep.subr.bf16.mxu0 %v7240_v23 }
 0x113   :  { %7078 = vmatpush3.bf16.msra.mxu0 %v7240_v23  ;;  %v7246_v23 = vld [vmem:[%s11883_s0 + $0x20] sm:$0xff]  }
 0x114   :  { %7079 = vmatprep.subr.bf16.mxu0 %v7241_v53 }
 0x117   :  { %7080 = vmatpush3.bf16.msra.mxu0 %v7241_v53  ;;  %v7248_v53 = vld [vmem:[%s11883_s0 + $0x30] sm:$0xff]  }
 0x11a   :  { %7082 = vmatmul.mubr.bf16.vlgmr.msra.gmra.mrb[0].mxu0 %v7243_v32  ;;  %v7249_v32 = vld [vmem:[%s11883_s0 + $0x38] sm:$0xff]  }
 0x11b   :  { %7085 = vmatprep.mubr.bf16.mxu0 %v7244_v57  ;;  %v7250_v57 = vld [vmem:[%s11883_s0 + $0x40] sm:$0xff]  }
 0x122   :  { %7086 = vmatmul.mubr.bf16.gmra.mrb[4].mxu0 %v7245_v24  ;;  %v7251_v24 = vld [vmem:[%s11883_s0 + $0x48] sm:$0xff]  }
 0x123   :  { %7089 = vmatprep.mubr.bf16.mxu0 %v7246_v23  ;;  %v7252_v23 = vld [vmem:[%s11883_s0 + $0x50] sm:$0xff]  }
 0x12a   :  { %7090 = vmatmul.mubr.bf16.gmra.mrb[8].mxu0 %v7247_v61  ;;  %v7253_v61 = vld [vmem:[%s11883_s0 + $0x58] sm:$0xff]  }
 0x12b   :  { %7093 = vmatprep.mubr.bf16.mxu0 %v7248_v53  ;;  %v7254_v53 = vld [vmem:[%s11883_s0 + $0x60] sm:$0xff]  }
 0x132   :  { %7094 = vmatmul.mubr.bf16.gmra.mrb[12].mxu0 %v7249_v32  ;;  %v7255_v32 = vld [vmem:[%s11883_s0 + $0x68] sm:$0xff]  }
 0x133   :  { %7097 = vmatprep.mubr.bf16.mxu0 %v7250_v57  ;;  %v7256_v57 = vld [vmem:[%s11883_s0 + $0x70] sm:$0xff]  }
 0x13a   :  { %7098 = vmatmul.mubr.bf16.gmra.mrb[16].mxu0 %v7251_v24  ;;  %v7257_v24 = vld [vmem:[%s11883_s0 + $0x78] sm:$0xff]  }
 0x13b   :  { %7101 = vmatprep.mubr.bf16.mxu0 %v7252_v23  ;;  %v7258_v23 = vld [vmem:[%s11883_s0 + $0x80] sm:$0xff]  }
 0x142   :  { %7102 = vmatmul.mubr.bf16.gmra.mrb[20].mxu0 %v7253_v61  ;;  %v7259_v61 = vld [vmem:[%s11883_s0 + $0x88] sm:$0xff]  }
 0x143   :  { %7105 = vmatprep.mubr.bf16.mxu0 %v7254_v53  ;;  %v7260_v53 = vld [vmem:[%s11883_s0 + $0x90] sm:$0xff]  }
 0x14a   :  { %7106 = vmatmul.mubr.bf16.gmra.mrb[24].mxu0 %v7255_v32  ;;  %v7261_v32 = vld [vmem:[%s11883_s0 + $0x98] sm:$0xff]  }
 0x14b   :  { %7109 = vmatprep.mubr.bf16.mxu0 %v7256_v57  ;;  %v7262_v57 = vld [vmem:[%s11883_s0 + $0xa0] sm:$0xff]  }
 0x152   :  { %7110 = vmatmul.mubr.bf16.gmra.mrb[28].mxu0 %v7257_v24  ;;  %v7263_v24 = vld [vmem:[%s11883_s0 + $0xa8] sm:$0xff]  }
 0x153   :  { %7113 = vmatprep.mubr.bf16.mxu0 %v7258_v23  ;;  %v7264_v23 = vld [vmem:[%s11883_s0 + $0xb0] sm:$0xff]  }
 0x15a   :  { %7114 = vmatmul.mubr.bf16.gmra.mrb[32].mxu0 %v7259_v61  ;;  %v7265_v61 = vld [vmem:[%s11883_s0 + $0xb8] sm:$0xff]  }
 0x15b   :  { %7117 = vmatprep.mubr.bf16.mxu0 %v7260_v53  ;;  %v7266_v53 = vld [vmem:[%s11883_s0 + $0xc0] sm:$0xff]  }
 0x162   :  { %7118 = vmatmul.mubr.bf16.gmra.mrb[36].mxu0 %v7261_v32  ;;  %v7267_v32 = vld [vmem:[%s11883_s0 + $0xc8] sm:$0xff]  }
 0x163   :  { %7121 = vmatprep.mubr.bf16.mxu0 %v7262_v57  ;;  %v7268_v57 = vld [vmem:[%s11883_s0 + $0xd0] sm:$0xff]  }
 0x16a   :  { %7122 = vmatmul.mubr.bf16.gmra.mrb[40].mxu0 %v7263_v24  ;;  %v7269_v24 = vld [vmem:[%s11883_s0 + $0xd8] sm:$0xff]  }
 0x16b   :  { %7125 = vmatprep.mubr.bf16.mxu0 %v7264_v23  ;;  %v7270_v23 = vld [vmem:[%s11883_s0 + $0xe0] sm:$0xff]  }
 0x172   :  { %7126 = vmatmul.mubr.bf16.gmra.mrb[44].mxu0 %v7265_v61  ;;  %v7271_v61 = vld [vmem:[%s11883_s0 + $0xe8] sm:$0xff]  }
 0x173   :  { %7129 = vmatprep.mubr.bf16.mxu0 %v7266_v53  ;;  %v7272_v53 = vld [vmem:[%s11883_s0 + $0xf0] sm:$0xff]  }
 0x17a   :  { %7130 = vmatmul.mubr.bf16.gmra.mrb[48].mxu0 %v7267_v32  ;;  %v7273_v32 = vld [vmem:[%s11883_s0 + $0xf8] sm:$0xff]  }
 0x17b   :  { %7133 = vmatprep.mubr.bf16.mxu0 %v7268_v57 }
 0x182   :  { %7134 = vmatmul.mubr.bf16.gmra.mrb[52].mxu0 %v7269_v24 }
 0x183   :  { %7137 = vmatprep.mubr.bf16.mxu0 %v7270_v23 }
 0x18a   :  { %7138 = vmatmul.mubr.bf16.gmra.mrb[56].mxu0 %v7271_v61 }
 0x18b   :  { %7141 = vmatprep.mubr.bf16.mxu0 %v7272_v53 }
 0x192   :  { %7142 = vmatmul.mubr.bf16.gmra.mrb[60].mxu0 %v7273_v32 }
 0x1ed   :  { %v7083_v57 = vpop.f32.mrb[0].mxu0 }
 0x1ee   :  { %v2445_v49 = vmul.f32 0.2, %v7083_v57  ;;  %v2124_v62 = vpop.f32.mrb[1].mxu0  ;;  %vm2381_vm0 = vcmp.gt.f32.partialorder %v7083_v57, 0.0 }
 0x1ef   :  { %v2443_v24 = vmul.f32 0.2, %v2124_v62  ;;  %v7084_v23 = vpop.f32.mrb[2].mxu0  ;;  %vm2379_vm1 = vcmp.gt.f32.partialorder %v2124_v62, 0.0 }
 0x1f0   :  { %vm2382_vm2 = vcmp.gt.f32.partialorder %v7084_v23, 0.0  ;;  %v2446_v31 = vmul.f32 0.2, %v7084_v23  ;;  %v2127_v22 = vpop.f32.mrb[3].mxu0  ;;  %v9406_v0 = vsel %vm2381_vm0, %v7083_v57, %v2445_v49 }
 0x1f1   :  { %vm2380_vm3 = vcmp.gt.f32.partialorder %v2127_v22, 0.0  ;;  %v2444_v58 = vmul.f32 0.2, %v2127_v22  ;;  %v9410_v53 = vsel %vm2379_vm1, %v2124_v62, %v2443_v24 }
 0x1f2   :  { %v9408_v61 = vsel %vm2382_vm2, %v7084_v23, %v2446_v31 }
 0x1f3   :  { %v9414_v30 = vsel %vm2380_vm3, %v2127_v22, %v2444_v58 }
 0x1f5   :  { %v7087_v50 = vpop.f32.mrb[4].mxu0 }
 0x1f6   :  { %v2449_v63 = vmul.f32 0.2, %v7087_v50  ;;  %v2140_v29 = vpop.f32.mrb[5].mxu0  ;;  %vm2385_vm4 = vcmp.gt.f32.partialorder %v7087_v50, 0.0 }
 0x1f7   :  { %v2447_v20 = vmul.f32 0.2, %v2140_v29  ;;  %v7088_v59 = vpop.f32.mrb[6].mxu0  ;;  %vm2383_vm5 = vcmp.gt.f32.partialorder %v2140_v29, 0.0 }
 0x1f8   :  { %vm2386_vm6 = vcmp.gt.f32.partialorder %v7088_v59, 0.0  ;;  %v2450_v31 = vmul.f32 0.2, %v7088_v59  ;;  %v2143_v49 = vpop.f32.mrb[7].mxu0  ;;  %v9418_v57 = vsel %vm2385_vm4, %v7087_v50, %v2449_v63 }
 0x1f9   :  { %vm2384_vm7 = vcmp.gt.f32.partialorder %v2143_v49, 0.0  ;;  %v2448_v62 = vmul.f32 0.2, %v2143_v49  ;;  %v9422_v22 = vsel %vm2383_vm5, %v2140_v29, %v2447_v20 }
 0x1fa   :  { %v9420_v24 = vsel %vm2386_vm6, %v7088_v59, %v2450_v31 }
 0x1fb   :  { %v9426_v23 = vsel %vm2384_vm7, %v2143_v49, %v2448_v62 }
 0x1fd   :  { %v7091_v21 = vpop.f32.mrb[8].mxu0 }
 0x1fe   :  { %v2453_v54 = vmul.f32 0.2, %v7091_v21  ;;  %v2156_v28 = vpop.f32.mrb[9].mxu0  ;;  %vm2389_vm8 = vcmp.gt.f32.partialorder %v7091_v21, 0.0 }
 0x1ff   :  { %v2451_v19 = vmul.f32 0.2, %v2156_v28  ;;  %v7092_v51 = vpop.f32.mrb[10].mxu0  ;;  %vm2387_vm9 = vcmp.gt.f32.partialorder %v2156_v28, 0.0 }
 0x200   :  { %vm2390_vm10 = vcmp.gt.f32.partialorder %v7092_v51, 0.0  ;;  %v2454_v50 = vmul.f32 0.2, %v7092_v51  ;;  %v2159_v59 = vpop.f32.mrb[11].mxu0  ;;  %v9430_v29 = vsel %vm2389_vm8, %v7091_v21, %v2453_v54 }
 0x201   :  { %vm2388_vm11 = vcmp.gt.f32.partialorder %v2159_v59, 0.0  ;;  %v2452_v20 = vmul.f32 0.2, %v2159_v59  ;;  %v9434_v31 = vsel %vm2387_vm9, %v2156_v28, %v2451_v19 }
 0x202   :  { %v9432_v63 = vsel %vm2390_vm10, %v7092_v51, %v2454_v50 }
 0x203   :  { %v9438_v62 = vsel %vm2388_vm11, %v2159_v59, %v2452_v20 }
 0x205   :  { %v7095_v32 = vpop.f32.mrb[12].mxu0 }
 0x206   :  { %v2457_v55 = vmul.f32 0.2, %v7095_v32  ;;  %v2172_v27 = vpop.f32.mrb[13].mxu0  ;;  %vm2393_vm12 = vcmp.gt.f32.partialorder %v7095_v32, 0.0 }
 0x207   :  { %v2455_v18 = vmul.f32 0.2, %v2172_v27  ;;  %v7096_v60 = vpop.f32.mrb[14].mxu0  ;;  %vm2391_vm13 = vcmp.gt.f32.partialorder %v2172_v27, 0.0 }
 0x208   :  { %vm2394_vm14 = vcmp.gt.f32.partialorder %v7096_v60, 0.0  ;;  %v2458_v21 = vmul.f32 0.2, %v7096_v60  ;;  %v2175_v51 = vpop.f32.mrb[15].mxu0  ;;  %v9442_v28 = vsel %vm2393_vm12, %v7095_v32, %v2457_v55 }
 0x209   :  { %vm2392_vm15 = vcmp.gt.f32.partialorder %v2175_v51, 0.0  ;;  %v2456_v19 = vmul.f32 0.2, %v2175_v51  ;;  %v9446_v50 = vsel %vm2391_vm13, %v2172_v27, %v2455_v18 }
 0x20a   :  { %v9444_v54 = vsel %vm2394_vm14, %v7096_v60, %v2458_v21 }
 0x20b   :  { %v9450_v20 = vsel %vm2392_vm15, %v2175_v51, %v2456_v19 }
 0x20d   :  { %v7099_v58 = vpop.f32.mrb[16].mxu0 }
 0x20e   :  { %v2461_v56 = vmul.f32 0.2, %v7099_v58  ;;  %v2188_v26 = vpop.f32.mrb[17].mxu0  ;;  %vm2397_vm0 = vcmp.gt.f32.partialorder %v7099_v58, 0.0 }
 0x20f   :  { %v2459_v17 = vmul.f32 0.2, %v2188_v26  ;;  %v7100_v52 = vpop.f32.mrb[18].mxu0  ;;  %vm2395_vm1 = vcmp.gt.f32.partialorder %v2188_v26, 0.0 }
 0x210   :  { %vm2398_vm2 = vcmp.gt.f32.partialorder %v7100_v52, 0.0  ;;  %v2462_v55 = vmul.f32 0.2, %v7100_v52  ;;  %v2191_v60 = vpop.f32.mrb[19].mxu0  ;;  %v9454_v27 = vsel %vm2397_vm0, %v7099_v58, %v2461_v56 }
 0x211   :  { %vm2396_vm3 = vcmp.gt.f32.partialorder %v2191_v60, 0.0  ;;  %v2460_v18 = vmul.f32 0.2, %v2191_v60  ;;  %v9458_v21 = vsel %vm2395_vm1, %v2188_v26, %v2459_v17 }
 0x212   :  { %v9456_v32 = vsel %vm2398_vm2, %v7100_v52, %v2462_v55 }
 0x213   :  { %v9462_v19 = vsel %vm2396_vm3, %v2191_v60, %v2460_v18 }
 0x215   :  { %v7103_v49 = vpop.f32.mrb[20].mxu0 }
 0x216   :  { %v2465_v40 = vmul.f32 0.2, %v7103_v49  ;;  %v2204_v25 = vpop.f32.mrb[21].mxu0  ;;  %vm2401_vm4 = vcmp.gt.f32.partialorder %v7103_v49, 0.0 }
 0x217   :  { %v2463_v8 = vmul.f32 0.2, %v2204_v25  ;;  %v7104_v48 = vpop.f32.mrb[22].mxu0  ;;  %vm2399_vm5 = vcmp.gt.f32.partialorder %v2204_v25, 0.0 }
 0x218   :  { %vm2402_vm6 = vcmp.gt.f32.partialorder %v7104_v48, 0.0  ;;  %v2466_v52 = vmul.f32 0.2, %v7104_v48  ;;  %v2207_v56 = vpop.f32.mrb[23].mxu0  ;;  %v9466_v26 = vsel %vm2401_vm4, %v7103_v49, %v2465_v40 }
 0x219   :  { %vm2400_vm7 = vcmp.gt.f32.partialorder %v2207_v56, 0.0  ;;  %v2464_v17 = vmul.f32 0.2, %v2207_v56  ;;  %12404 = vst [vmem:[#allocation287_spill] sm:$0xff] %v9466_v26  ;;  %v9470_v55 = vsel %vm2399_vm5, %v2204_v25, %v2463_v8 }
 0x21a   :  { %v9468_v58 = vsel %vm2402_vm6, %v7104_v48, %v2466_v52 }
 0x21b   :  { %v9474_v18 = vsel %vm2400_vm7, %v2207_v56, %v2464_v17 }
 0x21d   :  { %v7107_v59 = vpop.f32.mrb[24].mxu0 }
 0x21e   :  { %v2469_v39 = vmul.f32 0.2, %v7107_v59  ;;  %v2220_v16 = vpop.f32.mrb[25].mxu0  ;;  %vm2405_vm8 = vcmp.gt.f32.partialorder %v7107_v59, 0.0 }
 0x21f   :  { %v2467_v7 = vmul.f32 0.2, %v2220_v16  ;;  %v7108_v47 = vpop.f32.mrb[26].mxu0  ;;  %vm2403_vm9 = vcmp.gt.f32.partialorder %v2220_v16, 0.0 }
 0x220   :  { %vm2406_vm10 = vcmp.gt.f32.partialorder %v7108_v47, 0.0  ;;  %v2470_v40 = vmul.f32 0.2, %v7108_v47  ;;  %v2223_v48 = vpop.f32.mrb[27].mxu0  ;;  %v9478_v25 = vsel %vm2405_vm8, %v7107_v59, %v2469_v39 }
 0x221   :  { %vm2404_vm11 = vcmp.gt.f32.partialorder %v2223_v48, 0.0  ;;  %v2468_v8 = vmul.f32 0.2, %v2223_v48  ;;  %12405 = vst [vmem:[#allocation288_spill] sm:$0xff] %v9478_v25  ;;  %v9482_v52 = vsel %vm2403_vm9, %v2220_v16, %v2467_v7 }
 0x222   :  { %v9480_v49 = vsel %vm2406_vm10, %v7108_v47, %v2470_v40  ;;  %12407 = vst [vmem:[#allocation290_spill] sm:$0xff] %v9482_v52 }
 0x223   :  { %12406 = vst [vmem:[#allocation289_spill] sm:$0xff] %v9480_v49  ;;  %v9486_v17 = vsel %vm2404_vm11, %v2223_v48, %v2468_v8 }
 0x224   :  { %12408 = vst [vmem:[#allocation291_spill] sm:$0xff] %v9486_v17 }
 0x225   :  { %v7111_v51 = vpop.f32.mrb[28].mxu0 }
 0x226   :  { %v2473_v38 = vmul.f32 0.2, %v7111_v51  ;;  %v2236_v15 = vpop.f32.mrb[29].mxu0  ;;  %vm2409_vm12 = vcmp.gt.f32.partialorder %v7111_v51, 0.0 }
 0x227   :  { %v2471_v6 = vmul.f32 0.2, %v2236_v15  ;;  %v7112_v46 = vpop.f32.mrb[30].mxu0  ;;  %vm2407_vm13 = vcmp.gt.f32.partialorder %v2236_v15, 0.0 }
 0x228   :  { %vm2410_vm14 = vcmp.gt.f32.partialorder %v7112_v46, 0.0  ;;  %v2474_v39 = vmul.f32 0.2, %v7112_v46  ;;  %v2239_v47 = vpop.f32.mrb[31].mxu0  ;;  %v9490_v16 = vsel %vm2409_vm12, %v7111_v51, %v2473_v38 }
 0x229   :  { %vm2408_vm15 = vcmp.gt.f32.partialorder %v2239_v47, 0.0  ;;  %v2472_v7 = vmul.f32 0.2, %v2239_v47  ;;  %12409 = vst [vmem:[#allocation292_spill] sm:$0xff] %v9490_v16  ;;  %v9494_v40 = vsel %vm2407_vm13, %v2236_v15, %v2471_v6 }
 0x22a   :  { %v9492_v59 = vsel %vm2410_vm14, %v7112_v46, %v2474_v39  ;;  %12411 = vst [vmem:[#allocation294_spill] sm:$0xff] %v9494_v40 }
 0x22b   :  { %12410 = vst [vmem:[#allocation293_spill] sm:$0xff] %v9492_v59  ;;  %v9498_v8 = vsel %vm2408_vm15, %v2239_v47, %v2472_v7 }
 0x22c   :  { %12412 = vst [vmem:[#allocation295_spill] sm:$0xff] %v9498_v8 }
 0x22d   :  { %v7115_v60 = vpop.f32.mrb[32].mxu0 }
 0x22e   :  { %v2477_v37 = vmul.f32 0.2, %v7115_v60  ;;  %v2252_v14 = vpop.f32.mrb[33].mxu0  ;;  %vm2413_vm0 = vcmp.gt.f32.partialorder %v7115_v60, 0.0 }
 0x22f   :  { %v2475_v5 = vmul.f32 0.2, %v2252_v14  ;;  %v7116_v45 = vpop.f32.mrb[34].mxu0  ;;  %vm2411_vm1 = vcmp.gt.f32.partialorder %v2252_v14, 0.0 }
 0x230   :  { %vm2414_vm2 = vcmp.gt.f32.partialorder %v7116_v45, 0.0  ;;  %v2478_v38 = vmul.f32 0.2, %v7116_v45  ;;  %v2255_v46 = vpop.f32.mrb[35].mxu0  ;;  %v9502_v15 = vsel %vm2413_vm0, %v7115_v60, %v2477_v37 }
 0x231   :  { %vm2412_vm3 = vcmp.gt.f32.partialorder %v2255_v46, 0.0  ;;  %v2476_v6 = vmul.f32 0.2, %v2255_v46  ;;  %v9506_v39 = vsel %vm2411_vm1, %v2252_v14, %v2475_v5 }
 0x232   :  { %v9504_v51 = vsel %vm2414_vm2, %v7116_v45, %v2478_v38 }
 0x233   :  { %v9510_v7 = vsel %vm2412_vm3, %v2255_v46, %v2476_v6 }
 0x235   :  { %v7119_v56 = vpop.f32.mrb[36].mxu0 }
 0x236   :  { %v2481_v36 = vmul.f32 0.2, %v7119_v56  ;;  %v2268_v13 = vpop.f32.mrb[37].mxu0  ;;  %vm2417_vm4 = vcmp.gt.f32.partialorder %v7119_v56, 0.0 }
 0x237   :  { %v2479_v4 = vmul.f32 0.2, %v2268_v13  ;;  %v7120_v44 = vpop.f32.mrb[38].mxu0  ;;  %vm2415_vm5 = vcmp.gt.f32.partialorder %v2268_v13, 0.0 }
 0x238   :  { %vm2418_vm6 = vcmp.gt.f32.partialorder %v7120_v44, 0.0  ;;  %v2482_v37 = vmul.f32 0.2, %v7120_v44  ;;  %v2271_v45 = vpop.f32.mrb[39].mxu0  ;;  %v9514_v14 = vsel %vm2417_vm4, %v7119_v56, %v2481_v36 }
 0x239   :  { %vm2416_vm7 = vcmp.gt.f32.partialorder %v2271_v45, 0.0  ;;  %v2480_v5 = vmul.f32 0.2, %v2271_v45  ;;  %v9518_v38 = vsel %vm2415_vm5, %v2268_v13, %v2479_v4 }
 0x23a   :  { %v9516_v60 = vsel %vm2418_vm6, %v7120_v44, %v2482_v37 }
 0x23b   :  { %v9522_v6 = vsel %vm2416_vm7, %v2271_v45, %v2480_v5 }
 0x23d   :  { %v7123_v48 = vpop.f32.mrb[40].mxu0 }
 0x23e   :  { %v2485_v35 = vmul.f32 0.2, %v7123_v48  ;;  %v2284_v12 = vpop.f32.mrb[41].mxu0  ;;  %vm2421_vm8 = vcmp.gt.f32.partialorder %v7123_v48, 0.0 }
 0x23f   :  { %v2483_v3 = vmul.f32 0.2, %v2284_v12  ;;  %v7124_v43 = vpop.f32.mrb[42].mxu0  ;;  %vm2419_vm9 = vcmp.gt.f32.partialorder %v2284_v12, 0.0 }
 0x240   :  { %vm2422_vm10 = vcmp.gt.f32.partialorder %v7124_v43, 0.0  ;;  %v2486_v36 = vmul.f32 0.2, %v7124_v43  ;;  %v2287_v44 = vpop.f32.mrb[43].mxu0  ;;  %v9526_v13 = vsel %vm2421_vm8, %v7123_v48, %v2485_v35 }
 0x241   :  { %vm2420_vm11 = vcmp.gt.f32.partialorder %v2287_v44, 0.0  ;;  %v2484_v4 = vmul.f32 0.2, %v2287_v44  ;;  %v9530_v37 = vsel %vm2419_vm9, %v2284_v12, %v2483_v3 }
 0x242   :  { %v9528_v56 = vsel %vm2422_vm10, %v7124_v43, %v2486_v36 }
 0x243   :  { %v9534_v5 = vsel %vm2420_vm11, %v2287_v44, %v2484_v4 }
 0x245   :  { %v7127_v47 = vpop.f32.mrb[44].mxu0 }
 0x246   :  { %v2489_v34 = vmul.f32 0.2, %v7127_v47  ;;  %v2300_v11 = vpop.f32.mrb[45].mxu0  ;;  %vm2425_vm12 = vcmp.gt.f32.partialorder %v7127_v47, 0.0 }
 0x247   :  { %v2487_v2 = vmul.f32 0.2, %v2300_v11  ;;  %v7128_v42 = vpop.f32.mrb[46].mxu0  ;;  %vm2423_vm13 = vcmp.gt.f32.partialorder %v2300_v11, 0.0 }
 0x248   :  { %vm2426_vm14 = vcmp.gt.f32.partialorder %v7128_v42, 0.0  ;;  %v2490_v35 = vmul.f32 0.2, %v7128_v42  ;;  %v2303_v43 = vpop.f32.mrb[47].mxu0  ;;  %v9538_v12 = vsel %vm2425_vm12, %v7127_v47, %v2489_v34 }
 0x249   :  { %vm2424_vm15 = vcmp.gt.f32.partialorder %v2303_v43, 0.0  ;;  %v2488_v3 = vmul.f32 0.2, %v2303_v43  ;;  %v9542_v36 = vsel %vm2423_vm13, %v2300_v11, %v2487_v2 }
 0x24a   :  { %v9540_v48 = vsel %vm2426_vm14, %v7128_v42, %v2490_v35 }
 0x24b   :  { %v9546_v4 = vsel %vm2424_vm15, %v2303_v43, %v2488_v3 }
 0x24d   :  { %v7131_v46 = vpop.f32.mrb[48].mxu0 }
 0x24e   :  { %v2493_v33 = vmul.f32 0.2, %v7131_v46  ;;  %v2316_v10 = vpop.f32.mrb[49].mxu0  ;;  %vm2429_vm0 = vcmp.gt.f32.partialorder %v7131_v46, 0.0 }
 0x24f   :  { %v2491_v41 = vmul.f32 0.2, %v2316_v10  ;;  %v7132_v1 = vpop.f32.mrb[50].mxu0  ;;  %vm2427_vm1 = vcmp.gt.f32.partialorder %v2316_v10, 0.0 }
 0x250   :  { %vm2430_vm2 = vcmp.gt.f32.partialorder %v7132_v1, 0.0  ;;  %v2494_v34 = vmul.f32 0.2, %v7132_v1  ;;  %v2319_v42 = vpop.f32.mrb[51].mxu0  ;;  %v9550_v11 = vsel %vm2429_vm0, %v7131_v46, %v2493_v33 }
 0x251   :  { %vm2428_vm3 = vcmp.gt.f32.partialorder %v2319_v42, 0.0  ;;  %v2492_v2 = vmul.f32 0.2, %v2319_v42  ;;  %v9554_v35 = vsel %vm2427_vm1, %v2316_v10, %v2491_v41 }
 0x252   :  { %v9552_v47 = vsel %vm2430_vm2, %v7132_v1, %v2494_v34 }
 0x253   :  { %v9558_v3 = vsel %vm2428_vm3, %v2319_v42, %v2492_v2 }
 0x255   :  { %v7135_v45 = vpop.f32.mrb[52].mxu0 }
 0x256   :  { %v2497_v9 = vmul.f32 0.2, %v7135_v45  ;;  %v2332_v16 = vpop.f32.mrb[53].mxu0  ;;  %vm2433_vm4 = vcmp.gt.f32.partialorder %v7135_v45, 0.0 }
 0x257   :  { %v2495_v59 = vmul.f32 0.2, %v2332_v16  ;;  %v7136_v40 = vpop.f32.mrb[54].mxu0  ;;  %vm2431_vm5 = vcmp.gt.f32.partialorder %v2332_v16, 0.0 }
 0x258   :  { %vm2434_vm6 = vcmp.gt.f32.partialorder %v7136_v40, 0.0  ;;  %v2498_v1 = vmul.f32 0.2, %v7136_v40  ;;  %v2335_v33 = vpop.f32.mrb[55].mxu0  ;;  %v9562_v41 = vsel %vm2433_vm4, %v7135_v45, %v2497_v9 }
 0x259   :  { %vm2432_vm7 = vcmp.gt.f32.partialorder %v2335_v33, 0.0  ;;  %v2496_v10 = vmul.f32 0.2, %v2335_v33  ;;  %12413 = vst [vmem:[#allocation296_spill] sm:$0xff] %v9562_v41  ;;  %v9566_v34 = vsel %vm2431_vm5, %v2332_v16, %v2495_v59 }
 0x25a   :  { %v9564_v46 = vsel %vm2434_vm6, %v7136_v40, %v2498_v1 }
 0x25b   :  { %12414 = vst [vmem:[#allocation297_spill] sm:$0xff] %v9564_v46  ;;  %v9570_v2 = vsel %vm2432_vm7, %v2335_v33, %v2496_v10 }
 0x25d   :  { %v7139_v44 = vpop.f32.mrb[56].mxu0 }
 0x25e   :  { %v2501_v8 = vmul.f32 0.2, %v7139_v44  ;;  %v2348_v25 = vpop.f32.mrb[57].mxu0  ;;  %vm2437_vm8 = vcmp.gt.f32.partialorder %v7139_v44, 0.0 }
 0x25f   :  { %v2499_v49 = vmul.f32 0.2, %v2348_v25  ;;  %v7140_v52 = vpop.f32.mrb[58].mxu0  ;;  %vm2435_vm9 = vcmp.gt.f32.partialorder %v2348_v25, 0.0 }
 0x260   :  { %vm2438_vm10 = vcmp.gt.f32.partialorder %v7140_v52, 0.0  ;;  %v2502_v9 = vmul.f32 0.2, %v7140_v52  ;;  %v2351_v40 = vpop.f32.mrb[59].mxu0  ;;  %v9574_v59 = vsel %vm2437_vm8, %v7139_v44, %v2501_v8 }
 0x261   :  { %vm2436_vm11 = vcmp.gt.f32.partialorder %v2351_v40, 0.0  ;;  %v2500_v16 = vmul.f32 0.2, %v2351_v40  ;;  %v9578_v1 = vsel %vm2435_vm9, %v2348_v25, %v2499_v49 }
 0x262   :  { %v9576_v45 = vsel %vm2438_vm10, %v7140_v52, %v2502_v9 }
 0x263   :  { %v9582_v10 = vsel %vm2436_vm11, %v2351_v40, %v2500_v16 }
 0x265   :  { %v7143_v43 = vpop.f32.mrb[60].mxu0 }
 0x266   :  { %v2505_v17 = vmul.f32 0.2, %v7143_v43  ;;  %v2364_v41 = vpop.f32.mrb[61].mxu0  ;;  %vm2441_vm12 = vcmp.gt.f32.partialorder %v7143_v43, 0.0 }
 0x267   :  { %v2503_v46 = vmul.f32 0.2, %v2364_v41  ;;  %v7144_v26 = vpop.f32.mrb[62].mxu0  ;;  %vm2439_vm13 = vcmp.gt.f32.partialorder %v2364_v41, 0.0 }
 0x268   :  { %vm2442_vm14 = vcmp.gt.f32.partialorder %v7144_v26, 0.0  ;;  %v2506_v52 = vmul.f32 0.2, %v7144_v26  ;;  %v2367_v8 = vpop.f32.mrb[63].mxu0  ;;  %v9586_v49 = vsel %vm2441_vm12, %v7143_v43, %v2505_v17 }
 0x269   :  { %vm2440_vm15 = vcmp.gt.f32.partialorder %v2367_v8, 0.0  ;;  %v2504_v25 = vmul.f32 0.2, %v2367_v8  ;;  %v9590_v9 = vsel %vm2439_vm13, %v2364_v41, %v2503_v46 }
 0x26a   :  { %v9588_v44 = vsel %vm2442_vm14, %v7144_v26, %v2506_v52 }
 0x26b   :  { %v2602_v40 = vpack.c.bf16 %v9588_v44, %v9586_v49  ;;  %v9594_v16 = vsel %vm2440_vm15, %v2367_v8, %v2504_v25 }
 0x26c   :  { %v2601_v33 = vpack.c.bf16 %v9594_v16, %v9590_v9 }
 0x26d   :  { %7278 = dma.done.wait [#allocation6], 16384 }
 0x26e   :  { %7279 = vsyncadd [#allocation6], 4294950912  ;;  %v7286_v42 = vmov 0   ;;  %v12415_v26 = vpack.c.bf16 %v9414_v30, %v9410_v53  ;;  %v12416_v17 = vpack.c.bf16 %v9510_v7, %v9506_v39  ;;  %v12417_v43 = vpack.c.bf16 %v9408_v61, %v9406_v0  ;;  %v2608_v30 = vld [vmem:[#allocation2 + $0x8] sm:$0xff]  ;;  %v2614_v46 = vld [vmem:[#allocation2 + $0x38] sm:$0xff] }
 0x26f   :  { %2735 = vmatprep.subr.bf16.mxu1 %v7286_v42  ;;  %3344 = vmatprep.subr.bf16.mxu0 %v7286_v42  ;;  %v12418_v41 = vpack.c.bf16 %v9504_v51, %v9502_v15  ;;  %v12419_v53 = vpack.c.bf16 %v9426_v23, %v9422_v22  ;;  %v12420_v39 = vpack.c.bf16 %v9522_v6, %v9518_v38  ;;  %v12439_v15 = vld [vmem:[#allocation297_spill] sm:$0xff]  ;;  %v12440_v51 = vld [vmem:[#allocation296_spill] sm:$0xff]  ;;  %v2623_v25 = vld [vmem:[#allocation2 + $0x80] sm:$0xff] }
 0x270   :  { %2736 = vmatpush1.bf16.msra.mxu1 %v12415_v26  ;;  %3345 = vmatpush1.bf16.msra.mxu0 %v12416_v17  ;;  %v12421_v0 = vpack.c.bf16 %v9420_v24, %v9418_v57  ;;  %v12422_v61 = vpack.c.bf16 %v9516_v60, %v9514_v14  ;;  %v12423_v22 = vpack.c.bf16 %v9438_v62, %v9434_v31  ;;  %v12447_v38 = vld [vmem:[#allocation288_spill] sm:$0xff]  ;;  %v2621_v52 = vld [vmem:[#allocation2 + $0x70] sm:$0xff]  ;;  %v2626_v49 = vld [vmem:[#allocation2 + $0x98] sm:$0xff] }
 0x271   :  { %2737 = vmatprep.subr.bf16.mxu1 %v7286_v42  ;;  %3346 = vmatprep.subr.bf16.mxu0 %v7286_v42  ;;  %v12424_v23 = vpack.c.bf16 %v9534_v5, %v9530_v37  ;;  %v12425_v57 = vpack.c.bf16 %v9432_v63, %v9430_v29  ;;  %v12426_v24 = vpack.c.bf16 %v9528_v56, %v9526_v13  ;;  %v12450_v56 = vld [vmem:[#allocation295_spill] sm:$0xff]  ;;  %v12451_v37 = vld [vmem:[#allocation294_spill] sm:$0xff]  ;;  %v2624_v8 = vld [vmem:[#allocation2 + $0x88] sm:$0xff] }
 0x272   :  { %2767 = vmatprep.mubr.bf16.mxu1 %v2608_v30  ;;  %3376 = vmatprep.mubr.bf16.mxu0 %v2608_v30  ;;  %v12427_v31 = vpack.c.bf16 %v9450_v20, %v9446_v50  ;;  %v12428_v62 = vpack.c.bf16 %v9546_v4, %v9542_v36  ;;  %v12429_v29 = vpack.c.bf16 %v9444_v54, %v9442_v28  ;;  %v2607_v4 = vld [vmem:[#allocation2] sm:$0xff]  ;;  %v2625_v44 = vld [vmem:[#allocation2 + $0x90] sm:$0xff]  ;;  %v2628_v9 = vld [vmem:[#allocation2 + $0xa8] sm:$0xff] }
 0x273   :  { %v12430_v63 = vpack.c.bf16 %v9540_v48, %v9538_v12  ;;  %v12431_v50 = vpack.c.bf16 %v9462_v19, %v9458_v21  ;;  %v12432_v20 = vpack.c.bf16 %v9558_v3, %v9554_v35  ;;  %v12433_v28 = vpack.c.bf16 %v9456_v32, %v9454_v27  ;;  %v12437_v27 = vld [vmem:[#allocation287_spill] sm:$0xff]  ;;  %v12453_v12 = vld [vmem:[#allocation293_spill] sm:$0xff]  ;;  %v12454_v48 = vld [vmem:[#allocation292_spill] sm:$0xff] }
 0x274   :  { %2738 = vmatpush1.bf16.msra.mxu1 %v12417_v43  ;;  %3347 = vmatpush1.bf16.msra.mxu0 %v12418_v41  ;;  %v12434_v54 = vpack.c.bf16 %v9552_v47, %v9550_v11  ;;  %v12435_v21 = vpack.c.bf16 %v9474_v18, %v9470_v55  ;;  %v12436_v19 = vpack.c.bf16 %v9570_v2, %v9566_v34  ;;  %v12442_v55 = vld [vmem:[#allocation291_spill] sm:$0xff]  ;;  %v12443_v18 = vld [vmem:[#allocation290_spill] sm:$0xff]  ;;  %v2609_v47 = vld [vmem:[#allocation2 + $0x10] sm:$0xff] }
 0x275   :  { %2739 = vmatprep.subr.bf16.mxu1 %v7286_v42  ;;  %3348 = vmatprep.subr.bf16.mxu0 %v7286_v42  ;;  %v12438_v32 = vpack.c.bf16 %v9468_v58, %v12437_v27  ;;  %v12441_v7 = vpack.c.bf16 %v12439_v15, %v12440_v51  ;;  %v12444_v14 = vpack.c.bf16 %v12442_v55, %v12443_v18  ;;  %v12446_v58 = vld [vmem:[#allocation289_spill] sm:$0xff]  ;;  %v2610_v11 = vld [vmem:[#allocation2 + $0x18] sm:$0xff]  ;;  %v2612_v35 = vld [vmem:[#allocation2 + $0x28] sm:$0xff] }
 0x276   :  { %v12445_v60 = vpack.c.bf16 %v9582_v10, %v9578_v1  ;;  %v12448_v6 = vpack.c.bf16 %v12446_v58, %v12447_v38  ;;  %v12449_v13 = vpack.c.bf16 %v9576_v45, %v9574_v59  ;;  %v12452_v5 = vpack.c.bf16 %v12450_v56, %v12451_v37  ;;  %v2611_v3 = vld [vmem:[#allocation2 + $0x20] sm:$0xff]  ;;  %v2613_v34 = vld [vmem:[#allocation2 + $0x30] sm:$0xff]  ;;  %v2618_v59 = vld [vmem:[#allocation2 + $0x58] sm:$0xff] }
 0x277   :  { %v12455_v36 = vpack.c.bf16 %v12453_v12, %v12454_v48  ;;  %v2615_v2 = vld [vmem:[#allocation2 + $0x40] sm:$0xff]  ;;  %v2617_v45 = vld [vmem:[#allocation2 + $0x50] sm:$0xff]  ;;  %v2620_v1 = vld [vmem:[#allocation2 + $0x68] sm:$0xff] }
 0x278   :  { %2740 = vmatpush1.bf16.msra.mxu1 %v12419_v53  ;;  %3349 = vmatpush1.bf16.msra.mxu0 %v12420_v39  ;;  %v2622_v10 = vld [vmem:[#allocation2 + $0x78] sm:$0xff]  ;;  %v2629_v26 = vld [vmem:[#allocation2 + $0xb0] sm:$0xff]  ;;  %v2632_v17 = vld [vmem:[#allocation2 + $0xc8] sm:$0xff] }
 0x279   :  { %2741 = vmatprep.subr.bf16.mxu1 %v7286_v42  ;;  %3350 = vmatprep.subr.bf16.mxu0 %v7286_v42  ;;  %v2630_v16 = vld [vmem:[#allocation2 + $0xb8] sm:$0xff]  ;;  %v2631_v43 = vld [vmem:[#allocation2 + $0xc0] sm:$0xff]  ;;  %v2633_v30 = vld [vmem:[#allocation2 + $0xd0] sm:$0xff] }
 0x27a   :  { %v2634_v41 = vld [vmem:[#allocation2 + $0xd8] sm:$0xff]  ;;  %v2636_v53 = vld [vmem:[#allocation2 + $0xe8] sm:$0xff]  ;;  %v2635_v39 = vld [vmem:[#allocation2 + $0xe0] sm:$0xff] }
 0x27b   :  { %v2654_v27 = vld [vmem:[#allocation2 + $0x178] sm:$0xff]  ;;  %v2656_v15 = vld [vmem:[#allocation2 + $0x188] sm:$0xff]  ;;  %v2655_v51 = vld [vmem:[#allocation2 + $0x180] sm:$0xff] }
 0x27c   :  { %2742 = vmatpush1.bf16.msra.mxu1 %v12421_v0  ;;  %3351 = vmatpush1.bf16.msra.mxu0 %v12422_v61  ;;  %v2638_v0 = vld [vmem:[#allocation2 + $0xf8] sm:$0xff]  ;;  %v2637_v61 = vld [vmem:[#allocation2 + $0xf0] sm:$0xff]  ;;  %v2660_v18 = vld [vmem:[#allocation2 + $0x1a8] sm:$0xff] }
 0x27d   :  { %2743 = vmatprep.subr.bf16.mxu1 %v7286_v42  ;;  %3352 = vmatprep.subr.bf16.mxu0 %v7286_v42  ;;  %v2657_v55 = vld [vmem:[#allocation2 + $0x190] sm:$0xff] }
 0x280   :  { %2744 = vmatpush1.bf16.msra.mxu1 %v12423_v22  ;;  %3353 = vmatpush1.bf16.msra.mxu0 %v12424_v23  ;;  %v2640_v22 = vld [vmem:[#allocation2 + $0x108] sm:$0xff]  ;;  %v2639_v23 = vld [vmem:[#allocation2 + $0x100] sm:$0xff] }
 0x281   :  { %2745 = vmatprep.subr.bf16.mxu1 %v7286_v42  ;;  %3354 = vmatprep.subr.bf16.mxu0 %v7286_v42 }
 0x284   :  { %2746 = vmatpush1.bf16.msra.mxu1 %v12425_v57  ;;  %3355 = vmatpush1.bf16.msra.mxu0 %v12426_v24  ;;  %v2642_v57 = vld [vmem:[#allocation2 + $0x118] sm:$0xff]  ;;  %v2641_v24 = vld [vmem:[#allocation2 + $0x110] sm:$0xff] }
 0x285   :  { %2747 = vmatprep.subr.bf16.mxu1 %v7286_v42  ;;  %3356 = vmatprep.subr.bf16.mxu0 %v7286_v42 }
 0x288   :  { %2748 = vmatpush1.bf16.msra.mxu1 %v12427_v31  ;;  %3357 = vmatpush1.bf16.msra.mxu0 %v12428_v62  ;;  %v2644_v31 = vld [vmem:[#allocation2 + $0x128] sm:$0xff]  ;;  %v2643_v62 = vld [vmem:[#allocation2 + $0x120] sm:$0xff] }
 0x289   :  { %2749 = vmatprep.subr.bf16.mxu1 %v7286_v42  ;;  %3358 = vmatprep.subr.bf16.mxu0 %v7286_v42 }
 0x28c   :  { %2750 = vmatpush1.bf16.msra.mxu1 %v12429_v29  ;;  %3359 = vmatpush1.bf16.msra.mxu0 %v12430_v63  ;;  %v2646_v29 = vld [vmem:[#allocation2 + $0x138] sm:$0xff]  ;;  %v2645_v63 = vld [vmem:[#allocation2 + $0x130] sm:$0xff] }
 0x28d   :  { %2751 = vmatprep.subr.bf16.mxu1 %v7286_v42  ;;  %3360 = vmatprep.subr.bf16.mxu0 %v7286_v42 }
 0x290   :  { %2752 = vmatpush1.bf16.msra.mxu1 %v12431_v50  ;;  %3361 = vmatpush1.bf16.msra.mxu0 %v12432_v20  ;;  %v2648_v50 = vld [vmem:[#allocation2 + $0x148] sm:$0xff]  ;;  %v2647_v20 = vld [vmem:[#allocation2 + $0x140] sm:$0xff] }
 0x291   :  { %2753 = vmatprep.subr.bf16.mxu1 %v7286_v42  ;;  %3362 = vmatprep.subr.bf16.mxu0 %v7286_v42 }
 0x294   :  { %2754 = vmatpush1.bf16.msra.mxu1 %v12433_v28  ;;  %3363 = vmatpush1.bf16.msra.mxu0 %v12434_v54  ;;  %v2650_v28 = vld [vmem:[#allocation2 + $0x158] sm:$0xff]  ;;  %v2649_v54 = vld [vmem:[#allocation2 + $0x150] sm:$0xff] }
 0x295   :  { %2755 = vmatprep.subr.bf16.mxu1 %v7286_v42  ;;  %3364 = vmatprep.subr.bf16.mxu0 %v7286_v42 }
 0x298   :  { %2756 = vmatpush1.bf16.msra.mxu1 %v12435_v21  ;;  %3365 = vmatpush1.bf16.msra.mxu0 %v12436_v19  ;;  %v2652_v21 = vld [vmem:[#allocation2 + $0x168] sm:$0xff]  ;;  %v2651_v19 = vld [vmem:[#allocation2 + $0x160] sm:$0xff] }
 0x299   :  { %2757 = vmatprep.subr.bf16.mxu1 %v7286_v42  ;;  %3366 = vmatprep.subr.bf16.mxu0 %v7286_v42 }
 0x29c   :  { %2758 = vmatpush1.bf16.msra.mxu1 %v12438_v32  ;;  %3367 = vmatpush1.bf16.msra.mxu0 %v12441_v7  ;;  %v2653_v32 = vld [vmem:[#allocation2 + $0x170] sm:$0xff]  ;;  %v2658_v7 = vld [vmem:[#allocation2 + $0x198] sm:$0xff] }
 0x29d   :  { %2759 = vmatprep.subr.bf16.mxu1 %v7286_v42  ;;  %3368 = vmatprep.subr.bf16.mxu0 %v7286_v42 }
 0x2a0   :  { %2760 = vmatpush1.bf16.msra.mxu1 %v12444_v14  ;;  %3369 = vmatpush1.bf16.msra.mxu0 %v12445_v60  ;;  %v2659_v14 = vld [vmem:[#allocation2 + $0x1a0] sm:$0xff]  ;;  %v2662_v60 = vld [vmem:[#allocation2 + $0x1b8] sm:$0xff] }
 0x2a1   :  { %2761 = vmatprep.subr.bf16.mxu1 %v7286_v42  ;;  %3370 = vmatprep.subr.bf16.mxu0 %v7286_v42 }
 0x2a4   :  { %2762 = vmatpush1.bf16.msra.mxu1 %v12448_v6  ;;  %3371 = vmatpush1.bf16.msra.mxu0 %v12449_v13 }
 0x2a5   :  { %2763 = vmatprep.subr.bf16.mxu1 %v7286_v42  ;;  %3372 = vmatprep.subr.bf16.mxu0 %v7286_v42 }
 0x2a8   :  { %2764 = vmatpush1.bf16.msra.mxu1 %v12452_v5  ;;  %3373 = vmatpush1.bf16.msra.mxu0 %v2601_v33  ;;  %v2619_v33 = vld [vmem:[#allocation2 + $0x60] sm:$0xff]  ;;  %v2661_v5 = vld [vmem:[#allocation2 + $0x1b0] sm:$0xff] }
 0x2a9   :  { %2765 = vmatprep.subr.bf16.mxu1 %v7286_v42  ;;  %3374 = vmatprep.subr.bf16.mxu0 %v7286_v42  ;;  %v2616_v42 = vld [vmem:[#allocation2 + $0x48] sm:$0xff] }
 0x2ac   :  { %2766 = vmatpush1.bf16.msra.mxu1 %v12455_v36  ;;  %3375 = vmatpush1.bf16.msra.mxu0 %v2602_v40  ;;  %v2627_v40 = vld [vmem:[#allocation2 + $0xa0] sm:$0xff] }
 0x2af   :  { %2768 = vmatmul.mubr.bf16.vlgmr.msra.gmra.mrb[0].mxu1 %v2607_v4  ;;  %3377 = vmatmul.mubr.bf16.vlgmr.msra.gmra.mrb[64].mxu0 %v2607_v4 }
 0x2b0   :  { %2775 = vmatprep.mubr.bf16.mxu1 %v2610_v11  ;;  %3384 = vmatprep.mubr.bf16.mxu0 %v2610_v11  ;;  %v2664_v11 = vld [vmem:[#allocation2 + $0x1c8] sm:$0xff] }
 0x2b7   :  { %2776 = vmatmul.mubr.bf16.gmra.mrb[4].mxu1 %v2609_v47  ;;  %3385 = vmatmul.mubr.bf16.gmra.mrb[68].mxu0 %v2609_v47 }
 0x2b8   :  { %2783 = vmatprep.mubr.bf16.mxu1 %v2612_v35  ;;  %3392 = vmatprep.mubr.bf16.mxu0 %v2612_v35 }
 0x2bf   :  { %2784 = vmatmul.mubr.bf16.gmra.mrb[8].mxu1 %v2611_v3  ;;  %3393 = vmatmul.mubr.bf16.gmra.mrb[72].mxu0 %v2611_v3 }
 0x2c0   :  { %2791 = vmatprep.mubr.bf16.mxu1 %v2614_v46  ;;  %3400 = vmatprep.mubr.bf16.mxu0 %v2614_v46 }
 0x2c7   :  { %2792 = vmatmul.mubr.bf16.gmra.mrb[12].mxu1 %v2613_v34  ;;  %3401 = vmatmul.mubr.bf16.gmra.mrb[76].mxu0 %v2613_v34 }
 0x2c8   :  { %2799 = vmatprep.mubr.bf16.mxu1 %v2616_v42  ;;  %3408 = vmatprep.mubr.bf16.mxu0 %v2616_v42 }
 0x2cf   :  { %2800 = vmatmul.mubr.bf16.gmra.mrb[16].mxu1 %v2615_v2  ;;  %3409 = vmatmul.mubr.bf16.gmra.mrb[80].mxu0 %v2615_v2  ;;  %v2663_v2 = vld [vmem:[#allocation2 + $0x1c0] sm:$0xff] }
 0x2d0   :  { %2807 = vmatprep.mubr.bf16.mxu1 %v2618_v59  ;;  %3416 = vmatprep.mubr.bf16.mxu0 %v2618_v59 }
 0x2d7   :  { %2808 = vmatmul.mubr.bf16.gmra.mrb[20].mxu1 %v2617_v45  ;;  %3417 = vmatmul.mubr.bf16.gmra.mrb[84].mxu0 %v2617_v45 }
 0x2d8   :  { %2815 = vmatprep.mubr.bf16.mxu1 %v2620_v1  ;;  %3424 = vmatprep.mubr.bf16.mxu0 %v2620_v1 }
 0x2df   :  { %2816 = vmatmul.mubr.bf16.gmra.mrb[24].mxu1 %v2619_v33  ;;  %3425 = vmatmul.mubr.bf16.gmra.mrb[88].mxu0 %v2619_v33 }
 0x2e0   :  { %2823 = vmatprep.mubr.bf16.mxu1 %v2622_v10  ;;  %3432 = vmatprep.mubr.bf16.mxu0 %v2622_v10  ;;  %v2666_v10 = vld [vmem:[#allocation2 + $0x1d8] sm:$0xff] }
 0x2e7   :  { %2824 = vmatmul.mubr.bf16.gmra.mrb[28].mxu1 %v2621_v52  ;;  %3433 = vmatmul.mubr.bf16.gmra.mrb[92].mxu0 %v2621_v52 }
 0x2e8   :  { %2831 = vmatprep.mubr.bf16.mxu1 %v2624_v8  ;;  %3440 = vmatprep.mubr.bf16.mxu0 %v2624_v8 }
 0x2ef   :  { %2832 = vmatmul.mubr.bf16.gmra.mrb[32].mxu1 %v2623_v25  ;;  %3441 = vmatmul.mubr.bf16.gmra.mrb[96].mxu0 %v2623_v25 }
 0x2f0   :  { %2839 = vmatprep.mubr.bf16.mxu1 %v2626_v49  ;;  %3448 = vmatprep.mubr.bf16.mxu0 %v2626_v49 }
 0x2f7   :  { %2840 = vmatmul.mubr.bf16.gmra.mrb[36].mxu1 %v2625_v44  ;;  %3449 = vmatmul.mubr.bf16.gmra.mrb[100].mxu0 %v2625_v44 }
 0x2f8   :  { %2847 = vmatprep.mubr.bf16.mxu1 %v2628_v9  ;;  %3456 = vmatprep.mubr.bf16.mxu0 %v2628_v9 }
 0x2ff   :  { %2848 = vmatmul.mubr.bf16.gmra.mrb[40].mxu1 %v2627_v40  ;;  %3457 = vmatmul.mubr.bf16.gmra.mrb[104].mxu0 %v2627_v40  ;;  %v2665_v40 = vld [vmem:[#allocation2 + $0x1d0] sm:$0xff] }
 0x300   :  { %2855 = vmatprep.mubr.bf16.mxu1 %v2630_v16  ;;  %3464 = vmatprep.mubr.bf16.mxu0 %v2630_v16 }
 0x307   :  { %2856 = vmatmul.mubr.bf16.gmra.mrb[44].mxu1 %v2629_v26  ;;  %3465 = vmatmul.mubr.bf16.gmra.mrb[108].mxu0 %v2629_v26 }
 0x308   :  { %2863 = vmatprep.mubr.bf16.mxu1 %v2632_v17  ;;  %3472 = vmatprep.mubr.bf16.mxu0 %v2632_v17 }
 0x30f   :  { %2864 = vmatmul.mubr.bf16.gmra.mrb[48].mxu1 %v2631_v43  ;;  %3473 = vmatmul.mubr.bf16.gmra.mrb[112].mxu0 %v2631_v43 }
 0x310   :  { %2871 = vmatprep.mubr.bf16.mxu1 %v2634_v41  ;;  %3480 = vmatprep.mubr.bf16.mxu0 %v2634_v41  ;;  %v2668_v41 = vld [vmem:[#allocation2 + $0x1e8] sm:$0xff] }
 0x317   :  { %2872 = vmatmul.mubr.bf16.gmra.mrb[52].mxu1 %v2633_v30  ;;  %3481 = vmatmul.mubr.bf16.gmra.mrb[116].mxu0 %v2633_v30 }
 0x318   :  { %2879 = vmatprep.mubr.bf16.mxu1 %v2636_v53  ;;  %3488 = vmatprep.mubr.bf16.mxu0 %v2636_v53 }
 0x31f   :  { %2880 = vmatmul.mubr.bf16.gmra.mrb[56].mxu1 %v2635_v39  ;;  %3489 = vmatmul.mubr.bf16.gmra.mrb[120].mxu0 %v2635_v39 }
 0x320   :  { %2887 = vmatprep.mubr.bf16.mxu1 %v2638_v0  ;;  %3496 = vmatprep.mubr.bf16.mxu0 %v2638_v0 }
 0x327   :  { %2888 = vmatmul.mubr.bf16.gmra.mrb[60].mxu1 %v2637_v61  ;;  %3497 = vmatmul.mubr.bf16.gmra.mrb[124].mxu0 %v2637_v61 }
 0x328   :  { %2895 = vmatprep.mubr.bf16.mxu1 %v2640_v22  ;;  %3504 = vmatprep.mubr.bf16.mxu0 %v2640_v22 }
 0x32f   :  { %2896 = vmatmul.mubr.bf16.gmra.mrb[64].mxu1 %v2639_v23  ;;  %3505 = vmatmul.mubr.bf16.gmra.mrb[128].mxu0 %v2639_v23  ;;  %v2667_v23 = vld [vmem:[#allocation2 + $0x1e0] sm:$0xff] }
 0x330   :  { %2903 = vmatprep.mubr.bf16.mxu1 %v2642_v57  ;;  %3512 = vmatprep.mubr.bf16.mxu0 %v2642_v57 }
 0x337   :  { %2904 = vmatmul.mubr.bf16.gmra.mrb[68].mxu1 %v2641_v24  ;;  %3513 = vmatmul.mubr.bf16.gmra.mrb[132].mxu0 %v2641_v24 }
 0x338   :  { %2911 = vmatprep.mubr.bf16.mxu1 %v2644_v31  ;;  %3520 = vmatprep.mubr.bf16.mxu0 %v2644_v31 }
 0x33f   :  { %2912 = vmatmul.mubr.bf16.gmra.mrb[72].mxu1 %v2643_v62  ;;  %3521 = vmatmul.mubr.bf16.gmra.mrb[136].mxu0 %v2643_v62 }
 0x340   :  { %2919 = vmatprep.mubr.bf16.mxu1 %v2646_v29  ;;  %3528 = vmatprep.mubr.bf16.mxu0 %v2646_v29  ;;  %v2670_v29 = vld [vmem:[#allocation2 + $0x1f8] sm:$0xff] }
 0x347   :  { %2920 = vmatmul.mubr.bf16.gmra.mrb[76].mxu1 %v2645_v63  ;;  %3529 = vmatmul.mubr.bf16.gmra.mrb[140].mxu0 %v2645_v63 }
 0x348   :  { %2927 = vmatprep.mubr.bf16.mxu1 %v2648_v50  ;;  %3536 = vmatprep.mubr.bf16.mxu0 %v2648_v50 }
 0x34f   :  { %2928 = vmatmul.mubr.bf16.gmra.mrb[80].mxu1 %v2647_v20  ;;  %3537 = vmatmul.mubr.bf16.gmra.mrb[144].mxu0 %v2647_v20 }
 0x350   :  { %2935 = vmatprep.mubr.bf16.mxu1 %v2650_v28  ;;  %3544 = vmatprep.mubr.bf16.mxu0 %v2650_v28 }
 0x357   :  { %2936 = vmatmul.mubr.bf16.gmra.mrb[84].mxu1 %v2649_v54  ;;  %3545 = vmatmul.mubr.bf16.gmra.mrb[148].mxu0 %v2649_v54 }
 0x358   :  { %2943 = vmatprep.mubr.bf16.mxu1 %v2652_v21  ;;  %3552 = vmatprep.mubr.bf16.mxu0 %v2652_v21 }
 0x35f   :  { %2944 = vmatmul.mubr.bf16.gmra.mrb[88].mxu1 %v2651_v19  ;;  %3553 = vmatmul.mubr.bf16.gmra.mrb[152].mxu0 %v2651_v19  ;;  %v2669_v19 = vld [vmem:[#allocation2 + $0x1f0] sm:$0xff] }
 0x360   :  { %2951 = vmatprep.mubr.bf16.mxu1 %v2654_v27  ;;  %3560 = vmatprep.mubr.bf16.mxu0 %v2654_v27 }
 0x367   :  { %2952 = vmatmul.mubr.bf16.gmra.mrb[92].mxu1 %v2653_v32  ;;  %3561 = vmatmul.mubr.bf16.gmra.mrb[156].mxu0 %v2653_v32 }
 0x368   :  { %2959 = vmatprep.mubr.bf16.mxu1 %v2656_v15  ;;  %3568 = vmatprep.mubr.bf16.mxu0 %v2656_v15 }
 0x36f   :  { %2960 = vmatmul.mubr.bf16.gmra.mrb[96].mxu1 %v2655_v51  ;;  %3569 = vmatmul.mubr.bf16.gmra.mrb[160].mxu0 %v2655_v51 }
 0x370   :  { %2967 = vmatprep.mubr.bf16.mxu1 %v2658_v7  ;;  %3576 = vmatprep.mubr.bf16.mxu0 %v2658_v7  ;;  %v2672_v7 = vld [vmem:[#allocation2 + $0x208] sm:$0xff] }
 0x377   :  { %2968 = vmatmul.mubr.bf16.gmra.mrb[100].mxu1 %v2657_v55  ;;  %3577 = vmatmul.mubr.bf16.gmra.mrb[164].mxu0 %v2657_v55 }
 0x378   :  { %2975 = vmatprep.mubr.bf16.mxu1 %v2660_v18  ;;  %3584 = vmatprep.mubr.bf16.mxu0 %v2660_v18 }
 0x37f   :  { %2976 = vmatmul.mubr.bf16.gmra.mrb[104].mxu1 %v2659_v14  ;;  %3585 = vmatmul.mubr.bf16.gmra.mrb[168].mxu0 %v2659_v14 }
 0x380   :  { %2983 = vmatprep.mubr.bf16.mxu1 %v2662_v60  ;;  %3592 = vmatprep.mubr.bf16.mxu0 %v2662_v60 }
 0x382   :  { %v9726_v58 = vpop.f32.mrb[0].mxu1  ;;  %v9728_v38 = vpop.f32.mrb[64].mxu0 }
 0x383   :  { %v2771_v6 = vpop.f32.mrb[1].mxu1  ;;  %v3380_v13 = vpop.f32.mrb[65].mxu0 }
 0x384   :  { %v9730_v56 = vpop.f32.mrb[2].mxu1  ;;  %v9732_v37 = vpop.f32.mrb[66].mxu0 }
 0x385   :  { %v2774_v36 = vpop.f32.mrb[3].mxu1  ;;  %v3383_v4 = vpop.f32.mrb[67].mxu0 }
 0x387   :  { %2984 = vmatmul.mubr.bf16.gmra.mrb[108].mxu1 %v2661_v5  ;;  %3593 = vmatmul.mubr.bf16.gmra.mrb[172].mxu0 %v2661_v5  ;;  %v2671_v5 = vld [vmem:[#allocation2 + $0x200] sm:$0xff] }
 0x388   :  { %2991 = vmatprep.mubr.bf16.mxu1 %v2664_v11  ;;  %3600 = vmatprep.mubr.bf16.mxu0 %v2664_v11 }
 0x38a   :  { %v9738_v47 = vpop.f32.mrb[4].mxu1  ;;  %v9740_v35 = vpop.f32.mrb[68].mxu0 }
 0x38b   :  { %v2779_v3 = vpop.f32.mrb[5].mxu1  ;;  %v3388_v46 = vpop.f32.mrb[69].mxu0 }
 0x38c   :  { %v9742_v34 = vpop.f32.mrb[6].mxu1  ;;  %v9744_v42 = vpop.f32.mrb[70].mxu0  ;;  %v2674_v46 = vld [vmem:[#allocation2 + $0x218] sm:$0xff] }
 0x38d   :  { %v2782_v1 = vpop.f32.mrb[7].mxu1  ;;  %v3391_v33 = vpop.f32.mrb[71].mxu0 }
 0x38f   :  { %2992 = vmatmul.mubr.bf16.gmra.mrb[112].mxu1 %v2663_v2  ;;  %3601 = vmatmul.mubr.bf16.gmra.mrb[176].mxu0 %v2663_v2 }
 0x390   :  { %2999 = vmatprep.mubr.bf16.mxu1 %v2666_v10  ;;  %3608 = vmatprep.mubr.bf16.mxu0 %v2666_v10 }
 0x392   :  { %v9750_v52 = vpop.f32.mrb[8].mxu1  ;;  %v9752_v8 = vpop.f32.mrb[72].mxu0 }
 0x393   :  { %12456 = vst [vmem:[#allocation287_spill] sm:$0xff] %v9752_v8  ;;  %v2787_v25 = vpop.f32.mrb[9].mxu1  ;;  %v3396_v49 = vpop.f32.mrb[73].mxu0 }
 0x394   :  { %v9754_v44 = vpop.f32.mrb[10].mxu1  ;;  %v9756_v9 = vpop.f32.mrb[74].mxu0 }
 0x395   :  { %12457 = vst [vmem:[#allocation297_spill] sm:$0xff] %v9756_v9  ;;  %v2790_v17 = vpop.f32.mrb[11].mxu1  ;;  %v3399_v43 = vpop.f32.mrb[75].mxu0 }
 0x397   :  { %3000 = vmatmul.mubr.bf16.gmra.mrb[116].mxu1 %v2665_v40  ;;  %3609 = vmatmul.mubr.bf16.gmra.mrb[180].mxu0 %v2665_v40  ;;  %v2673_v40 = vld [vmem:[#allocation2 + $0x210] sm:$0xff] }
 0x398   :  { %3007 = vmatprep.mubr.bf16.mxu1 %v2668_v41  ;;  %3616 = vmatprep.mubr.bf16.mxu0 %v2668_v41 }
 0x39a   :  { %v9762_v30 = vpop.f32.mrb[12].mxu1  ;;  %v9764_v53 = vpop.f32.mrb[76].mxu0 }
 0x39b   :  { %12458 = vst [vmem:[#allocation296_spill] sm:$0xff] %v9764_v53  ;;  %v2795_v39 = vpop.f32.mrb[13].mxu1  ;;  %v3404_v0 = vpop.f32.mrb[77].mxu0 }
 0x39c   :  { %v9766_v61 = vpop.f32.mrb[14].mxu1  ;;  %v9768_v22 = vpop.f32.mrb[78].mxu0  ;;  %v2676_v0 = vld [vmem:[#allocation2 + $0x228] sm:$0xff] }
 0x39d   :  { %12459 = vst [vmem:[#allocation291_spill] sm:$0xff] %v9768_v22  ;;  %v2798_v31 = vpop.f32.mrb[15].mxu1  ;;  %v3407_v62 = vpop.f32.mrb[79].mxu0 }
 0x39f   :  { %3008 = vmatmul.mubr.bf16.gmra.mrb[120].mxu1 %v2667_v23  ;;  %3617 = vmatmul.mubr.bf16.gmra.mrb[184].mxu0 %v2667_v23 }
 0x3a0   :  { %3015 = vmatprep.mubr.bf16.mxu1 %v2670_v29  ;;  %3624 = vmatprep.mubr.bf16.mxu0 %v2670_v29 }
 0x3a2   :  { %v9774_v63 = vpop.f32.mrb[16].mxu1  ;;  %v9776_v50 = vpop.f32.mrb[80].mxu0 }
 0x3a3   :  { %v2803_v20 = vpop.f32.mrb[17].mxu1  ;;  %v3412_v28 = vpop.f32.mrb[81].mxu0 }
 0x3a4   :  { %v9778_v54 = vpop.f32.mrb[18].mxu1  ;;  %v9780_v21 = vpop.f32.mrb[82].mxu0 }
 0x3a5   :  { %v2806_v15 = vpop.f32.mrb[19].mxu1  ;;  %v3415_v51 = vpop.f32.mrb[83].mxu0 }
 0x3a7   :  { %3016 = vmatmul.mubr.bf16.gmra.mrb[124].mxu1 %v2669_v19  ;;  %3625 = vmatmul.mubr.bf16.gmra.mrb[188].mxu0 %v2669_v19  ;;  %v2675_v19 = vld [vmem:[#allocation2 + $0x220] sm:$0xff] }
 0x3a8   :  { %3023 = vmatprep.mubr.bf16.mxu1 %v2672_v7  ;;  %3632 = vmatprep.mubr.bf16.mxu0 %v2672_v7 }
 0x3aa   :  { %v9786_v55 = vpop.f32.mrb[20].mxu1  ;;  %v9788_v18 = vpop.f32.mrb[84].mxu0 }
 0x3ab   :  { %v2811_v14 = vpop.f32.mrb[21].mxu1  ;;  %v3420_v60 = vpop.f32.mrb[85].mxu0 }
 0x3ac   :  { %v9790_v6 = vpop.f32.mrb[22].mxu1  ;;  %v9792_v13 = vpop.f32.mrb[86].mxu0  ;;  %v2678_v60 = vld [vmem:[#allocation2 + $0x238] sm:$0xff] }
 0x3ad   :  { %v2814_v11 = vpop.f32.mrb[23].mxu1  ;;  %v3423_v3 = vpop.f32.mrb[87].mxu0 }
 0x3af   :  { %3024 = vmatmul.mubr.bf16.gmra.mrb[128].mxu1 %v2671_v5  ;;  %3633 = vmatmul.mubr.bf16.gmra.mrb[192].mxu0 %v2671_v5 }
 0x3b0   :  { %3031 = vmatprep.mubr.bf16.mxu1 %v2674_v46  ;;  %3640 = vmatprep.mubr.bf16.mxu0 %v2674_v46 }
 0x3b2   :  { %v9798_v2 = vpop.f32.mrb[24].mxu1  ;;  %v9800_v1 = vpop.f32.mrb[88].mxu0 }
 0x3b3   :  { %v2819_v33 = vpop.f32.mrb[25].mxu1  ;;  %v3428_v10 = vpop.f32.mrb[89].mxu0 }
 0x3b4   :  { %v9802_v25 = vpop.f32.mrb[26].mxu1  ;;  %v9804_v49 = vpop.f32.mrb[90].mxu0 }
 0x3b5   :  { %v2822_v41 = vpop.f32.mrb[27].mxu1  ;;  %v3431_v39 = vpop.f32.mrb[91].mxu0 }
 0x3b6   :  { %v2679_v41 = vld [vmem:[#allocation2 + $0x240] sm:$0xff] }
 0x3b7   :  { %3032 = vmatmul.mubr.bf16.gmra.mrb[132].mxu1 %v2673_v40  ;;  %3641 = vmatmul.mubr.bf16.gmra.mrb[196].mxu0 %v2673_v40  ;;  %v2677_v40 = vld [vmem:[#allocation2 + $0x230] sm:$0xff] }
 0x3b8   :  { %3039 = vmatprep.mubr.bf16.mxu1 %v2676_v0  ;;  %3648 = vmatprep.mubr.bf16.mxu0 %v2676_v0 }
 0x3ba   :  { %v9810_v23 = vpop.f32.mrb[28].mxu1  ;;  %v9812_v31 = vpop.f32.mrb[92].mxu0 }
 0x3bb   :  { %12460 = vst [vmem:[#allocation290_spill] sm:$0xff] %v9812_v31  ;;  %v2827_v62 = vpop.f32.mrb[29].mxu1  ;;  %v3436_v29 = vpop.f32.mrb[93].mxu0 }
 0x3bc   :  { %v9814_v20 = vpop.f32.mrb[30].mxu1  ;;  %v9816_v28 = vpop.f32.mrb[94].mxu0  ;;  %v2680_v29 = vld [vmem:[#allocation2 + $0x248] sm:$0xff] }
 0x3bd   :  { %12461 = vst [vmem:[#allocation289_spill] sm:$0xff] %v9816_v28  ;;  %v2830_v7 = vpop.f32.mrb[31].mxu1  ;;  %v3439_v14 = vpop.f32.mrb[95].mxu0 }
 0x3bf   :  { %3040 = vmatmul.mubr.bf16.gmra.mrb[136].mxu1 %v2675_v19  ;;  %3649 = vmatmul.mubr.bf16.gmra.mrb[200].mxu0 %v2675_v19 }
 0x3c0   :  { %3047 = vmatprep.mubr.bf16.mxu1 %v2678_v60  ;;  %3656 = vmatprep.mubr.bf16.mxu0 %v2678_v60 }
 0x3c2   :  { %v9822_v5 = vpop.f32.mrb[32].mxu1  ;;  %v9824_v11 = vpop.f32.mrb[96].mxu0 }
 0x3c3   :  { %12462 = vst [vmem:[#allocation288_spill] sm:$0xff] %v9822_v5  ;;  %12463 = vst [vmem:[#allocation295_spill] sm:$0xff] %v9824_v11  ;;  %v2835_v3 = vpop.f32.mrb[33].mxu1  ;;  %v3444_v46 = vpop.f32.mrb[97].mxu0 }
 0x3c4   :  { %v9826_v33 = vpop.f32.mrb[34].mxu1  ;;  %v9828_v10 = vpop.f32.mrb[98].mxu0 }
 0x3c5   :  { %12464 = vst [vmem:[#allocation294_spill] sm:$0xff] %v9826_v33  ;;  %12465 = vst [vmem:[#allocation293_spill] sm:$0xff] %v9828_v10  ;;  %v2838_v0 = vpop.f32.mrb[35].mxu1  ;;  %v3447_v62 = vpop.f32.mrb[99].mxu0 }
 0x3c6   :  { %v2681_v0 = vld [vmem:[#allocation2 + $0x250] sm:$0xff] }
 0x3c7   :  { %3048 = vmatmul.mubr.bf16.gmra.mrb[140].mxu1 %v2677_v40  ;;  %3657 = vmatmul.mubr.bf16.gmra.mrb[204].mxu0 %v2677_v40 }
 0x3c8   :  { %3055 = vmatprep.mubr.bf16.mxu1 %v2680_v29  ;;  %3664 = vmatprep.mubr.bf16.mxu0 %v2680_v29  ;;  %v2682_v29 = vld [vmem:[#allocation2 + $0x258] sm:$0xff] }
 0x3ca   :  { %v9834_v19 = vpop.f32.mrb[36].mxu1  ;;  %v9836_v7 = vpop.f32.mrb[100].mxu0 }
 0x3cb   :  { %12466 = vst [vmem:[#allocation292_spill] sm:$0xff] %v9834_v19  ;;  %12467 = vst [vmem:[#allocation298_spill] sm:$0xff] %v9836_v7  ;;  %v2843_v14 = vpop.f32.mrb[37].mxu1  ;;  %v3452_v60 = vpop.f32.mrb[101].mxu0 }
 0x3cc   :  { %v9838_v3 = vpop.f32.mrb[38].mxu1  ;;  %v9840_v46 = vpop.f32.mrb[102].mxu0 }
 0x3cd   :  { %12468 = vst [vmem:[#allocation299_spill] sm:$0xff] %v9838_v3  ;;  %12469 = vst [vmem:[#allocation300_spill] sm:$0xff] %v9840_v46  ;;  %v2846_v40 = vpop.f32.mrb[39].mxu1  ;;  %v3455_v39 = vpop.f32.mrb[103].mxu0 }
 0x3ce   :  { %v2683_v40 = vld [vmem:[#allocation2 + $0x260] sm:$0xff] }
 0x3cf   :  { %3056 = vmatmul.mubr.bf16.gmra.mrb[144].mxu1 %v2679_v41  ;;  %3665 = vmatmul.mubr.bf16.gmra.mrb[208].mxu0 %v2679_v41 }
 0x3d0   :  { %3063 = vmatprep.mubr.bf16.mxu1 %v2682_v29  ;;  %3672 = vmatprep.mubr.bf16.mxu0 %v2682_v29  ;;  %v2684_v29 = vld [vmem:[#allocation2 + $0x268] sm:$0xff] }
 0x3d2   :  { %v9846_v14 = vpop.f32.mrb[40].mxu1  ;;  %v9848_v60 = vpop.f32.mrb[104].mxu0 }
 0x3d3   :  { %12470 = vst [vmem:[#allocation301_spill] sm:$0xff] %v9846_v14  ;;  %12471 = vst [vmem:[#allocation302_spill] sm:$0xff] %v9848_v60  ;;  %v2851_v24 = vpop.f32.mrb[41].mxu1  ;;  %v3460_v51 = vpop.f32.mrb[105].mxu0 }
 0x3d4   :  { %v9850_v26 = vpop.f32.mrb[42].mxu1  ;;  %v9852_v43 = vpop.f32.mrb[106].mxu0 }
 0x3d5   :  { %12472 = vst [vmem:[#allocation303_spill] sm:$0xff] %v9850_v26  ;;  %12473 = vst [vmem:[#allocation304_spill] sm:$0xff] %v9852_v43  ;;  %v2854_v41 = vpop.f32.mrb[43].mxu1  ;;  %v3463_v62 = vpop.f32.mrb[107].mxu0 }
 0x3d6   :  { %v2685_v41 = vld [vmem:[#allocation2 + $0x270] sm:$0xff] }
 0x3d7   :  { %3064 = vmatmul.mubr.bf16.gmra.mrb[148].mxu1 %v2681_v0  ;;  %3673 = vmatmul.mubr.bf16.gmra.mrb[212].mxu0 %v2681_v0 }
 0x3d8   :  { %3071 = vmatprep.mubr.bf16.mxu1 %v2684_v29  ;;  %3680 = vmatprep.mubr.bf16.mxu0 %v2684_v29  ;;  %v2686_v29 = vld [vmem:[#allocation2 + $0x278] sm:$0xff] }
 0x3da   :  { %v9858_v24 = vpop.f32.mrb[44].mxu1  ;;  %v9860_v51 = vpop.f32.mrb[108].mxu0 }
 0x3db   :  { %12474 = vst [vmem:[#allocation305_spill] sm:$0xff] %v9858_v24  ;;  %12475 = vst [vmem:[#allocation306_spill] sm:$0xff] %v9860_v51  ;;  %v2859_v45 = vpop.f32.mrb[45].mxu1  ;;  %v3468_v4 = vpop.f32.mrb[109].mxu0 }
 0x3dc   :  { %v9862_v48 = vpop.f32.mrb[46].mxu1  ;;  %v9864_v32 = vpop.f32.mrb[110].mxu0 }
 0x3dd   :  { %12476 = vst [vmem:[#allocation307_spill] sm:$0xff] %v9862_v48  ;;  %12477 = vst [vmem:[#allocation308_spill] sm:$0xff] %v9864_v32  ;;  %v2862_v0 = vpop.f32.mrb[47].mxu1  ;;  %v3471_v39 = vpop.f32.mrb[111].mxu0 }
 0x3de   :  { %v2687_v0 = vld [vmem:[#allocation2 + $0x280] sm:$0xff] }
 0x3df   :  { %3072 = vmatmul.mubr.bf16.gmra.mrb[152].mxu1 %v2683_v40  ;;  %3681 = vmatmul.mubr.bf16.gmra.mrb[216].mxu0 %v2683_v40 }
 0x3e0   :  { %3079 = vmatprep.mubr.bf16.mxu1 %v2686_v29  ;;  %3688 = vmatprep.mubr.bf16.mxu0 %v2686_v29  ;;  %v2688_v29 = vld [vmem:[#allocation2 + $0x288] sm:$0xff] }
 0x3e2   :  { %v9870_v45 = vpop.f32.mrb[48].mxu1  ;;  %v9872_v4 = vpop.f32.mrb[112].mxu0 }
 0x3e3   :  { %12478 = vst [vmem:[#allocation309_spill] sm:$0xff] %v9870_v45  ;;  %12479 = vst [vmem:[#allocation310_spill] sm:$0xff] %v9872_v4  ;;  %v2867_v57 = vpop.f32.mrb[49].mxu1  ;;  %v3476_v15 = vpop.f32.mrb[113].mxu0 }
 0x3e4   :  { %v9874_v16 = vpop.f32.mrb[50].mxu1  ;;  %v9876_v17 = vpop.f32.mrb[114].mxu0 }
 0x3e5   :  { %12480 = vst [vmem:[#allocation311_spill] sm:$0xff] %v9874_v16  ;;  %12481 = vst [vmem:[#allocation312_spill] sm:$0xff] %v9876_v17  ;;  %v2870_v40 = vpop.f32.mrb[51].mxu1  ;;  %v3479_v62 = vpop.f32.mrb[115].mxu0 }
 0x3e6   :  { %v2689_v40 = vld [vmem:[#allocation2 + $0x290] sm:$0xff] }
 0x3e7   :  { %3080 = vmatmul.mubr.bf16.gmra.mrb[156].mxu1 %v2685_v41  ;;  %3689 = vmatmul.mubr.bf16.gmra.mrb[220].mxu0 %v2685_v41 }
 0x3e8   :  { %3087 = vmatprep.mubr.bf16.mxu1 %v2688_v29  ;;  %3696 = vmatprep.mubr.bf16.mxu0 %v2688_v29  ;;  %v2690_v29 = vld [vmem:[#allocation2 + $0x298] sm:$0xff] }
 0x3ea   :  { %v9882_v57 = vpop.f32.mrb[52].mxu1  ;;  %v9884_v15 = vpop.f32.mrb[116].mxu0 }
 0x3eb   :  { %12482 = vst [vmem:[#allocation313_spill] sm:$0xff] %v9882_v57  ;;  %12483 = vst [vmem:[#allocation314_spill] sm:$0xff] %v9884_v15  ;;  %v2875_v59 = vpop.f32.mrb[53].mxu1  ;;  %v3484_v36 = vpop.f32.mrb[117].mxu0 }
 0x3ec   :  { %v9886_v12 = vpop.f32.mrb[54].mxu1  ;;  %v9888_v27 = vpop.f32.mrb[118].mxu0 }
 0x3ed   :  { %12484 = vst [vmem:[#allocation315_spill] sm:$0xff] %v9886_v12  ;;  %12485 = vst [vmem:[#allocation316_spill] sm:$0xff] %v9888_v27  ;;  %v2878_v41 = vpop.f32.mrb[55].mxu1  ;;  %v3487_v39 = vpop.f32.mrb[119].mxu0 }
 0x3ee   :  { %v2691_v41 = vld [vmem:[#allocation2 + $0x2a0] sm:$0xff] }
 0x3ef   :  { %3088 = vmatmul.mubr.bf16.gmra.mrb[160].mxu1 %v2687_v0  ;;  %3697 = vmatmul.mubr.bf16.gmra.mrb[224].mxu0 %v2687_v0 }
 0x3f0   :  { %3095 = vmatprep.mubr.bf16.mxu1 %v2690_v29  ;;  %3704 = vmatprep.mubr.bf16.mxu0 %v2690_v29  ;;  %v2692_v29 = vld [vmem:[#allocation2 + $0x2a8] sm:$0xff] }
 0x3f2   :  { %v9894_v59 = vpop.f32.mrb[56].mxu1  ;;  %v9896_v36 = vpop.f32.mrb[120].mxu0 }
 0x3f3   :  { %12486 = vst [vmem:[#allocation317_spill] sm:$0xff] %v9894_v59  ;;  %12487 = vst [vmem:[#allocation318_spill] sm:$0xff] %v9896_v36  ;;  %v2883_v51 = vpop.f32.mrb[57].mxu1  ;;  %v3492_v32 = vpop.f32.mrb[121].mxu0 }
 0x3f4   :  { %v9898_v60 = vpop.f32.mrb[58].mxu1  ;;  %v9900_v43 = vpop.f32.mrb[122].mxu0 }
 0x3f5   :  { %12488 = vst [vmem:[#allocation319_spill] sm:$0xff] %v9898_v60  ;;  %12489 = vst [vmem:[#allocation320_spill] sm:$0xff] %v9900_v43  ;;  %v2886_v0 = vpop.f32.mrb[59].mxu1  ;;  %v3495_v62 = vpop.f32.mrb[123].mxu0 }
 0x3f6   :  { %v2693_v0 = vld [vmem:[#allocation2 + $0x2b0] sm:$0xff] }
 0x3f7   :  { %3096 = vmatmul.mubr.bf16.gmra.mrb[164].mxu1 %v2689_v40  ;;  %3705 = vmatmul.mubr.bf16.gmra.mrb[228].mxu0 %v2689_v40 }
 0x3f8   :  { %3103 = vmatprep.mubr.bf16.mxu1 %v2692_v29  ;;  %3712 = vmatprep.mubr.bf16.mxu0 %v2692_v29  ;;  %v2694_v29 = vld [vmem:[#allocation2 + $0x2b8] sm:$0xff] }
 0x3fa   :  { %v9906_v51 = vpop.f32.mrb[60].mxu1  ;;  %v9908_v32 = vpop.f32.mrb[124].mxu0 }
 0x3fb   :  { %12490 = vst [vmem:[#allocation321_spill] sm:$0xff] %v9906_v51  ;;  %12491 = vst [vmem:[#allocation322_spill] sm:$0xff] %v9908_v32  ;;  %v2891_v7 = vpop.f32.mrb[61].mxu1  ;;  %v3500_v46 = vpop.f32.mrb[125].mxu0 }
 0x3fc   :  { %v9910_v15 = vpop.f32.mrb[62].mxu1  ;;  %v9912_v27 = vpop.f32.mrb[126].mxu0 }
 0x3fd   :  { %12492 = vst [vmem:[#allocation323_spill] sm:$0xff] %v9910_v15  ;;  %12493 = vst [vmem:[#allocation324_spill] sm:$0xff] %v9912_v27  ;;  %v2894_v40 = vpop.f32.mrb[63].mxu1  ;;  %v3503_v39 = vpop.f32.mrb[127].mxu0 }
 0x3fe   :  { %v2695_v40 = vld [vmem:[#allocation2 + $0x2c0] sm:$0xff] }
 0x3ff   :  { %3104 = vmatmul.mubr.bf16.gmra.mrb[168].mxu1 %v2691_v41  ;;  %3713 = vmatmul.mubr.bf16.gmra.mrb[232].mxu0 %v2691_v41 }
 0x400   :  { %3111 = vmatprep.mubr.bf16.mxu1 %v2694_v29  ;;  %3720 = vmatprep.mubr.bf16.mxu0 %v2694_v29  ;;  %v2696_v29 = vld [vmem:[#allocation2 + $0x2c8] sm:$0xff] }
 0x402   :  { %v9918_v7 = vpop.f32.mrb[64].mxu1  ;;  %v9920_v46 = vpop.f32.mrb[128].mxu0 }
 0x403   :  { %v2899_v36 = vpop.f32.mrb[65].mxu1  ;;  %v3508_v43 = vpop.f32.mrb[129].mxu0 }
 0x404   :  { %v9922_v11 = vpop.f32.mrb[66].mxu1  ;;  %v9924_v10 = vpop.f32.mrb[130].mxu0 }
 0x405   :  { %v2902_v41 = vpop.f32.mrb[67].mxu1  ;;  %v3511_v62 = vpop.f32.mrb[131].mxu0 }
 0x406   :  { %v2697_v41 = vld [vmem:[#allocation2 + $0x2d0] sm:$0xff] }
 0x407   :  { %3112 = vmatmul.mubr.bf16.gmra.mrb[172].mxu1 %v2693_v0  ;;  %3721 = vmatmul.mubr.bf16.gmra.mrb[236].mxu0 %v2693_v0 }
 0x408   :  { %3119 = vmatprep.mubr.bf16.mxu1 %v2696_v29  ;;  %3728 = vmatprep.mubr.bf16.mxu0 %v2696_v29  ;;  %v2698_v29 = vld [vmem:[#allocation2 + $0x2d8] sm:$0xff] }
 0x40a   :  { %v9930_v36 = vpop.f32.mrb[68].mxu1  ;;  %v9932_v43 = vpop.f32.mrb[132].mxu0 }
 0x40b   :  { %12494 = vst [vmem:[#allocation325_spill] sm:$0xff] %v9932_v43  ;;  %v2907_v32 = vpop.f32.mrb[69].mxu1  ;;  %v3516_v27 = vpop.f32.mrb[133].mxu0 }
 0x40c   :  { %v9934_v4 = vpop.f32.mrb[70].mxu1  ;;  %v9936_v17 = vpop.f32.mrb[134].mxu0 }
 0x40d   :  { %12495 = vst [vmem:[#allocation326_spill] sm:$0xff] %v9936_v17  ;;  %v2910_v0 = vpop.f32.mrb[71].mxu1  ;;  %v3519_v39 = vpop.f32.mrb[135].mxu0 }
 0x40e   :  { %v2699_v0 = vld [vmem:[#allocation2 + $0x2e0] sm:$0xff] }
 0x40f   :  { %3120 = vmatmul.mubr.bf16.gmra.mrb[176].mxu1 %v2695_v40  ;;  %3729 = vmatmul.mubr.bf16.gmra.mrb[240].mxu0 %v2695_v40 }
 0x410   :  { %3127 = vmatprep.mubr.bf16.mxu1 %v2698_v29  ;;  %3736 = vmatprep.mubr.bf16.mxu0 %v2698_v29  ;;  %v2700_v29 = vld [vmem:[#allocation2 + $0x2e8] sm:$0xff] }
 0x412   :  { %v9942_v32 = vpop.f32.mrb[72].mxu1  ;;  %v9944_v27 = vpop.f32.mrb[136].mxu0 }
 0x413   :  { %12496 = vst [vmem:[#allocation327_spill] sm:$0xff] %v9944_v27  ;;  %v2915_v24 = vpop.f32.mrb[73].mxu1  ;;  %v3524_v48 = vpop.f32.mrb[137].mxu0 }
 0x414   :  { %v9946_v51 = vpop.f32.mrb[74].mxu1  ;;  %v9948_v15 = vpop.f32.mrb[138].mxu0 }
 0x415   :  { %12497 = vst [vmem:[#allocation328_spill] sm:$0xff] %v9948_v15  ;;  %v2918_v40 = vpop.f32.mrb[75].mxu1  ;;  %v3527_v62 = vpop.f32.mrb[139].mxu0 }
 0x416   :  { %v2701_v40 = vld [vmem:[#allocation2 + $0x2f0] sm:$0xff] }
 0x417   :  { %3128 = vmatmul.mubr.bf16.gmra.mrb[180].mxu1 %v2697_v41  ;;  %3737 = vmatmul.mubr.bf16.gmra.mrb[244].mxu0 %v2697_v41 }
 0x418   :  { %3135 = vmatprep.mubr.bf16.mxu1 %v2700_v29  ;;  %3744 = vmatprep.mubr.bf16.mxu0 %v2700_v29  ;;  %v2702_v29 = vld [vmem:[#allocation2 + $0x2f8] sm:$0xff] }
 0x41a   :  { %v9954_v24 = vpop.f32.mrb[76].mxu1  ;;  %v9956_v48 = vpop.f32.mrb[140].mxu0 }
 0x41b   :  { %12498 = vst [vmem:[#allocation329_spill] sm:$0xff] %v9956_v48  ;;  %v2923_v14 = vpop.f32.mrb[77].mxu1  ;;  %v3532_v26 = vpop.f32.mrb[141].mxu0 }
 0x41c   :  { %v9958_v59 = vpop.f32.mrb[78].mxu1  ;;  %v9960_v60 = vpop.f32.mrb[142].mxu0 }
 0x41d   :  { %12499 = vst [vmem:[#allocation330_spill] sm:$0xff] %v9960_v60  ;;  %v2926_v41 = vpop.f32.mrb[79].mxu1  ;;  %v3535_v39 = vpop.f32.mrb[143].mxu0 }
 0x41e   :  { %v2703_v41 = vld [vmem:[#allocation2 + $0x300] sm:$0xff] }
 0x41f   :  { %3136 = vmatmul.mubr.bf16.gmra.mrb[184].mxu1 %v2699_v0  ;;  %3745 = vmatmul.mubr.bf16.gmra.mrb[248].mxu0 %v2699_v0 }
 0x420   :  { %3143 = vmatprep.mubr.bf16.mxu1 %v2702_v29  ;;  %3752 = vmatprep.mubr.bf16.mxu0 %v2702_v29  ;;  %v2704_v29 = vld [vmem:[#allocation2 + $0x308] sm:$0xff] }
 0x422   :  { %v9966_v14 = vpop.f32.mrb[80].mxu1  ;;  %v9968_v26 = vpop.f32.mrb[144].mxu0 }
 0x423   :  { %v2931_v19 = vpop.f32.mrb[81].mxu1  ;;  %v3540_v3 = vpop.f32.mrb[145].mxu0 }
 0x424   :  { %v9970_v57 = vpop.f32.mrb[82].mxu1  ;;  %v9972_v12 = vpop.f32.mrb[146].mxu0 }
 0x425   :  { %v2934_v0 = vpop.f32.mrb[83].mxu1  ;;  %v3543_v62 = vpop.f32.mrb[147].mxu0 }
 0x426   :  { %v2705_v0 = vld [vmem:[#allocation2 + $0x310] sm:$0xff] }
 0x427   :  { %3144 = vmatmul.mubr.bf16.gmra.mrb[188].mxu1 %v2701_v40  ;;  %3753 = vmatmul.mubr.bf16.gmra.mrb[252].mxu0 %v2701_v40 }
 0x428   :  { %3151 = vmatprep.mubr.bf16.mxu1 %v2704_v29  ;;  %3760 = vmatprep.mubr.bf16.mxu0 %v2704_v29  ;;  %v2706_v29 = vld [vmem:[#allocation2 + $0x318] sm:$0xff] }
 0x42a   :  { %v9978_v19 = vpop.f32.mrb[84].mxu1  ;;  %v9980_v3 = vpop.f32.mrb[148].mxu0 }
 0x42b   :  { %v2939_v5 = vpop.f32.mrb[85].mxu1  ;;  %v3548_v33 = vpop.f32.mrb[149].mxu0 }
 0x42c   :  { %v9982_v48 = vpop.f32.mrb[86].mxu1  ;;  %v9984_v60 = vpop.f32.mrb[150].mxu0 }
 0x42d   :  { %v2942_v40 = vpop.f32.mrb[87].mxu1  ;;  %v3551_v39 = vpop.f32.mrb[151].mxu0 }
 0x42e   :  { %v2707_v40 = vld [vmem:[#allocation2 + $0x320] sm:$0xff] }
 0x42f   :  { %3152 = vmatmul.mubr.bf16.gmra.mrb[192].mxu1 %v2703_v41  ;;  %3761 = vmatmul.mubr.bf16.gmra.mrb[0].mxu0 %v2703_v41 }
 0x430   :  { %3159 = vmatprep.mubr.bf16.mxu1 %v2706_v29  ;;  %3768 = vmatprep.mubr.bf16.mxu0 %v2706_v29  ;;  %v2708_v29 = vld [vmem:[#allocation2 + $0x328] sm:$0xff] }
 0x432   :  { %v9990_v5 = vpop.f32.mrb[88].mxu1  ;;  %v9992_v33 = vpop.f32.mrb[152].mxu0 }
 0x433   :  { %12500 = vst [vmem:[#allocation331_spill] sm:$0xff] %v9992_v33  ;;  %v2947_v45 = vpop.f32.mrb[89].mxu1  ;;  %v3556_v16 = vpop.f32.mrb[153].mxu0 }
 0x434   :  { %v9994_v53 = vpop.f32.mrb[90].mxu1  ;;  %v9996_v22 = vpop.f32.mrb[154].mxu0 }
 0x435   :  { %12501 = vst [vmem:[#allocation332_spill] sm:$0xff] %v9996_v22  ;;  %v2950_v41 = vpop.f32.mrb[91].mxu1  ;;  %v3559_v62 = vpop.f32.mrb[155].mxu0 }
 0x436   :  { %v2709_v41 = vld [vmem:[#allocation2 + $0x330] sm:$0xff] }
 0x437   :  { %3160 = vmatmul.mubr.bf16.gmra.mrb[196].mxu1 %v2705_v0  ;;  %3769 = vmatmul.mubr.bf16.gmra.mrb[4].mxu0 %v2705_v0 }
 0x438   :  { %3167 = vmatprep.mubr.bf16.mxu1 %v2708_v29  ;;  %3776 = vmatprep.mubr.bf16.mxu0 %v2708_v29  ;;  %v2710_v29 = vld [vmem:[#allocation2 + $0x338] sm:$0xff] }
 0x43a   :  { %v10002_v45 = vpop.f32.mrb[92].mxu1  ;;  %v10004_v16 = vpop.f32.mrb[156].mxu0 }
 0x43b   :  { %12502 = vst [vmem:[#allocation333_spill] sm:$0xff] %v10004_v16  ;;  %v2955_v27 = vpop.f32.mrb[93].mxu1  ;;  %v3564_v15 = vpop.f32.mrb[157].mxu0 }
 0x43c   :  { %v10006_v31 = vpop.f32.mrb[94].mxu1  ;;  %v10008_v28 = vpop.f32.mrb[158].mxu0 }
 0x43d   :  { %12503 = vst [vmem:[#allocation334_spill] sm:$0xff] %v10008_v28  ;;  %v2958_v0 = vpop.f32.mrb[95].mxu1  ;;  %v3567_v39 = vpop.f32.mrb[159].mxu0 }
 0x43e   :  { %v2711_v0 = vld [vmem:[#allocation2 + $0x340] sm:$0xff] }
 0x43f   :  { %3168 = vmatmul.mubr.bf16.gmra.mrb[200].mxu1 %v2707_v40  ;;  %3777 = vmatmul.mubr.bf16.gmra.mrb[8].mxu0 %v2707_v40 }
 0x440   :  { %3175 = vmatprep.mubr.bf16.mxu1 %v2710_v29  ;;  %3784 = vmatprep.mubr.bf16.mxu0 %v2710_v29  ;;  %v2712_v29 = vld [vmem:[#allocation2 + $0x348] sm:$0xff] }
 0x442   :  { %v10014_v27 = vpop.f32.mrb[96].mxu1  ;;  %v10016_v15 = vpop.f32.mrb[160].mxu0 }
 0x443   :  { %12504 = vst [vmem:[#allocation335_spill] sm:$0xff] %v10014_v27  ;;  %12505 = vst [vmem:[#allocation336_spill] sm:$0xff] %v10016_v15  ;;  %v2963_v8 = vpop.f32.mrb[97].mxu1  ;;  %v3572_v9 = vpop.f32.mrb[161].mxu0 }
 0x444   :  { %v10018_v33 = vpop.f32.mrb[98].mxu1  ;;  %v10020_v22 = vpop.f32.mrb[162].mxu0 }
 0x445   :  { %12506 = vst [vmem:[#allocation337_spill] sm:$0xff] %v10018_v33  ;;  %12507 = vst [vmem:[#allocation338_spill] sm:$0xff] %v10020_v22  ;;  %v2966_v40 = vpop.f32.mrb[99].mxu1  ;;  %v3575_v62 = vpop.f32.mrb[163].mxu0 }
 0x446   :  { %v2713_v40 = vld [vmem:[#allocation2 + $0x350] sm:$0xff] }
 0x447   :  { %3176 = vmatmul.mubr.bf16.gmra.mrb[204].mxu1 %v2709_v41  ;;  %3785 = vmatmul.mubr.bf16.gmra.mrb[12].mxu0 %v2709_v41 }
 0x448   :  { %3183 = vmatprep.mubr.bf16.mxu1 %v2712_v29  ;;  %3792 = vmatprep.mubr.bf16.mxu0 %v2712_v29  ;;  %v2714_v29 = vld [vmem:[#allocation2 + $0x358] sm:$0xff] }
 0x44a   :  { %v10026_v8 = vpop.f32.mrb[100].mxu1  ;;  %v10028_v9 = vpop.f32.mrb[164].mxu0 }
 0x44b   :  { %12508 = vst [vmem:[#allocation339_spill] sm:$0xff] %v10026_v8  ;;  %12509 = vst [vmem:[#allocation340_spill] sm:$0xff] %v10028_v9  ;;  %v2971_v16 = vpop.f32.mrb[101].mxu1  ;;  %v3580_v28 = vpop.f32.mrb[165].mxu0 }
 0x44c   :  { %v10030_v43 = vpop.f32.mrb[102].mxu1  ;;  %v10032_v17 = vpop.f32.mrb[166].mxu0 }
 0x44d   :  { %12510 = vst [vmem:[#allocation341_spill] sm:$0xff] %v10030_v43  ;;  %12511 = vst [vmem:[#allocation342_spill] sm:$0xff] %v10032_v17  ;;  %v2974_v41 = vpop.f32.mrb[103].mxu1  ;;  %v3583_v39 = vpop.f32.mrb[167].mxu0 }
 0x44e   :  { %v2715_v41 = vld [vmem:[#allocation2 + $0x360] sm:$0xff] }
 0x44f   :  { %3184 = vmatmul.mubr.bf16.gmra.mrb[208].mxu1 %v2711_v0  ;;  %3793 = vmatmul.mubr.bf16.gmra.mrb[16].mxu0 %v2711_v0 }
 0x450   :  { %3191 = vmatprep.mubr.bf16.mxu1 %v2714_v29  ;;  %3800 = vmatprep.mubr.bf16.mxu0 %v2714_v29  ;;  %v2716_v29 = vld [vmem:[#allocation2 + $0x368] sm:$0xff] }
 0x452   :  { %v10038_v16 = vpop.f32.mrb[104].mxu1  ;;  %v10040_v28 = vpop.f32.mrb[168].mxu0 }
 0x453   :  { %12512 = vst [vmem:[#allocation343_spill] sm:$0xff] %v10038_v16  ;;  %12513 = vst [vmem:[#allocation344_spill] sm:$0xff] %v10040_v28  ;;  %v2979_v15 = vpop.f32.mrb[105].mxu1  ;;  %v3588_v22 = vpop.f32.mrb[169].mxu0 }
 0x454   :  { %v10042_v27 = vpop.f32.mrb[106].mxu1  ;;  %v10044_v33 = vpop.f32.mrb[170].mxu0 }
 0x455   :  { %12514 = vst [vmem:[#allocation345_spill] sm:$0xff] %v10042_v27  ;;  %12515 = vst [vmem:[#allocation346_spill] sm:$0xff] %v10044_v33  ;;  %v2982_v0 = vpop.f32.mrb[107].mxu1  ;;  %v3591_v62 = vpop.f32.mrb[171].mxu0 }
 0x456   :  { %v2717_v0 = vld [vmem:[#allocation2 + $0x370] sm:$0xff] }
 0x457   :  { %3192 = vmatmul.mubr.bf16.gmra.mrb[212].mxu1 %v2713_v40  ;;  %3801 = vmatmul.mubr.bf16.gmra.mrb[20].mxu0 %v2713_v40 }
 0x458   :  { %3199 = vmatprep.mubr.bf16.mxu1 %v2716_v29  ;;  %3808 = vmatprep.mubr.bf16.mxu0 %v2716_v29  ;;  %v2718_v29 = vld [vmem:[#allocation2 + $0x378] sm:$0xff] }
 0x45a   :  { %v10050_v15 = vpop.f32.mrb[108].mxu1  ;;  %v10052_v22 = vpop.f32.mrb[172].mxu0 }
 0x45b   :  { %12516 = vst [vmem:[#allocation347_spill] sm:$0xff] %v10050_v15  ;;  %12517 = vst [vmem:[#allocation348_spill] sm:$0xff] %v10052_v22  ;;  %v2987_v9 = vpop.f32.mrb[109].mxu1  ;;  %v3596_v17 = vpop.f32.mrb[173].mxu0 }
 0x45c   :  { %v10054_v8 = vpop.f32.mrb[110].mxu1  ;;  %v10056_v43 = vpop.f32.mrb[174].mxu0 }
 0x45d   :  { %12518 = vst [vmem:[#allocation349_spill] sm:$0xff] %v10054_v8  ;;  %12519 = vst [vmem:[#allocation350_spill] sm:$0xff] %v10056_v43  ;;  %v2990_v40 = vpop.f32.mrb[111].mxu1  ;;  %v3599_v39 = vpop.f32.mrb[175].mxu0 }
 0x45e   :  { %v2719_v40 = vld [vmem:[#allocation2 + $0x380] sm:$0xff] }
 0x45f   :  { %3200 = vmatmul.mubr.bf16.gmra.mrb[216].mxu1 %v2715_v41  ;;  %3809 = vmatmul.mubr.bf16.gmra.mrb[24].mxu0 %v2715_v41 }
 0x460   :  { %3207 = vmatprep.mubr.bf16.mxu1 %v2718_v29  ;;  %3816 = vmatprep.mubr.bf16.mxu0 %v2718_v29  ;;  %v2720_v29 = vld [vmem:[#allocation2 + $0x388] sm:$0xff] }
 0x462   :  { %v10062_v9 = vpop.f32.mrb[112].mxu1  ;;  %v10064_v17 = vpop.f32.mrb[176].mxu0 }
 0x463   :  { %12520 = vst [vmem:[#allocation351_spill] sm:$0xff] %v10062_v9  ;;  %12521 = vst [vmem:[#allocation352_spill] sm:$0xff] %v10064_v17  ;;  %v2995_v28 = vpop.f32.mrb[113].mxu1  ;;  %v3604_v33 = vpop.f32.mrb[177].mxu0 }
 0x464   :  { %v10066_v16 = vpop.f32.mrb[114].mxu1  ;;  %v10068_v27 = vpop.f32.mrb[178].mxu0 }
 0x465   :  { %12522 = vst [vmem:[#allocation353_spill] sm:$0xff] %v10066_v16  ;;  %12523 = vst [vmem:[#allocation354_spill] sm:$0xff] %v10068_v27  ;;  %v2998_v41 = vpop.f32.mrb[115].mxu1  ;;  %v3607_v62 = vpop.f32.mrb[179].mxu0 }
 0x466   :  { %v2721_v41 = vld [vmem:[#allocation2 + $0x390] sm:$0xff] }
 0x467   :  { %3208 = vmatmul.mubr.bf16.gmra.mrb[220].mxu1 %v2717_v0  ;;  %3817 = vmatmul.mubr.bf16.gmra.mrb[28].mxu0 %v2717_v0 }
 0x468   :  { %3215 = vmatprep.mubr.bf16.mxu1 %v2720_v29  ;;  %3824 = vmatprep.mubr.bf16.mxu0 %v2720_v29  ;;  %v2722_v29 = vld [vmem:[#allocation2 + $0x398] sm:$0xff] }
 0x46a   :  { %v10074_v28 = vpop.f32.mrb[116].mxu1  ;;  %v10076_v33 = vpop.f32.mrb[180].mxu0 }
 0x46b   :  { %12524 = vst [vmem:[#allocation355_spill] sm:$0xff] %v10074_v28  ;;  %12525 = vst [vmem:[#allocation356_spill] sm:$0xff] %v10076_v33  ;;  %v3003_v22 = vpop.f32.mrb[117].mxu1  ;;  %v3612_v43 = vpop.f32.mrb[181].mxu0 }
 0x46c   :  { %v10078_v15 = vpop.f32.mrb[118].mxu1  ;;  %v10080_v8 = vpop.f32.mrb[182].mxu0 }
 0x46d   :  { %12526 = vst [vmem:[#allocation357_spill] sm:$0xff] %v10078_v15  ;;  %12527 = vst [vmem:[#allocation358_spill] sm:$0xff] %v10080_v8  ;;  %v3006_v0 = vpop.f32.mrb[119].mxu1  ;;  %v3615_v39 = vpop.f32.mrb[183].mxu0 }
 0x46e   :  { %v2723_v0 = vld [vmem:[#allocation2 + $0x3a0] sm:$0xff] }
 0x46f   :  { %3216 = vmatmul.mubr.bf16.gmra.mrb[224].mxu1 %v2719_v40  ;;  %3825 = vmatmul.mubr.bf16.gmra.mrb[32].mxu0 %v2719_v40 }
 0x470   :  { %3223 = vmatprep.mubr.bf16.mxu1 %v2722_v29  ;;  %3832 = vmatprep.mubr.bf16.mxu0 %v2722_v29  ;;  %v2724_v29 = vld [vmem:[#allocation2 + $0x3a8] sm:$0xff] }
 0x472   :  { %v10086_v22 = vpop.f32.mrb[120].mxu1  ;;  %v10088_v43 = vpop.f32.mrb[184].mxu0 }
 0x473   :  { %12528 = vst [vmem:[#allocation359_spill] sm:$0xff] %v10086_v22  ;;  %12529 = vst [vmem:[#allocation360_spill] sm:$0xff] %v10088_v43  ;;  %v3011_v17 = vpop.f32.mrb[121].mxu1  ;;  %v3620_v27 = vpop.f32.mrb[185].mxu0 }
 0x474   :  { %v10090_v9 = vpop.f32.mrb[122].mxu1  ;;  %v10092_v16 = vpop.f32.mrb[186].mxu0 }
 0x475   :  { %12530 = vst [vmem:[#allocation361_spill] sm:$0xff] %v10090_v9  ;;  %12531 = vst [vmem:[#allocation362_spill] sm:$0xff] %v10092_v16  ;;  %v3014_v40 = vpop.f32.mrb[123].mxu1  ;;  %v3623_v62 = vpop.f32.mrb[187].mxu0 }
 0x476   :  { %v2725_v40 = vld [vmem:[#allocation2 + $0x3b0] sm:$0xff] }
 0x477   :  { %3224 = vmatmul.mubr.bf16.gmra.mrb[228].mxu1 %v2721_v41  ;;  %3833 = vmatmul.mubr.bf16.gmra.mrb[36].mxu0 %v2721_v41 }
 0x478   :  { %3231 = vmatprep.mubr.bf16.mxu1 %v2724_v29  ;;  %3840 = vmatprep.mubr.bf16.mxu0 %v2724_v29  ;;  %v2726_v29 = vld [vmem:[#allocation2 + $0x3b8] sm:$0xff] }
 0x47a   :  { %v10098_v17 = vpop.f32.mrb[124].mxu1  ;;  %v10100_v27 = vpop.f32.mrb[188].mxu0 }
 0x47b   :  { %12532 = vst [vmem:[#allocation363_spill] sm:$0xff] %v10098_v17  ;;  %12533 = vst [vmem:[#allocation364_spill] sm:$0xff] %v10100_v27  ;;  %v3019_v33 = vpop.f32.mrb[125].mxu1  ;;  %v3628_v8 = vpop.f32.mrb[189].mxu0 }
 0x47c   :  { %v10102_v28 = vpop.f32.mrb[126].mxu1  ;;  %v10104_v15 = vpop.f32.mrb[190].mxu0 }
 0x47d   :  { %12534 = vst [vmem:[#allocation365_spill] sm:$0xff] %v10102_v28  ;;  %12535 = vst [vmem:[#allocation366_spill] sm:$0xff] %v10104_v15  ;;  %v3022_v41 = vpop.f32.mrb[127].mxu1  ;;  %v3631_v39 = vpop.f32.mrb[191].mxu0 }
 0x47e   :  { %v2727_v41 = vld [vmem:[#allocation2 + $0x3c0] sm:$0xff] }
 0x47f   :  { %3232 = vmatmul.mubr.bf16.gmra.mrb[232].mxu1 %v2723_v0  ;;  %3841 = vmatmul.mubr.bf16.gmra.mrb[40].mxu0 %v2723_v0 }
 0x480   :  { %3239 = vmatprep.mubr.bf16.mxu1 %v2726_v29  ;;  %3848 = vmatprep.mubr.bf16.mxu0 %v2726_v29  ;;  %v2728_v29 = vld [vmem:[#allocation2 + $0x3c8] sm:$0xff] }
 0x482   :  { %v10110_v33 = vpop.f32.mrb[128].mxu1  ;;  %v10112_v8 = vpop.f32.mrb[192].mxu0 }
 0x483   :  { %12536 = vst [vmem:[#allocation367_spill] sm:$0xff] %v10110_v33  ;;  %12537 = vst [vmem:[#allocation368_spill] sm:$0xff] %v10112_v8  ;;  %v3027_v43 = vpop.f32.mrb[129].mxu1  ;;  %v3636_v16 = vpop.f32.mrb[193].mxu0 }
 0x484   :  { %v10114_v22 = vpop.f32.mrb[130].mxu1  ;;  %v10116_v9 = vpop.f32.mrb[194].mxu0 }
 0x485   :  { %12538 = vst [vmem:[#allocation369_spill] sm:$0xff] %v10114_v22  ;;  %12539 = vst [vmem:[#allocation370_spill] sm:$0xff] %v10116_v9  ;;  %v3030_v0 = vpop.f32.mrb[131].mxu1  ;;  %v3639_v62 = vpop.f32.mrb[195].mxu0 }
 0x486   :  { %v2729_v0 = vld [vmem:[#allocation2 + $0x3d0] sm:$0xff] }
 0x487   :  { %3240 = vmatmul.mubr.bf16.gmra.mrb[236].mxu1 %v2725_v40  ;;  %3849 = vmatmul.mubr.bf16.gmra.mrb[44].mxu0 %v2725_v40 }
 0x488   :  { %3247 = vmatprep.mubr.bf16.mxu1 %v2728_v29  ;;  %3856 = vmatprep.mubr.bf16.mxu0 %v2728_v29  ;;  %v2730_v29 = vld [vmem:[#allocation2 + $0x3d8] sm:$0xff] }
 0x48a   :  { %v10122_v43 = vpop.f32.mrb[132].mxu1  ;;  %v10124_v16 = vpop.f32.mrb[196].mxu0 }
 0x48b   :  { %12540 = vst [vmem:[#allocation371_spill] sm:$0xff] %v10122_v43  ;;  %12541 = vst [vmem:[#allocation372_spill] sm:$0xff] %v10124_v16  ;;  %v3035_v27 = vpop.f32.mrb[133].mxu1  ;;  %v3644_v15 = vpop.f32.mrb[197].mxu0 }
 0x48c   :  { %v10126_v17 = vpop.f32.mrb[134].mxu1  ;;  %v10128_v28 = vpop.f32.mrb[198].mxu0 }
 0x48d   :  { %12542 = vst [vmem:[#allocation373_spill] sm:$0xff] %v10126_v17  ;;  %12543 = vst [vmem:[#allocation374_spill] sm:$0xff] %v10128_v28  ;;  %v3038_v40 = vpop.f32.mrb[135].mxu1  ;;  %v3647_v39 = vpop.f32.mrb[199].mxu0 }
 0x48e   :  { %v2731_v40 = vld [vmem:[#allocation2 + $0x3e0] sm:$0xff] }
 0x48f   :  { %3248 = vmatmul.mubr.bf16.gmra.mrb[240].mxu1 %v2727_v41  ;;  %3857 = vmatmul.mubr.bf16.gmra.mrb[48].mxu0 %v2727_v41 }
 0x490   :  { %3255 = vmatprep.mubr.bf16.mxu1 %v2730_v29  ;;  %3864 = vmatprep.mubr.bf16.mxu0 %v2730_v29  ;;  %v2732_v29 = vld [vmem:[#allocation2 + $0x3e8] sm:$0xff] }
 0x492   :  { %v10134_v27 = vpop.f32.mrb[136].mxu1  ;;  %v10136_v15 = vpop.f32.mrb[200].mxu0 }
 0x493   :  { %12544 = vst [vmem:[#allocation375_spill] sm:$0xff] %v10134_v27  ;;  %12545 = vst [vmem:[#allocation376_spill] sm:$0xff] %v10136_v15  ;;  %v3043_v8 = vpop.f32.mrb[137].mxu1  ;;  %v3652_v9 = vpop.f32.mrb[201].mxu0 }
 0x494   :  { %v10138_v33 = vpop.f32.mrb[138].mxu1  ;;  %v10140_v22 = vpop.f32.mrb[202].mxu0 }
 0x495   :  { %12546 = vst [vmem:[#allocation377_spill] sm:$0xff] %v10138_v33  ;;  %12547 = vst [vmem:[#allocation378_spill] sm:$0xff] %v10140_v22  ;;  %v3046_v41 = vpop.f32.mrb[139].mxu1  ;;  %v3655_v62 = vpop.f32.mrb[203].mxu0 }
 0x496   :  { %v2733_v41 = vld [vmem:[#allocation2 + $0x3f0] sm:$0xff] }
 0x497   :  { %3256 = vmatmul.mubr.bf16.gmra.mrb[244].mxu1 %v2729_v0  ;;  %3865 = vmatmul.mubr.bf16.gmra.mrb[52].mxu0 %v2729_v0 }
 0x498   :  { %3263 = vmatprep.mubr.bf16.mxu1 %v2732_v29  ;;  %3872 = vmatprep.mubr.bf16.mxu0 %v2732_v29  ;;  %v2734_v29 = vld [vmem:[#allocation2 + $0x3f8] sm:$0xff] }
 0x49a   :  { %v10146_v8 = vpop.f32.mrb[140].mxu1  ;;  %v10148_v9 = vpop.f32.mrb[204].mxu0 }
 0x49b   :  { %12548 = vst [vmem:[#allocation379_spill] sm:$0xff] %v10146_v8  ;;  %12549 = vst [vmem:[#allocation380_spill] sm:$0xff] %v10148_v9  ;;  %v3051_v16 = vpop.f32.mrb[141].mxu1  ;;  %v3660_v28 = vpop.f32.mrb[205].mxu0 }
 0x49c   :  { %v10150_v43 = vpop.f32.mrb[142].mxu1  ;;  %v10152_v17 = vpop.f32.mrb[206].mxu0 }
 0x49d   :  { %12550 = vst [vmem:[#allocation381_spill] sm:$0xff] %v10150_v43  ;;  %12551 = vst [vmem:[#allocation382_spill] sm:$0xff] %v10152_v17  ;;  %v3054_v0 = vpop.f32.mrb[143].mxu1  ;;  %v3663_v39 = vpop.f32.mrb[207].mxu0 }
 0x49f   :  { %3264 = vmatmul.mubr.bf16.gmra.mrb[248].mxu1 %v2731_v40  ;;  %3873 = vmatmul.mubr.bf16.gmra.mrb[56].mxu0 %v2731_v40 }
 0x4a0   :  { %3271 = vmatprep.mubr.bf16.mxu1 %v2734_v29  ;;  %3880 = vmatprep.mubr.bf16.mxu0 %v2734_v29 }
 0x4a2   :  { %v10158_v16 = vpop.f32.mrb[144].mxu1  ;;  %v10160_v28 = vpop.f32.mrb[208].mxu0 }
 0x4a3   :  { %12552 = vst [vmem:[#allocation383_spill] sm:$0xff] %v10158_v16  ;;  %12553 = vst [vmem:[#allocation384_spill] sm:$0xff] %v10160_v28  ;;  %v3059_v15 = vpop.f32.mrb[145].mxu1  ;;  %v3668_v22 = vpop.f32.mrb[209].mxu0 }
 0x4a4   :  { %v10162_v27 = vpop.f32.mrb[146].mxu1  ;;  %v10164_v33 = vpop.f32.mrb[210].mxu0 }
 0x4a5   :  { %12554 = vst [vmem:[#allocation385_spill] sm:$0xff] %v10164_v33  ;;  %v3062_v40 = vpop.f32.mrb[147].mxu1  ;;  %v3671_v62 = vpop.f32.mrb[211].mxu0 }
 0x4a7   :  { %3272 = vmatmul.mubr.bf16.gmra.mrb[252].mxu1 %v2733_v41  ;;  %3881 = vmatmul.mubr.bf16.gmra.mrb[60].mxu0 %v2733_v41 }
 0x4aa   :  { %v10170_v29 = vpop.f32.mrb[148].mxu1  ;;  %v10172_v9 = vpop.f32.mrb[212].mxu0 }
 0x4ab   :  { %12555 = vst [vmem:[#allocation386_spill] sm:$0xff] %v10170_v29  ;;  %12556 = vst [vmem:[#allocation387_spill] sm:$0xff] %v10172_v9  ;;  %v3067_v22 = vpop.f32.mrb[149].mxu1  ;;  %v3676_v15 = vpop.f32.mrb[213].mxu0 }
 0x4ac   :  { %v10174_v17 = vpop.f32.mrb[150].mxu1  ;;  %v10176_v8 = vpop.f32.mrb[214].mxu0 }
 0x4ad   :  { %12557 = vst [vmem:[#allocation388_spill] sm:$0xff] %v10174_v17  ;;  %12558 = vst [vmem:[#allocation389_spill] sm:$0xff] %v10176_v8  ;;  %v3070_v40 = vpop.f32.mrb[151].mxu1  ;;  %v3679_v62 = vpop.f32.mrb[215].mxu0 }
 0x4b2   :  { %v10182_v28 = vpop.f32.mrb[152].mxu1  ;;  %v10184_v41 = vpop.f32.mrb[216].mxu0 }
 0x4b3   :  { %12559 = vst [vmem:[#allocation390_spill] sm:$0xff] %v10182_v28  ;;  %12560 = vst [vmem:[#allocation391_spill] sm:$0xff] %v10184_v41  ;;  %v3075_v33 = vpop.f32.mrb[153].mxu1  ;;  %v3684_v43 = vpop.f32.mrb[217].mxu0 }
 0x4b4   :  { %v10186_v22 = vpop.f32.mrb[154].mxu1  ;;  %v10188_v15 = vpop.f32.mrb[218].mxu0 }
 0x4b5   :  { %12561 = vst [vmem:[#allocation392_spill] sm:$0xff] %v10186_v22  ;;  %12562 = vst [vmem:[#allocation393_spill] sm:$0xff] %v10188_v15  ;;  %v3078_v29 = vpop.f32.mrb[155].mxu1  ;;  %v3687_v39 = vpop.f32.mrb[219].mxu0 }
 0x4ba   :  { %v10194_v40 = vpop.f32.mrb[156].mxu1  ;;  %v10196_v62 = vpop.f32.mrb[220].mxu0 }
 0x4bb   :  { %12563 = vst [vmem:[#allocation394_spill] sm:$0xff] %v10194_v40  ;;  %12564 = vst [vmem:[#allocation395_spill] sm:$0xff] %v10196_v62  ;;  %v3083_v9 = vpop.f32.mrb[157].mxu1  ;;  %v3692_v8 = vpop.f32.mrb[221].mxu0 }
 0x4bc   :  { %v10198_v33 = vpop.f32.mrb[158].mxu1  ;;  %v10200_v43 = vpop.f32.mrb[222].mxu0 }
 0x4bd   :  { %12565 = vst [vmem:[#allocation396_spill] sm:$0xff] %v10198_v33  ;;  %12566 = vst [vmem:[#allocation397_spill] sm:$0xff] %v10200_v43  ;;  %v3086_v28 = vpop.f32.mrb[159].mxu1  ;;  %v3695_v0 = vpop.f32.mrb[223].mxu0 }
 0x4c2   :  { %v10206_v29 = vpop.f32.mrb[160].mxu1  ;;  %v10208_v39 = vpop.f32.mrb[224].mxu0 }
 0x4c3   :  { %12567 = vst [vmem:[#allocation398_spill] sm:$0xff] %v10206_v29  ;;  %12568 = vst [vmem:[#allocation399_spill] sm:$0xff] %v10208_v39  ;;  %v3091_v41 = vpop.f32.mrb[161].mxu1  ;;  %v3700_v15 = vpop.f32.mrb[225].mxu0 }
 0x4c4   :  { %v10210_v9 = vpop.f32.mrb[162].mxu1  ;;  %v10212_v8 = vpop.f32.mrb[226].mxu0 }
 0x4c5   :  { %12569 = vst [vmem:[#allocation400_spill] sm:$0xff] %v10210_v9  ;;  %12570 = vst [vmem:[#allocation401_spill] sm:$0xff] %v10212_v8  ;;  %v3094_v40 = vpop.f32.mrb[163].mxu1  ;;  %v3703_v16 = vpop.f32.mrb[227].mxu0 }
 0x4ca   :  { %v10218_v28 = vpop.f32.mrb[164].mxu1  ;;  %v10220_v0 = vpop.f32.mrb[228].mxu0 }
 0x4cb   :  { %12571 = vst [vmem:[#allocation402_spill] sm:$0xff] %v10218_v28  ;;  %12572 = vst [vmem:[#allocation403_spill] sm:$0xff] %v10220_v0  ;;  %v3099_v62 = vpop.f32.mrb[165].mxu1  ;;  %v3708_v43 = vpop.f32.mrb[229].mxu0 }
 0x4cc   :  { %v10222_v41 = vpop.f32.mrb[166].mxu1  ;;  %v10224_v15 = vpop.f32.mrb[230].mxu0 }
 0x4cd   :  { %12573 = vst [vmem:[#allocation404_spill] sm:$0xff] %v10222_v41  ;;  %12574 = vst [vmem:[#allocation405_spill] sm:$0xff] %v10224_v15  ;;  %v3102_v29 = vpop.f32.mrb[167].mxu1  ;;  %v3711_v17 = vpop.f32.mrb[231].mxu0 }
 0x4d2   :  { %v10230_v40 = vpop.f32.mrb[168].mxu1  ;;  %v10232_v16 = vpop.f32.mrb[232].mxu0 }
 0x4d3   :  { %12575 = vst [vmem:[#allocation406_spill] sm:$0xff] %v10230_v40  ;;  %12576 = vst [vmem:[#allocation407_spill] sm:$0xff] %v10232_v16  ;;  %v3107_v39 = vpop.f32.mrb[169].mxu1  ;;  %v3716_v8 = vpop.f32.mrb[233].mxu0 }
 0x4d4   :  { %v10234_v62 = vpop.f32.mrb[170].mxu1  ;;  %v10236_v43 = vpop.f32.mrb[234].mxu0 }
 0x4d5   :  { %12577 = vst [vmem:[#allocation408_spill] sm:$0xff] %v10234_v62  ;;  %12578 = vst [vmem:[#allocation409_spill] sm:$0xff] %v10236_v43  ;;  %v3110_v28 = vpop.f32.mrb[171].mxu1  ;;  %v3719_v22 = vpop.f32.mrb[235].mxu0 }
 0x4da   :  { %v10242_v29 = vpop.f32.mrb[172].mxu1  ;;  %v10244_v17 = vpop.f32.mrb[236].mxu0 }
 0x4db   :  { %12579 = vst [vmem:[#allocation410_spill] sm:$0xff] %v10242_v29  ;;  %12580 = vst [vmem:[#allocation411_spill] sm:$0xff] %v10244_v17  ;;  %v3115_v0 = vpop.f32.mrb[173].mxu1  ;;  %v3724_v15 = vpop.f32.mrb[237].mxu0 }
 0x4dc   :  { %v10246_v39 = vpop.f32.mrb[174].mxu1  ;;  %v10248_v8 = vpop.f32.mrb[238].mxu0 }
 0x4dd   :  { %12581 = vst [vmem:[#allocation412_spill] sm:$0xff] %v10246_v39  ;;  %12582 = vst [vmem:[#allocation413_spill] sm:$0xff] %v10248_v8  ;;  %v3118_v40 = vpop.f32.mrb[175].mxu1  ;;  %v3727_v33 = vpop.f32.mrb[239].mxu0 }
 0x4e2   :  { %v10254_v28 = vpop.f32.mrb[176].mxu1  ;;  %v10256_v22 = vpop.f32.mrb[240].mxu0 }
 0x4e3   :  { %12583 = vst [vmem:[#allocation414_spill] sm:$0xff] %v10254_v28  ;;  %12584 = vst [vmem:[#allocation415_spill] sm:$0xff] %v10256_v22  ;;  %v3123_v16 = vpop.f32.mrb[177].mxu1  ;;  %v3732_v43 = vpop.f32.mrb[241].mxu0 }
 0x4e4   :  { %v10258_v0 = vpop.f32.mrb[178].mxu1  ;;  %v10260_v15 = vpop.f32.mrb[242].mxu0 }
 0x4e5   :  { %12585 = vst [vmem:[#allocation416_spill] sm:$0xff] %v10258_v0  ;;  %12586 = vst [vmem:[#allocation417_spill] sm:$0xff] %v10260_v15  ;;  %v3126_v29 = vpop.f32.mrb[179].mxu1  ;;  %v3735_v9 = vpop.f32.mrb[243].mxu0 }
 0x4ea   :  { %v10266_v40 = vpop.f32.mrb[180].mxu1  ;;  %v10268_v33 = vpop.f32.mrb[244].mxu0 }
 0x4eb   :  { %12587 = vst [vmem:[#allocation418_spill] sm:$0xff] %v10266_v40  ;;  %12588 = vst [vmem:[#allocation419_spill] sm:$0xff] %v10268_v33  ;;  %v3131_v17 = vpop.f32.mrb[181].mxu1  ;;  %v3740_v8 = vpop.f32.mrb[245].mxu0 }
 0x4ec   :  { %v10270_v16 = vpop.f32.mrb[182].mxu1  ;;  %v10272_v43 = vpop.f32.mrb[246].mxu0 }
 0x4ed   :  { %12589 = vst [vmem:[#allocation420_spill] sm:$0xff] %v10270_v16  ;;  %12590 = vst [vmem:[#allocation421_spill] sm:$0xff] %v10272_v43  ;;  %v3134_v28 = vpop.f32.mrb[183].mxu1  ;;  %v3743_v41 = vpop.f32.mrb[247].mxu0 }
 0x4f2   :  { %v10278_v29 = vpop.f32.mrb[184].mxu1  ;;  %v10280_v9 = vpop.f32.mrb[248].mxu0 }
 0x4f3   :  { %12591 = vst [vmem:[#allocation422_spill] sm:$0xff] %v10278_v29  ;;  %12592 = vst [vmem:[#allocation423_spill] sm:$0xff] %v10280_v9  ;;  %v3139_v22 = vpop.f32.mrb[185].mxu1  ;;  %v3748_v15 = vpop.f32.mrb[249].mxu0 }
 0x4f4   :  { %v10282_v17 = vpop.f32.mrb[186].mxu1  ;;  %v10284_v8 = vpop.f32.mrb[250].mxu0 }
 0x4f5   :  { %12593 = vst [vmem:[#allocation424_spill] sm:$0xff] %v10282_v17  ;;  %12594 = vst [vmem:[#allocation425_spill] sm:$0xff] %v10284_v8  ;;  %v3142_v40 = vpop.f32.mrb[187].mxu1  ;;  %v3751_v62 = vpop.f32.mrb[251].mxu0 }
 0x4fa   :  { %v10290_v28 = vpop.f32.mrb[188].mxu1  ;;  %v10292_v41 = vpop.f32.mrb[252].mxu0 }
 0x4fb   :  { %12595 = vst [vmem:[#allocation426_spill] sm:$0xff] %v10290_v28  ;;  %12596 = vst [vmem:[#allocation427_spill] sm:$0xff] %v10292_v41  ;;  %v3147_v33 = vpop.f32.mrb[189].mxu1  ;;  %v3756_v43 = vpop.f32.mrb[253].mxu0 }
 0x4fc   :  { %v10294_v22 = vpop.f32.mrb[190].mxu1  ;;  %v10296_v15 = vpop.f32.mrb[254].mxu0 }
 0x4fd   :  { %12597 = vst [vmem:[#allocation428_spill] sm:$0xff] %v10294_v22  ;;  %12598 = vst [vmem:[#allocation429_spill] sm:$0xff] %v10296_v15  ;;  %v3150_v29 = vpop.f32.mrb[191].mxu1  ;;  %v3759_v39 = vpop.f32.mrb[255].mxu0 }
 0x502   :  { %v10302_v40 = vpop.f32.mrb[192].mxu1  ;;  %v10304_v62 = vpop.f32.mrb[0].mxu0 }
 0x503   :  { %12599 = vst [vmem:[#allocation430_spill] sm:$0xff] %v10302_v40  ;;  %12600 = vst [vmem:[#allocation431_spill] sm:$0xff] %v10304_v62  ;;  %v3155_v9 = vpop.f32.mrb[193].mxu1  ;;  %v3764_v8 = vpop.f32.mrb[1].mxu0 }
 0x504   :  { %v10306_v33 = vpop.f32.mrb[194].mxu1  ;;  %v10308_v43 = vpop.f32.mrb[2].mxu0 }
 0x505   :  { %12601 = vst [vmem:[#allocation432_spill] sm:$0xff] %v10306_v33  ;;  %12602 = vst [vmem:[#allocation433_spill] sm:$0xff] %v10308_v43  ;;  %v3158_v28 = vpop.f32.mrb[195].mxu1  ;;  %v3767_v0 = vpop.f32.mrb[3].mxu0 }
 0x50a   :  { %v10314_v29 = vpop.f32.mrb[196].mxu1  ;;  %v10316_v39 = vpop.f32.mrb[4].mxu0 }
 0x50b   :  { %12603 = vst [vmem:[#allocation434_spill] sm:$0xff] %v10314_v29  ;;  %12604 = vst [vmem:[#allocation435_spill] sm:$0xff] %v10316_v39  ;;  %v3163_v41 = vpop.f32.mrb[197].mxu1  ;;  %v3772_v15 = vpop.f32.mrb[5].mxu0 }
 0x50c   :  { %v10318_v9 = vpop.f32.mrb[198].mxu1  ;;  %v10320_v8 = vpop.f32.mrb[6].mxu0 }
 0x50d   :  { %12605 = vst [vmem:[#allocation436_spill] sm:$0xff] %v10318_v9  ;;  %12606 = vst [vmem:[#allocation437_spill] sm:$0xff] %v10320_v8  ;;  %v3166_v40 = vpop.f32.mrb[199].mxu1  ;;  %v3775_v16 = vpop.f32.mrb[7].mxu0 }
 0x512   :  { %v10326_v28 = vpop.f32.mrb[200].mxu1  ;;  %v10328_v0 = vpop.f32.mrb[8].mxu0 }
 0x513   :  { %12607 = vst [vmem:[#allocation438_spill] sm:$0xff] %v10326_v28  ;;  %12608 = vst [vmem:[#allocation439_spill] sm:$0xff] %v10328_v0  ;;  %v3171_v62 = vpop.f32.mrb[201].mxu1  ;;  %v3780_v43 = vpop.f32.mrb[9].mxu0 }
 0x514   :  { %v10330_v41 = vpop.f32.mrb[202].mxu1  ;;  %v10332_v15 = vpop.f32.mrb[10].mxu0 }
 0x515   :  { %12609 = vst [vmem:[#allocation440_spill] sm:$0xff] %v10330_v41  ;;  %12610 = vst [vmem:[#allocation441_spill] sm:$0xff] %v10332_v15  ;;  %v3174_v29 = vpop.f32.mrb[203].mxu1  ;;  %v3783_v17 = vpop.f32.mrb[11].mxu0 }
 0x51a   :  { %v10338_v40 = vpop.f32.mrb[204].mxu1  ;;  %v10340_v16 = vpop.f32.mrb[12].mxu0 }
 0x51b   :  { %12611 = vst [vmem:[#allocation442_spill] sm:$0xff] %v10338_v40  ;;  %12612 = vst [vmem:[#allocation443_spill] sm:$0xff] %v10340_v16  ;;  %v3179_v39 = vpop.f32.mrb[205].mxu1  ;;  %v3788_v8 = vpop.f32.mrb[13].mxu0 }
 0x51c   :  { %v10342_v62 = vpop.f32.mrb[206].mxu1  ;;  %v10344_v43 = vpop.f32.mrb[14].mxu0 }
 0x51d   :  { %12613 = vst [vmem:[#allocation444_spill] sm:$0xff] %v10342_v62  ;;  %12614 = vst [vmem:[#allocation445_spill] sm:$0xff] %v10344_v43  ;;  %v3182_v28 = vpop.f32.mrb[207].mxu1  ;;  %v3791_v22 = vpop.f32.mrb[15].mxu0 }
 0x522   :  { %v10350_v29 = vpop.f32.mrb[208].mxu1  ;;  %v10352_v17 = vpop.f32.mrb[16].mxu0 }
 0x523   :  { %12615 = vst [vmem:[#allocation446_spill] sm:$0xff] %v10350_v29  ;;  %12616 = vst [vmem:[#allocation447_spill] sm:$0xff] %v10352_v17  ;;  %v3187_v0 = vpop.f32.mrb[209].mxu1  ;;  %v3796_v15 = vpop.f32.mrb[17].mxu0 }
 0x524   :  { %v10354_v39 = vpop.f32.mrb[210].mxu1  ;;  %v10356_v8 = vpop.f32.mrb[18].mxu0 }
 0x525   :  { %12617 = vst [vmem:[#allocation448_spill] sm:$0xff] %v10354_v39  ;;  %12618 = vst [vmem:[#allocation449_spill] sm:$0xff] %v10356_v8  ;;  %v3190_v40 = vpop.f32.mrb[211].mxu1  ;;  %v3799_v33 = vpop.f32.mrb[19].mxu0 }
 0x52a   :  { %v10362_v28 = vpop.f32.mrb[212].mxu1  ;;  %v10364_v22 = vpop.f32.mrb[20].mxu0 }
 0x52b   :  { %12619 = vst [vmem:[#allocation450_spill] sm:$0xff] %v10362_v28  ;;  %12620 = vst [vmem:[#allocation451_spill] sm:$0xff] %v10364_v22  ;;  %v3195_v16 = vpop.f32.mrb[213].mxu1  ;;  %v3804_v43 = vpop.f32.mrb[21].mxu0 }
 0x52c   :  { %v10366_v0 = vpop.f32.mrb[214].mxu1  ;;  %v10368_v15 = vpop.f32.mrb[22].mxu0 }
 0x52d   :  { %12621 = vst [vmem:[#allocation452_spill] sm:$0xff] %v10366_v0  ;;  %12622 = vst [vmem:[#allocation453_spill] sm:$0xff] %v10368_v15  ;;  %v3198_v29 = vpop.f32.mrb[215].mxu1  ;;  %v3807_v9 = vpop.f32.mrb[23].mxu0 }
 0x532   :  { %v10374_v40 = vpop.f32.mrb[216].mxu1  ;;  %v10376_v33 = vpop.f32.mrb[24].mxu0 }
 0x533   :  { %12623 = vst [vmem:[#allocation454_spill] sm:$0xff] %v10374_v40  ;;  %12624 = vst [vmem:[#allocation455_spill] sm:$0xff] %v10376_v33  ;;  %v3203_v17 = vpop.f32.mrb[217].mxu1  ;;  %v3812_v8 = vpop.f32.mrb[25].mxu0 }
 0x534   :  { %v10378_v16 = vpop.f32.mrb[218].mxu1  ;;  %v10380_v43 = vpop.f32.mrb[26].mxu0 }
 0x535   :  { %12625 = vst [vmem:[#allocation456_spill] sm:$0xff] %v10378_v16  ;;  %12626 = vst [vmem:[#allocation457_spill] sm:$0xff] %v10380_v43  ;;  %v3206_v28 = vpop.f32.mrb[219].mxu1  ;;  %v3815_v41 = vpop.f32.mrb[27].mxu0 }
 0x53a   :  { %v10386_v29 = vpop.f32.mrb[220].mxu1  ;;  %v10388_v9 = vpop.f32.mrb[28].mxu0 }
 0x53b   :  { %12627 = vst [vmem:[#allocation458_spill] sm:$0xff] %v10386_v29  ;;  %12628 = vst [vmem:[#allocation459_spill] sm:$0xff] %v10388_v9  ;;  %v3211_v22 = vpop.f32.mrb[221].mxu1  ;;  %v3820_v15 = vpop.f32.mrb[29].mxu0 }
 0x53c   :  { %v10390_v17 = vpop.f32.mrb[222].mxu1  ;;  %v10392_v8 = vpop.f32.mrb[30].mxu0 }
 0x53d   :  { %12629 = vst [vmem:[#allocation460_spill] sm:$0xff] %v10390_v17  ;;  %12630 = vst [vmem:[#allocation461_spill] sm:$0xff] %v10392_v8  ;;  %v3214_v40 = vpop.f32.mrb[223].mxu1  ;;  %v3823_v62 = vpop.f32.mrb[31].mxu0 }
 0x542   :  { %v10398_v28 = vpop.f32.mrb[224].mxu1  ;;  %v10400_v41 = vpop.f32.mrb[32].mxu0 }
 0x543   :  { %12631 = vst [vmem:[#allocation462_spill] sm:$0xff] %v10398_v28  ;;  %12632 = vst [vmem:[#allocation463_spill] sm:$0xff] %v10400_v41  ;;  %v3219_v33 = vpop.f32.mrb[225].mxu1  ;;  %v3828_v43 = vpop.f32.mrb[33].mxu0 }
 0x544   :  { %v10402_v22 = vpop.f32.mrb[226].mxu1  ;;  %v10404_v15 = vpop.f32.mrb[34].mxu0 }
 0x545   :  { %12633 = vst [vmem:[#allocation464_spill] sm:$0xff] %v10402_v22  ;;  %12634 = vst [vmem:[#allocation465_spill] sm:$0xff] %v10404_v15  ;;  %v3222_v29 = vpop.f32.mrb[227].mxu1  ;;  %v3831_v39 = vpop.f32.mrb[35].mxu0 }
 0x54a   :  { %v10410_v40 = vpop.f32.mrb[228].mxu1  ;;  %v10412_v62 = vpop.f32.mrb[36].mxu0 }
 0x54b   :  { %12635 = vst [vmem:[#allocation466_spill] sm:$0xff] %v10410_v40  ;;  %12636 = vst [vmem:[#allocation467_spill] sm:$0xff] %v10412_v62  ;;  %v3227_v9 = vpop.f32.mrb[229].mxu1  ;;  %v3836_v8 = vpop.f32.mrb[37].mxu0 }
 0x54c   :  { %v10414_v33 = vpop.f32.mrb[230].mxu1  ;;  %v10416_v43 = vpop.f32.mrb[38].mxu0 }
 0x54d   :  { %12637 = vst [vmem:[#allocation468_spill] sm:$0xff] %v10414_v33  ;;  %12638 = vst [vmem:[#allocation469_spill] sm:$0xff] %v10416_v43  ;;  %v3230_v28 = vpop.f32.mrb[231].mxu1  ;;  %v3839_v0 = vpop.f32.mrb[39].mxu0 }
 0x552   :  { %v10422_v29 = vpop.f32.mrb[232].mxu1  ;;  %v10424_v39 = vpop.f32.mrb[40].mxu0 }
 0x553   :  { %12639 = vst [vmem:[#allocation470_spill] sm:$0xff] %v10422_v29  ;;  %12640 = vst [vmem:[#allocation471_spill] sm:$0xff] %v10424_v39  ;;  %v3235_v41 = vpop.f32.mrb[233].mxu1  ;;  %v3844_v15 = vpop.f32.mrb[41].mxu0 }
 0x554   :  { %v10426_v9 = vpop.f32.mrb[234].mxu1  ;;  %v10428_v8 = vpop.f32.mrb[42].mxu0 }
 0x555   :  { %12641 = vst [vmem:[#allocation472_spill] sm:$0xff] %v10426_v9  ;;  %12642 = vst [vmem:[#allocation473_spill] sm:$0xff] %v10428_v8  ;;  %v3238_v40 = vpop.f32.mrb[235].mxu1  ;;  %v3847_v16 = vpop.f32.mrb[43].mxu0 }
 0x55a   :  { %v10434_v28 = vpop.f32.mrb[236].mxu1  ;;  %v10436_v0 = vpop.f32.mrb[44].mxu0 }
 0x55b   :  { %12643 = vst [vmem:[#allocation474_spill] sm:$0xff] %v10434_v28  ;;  %12644 = vst [vmem:[#allocation475_spill] sm:$0xff] %v10436_v0  ;;  %v3243_v62 = vpop.f32.mrb[237].mxu1  ;;  %v3852_v43 = vpop.f32.mrb[45].mxu0 }
 0x55c   :  { %v10438_v41 = vpop.f32.mrb[238].mxu1  ;;  %v10440_v15 = vpop.f32.mrb[46].mxu0 }
 0x55d   :  { %12645 = vst [vmem:[#allocation476_spill] sm:$0xff] %v10438_v41  ;;  %12646 = vst [vmem:[#allocation477_spill] sm:$0xff] %v10440_v15  ;;  %v3246_v29 = vpop.f32.mrb[239].mxu1  ;;  %v3855_v17 = vpop.f32.mrb[47].mxu0 }
 0x562   :  { %v10446_v40 = vpop.f32.mrb[240].mxu1  ;;  %v10448_v16 = vpop.f32.mrb[48].mxu0 }
 0x563   :  { %12647 = vst [vmem:[#allocation478_spill] sm:$0xff] %v10446_v40  ;;  %12648 = vst [vmem:[#allocation479_spill] sm:$0xff] %v10448_v16  ;;  %v3251_v39 = vpop.f32.mrb[241].mxu1  ;;  %v3860_v8 = vpop.f32.mrb[49].mxu0 }
 0x564   :  { %v10450_v62 = vpop.f32.mrb[242].mxu1  ;;  %v10452_v43 = vpop.f32.mrb[50].mxu0 }
 0x565   :  { %12649 = vst [vmem:[#allocation480_spill] sm:$0xff] %v10450_v62  ;;  %12650 = vst [vmem:[#allocation481_spill] sm:$0xff] %v10452_v43  ;;  %v3254_v28 = vpop.f32.mrb[243].mxu1  ;;  %v3863_v22 = vpop.f32.mrb[51].mxu0 }
 0x56a   :  { %v10458_v29 = vpop.f32.mrb[244].mxu1  ;;  %v10460_v17 = vpop.f32.mrb[52].mxu0 }
 0x56b   :  { %12651 = vst [vmem:[#allocation482_spill] sm:$0xff] %v10458_v29  ;;  %12652 = vst [vmem:[#allocation483_spill] sm:$0xff] %v10460_v17  ;;  %v3259_v0 = vpop.f32.mrb[245].mxu1  ;;  %v3868_v15 = vpop.f32.mrb[53].mxu0 }
 0x56c   :  { %v10462_v39 = vpop.f32.mrb[246].mxu1  ;;  %v10464_v8 = vpop.f32.mrb[54].mxu0 }
 0x56d   :  { %12653 = vst [vmem:[#allocation484_spill] sm:$0xff] %v10462_v39  ;;  %12654 = vst [vmem:[#allocation485_spill] sm:$0xff] %v10464_v8  ;;  %v3262_v40 = vpop.f32.mrb[247].mxu1  ;;  %v3871_v33 = vpop.f32.mrb[55].mxu0 }
 0x572   :  { %v10470_v28 = vpop.f32.mrb[248].mxu1  ;;  %v10472_v22 = vpop.f32.mrb[56].mxu0 }
 0x573   :  { %12655 = vst [vmem:[#allocation486_spill] sm:$0xff] %v10470_v28  ;;  %12656 = vst [vmem:[#allocation487_spill] sm:$0xff] %v10472_v22  ;;  %v3267_v16 = vpop.f32.mrb[249].mxu1  ;;  %v3876_v43 = vpop.f32.mrb[57].mxu0 }
 0x574   :  { %v10474_v0 = vpop.f32.mrb[250].mxu1  ;;  %v10476_v15 = vpop.f32.mrb[58].mxu0 }
 0x575   :  { %12657 = vst [vmem:[#allocation488_spill] sm:$0xff] %v10476_v15  ;;  %v3270_v29 = vpop.f32.mrb[251].mxu1  ;;  %v3879_v9 = vpop.f32.mrb[59].mxu0 }
 0x576   :  { %v12658_v29 = vld [vmem:[#allocation23_spill] sm:$0xff]  ;;  %v12659_v9 = vpack.c.bf16 %v9778_v54, %v9774_v63 }
 0x577   :  { %6289 = vmatprep.subr.bf16.mxu1 %v12658_v29 }
 0x578   :  { %4117 = vmatprep.mubr.bf16.mxu1 %v12659_v9 }
 0x57a   :  { %v10482_v40 = vpop.f32.mrb[252].mxu1  ;;  %v10484_v33 = vpop.f32.mrb[60].mxu0 }
 0x57b   :  { %v3275_v17 = vpop.f32.mrb[253].mxu1  ;;  %v3884_v8 = vpop.f32.mrb[61].mxu0 }
 0x57c   :  { %v10486_v16 = vpop.f32.mrb[254].mxu1  ;;  %v10488_v43 = vpop.f32.mrb[62].mxu0 }
 0x57d   :  { %v3952_v62 = vpack.c.bf16 %v10488_v43, %v10484_v33  ;;  %v3278_v28 = vpop.f32.mrb[255].mxu1  ;;  %v3887_v41 = vpop.f32.mrb[63].mxu0 }
 0x57e   :  { %7280 = dma.done.wait [#allocation6 + $0x1], 16384 }
 0x57f   :  { %7281 = vsyncadd [#allocation6 + $0x1], 4294950912  ;;  %v12660_v17 = vld [vmem:[#allocation15_spill] sm:$0xff]  ;;  %v12662_v22 = vld [vmem:[#allocation24_spill] sm:$0xff]  ;;  %v12665_v41 = vpack.c.bf16 %v9970_v57, %v9966_v14 }
 0x580   :  { %6290 = vmatpush3.bf16.msra.mxu1 %v12660_v17  ;;  %v12661_v8 = vld [vmem:[#allocation55_spill] sm:$0xff]  ;;  %v12664_v15 = vld [vmem:[#allocation56_spill] sm:$0xff]  ;;  %v12667_v63 = vld [vmem:[#allocation25_spill] sm:$0xff] }
 0x581   :  { %6417 = vmatprep.subr.bf16.mxu0 %v12661_v8  ;;  %6291 = vmatprep.subr.bf16.mxu1 %v12662_v22  ;;  %v12663_v39 = vld [vmem:[#allocation47_spill] sm:$0xff]  ;;  %v12666_v28 = vld [vmem:[#allocation16_spill] sm:$0xff]  ;;  %v12669_v29 = vld [vmem:[#allocation57_spill] sm:$0xff] }
 0x582   :  { %6418 = vmatpush3.bf16.msra.mxu0 %v12663_v39  ;;  %4311 = vmatprep.mubr.bf16.mxu0 %v12665_v41  ;;  %v12668_v54 = vld [vmem:[#allocation48_spill] sm:$0xff]  ;;  %v12670_v9 = vld [vmem:[#allocation17_spill] sm:$0xff]  ;;  %v12671_v17 = vld [vmem:[#allocation26_spill] sm:$0xff] }
 0x583   :  { %6419 = vmatprep.subr.bf16.mxu0 %v12664_v15  ;;  %v12672_v22 = vld [vmem:[#allocation49_spill] sm:$0xff]  ;;  %v12673_v39 = vld [vmem:[#allocation58_spill] sm:$0xff]  ;;  %v12675_v57 = vld [vmem:[#allocation27_spill] sm:$0xff] }
 0x584   :  { %6292 = vmatpush3.bf16.msra.mxu1 %v12666_v28  ;;  %v12674_v15 = vld [vmem:[#allocation18_spill] sm:$0xff]  ;;  %v12677_v8 = vld [vmem:[#allocation59_spill] sm:$0xff]  ;;  %v12679_v28 = vld [vmem:[#allocation28_spill] sm:$0xff] }
 0x585   :  { %6293 = vmatprep.subr.bf16.mxu1 %v12667_v63  ;;  %v12676_v14 = vld [vmem:[#allocation50_spill] sm:$0xff]  ;;  %v12678_v41 = vld [vmem:[#allocation19_spill] sm:$0xff]  ;;  %v13112_v33 = vld [vmem:[#allocation477_spill] sm:$0xff] }
 0x586   :  { %6420 = vmatpush3.bf16.msra.mxu0 %v12668_v54  ;;  %v12680_v63 = vld [vmem:[#allocation51_spill] sm:$0xff]  ;;  %v12681_v54 = vld [vmem:[#allocation60_spill] sm:$0xff] }
 0x587   :  { %6421 = vmatprep.subr.bf16.mxu0 %v12669_v29  ;;  %v12682_v29 = vld [vmem:[#allocation20_spill] sm:$0xff] }
 0x588   :  { %6294 = vmatpush3.bf16.msra.mxu1 %v12670_v9  ;;  %v12683_v9 = vld [vmem:[#allocation29_spill] sm:$0xff] }
 0x589   :  { %6295 = vmatprep.subr.bf16.mxu1 %v12671_v17  ;;  %v12684_v17 = vld [vmem:[#allocation52_spill] sm:$0xff] }
 0x58a   :  { %6422 = vmatpush3.bf16.msra.mxu0 %v12672_v22  ;;  %v12685_v22 = vld [vmem:[#allocation61_spill] sm:$0xff] }
 0x58b   :  { %6423 = vmatprep.subr.bf16.mxu0 %v12673_v39  ;;  %v12686_v39 = vld [vmem:[#allocation21_spill] sm:$0xff] }
 0x58c   :  { %6296 = vmatpush3.bf16.msra.mxu1 %v12674_v15  ;;  %v12687_v15 = vld [vmem:[#allocation30_spill] sm:$0xff] }
 0x58d   :  { %6297 = vmatprep.subr.bf16.mxu1 %v12675_v57  ;;  %v12688_v57 = vld [vmem:[#allocation53_spill] sm:$0xff] }
 0x58e   :  { %6424 = vmatpush3.bf16.msra.mxu0 %v12676_v14  ;;  %v12689_v14 = vld [vmem:[#allocation62_spill] sm:$0xff] }
 0x58f   :  { %6425 = vmatprep.subr.bf16.mxu0 %v12677_v8  ;;  %v12690_v8 = vld [vmem:[#allocation22_spill] sm:$0xff] }
 0x590   :  { %6298 = vmatpush3.bf16.msra.mxu1 %v12678_v41  ;;  %v12691_v41 = vld [vmem:[#allocation39_spill] sm:$0xff] }
 0x591   :  { %6299 = vmatprep.subr.bf16.mxu1 %v12679_v28  ;;  %v12692_v28 = vld [vmem:[#allocation54_spill] sm:$0xff] }
 0x592   :  { %6426 = vmatpush3.bf16.msra.mxu0 %v12680_v63  ;;  %v12693_v63 = vld [vmem:[#allocation87_spill] sm:$0xff] }
 0x593   :  { %6427 = vmatprep.subr.bf16.mxu0 %v12681_v54  ;;  %v12694_v54 = vpack.c.bf16 %v9730_v56, %v9726_v58  ;;  %v12701_v58 = vld [vmem:[#allocation88_spill] sm:$0xff] }
 0x594   :  { %6300 = vmatpush3.bf16.msra.mxu1 %v12682_v29  ;;  %v12695_v29 = vld [vmem:[#allocation31_spill] sm:$0xff]  ;;  %v12702_v56 = vld [vmem:[#allocation32_spill] sm:$0xff] }
 0x595   :  { %6301 = vmatprep.subr.bf16.mxu1 %v12683_v9  ;;  %v12696_v9 = vpack.c.bf16 %v9790_v6, %v9786_v55  ;;  %v12704_v55 = vld [vmem:[#allocation80_spill] sm:$0xff]  ;;  %v12705_v6 = vpack.c.bf16 %v9742_v34, %v9738_v47  ;;  %v12712_v47 = vld [vmem:[#allocation81_spill] sm:$0xff]  ;;  %v12713_v34 = vld [vmem:[#allocation90_spill] sm:$0xff] }
 0x596   :  { %6428 = vmatpush3.bf16.msra.mxu0 %v12684_v17  ;;  %v12697_v17 = vld [vmem:[#allocation40_spill] sm:$0xff] }
 0x597   :  { %6429 = vmatprep.subr.bf16.mxu0 %v12685_v22  ;;  %v12698_v22 = vpack.c.bf16 %v9922_v11, %v9918_v7  ;;  %v12706_v11 = vld [vmem:[#allocation89_spill] sm:$0xff]  ;;  %v12707_v7 = vpack.c.bf16 %v9802_v25, %v9798_v2  ;;  %v12715_v2 = vld [vmem:[#allocation43_spill] sm:$0xff]  ;;  %v12716_v25 = vld [vmem:[#allocation82_spill] sm:$0xff] }
 0x598   :  { %6302 = vmatpush3.bf16.msra.mxu1 %v12686_v39  ;;  %v12699_v39 = vpack.c.bf16 %v9982_v48, %v9978_v19  ;;  %v12708_v48 = vld [vmem:[#allocation33_spill] sm:$0xff]  ;;  %v12709_v19 = vld [vmem:[#allocation42_spill] sm:$0xff] }
 0x599   :  { %6303 = vmatprep.subr.bf16.mxu1 %v12687_v15  ;;  %v12700_v15 = vld [vmem:[#allocation79_spill] sm:$0xff] }
 0x59a   :  { %6430 = vmatpush3.bf16.msra.mxu0 %v12688_v57  ;;  %v12703_v57 = vld [vmem:[#allocation41_spill] sm:$0xff] }
 0x59b   :  { %6431 = vmatprep.subr.bf16.mxu0 %v12689_v14  ;;  %v12710_v14 = vpack.c.bf16 %v9934_v4, %v9930_v36  ;;  %v12718_v4 = vld [vmem:[#allocation91_spill] sm:$0xff] }
 0x59c   :  { %6304 = vmatpush3.bf16.msra.mxu1 %v12690_v8  ;;  %v12711_v8 = vpack.c.bf16 %v9994_v53, %v9990_v5  ;;  %v12719_v53 = vpack.c.bf16 %v9814_v20, %v9810_v23  ;;  %v12720_v36 = vld [vmem:[#allocation35_spill] sm:$0xff]  ;;  %v12721_v5 = vld [vmem:[#allocation44_spill] sm:$0xff]  ;;  %v12727_v23 = vld [vmem:[#allocation45_spill] sm:$0xff] }
 0x59d   :  { %6353 = vmatprep.subr.bf16.mxu1 %v12691_v41  ;;  %v12714_v41 = vld [vmem:[#allocation34_spill] sm:$0xff]  ;;  %v12728_v20 = vld [vmem:[#allocation84_spill] sm:$0xff] }
 0x59e   :  { %6432 = vmatpush3.bf16.msra.mxu0 %v12692_v28  ;;  %v12717_v28 = vpack.c.bf16 %v9754_v44, %v9750_v52  ;;  %v12724_v52 = vld [vmem:[#allocation83_spill] sm:$0xff]  ;;  %v12725_v44 = vld [vmem:[#allocation92_spill] sm:$0xff] }
 0x59f   :  { %6545 = vmatprep.subr.bf16.mxu0 %v12693_v63  ;;  %4118 = vmatmul.mubr.bf16.vlgmr.msra.gmra.mrb[0].mxu1 %v12694_v54  ;;  %v12722_v63 = vpack.c.bf16 %v9946_v51, %v9942_v32  ;;  %v12723_v54 = vpack.c.bf16 %v10006_v31, %v10002_v45  ;;  %v12730_v51 = vld [vmem:[#allocation93_spill] sm:$0xff]  ;;  %v12731_v31 = vpack.c.bf16 %v9780_v21, %v9776_v50  ;;  %v12733_v45 = vld [vmem:[#allocation46_spill] sm:$0xff]  ;;  %v12739_v50 = vld [vmem:[#allocation71_spill] sm:$0xff] }
 0x5a0   :  { %6354 = vmatpush3.bf16.msra.mxu1 %v12695_v29  ;;  %4125 = vmatprep.mubr.bf16.mxu1 %v12696_v9  ;;  %v12726_v29 = vld [vmem:[#allocation36_spill] sm:$0xff]  ;;  %v12729_v9 = vpack.c.bf16 %v9766_v61, %v9762_v30  ;;  %v12732_v32 = vld [vmem:[#allocation37_spill] sm:$0xff]  ;;  %v12737_v61 = vld [vmem:[#allocation94_spill] sm:$0xff] }
 0x5a1   :  { %6355 = vmatprep.subr.bf16.mxu1 %v12697_v17  ;;  %4312 = vmatmul.mubr.bf16.vlgmr.msra.gmra.mrb[64].mxu0 %v12698_v22  ;;  %v12734_v17 = vpack.c.bf16 %v9958_v59, %v9954_v24  ;;  %v12735_v22 = vpack.c.bf16 %v9972_v12, %v9968_v26  ;;  %v12736_v30 = vld [vmem:[#allocation85_spill] sm:$0xff]  ;;  %v12740_v21 = vld [vmem:[#allocation86_spill] sm:$0xff]  ;;  %v12742_v59 = vld [vmem:[#allocation119_spill] sm:$0xff]  ;;  %v12743_v12 = vpack.c.bf16 %v9792_v13, %v9788_v18 }
 0x5a2   :  { %4319 = vmatprep.mubr.bf16.mxu0 %v12699_v39  ;;  %6546 = vmatpush3.bf16.msra.mxu0 %v12700_v15  ;;  %v12738_v39 = vld [vmem:[#allocation38_spill] sm:$0xff]  ;;  %v12741_v15 = vpack.c.bf16 %v9732_v37, %v9728_v38  ;;  %v12744_v24 = vpack.c.bf16 %v9924_v10, %v9920_v46  ;;  %v12745_v26 = vpack.c.bf16 %v9984_v60, %v9980_v3  ;;  %v12751_v13 = vld [vmem:[#allocation332_spill] sm:$0xff]  ;;  %v12754_v46 = vld [vmem:[#allocation297_spill] sm:$0xff] }
 0x5a3   :  { %6547 = vmatprep.subr.bf16.mxu0 %v12701_v58  ;;  %v12746_v58 = vpack.c.bf16 %v9744_v42, %v9740_v35  ;;  %v12747_v38 = vpack.c.bf16 %v9804_v49, %v9800_v1  ;;  %v12748_v37 = vld [vmem:[#allocation326_spill] sm:$0xff]  ;;  %v12757_v3 = vld [vmem:[#allocation289_spill] sm:$0xff]  ;;  %v12760_v42 = vld [vmem:[#allocation328_spill] sm:$0xff] }
 0x5a4   :  { %6356 = vmatpush3.bf16.msra.mxu1 %v12702_v56  ;;  %v12749_v56 = vld [vmem:[#allocation325_spill] sm:$0xff]  ;;  %v12763_v49 = vld [vmem:[#allocation334_spill] sm:$0xff] }
 0x5a5   :  { %6357 = vmatprep.subr.bf16.mxu1 %v12703_v57  ;;  %v12750_v18 = vpack.c.bf16 %v12748_v37, %v12749_v56  ;;  %v12752_v57 = vld [vmem:[#allocation331_spill] sm:$0xff] }
 0x5a6   :  { %6548 = vmatpush3.bf16.msra.mxu0 %v12704_v55  ;;  %v12753_v10 = vpack.c.bf16 %v12751_v13, %v12752_v57  ;;  %v12755_v55 = vld [vmem:[#allocation287_spill] sm:$0xff]  ;;  %v12809_v13 = vld [vmem:[#allocation390_spill] sm:$0xff] }
 0x5a7   :  { %4126 = vmatmul.mubr.bf16.gmra.mrb[4].mxu1 %v12705_v6  ;;  %6549 = vmatprep.subr.bf16.mxu0 %v12706_v11  ;;  %v12756_v60 = vpack.c.bf16 %v12754_v46, %v12755_v55  ;;  %v12758_v6 = vld [vmem:[#allocation290_spill] sm:$0xff]  ;;  %v12761_v11 = vld [vmem:[#allocation327_spill] sm:$0xff] }
 0x5a8   :  { %4133 = vmatprep.mubr.bf16.mxu1 %v12707_v7  ;;  %6358 = vmatpush3.bf16.msra.mxu1 %v12708_v48  ;;  %v12759_v35 = vpack.c.bf16 %v12757_v3, %v12758_v6  ;;  %v12762_v1 = vpack.c.bf16 %v12760_v42, %v12761_v11  ;;  %v12764_v7 = vld [vmem:[#allocation333_spill] sm:$0xff]  ;;  %v12806_v37 = vld [vmem:[#allocation371_spill] sm:$0xff]  ;;  %v12812_v46 = vld [vmem:[#allocation122_spill] sm:$0xff] }
 0x5a9   :  { %6359 = vmatprep.subr.bf16.mxu1 %v12709_v19  ;;  %4320 = vmatmul.mubr.bf16.gmra.mrb[68].mxu0 %v12710_v14  ;;  %v12765_v48 = vpack.c.bf16 %v12763_v49, %v12764_v7  ;;  %v12766_v19 = vld [vmem:[#allocation291_spill] sm:$0xff]  ;;  %v12767_v14 = vld [vmem:[#allocation296_spill] sm:$0xff]  ;;  %v12813_v55 = vld [vmem:[#allocation66_spill] sm:$0xff] }
 0x5aa   :  { %4327 = vmatprep.mubr.bf16.mxu0 %v12711_v8  ;;  %6550 = vmatpush3.bf16.msra.mxu0 %v12712_v47  ;;  %v12768_v8 = vpack.c.bf16 %v12766_v19, %v12767_v14  ;;  %v12769_v47 = vld [vmem:[#allocation311_spill] sm:$0xff]  ;;  %v12815_v3 = vld [vmem:[#allocation114_spill] sm:$0xff]  ;;  %v12821_v49 = vld [vmem:[#allocation321_spill] sm:$0xff] }
 0x5ab   :  { %6551 = vmatprep.subr.bf16.mxu0 %v12713_v34  ;;  %v12770_v34 = vld [vmem:[#allocation309_spill] sm:$0xff]  ;;  %v12816_v6 = vld [vmem:[#allocation303_spill] sm:$0xff]  ;;  %v12824_v19 = vld [vmem:[#allocation76_spill] sm:$0xff] }
 0x5ac   :  { %6360 = vmatpush3.bf16.msra.mxu1 %v12714_v41  ;;  %v12771_v41 = vpack.c.bf16 %v12769_v47, %v12770_v34  ;;  %v12819_v11 = vld [vmem:[#allocation123_spill] sm:$0xff]  ;;  %v12825_v14 = vld [vmem:[#allocation377_spill] sm:$0xff]  ;;  %v12828_v34 = vld [vmem:[#allocation396_spill] sm:$0xff] }
 0x5ad   :  { %6361 = vmatprep.subr.bf16.mxu1 %v12715_v2  ;;  %v12772_v2 = vld [vmem:[#allocation330_spill] sm:$0xff] }
 0x5ae   :  { %6552 = vmatpush3.bf16.msra.mxu0 %v12716_v25  ;;  %v12773_v25 = vld [vmem:[#allocation329_spill] sm:$0xff] }
 0x5af   :  { %4134 = vmatmul.mubr.bf16.gmra.mrb[8].mxu1 %v12717_v28  ;;  %6553 = vmatprep.subr.bf16.mxu0 %v12718_v4  ;;  %v12774_v28 = vpack.c.bf16 %v12772_v2, %v12773_v25  ;;  %v12775_v4 = vld [vmem:[#allocation383_spill] sm:$0xff] }
 0x5b0   :  { %4141 = vmatprep.mubr.bf16.mxu1 %v12719_v53  ;;  %6362 = vmatpush3.bf16.msra.mxu1 %v12720_v36  ;;  %v12776_v53 = vpack.c.bf16 %v10162_v27, %v12775_v4  ;;  %v12777_v36 = vld [vmem:[#allocation294_spill] sm:$0xff]  ;;  %v12831_v25 = vld [vmem:[#allocation115_spill] sm:$0xff]  ;;  %v12833_v4 = vld [vmem:[#allocation68_spill] sm:$0xff] }
 0x5b1   :  { %6363 = vmatprep.subr.bf16.mxu1 %v12721_v5  ;;  %4328 = vmatmul.mubr.bf16.gmra.mrb[72].mxu0 %v12722_v63  ;;  %v12778_v5 = vld [vmem:[#allocation288_spill] sm:$0xff] }
 0x5b2   :  { %4335 = vmatprep.mubr.bf16.mxu0 %v12723_v54  ;;  %6554 = vmatpush3.bf16.msra.mxu0 %v12724_v52  ;;  %v12779_v63 = vpack.c.bf16 %v12777_v36, %v12778_v5  ;;  %v12780_v54 = vld [vmem:[#allocation63_spill] sm:$0xff]  ;;  %v12835_v36 = vld [vmem:[#allocation116_spill] sm:$0xff] }
 0x5b3   :  { %6555 = vmatprep.subr.bf16.mxu0 %v12725_v44  ;;  %v12781_v52 = vld [vmem:[#allocation315_spill] sm:$0xff]  ;;  %v12782_v44 = vld [vmem:[#allocation313_spill] sm:$0xff] }
 0x5b4   :  { %6364 = vmatpush3.bf16.msra.mxu1 %v12726_v29  ;;  %v12783_v29 = vpack.c.bf16 %v12781_v52, %v12782_v44  ;;  %v12836_v5 = vld [vmem:[#allocation307_spill] sm:$0xff]  ;;  %v12839_v52 = vld [vmem:[#allocation125_spill] sm:$0xff]  ;;  %v12840_v44 = vld [vmem:[#allocation312_spill] sm:$0xff] }
 0x5b5   :  { %6365 = vmatprep.subr.bf16.mxu1 %v12727_v23  ;;  %v12784_v23 = vld [vmem:[#allocation72_spill] sm:$0xff] }
 0x5b6   :  { %6556 = vmatpush3.bf16.msra.mxu0 %v12728_v20  ;;  %v12785_v20 = vld [vmem:[#allocation369_spill] sm:$0xff] }
 0x5b7   :  { %4142 = vmatmul.mubr.bf16.gmra.mrb[12].mxu1 %v12729_v9  ;;  %6557 = vmatprep.subr.bf16.mxu0 %v12730_v51  ;;  %v12786_v9 = vld [vmem:[#allocation367_spill] sm:$0xff] }
 0x5b8   :  { %4149 = vmatprep.mubr.bf16.mxu1 %v12731_v31  ;;  %6366 = vmatpush3.bf16.msra.mxu1 %v12732_v32  ;;  %v12787_v51 = vpack.c.bf16 %v12785_v20, %v12786_v9  ;;  %v12788_v31 = vld [vmem:[#allocation388_spill] sm:$0xff]  ;;  %v12789_v32 = vld [vmem:[#allocation386_spill] sm:$0xff]  ;;  %v12843_v20 = vld [vmem:[#allocation69_spill] sm:$0xff] }
 0x5b9   :  { %6367 = vmatprep.subr.bf16.mxu1 %v12733_v45  ;;  %4336 = vmatmul.mubr.bf16.gmra.mrb[76].mxu0 %v12734_v17  ;;  %v12790_v27 = vpack.c.bf16 %v12788_v31, %v12789_v32  ;;  %v12791_v45 = vld [vmem:[#allocation111_spill] sm:$0xff]  ;;  %v12792_v17 = vld [vmem:[#allocation120_spill] sm:$0xff]  ;;  %v12844_v9 = vld [vmem:[#allocation78_spill] sm:$0xff] }
 0x5ba   :  { %4343 = vmatprep.mubr.bf16.mxu0 %v12735_v22  ;;  %6558 = vmatpush3.bf16.msra.mxu0 %v12736_v30  ;;  %v12793_v22 = vld [vmem:[#allocation64_spill] sm:$0xff]  ;;  %v12794_v30 = vld [vmem:[#allocation73_spill] sm:$0xff]  ;;  %v12846_v31 = vld [vmem:[#allocation379_spill] sm:$0xff] }
 0x5bb   :  { %6559 = vmatprep.subr.bf16.mxu0 %v12737_v61  ;;  %v12795_v61 = vld [vmem:[#allocation112_spill] sm:$0xff] }
 0x5bc   :  { %6368 = vmatpush3.bf16.msra.mxu1 %v12738_v39  ;;  %v12796_v39 = vld [vmem:[#allocation299_spill] sm:$0xff] }
 0x5bd   :  { %6481 = vmatprep.subr.bf16.mxu1 %v12739_v50  ;;  %v12797_v50 = vld [vmem:[#allocation292_spill] sm:$0xff] }
 0x5be   :  { %6560 = vmatpush3.bf16.msra.mxu0 %v12740_v21  ;;  %v12798_v21 = vpack.c.bf16 %v12796_v39, %v12797_v50  ;;  %v12854_v39 = vld [vmem:[#allocation103_spill] sm:$0xff]  ;;  %v12855_v50 = vld [vmem:[#allocation118_spill] sm:$0xff] }
 0x5bf   :  { %4150 = vmatmul.mubr.bf16.gmra.mrb[16].mxu1 %v12741_v15  ;;  %6673 = vmatprep.subr.bf16.mxu0 %v12742_v59  ;;  %v12799_v15 = vld [vmem:[#allocation121_spill] sm:$0xff]  ;;  %v12800_v59 = vld [vmem:[#allocation319_spill] sm:$0xff] }
 0x5c0   :  { %4157 = vmatprep.mubr.bf16.mxu1 %v12743_v12  ;;  %v12801_v12 = vld [vmem:[#allocation317_spill] sm:$0xff] }
 0x5c1   :  { %4344 = vmatmul.mubr.bf16.gmra.mrb[80].mxu0 %v12744_v24  ;;  %v12802_v24 = vpack.c.bf16 %v12800_v59, %v12801_v12  ;;  %v12859_v12 = vld [vmem:[#allocation316_spill] sm:$0xff] }
 0x5c2   :  { %4351 = vmatprep.mubr.bf16.mxu0 %v12745_v26  ;;  %v12803_v26 = vld [vmem:[#allocation65_spill] sm:$0xff] }
 0x5c7   :  { %4158 = vmatmul.mubr.bf16.gmra.mrb[20].mxu1 %v12746_v58  ;;  %v12804_v58 = vld [vmem:[#allocation74_spill] sm:$0xff] }
 0x5c8   :  { %4165 = vmatprep.mubr.bf16.mxu1 %v12747_v38  ;;  %v12805_v38 = vld [vmem:[#allocation373_spill] sm:$0xff] }
 0x5c9   :  { %4352 = vmatmul.mubr.bf16.gmra.mrb[84].mxu0 %v12750_v18  ;;  %v12807_v56 = vpack.c.bf16 %v12805_v38, %v12806_v37  ;;  %v12808_v18 = vld [vmem:[#allocation392_spill] sm:$0xff] }
 0x5ca   :  { %4359 = vmatprep.mubr.bf16.mxu0 %v12753_v10  ;;  %v12810_v57 = vpack.c.bf16 %v12808_v18, %v12809_v13  ;;  %v12811_v10 = vld [vmem:[#allocation113_spill] sm:$0xff]  ;;  %v12863_v38 = vld [vmem:[#allocation368_spill] sm:$0xff]  ;;  %v12866_v18 = vld [vmem:[#allocation387_spill] sm:$0xff] }
 0x5cf   :  { %4166 = vmatmul.mubr.bf16.gmra.mrb[24].mxu1 %v12756_v60  ;;  %v12814_v60 = vld [vmem:[#allocation75_spill] sm:$0xff] }
 0x5d0   :  { %4173 = vmatprep.mubr.bf16.mxu1 %v12759_v35  ;;  %v12817_v35 = vld [vmem:[#allocation301_spill] sm:$0xff] }
 0x5d1   :  { %4360 = vmatmul.mubr.bf16.gmra.mrb[88].mxu0 %v12762_v1  ;;  %v12818_v42 = vpack.c.bf16 %v12816_v6, %v12817_v35  ;;  %v12820_v1 = vld [vmem:[#allocation323_spill] sm:$0xff]  ;;  %v12874_v6 = vld [vmem:[#allocation374_spill] sm:$0xff]  ;;  %v12875_v35 = vld [vmem:[#allocation372_spill] sm:$0xff] }
 0x5d2   :  { %4367 = vmatprep.mubr.bf16.mxu0 %v12765_v48  ;;  %v12822_v7 = vpack.c.bf16 %v12820_v1, %v12821_v49  ;;  %v12823_v48 = vld [vmem:[#allocation67_spill] sm:$0xff] }
 0x5d3   :  { %v12878_v1 = vld [vmem:[#allocation391_spill] sm:$0xff] }
 0x5d7   :  { %4174 = vmatmul.mubr.bf16.gmra.mrb[28].mxu1 %v12768_v8  ;;  %v12826_v8 = vld [vmem:[#allocation375_spill] sm:$0xff] }
 0x5d8   :  { %4214 = vmatprep.mubr.bf16.mxu1 %v12771_v41  ;;  %v12827_v47 = vpack.c.bf16 %v12825_v14, %v12826_v8  ;;  %v12829_v41 = vld [vmem:[#allocation394_spill] sm:$0xff]  ;;  %v12883_v14 = vld [vmem:[#allocation324_spill] sm:$0xff] }
 0x5d9   :  { %4368 = vmatmul.mubr.bf16.gmra.mrb[92].mxu0 %v12774_v28  ;;  %v12830_v2 = vpack.c.bf16 %v12828_v34, %v12829_v41  ;;  %v12832_v28 = vld [vmem:[#allocation124_spill] sm:$0xff]  ;;  %v12884_v8 = vld [vmem:[#allocation322_spill] sm:$0xff] }
 0x5da   :  { %4505 = vmatprep.mubr.bf16.mxu0 %v12776_v53  ;;  %v12834_v53 = vld [vmem:[#allocation77_spill] sm:$0xff]  ;;  %v12886_v34 = vld [vmem:[#allocation378_spill] sm:$0xff]  ;;  %v12887_v41 = vld [vmem:[#allocation376_spill] sm:$0xff] }
 0x5df   :  { %4215 = vmatmul.mubr.bf16.vlgmr.msra.gmra.mrb[32].mxu1 %v12779_v63  ;;  %v12837_v63 = vld [vmem:[#allocation305_spill] sm:$0xff] }
 0x5e0   :  { %6482 = vmatpush3.bf16.msra.mxu1 %v12780_v54  ;;  %4222 = vmatprep.mubr.bf16.mxu1 %v12783_v29  ;;  %v12838_v54 = vpack.c.bf16 %v12836_v5, %v12837_v63  ;;  %v12841_v29 = vld [vmem:[#allocation310_spill] sm:$0xff]  ;;  %v12895_v63 = vld [vmem:[#allocation353_spill] sm:$0xff] }
 0x5e1   :  { %6483 = vmatprep.subr.bf16.mxu1 %v12784_v23  ;;  %4506 = vmatmul.mubr.bf16.vlgmr.msra.gmra.mrb[96].mxu0 %v12787_v51  ;;  %v12842_v23 = vpack.c.bf16 %v12840_v44, %v12841_v29  ;;  %v12845_v51 = vld [vmem:[#allocation381_spill] sm:$0xff]  ;;  %v12898_v44 = vld [vmem:[#allocation382_spill] sm:$0xff]  ;;  %v12899_v29 = vld [vmem:[#allocation380_spill] sm:$0xff] }
 0x5e2   :  { %4513 = vmatprep.mubr.bf16.mxu0 %v12790_v27  ;;  %6674 = vmatpush3.bf16.msra.mxu0 %v12791_v45  ;;  %v12847_v32 = vpack.c.bf16 %v12845_v51, %v12846_v31  ;;  %v12848_v27 = vld [vmem:[#allocation385_spill] sm:$0xff]  ;;  %v12849_v45 = vld [vmem:[#allocation384_spill] sm:$0xff] }
 0x5e3   :  { %6675 = vmatprep.subr.bf16.mxu0 %v12792_v17  ;;  %v12850_v17 = vpack.c.bf16 %v12848_v27, %v12849_v45  ;;  %v12904_v31 = vld [vmem:[#allocation337_spill] sm:$0xff]  ;;  %v12907_v45 = vld [vmem:[#allocation95_spill] sm:$0xff] }
 0x5e4   :  { %6484 = vmatpush3.bf16.msra.mxu1 %v12793_v22  ;;  %v12851_v22 = vld [vmem:[#allocation117_spill] sm:$0xff] }
 0x5e5   :  { %6485 = vmatprep.subr.bf16.mxu1 %v12794_v30  ;;  %v12852_v30 = vld [vmem:[#allocation126_spill] sm:$0xff] }
 0x5e6   :  { %6676 = vmatpush3.bf16.msra.mxu0 %v12795_v61  ;;  %v12853_v61 = vld [vmem:[#allocation70_spill] sm:$0xff] }
 0x5e7   :  { %4223 = vmatmul.mubr.bf16.gmra.mrb[36].mxu1 %v12798_v21  ;;  %6677 = vmatprep.subr.bf16.mxu0 %v12799_v15  ;;  %v12856_v21 = vld [vmem:[#allocation293_spill] sm:$0xff]  ;;  %v12857_v15 = vld [vmem:[#allocation295_spill] sm:$0xff] }
 0x5e8   :  { %4230 = vmatprep.mubr.bf16.mxu1 %v12802_v24  ;;  %6486 = vmatpush3.bf16.msra.mxu1 %v12803_v26  ;;  %v12858_v59 = vpack.c.bf16 %v12856_v21, %v12857_v15  ;;  %v12860_v24 = vld [vmem:[#allocation314_spill] sm:$0xff]  ;;  %v12915_v15 = vld [vmem:[#allocation452_spill] sm:$0xff] }
 0x5e9   :  { %6487 = vmatprep.subr.bf16.mxu1 %v12804_v58  ;;  %4514 = vmatmul.mubr.bf16.gmra.mrb[100].mxu0 %v12807_v56  ;;  %v12861_v26 = vpack.c.bf16 %v12859_v12, %v12860_v24  ;;  %v12862_v58 = vld [vmem:[#allocation370_spill] sm:$0xff]  ;;  %v12865_v56 = vld [vmem:[#allocation389_spill] sm:$0xff]  ;;  %v12918_v24 = vld [vmem:[#allocation96_spill] sm:$0xff] }
 0x5ea   :  { %4521 = vmatprep.mubr.bf16.mxu0 %v12810_v57  ;;  %6678 = vmatpush3.bf16.msra.mxu0 %v12811_v10  ;;  %v12864_v37 = vpack.c.bf16 %v12862_v58, %v12863_v38  ;;  %v12867_v13 = vpack.c.bf16 %v12865_v56, %v12866_v18  ;;  %v12868_v57 = vld [vmem:[#allocation300_spill] sm:$0xff]  ;;  %v12869_v10 = vld [vmem:[#allocation298_spill] sm:$0xff]  ;;  %v12920_v58 = vld [vmem:[#allocation341_spill] sm:$0xff] }
 0x5eb   :  { %6679 = vmatprep.subr.bf16.mxu0 %v12812_v46  ;;  %v12870_v46 = vpack.c.bf16 %v12868_v57, %v12869_v10  ;;  %v12921_v38 = vld [vmem:[#allocation339_spill] sm:$0xff]  ;;  %v12923_v56 = vld [vmem:[#allocation361_spill] sm:$0xff]  ;;  %v12927_v10 = vld [vmem:[#allocation106_spill] sm:$0xff] }
 0x5ec   :  { %6488 = vmatpush3.bf16.msra.mxu1 %v12813_v55  ;;  %v12871_v55 = vld [vmem:[#allocation320_spill] sm:$0xff]  ;;  %v12924_v18 = vld [vmem:[#allocation359_spill] sm:$0xff]  ;;  %v12926_v57 = vld [vmem:[#allocation97_spill] sm:$0xff] }
 0x5ed   :  { %6489 = vmatprep.subr.bf16.mxu1 %v12814_v60  ;;  %v12872_v60 = vld [vmem:[#allocation318_spill] sm:$0xff] }
 0x5ee   :  { %6680 = vmatpush3.bf16.msra.mxu0 %v12815_v3  ;;  %v12873_v3 = vpack.c.bf16 %v12871_v55, %v12872_v60  ;;  %v12929_v55 = vld [vmem:[#allocation434_spill] sm:$0xff] }
 0x5ef   :  { %4231 = vmatmul.mubr.bf16.gmra.mrb[40].mxu1 %v12818_v42  ;;  %6681 = vmatprep.subr.bf16.mxu0 %v12819_v11  ;;  %v12876_v42 = vpack.c.bf16 %v12874_v6, %v12875_v35  ;;  %v12877_v11 = vld [vmem:[#allocation393_spill] sm:$0xff]  ;;  %v12932_v6 = vld [vmem:[#allocation454_spill] sm:$0xff] }
 0x5f0   :  { %4238 = vmatprep.mubr.bf16.mxu1 %v12822_v7  ;;  %6490 = vmatpush3.bf16.msra.mxu1 %v12823_v48  ;;  %v12879_v49 = vpack.c.bf16 %v12877_v11, %v12878_v1  ;;  %v12880_v7 = vld [vmem:[#allocation304_spill] sm:$0xff]  ;;  %v12881_v48 = vld [vmem:[#allocation302_spill] sm:$0xff]  ;;  %v12935_v11 = vld [vmem:[#allocation107_spill] sm:$0xff] }
 0x5f1   :  { %6491 = vmatprep.subr.bf16.mxu1 %v12824_v19  ;;  %4522 = vmatmul.mubr.bf16.gmra.mrb[104].mxu0 %v12827_v47  ;;  %v12882_v19 = vpack.c.bf16 %v12880_v7, %v12881_v48  ;;  %v12885_v47 = vpack.c.bf16 %v12883_v14, %v12884_v8  ;;  %v12936_v1 = vld [vmem:[#allocation345_spill] sm:$0xff]  ;;  %v12942_v8 = vld [vmem:[#allocation99_spill] sm:$0xff] }
 0x5f2   :  { %4529 = vmatprep.mubr.bf16.mxu0 %v12830_v2  ;;  %6682 = vmatpush3.bf16.msra.mxu0 %v12831_v25  ;;  %v12888_v2 = vpack.c.bf16 %v12886_v34, %v12887_v41  ;;  %v12889_v25 = vld [vmem:[#allocation397_spill] sm:$0xff]  ;;  %v12944_v34 = vld [vmem:[#allocation440_spill] sm:$0xff]  ;;  %v12945_v41 = vld [vmem:[#allocation438_spill] sm:$0xff] }
 0x5f3   :  { %6683 = vmatprep.subr.bf16.mxu0 %v12832_v28  ;;  %v12890_v28 = vld [vmem:[#allocation395_spill] sm:$0xff]  ;;  %v12939_v48 = vld [vmem:[#allocation365_spill] sm:$0xff] }
 0x5f4   :  { %6492 = vmatpush3.bf16.msra.mxu1 %v12833_v4  ;;  %v12891_v4 = vpack.c.bf16 %v12889_v25, %v12890_v28  ;;  %v12947_v25 = vld [vmem:[#allocation460_spill] sm:$0xff]  ;;  %v12948_v28 = vld [vmem:[#allocation458_spill] sm:$0xff] }
 0x5f5   :  { %6493 = vmatprep.subr.bf16.mxu1 %v12834_v53  ;;  %v12892_v53 = vld [vmem:[#allocation308_spill] sm:$0xff] }
 0x5f6   :  { %6684 = vmatpush3.bf16.msra.mxu0 %v12835_v36  ;;  %v12893_v36 = vld [vmem:[#allocation306_spill] sm:$0xff] }
 0x5f7   :  { %4239 = vmatmul.mubr.bf16.gmra.mrb[44].mxu1 %v12838_v54  ;;  %6685 = vmatprep.subr.bf16.mxu0 %v12839_v52  ;;  %v12894_v5 = vpack.c.bf16 %v12892_v53, %v12893_v36  ;;  %v12896_v54 = vld [vmem:[#allocation351_spill] sm:$0xff]  ;;  %v12950_v53 = vld [vmem:[#allocation100_spill] sm:$0xff]  ;;  %v12951_v36 = vld [vmem:[#allocation109_spill] sm:$0xff] }
 0x5f8   :  { %4246 = vmatprep.mubr.bf16.mxu1 %v12842_v23  ;;  %6494 = vmatpush3.bf16.msra.mxu1 %v12843_v20  ;;  %v12897_v52 = vpack.c.bf16 %v12895_v63, %v12896_v54  ;;  %v12900_v23 = vpack.c.bf16 %v12898_v44, %v12899_v29  ;;  %v12901_v20 = vld [vmem:[#allocation448_spill] sm:$0xff]  ;;  %v12953_v63 = vld [vmem:[#allocation347_spill] sm:$0xff] }
 0x5f9   :  { %6495 = vmatprep.subr.bf16.mxu1 %v12844_v9  ;;  %4530 = vmatmul.mubr.bf16.gmra.mrb[108].mxu0 %v12847_v32  ;;  %v12902_v9 = vld [vmem:[#allocation446_spill] sm:$0xff]  ;;  %v12905_v32 = vld [vmem:[#allocation335_spill] sm:$0xff]  ;;  %v12956_v44 = vld [vmem:[#allocation352_spill] sm:$0xff] }
 0x5fa   :  { %4537 = vmatprep.mubr.bf16.mxu0 %v12850_v17  ;;  %6686 = vmatpush3.bf16.msra.mxu0 %v12851_v22  ;;  %v12903_v51 = vpack.c.bf16 %v12901_v20, %v12902_v9  ;;  %v12906_v27 = vpack.c.bf16 %v12904_v31, %v12905_v32  ;;  %v12908_v17 = vld [vmem:[#allocation357_spill] sm:$0xff]  ;;  %v12909_v22 = vld [vmem:[#allocation355_spill] sm:$0xff]  ;;  %v12959_v20 = vld [vmem:[#allocation110_spill] sm:$0xff] }
 0x5fb   :  { %6687 = vmatprep.subr.bf16.mxu0 %v12852_v30  ;;  %v12910_v30 = vpack.c.bf16 %v12908_v17, %v12909_v22  ;;  %v12960_v9 = vld [vmem:[#allocation444_spill] sm:$0xff]  ;;  %v12963_v32 = vld [vmem:[#allocation449_spill] sm:$0xff]  ;;  %v12966_v17 = vld [vmem:[#allocation102_spill] sm:$0xff] }
 0x5fc   :  { %6496 = vmatpush3.bf16.msra.mxu1 %v12853_v61  ;;  %v12911_v61 = vld [vmem:[#allocation104_spill] sm:$0xff]  ;;  %v12967_v22 = vld [vmem:[#allocation135_spill] sm:$0xff] }
 0x5fd   :  { %6609 = vmatprep.subr.bf16.mxu1 %v12854_v39  ;;  %v12912_v39 = vld [vmem:[#allocation432_spill] sm:$0xff] }
 0x5fe   :  { %6688 = vmatpush3.bf16.msra.mxu0 %v12855_v50  ;;  %v12913_v50 = vld [vmem:[#allocation430_spill] sm:$0xff] }
 0x5ff   :  { %4247 = vmatmul.mubr.bf16.gmra.mrb[48].mxu1 %v12858_v59  ;;  %v12914_v21 = vpack.c.bf16 %v12912_v39, %v12913_v50  ;;  %v12916_v59 = vld [vmem:[#allocation450_spill] sm:$0xff] }
 0x600   :  { %4254 = vmatprep.mubr.bf16.mxu1 %v12861_v26  ;;  %v12917_v12 = vpack.c.bf16 %v12915_v15, %v12916_v59  ;;  %v12919_v26 = vld [vmem:[#allocation105_spill] sm:$0xff]  ;;  %v12971_v50 = vld [vmem:[#allocation358_spill] sm:$0xff] }
 0x601   :  { %4538 = vmatmul.mubr.bf16.gmra.mrb[112].mxu0 %v12864_v37  ;;  %v12922_v37 = vpack.c.bf16 %v12920_v58, %v12921_v38  ;;  %v12974_v59 = vld [vmem:[#allocation433_spill] sm:$0xff]  ;;  %v12978_v58 = vld [vmem:[#allocation451_spill] sm:$0xff] }
 0x602   :  { %4545 = vmatprep.mubr.bf16.mxu0 %v12867_v13  ;;  %v12925_v13 = vpack.c.bf16 %v12923_v56, %v12924_v18  ;;  %v12981_v56 = vld [vmem:[#allocation340_spill] sm:$0xff] }
 0x607   :  { %4255 = vmatmul.mubr.bf16.gmra.mrb[52].mxu1 %v12870_v46  ;;  %v12928_v46 = vld [vmem:[#allocation436_spill] sm:$0xff] }
 0x608   :  { %4262 = vmatprep.mubr.bf16.mxu1 %v12873_v3  ;;  %v12930_v60 = vpack.c.bf16 %v12928_v46, %v12929_v55  ;;  %v12931_v3 = vld [vmem:[#allocation456_spill] sm:$0xff]  ;;  %v12986_v46 = vld [vmem:[#allocation437_spill] sm:$0xff]  ;;  %v12987_v55 = vld [vmem:[#allocation435_spill] sm:$0xff] }
 0x609   :  { %4546 = vmatmul.mubr.bf16.gmra.mrb[116].mxu0 %v12876_v42  ;;  %v12933_v35 = vpack.c.bf16 %v12931_v3, %v12932_v6  ;;  %v12934_v42 = vld [vmem:[#allocation98_spill] sm:$0xff]  ;;  %v12989_v3 = vld [vmem:[#allocation457_spill] sm:$0xff]  ;;  %v12990_v6 = vld [vmem:[#allocation455_spill] sm:$0xff] }
 0x60a   :  { %4553 = vmatprep.mubr.bf16.mxu0 %v12879_v49  ;;  %v12937_v49 = vld [vmem:[#allocation343_spill] sm:$0xff] }
 0x60b   :  { %v12938_v7 = vpack.c.bf16 %v12936_v1, %v12937_v49  ;;  %v12995_v49 = vld [vmem:[#allocation366_spill] sm:$0xff] }
 0x60f   :  { %4263 = vmatmul.mubr.bf16.gmra.mrb[56].mxu1 %v12882_v19  ;;  %v12940_v19 = vld [vmem:[#allocation363_spill] sm:$0xff] }
 0x610   :  { %4270 = vmatprep.mubr.bf16.mxu1 %v12885_v47  ;;  %v12941_v14 = vpack.c.bf16 %v12939_v48, %v12940_v19  ;;  %v12943_v47 = vld [vmem:[#allocation108_spill] sm:$0xff]  ;;  %v12998_v19 = vld [vmem:[#allocation441_spill] sm:$0xff] }
 0x611   :  { %4554 = vmatmul.mubr.bf16.gmra.mrb[120].mxu0 %v12888_v2  ;;  %v12946_v2 = vpack.c.bf16 %v12944_v34, %v12945_v41  ;;  %v13002_v34 = vld [vmem:[#allocation459_spill] sm:$0xff] }
 0x612   :  { %4561 = vmatprep.mubr.bf16.mxu0 %v12891_v4  ;;  %v12949_v4 = vpack.c.bf16 %v12947_v25, %v12948_v28  ;;  %v13005_v25 = vld [vmem:[#allocation348_spill] sm:$0xff] }
 0x617   :  { %4271 = vmatmul.mubr.bf16.gmra.mrb[60].mxu1 %v12894_v5  ;;  %v12952_v5 = vld [vmem:[#allocation349_spill] sm:$0xff] }
 0x618   :  { %4408 = vmatprep.mubr.bf16.mxu1 %v12897_v52  ;;  %v12954_v54 = vpack.c.bf16 %v12952_v5, %v12953_v63  ;;  %v12955_v52 = vld [vmem:[#allocation354_spill] sm:$0xff]  ;;  %v13010_v5 = vld [vmem:[#allocation445_spill] sm:$0xff]  ;;  %v13011_v63 = vld [vmem:[#allocation443_spill] sm:$0xff] }
 0x619   :  { %4562 = vmatmul.mubr.bf16.gmra.mrb[124].mxu0 %v12900_v23  ;;  %v12957_v29 = vpack.c.bf16 %v12955_v52, %v12956_v44  ;;  %v12958_v23 = vld [vmem:[#allocation101_spill] sm:$0xff]  ;;  %v13013_v52 = vld [vmem:[#allocation400_spill] sm:$0xff]  ;;  %v13014_v44 = vld [vmem:[#allocation398_spill] sm:$0xff] }
 0x61a   :  { %4699 = vmatprep.mubr.bf16.mxu0 %v12903_v51  ;;  %v12961_v51 = vld [vmem:[#allocation442_spill] sm:$0xff] }
 0x61b   :  { %v12962_v31 = vpack.c.bf16 %v12960_v9, %v12961_v51  ;;  %v13018_v9 = vld [vmem:[#allocation418_spill] sm:$0xff] }
 0x61f   :  { %4409 = vmatmul.mubr.bf16.vlgmr.msra.gmra.mrb[64].mxu1 %v12906_v27  ;;  %v12964_v27 = vld [vmem:[#allocation447_spill] sm:$0xff] }
 0x620   :  { %6610 = vmatpush3.bf16.msra.mxu1 %v12907_v45  ;;  %4416 = vmatprep.mubr.bf16.mxu1 %v12910_v30  ;;  %v12965_v45 = vpack.c.bf16 %v12963_v32, %v12964_v27  ;;  %v12968_v30 = vld [vmem:[#allocation338_spill] sm:$0xff]  ;;  %v13021_v32 = vld [vmem:[#allocation128_spill] sm:$0xff]  ;;  %v13022_v27 = vld [vmem:[#allocation137_spill] sm:$0xff] }
 0x621   :  { %6611 = vmatprep.subr.bf16.mxu1 %v12911_v61  ;;  %4700 = vmatmul.mubr.bf16.vlgmr.msra.gmra.mrb[128].mxu0 %v12914_v21  ;;  %v12969_v61 = vld [vmem:[#allocation336_spill] sm:$0xff] }
 0x622   :  { %4707 = vmatprep.mubr.bf16.mxu0 %v12917_v12  ;;  %v12970_v39 = vpack.c.bf16 %v12968_v30, %v12969_v61  ;;  %v12972_v21 = vld [vmem:[#allocation356_spill] sm:$0xff]  ;;  %v12975_v12 = vld [vmem:[#allocation431_spill] sm:$0xff]  ;;  %v13027_v61 = vld [vmem:[#allocation422_spill] sm:$0xff] }
 0x623   :  { %v12973_v15 = vpack.c.bf16 %v12971_v50, %v12972_v21  ;;  %v13026_v30 = vld [vmem:[#allocation424_spill] sm:$0xff]  ;;  %v13029_v50 = vld [vmem:[#allocation129_spill] sm:$0xff]  ;;  %v13030_v21 = vld [vmem:[#allocation138_spill] sm:$0xff] }
 0x624   :  { %6612 = vmatpush3.bf16.msra.mxu1 %v12918_v24  ;;  %v12976_v24 = vpack.c.bf16 %v12974_v59, %v12975_v12  ;;  %v13032_v59 = vld [vmem:[#allocation139_spill] sm:$0xff]  ;;  %v13033_v12 = vld [vmem:[#allocation408_spill] sm:$0xff] }
 0x625   :  { %6613 = vmatprep.subr.bf16.mxu1 %v12919_v26  ;;  %v12977_v26 = vld [vmem:[#allocation453_spill] sm:$0xff] }
 0x626   :  { %v12979_v38 = vpack.c.bf16 %v12977_v26, %v12978_v58  ;;  %v13036_v58 = vld [vmem:[#allocation428_spill] sm:$0xff] }
 0x627   :  { %4417 = vmatmul.mubr.bf16.gmra.mrb[68].mxu1 %v12922_v37  ;;  %v12980_v37 = vld [vmem:[#allocation342_spill] sm:$0xff] }
 0x628   :  { %4424 = vmatprep.mubr.bf16.mxu1 %v12925_v13  ;;  %6614 = vmatpush3.bf16.msra.mxu1 %v12926_v57  ;;  %v12982_v18 = vpack.c.bf16 %v12980_v37, %v12981_v56  ;;  %v12983_v13 = vld [vmem:[#allocation362_spill] sm:$0xff]  ;;  %v12984_v57 = vld [vmem:[#allocation360_spill] sm:$0xff]  ;;  %v13039_v56 = vld [vmem:[#allocation131_spill] sm:$0xff] }
 0x629   :  { %6615 = vmatprep.subr.bf16.mxu1 %v12927_v10  ;;  %4708 = vmatmul.mubr.bf16.gmra.mrb[132].mxu0 %v12930_v60  ;;  %v12985_v10 = vpack.c.bf16 %v12983_v13, %v12984_v57  ;;  %v12988_v60 = vpack.c.bf16 %v12986_v46, %v12987_v55  ;;  %v13041_v55 = vld [vmem:[#allocation132_spill] sm:$0xff] }
 0x62a   :  { %4715 = vmatprep.mubr.bf16.mxu0 %v12933_v35  ;;  %v12991_v35 = vpack.c.bf16 %v12989_v3, %v12990_v6  ;;  %v13042_v6 = vld [vmem:[#allocation141_spill] sm:$0xff] }
 0x62c   :  { %6616 = vmatpush3.bf16.msra.mxu1 %v12934_v42  ;;  %v12992_v42 = vld [vmem:[#allocation346_spill] sm:$0xff] }
 0x62d   :  { %6617 = vmatprep.subr.bf16.mxu1 %v12935_v11  ;;  %v12993_v11 = vld [vmem:[#allocation344_spill] sm:$0xff] }
 0x62e   :  { %v12994_v1 = vpack.c.bf16 %v12992_v42, %v12993_v11 }
 0x62f   :  { %4425 = vmatmul.mubr.bf16.gmra.mrb[72].mxu1 %v12938_v7  ;;  %v12996_v7 = vld [vmem:[#allocation364_spill] sm:$0xff] }
 0x630   :  { %4432 = vmatprep.mubr.bf16.mxu1 %v12941_v14  ;;  %6618 = vmatpush3.bf16.msra.mxu1 %v12942_v8  ;;  %v12997_v48 = vpack.c.bf16 %v12995_v49, %v12996_v7  ;;  %v12999_v14 = vld [vmem:[#allocation439_spill] sm:$0xff]  ;;  %v13043_v49 = vld [vmem:[#allocation412_spill] sm:$0xff]  ;;  %v13044_v7 = vld [vmem:[#allocation410_spill] sm:$0xff] }
 0x631   :  { %6619 = vmatprep.subr.bf16.mxu1 %v12943_v47  ;;  %4716 = vmatmul.mubr.bf16.gmra.mrb[136].mxu0 %v12946_v2  ;;  %v13000_v8 = vpack.c.bf16 %v12998_v19, %v12999_v14  ;;  %v13001_v47 = vld [vmem:[#allocation461_spill] sm:$0xff]  ;;  %v13004_v2 = vld [vmem:[#allocation350_spill] sm:$0xff] }
 0x632   :  { %4723 = vmatprep.mubr.bf16.mxu0 %v12949_v4  ;;  %v13003_v41 = vpack.c.bf16 %v13001_v47, %v13002_v34  ;;  %v13006_v28 = vpack.c.bf16 %v13004_v2, %v13005_v25  ;;  %v13007_v4 = vld [vmem:[#allocation416_spill] sm:$0xff]  ;;  %v13046_v14 = vld [vmem:[#allocation417_spill] sm:$0xff]  ;;  %v13050_v2 = vld [vmem:[#allocation142_spill] sm:$0xff] }
 0x633   :  { %v13049_v34 = vld [vmem:[#allocation133_spill] sm:$0xff] }
 0x634   :  { %6620 = vmatpush3.bf16.msra.mxu1 %v12950_v53  ;;  %v13008_v53 = vld [vmem:[#allocation414_spill] sm:$0xff] }
 0x635   :  { %6621 = vmatprep.subr.bf16.mxu1 %v12951_v36  ;;  %v13009_v36 = vpack.c.bf16 %v13007_v4, %v13008_v53 }
 0x637   :  { %4433 = vmatmul.mubr.bf16.gmra.mrb[76].mxu1 %v12954_v54  ;;  %v13012_v54 = vpack.c.bf16 %v13010_v5, %v13011_v63 }
 0x638   :  { %4440 = vmatprep.mubr.bf16.mxu1 %v12957_v29  ;;  %6622 = vmatpush3.bf16.msra.mxu1 %v12958_v23  ;;  %v13015_v29 = vpack.c.bf16 %v13013_v52, %v13014_v44  ;;  %v13016_v23 = vld [vmem:[#allocation127_spill] sm:$0xff] }
 0x639   :  { %6623 = vmatprep.subr.bf16.mxu1 %v12959_v20  ;;  %4724 = vmatmul.mubr.bf16.gmra.mrb[140].mxu0 %v12962_v31  ;;  %v13017_v20 = vld [vmem:[#allocation420_spill] sm:$0xff] }
 0x63a   :  { %4731 = vmatprep.mubr.bf16.mxu0 %v12965_v45  ;;  %v13019_v51 = vpack.c.bf16 %v13017_v20, %v13018_v9  ;;  %v13020_v31 = vld [vmem:[#allocation136_spill] sm:$0xff]  ;;  %v13053_v20 = vld [vmem:[#allocation399_spill] sm:$0xff] }
 0x63b   :  { %v13023_v45 = vld [vmem:[#allocation404_spill] sm:$0xff] }
 0x63c   :  { %6624 = vmatpush3.bf16.msra.mxu1 %v12966_v17  ;;  %v13024_v17 = vld [vmem:[#allocation402_spill] sm:$0xff] }
 0x63d   :  { %6737 = vmatprep.subr.bf16.mxu1 %v12967_v22  ;;  %v13025_v22 = vpack.c.bf16 %v13023_v45, %v13024_v17 }
 0x63f   :  { %4441 = vmatmul.mubr.bf16.gmra.mrb[80].mxu1 %v12970_v39  ;;  %v13028_v39 = vpack.c.bf16 %v13026_v30, %v13027_v61 }
 0x640   :  { %4448 = vmatprep.mubr.bf16.mxu1 %v12973_v15  ;;  %v13031_v15 = vld [vmem:[#allocation130_spill] sm:$0xff] }
 0x641   :  { %4732 = vmatmul.mubr.bf16.gmra.mrb[144].mxu0 %v12976_v24  ;;  %v13034_v24 = vld [vmem:[#allocation406_spill] sm:$0xff] }
 0x642   :  { %4739 = vmatprep.mubr.bf16.mxu0 %v12979_v38  ;;  %v13035_v26 = vpack.c.bf16 %v13033_v12, %v13034_v24  ;;  %v13037_v38 = vld [vmem:[#allocation426_spill] sm:$0xff]  ;;  %v13058_v24 = vld [vmem:[#allocation405_spill] sm:$0xff] }
 0x643   :  { %v13038_v37 = vpack.c.bf16 %v13036_v58, %v13037_v38 }
 0x647   :  { %4449 = vmatmul.mubr.bf16.gmra.mrb[84].mxu1 %v12982_v18  ;;  %v13040_v18 = vld [vmem:[#allocation140_spill] sm:$0xff] }
 0x648   :  { %4456 = vmatprep.mubr.bf16.mxu1 %v12985_v10 }
 0x649   :  { %4740 = vmatmul.mubr.bf16.gmra.mrb[148].mxu0 %v12988_v60 }
 0x64a   :  { %4747 = vmatprep.mubr.bf16.mxu0 %v12991_v35 }
 0x64f   :  { %4457 = vmatmul.mubr.bf16.gmra.mrb[88].mxu1 %v12994_v1 }
 0x650   :  { %4464 = vmatprep.mubr.bf16.mxu1 %v12997_v48  ;;  %v13045_v48 = vpack.c.bf16 %v13043_v49, %v13044_v7 }
 0x651   :  { %4748 = vmatmul.mubr.bf16.gmra.mrb[152].mxu0 %v13000_v8  ;;  %v13047_v8 = vld [vmem:[#allocation415_spill] sm:$0xff] }
 0x652   :  { %4755 = vmatprep.mubr.bf16.mxu0 %v13003_v41  ;;  %v13048_v47 = vpack.c.bf16 %v13046_v14, %v13047_v8 }
 0x657   :  { %4465 = vmatmul.mubr.bf16.gmra.mrb[92].mxu1 %v13006_v28 }
 0x658   :  { %4602 = vmatprep.mubr.bf16.mxu1 %v13009_v36  ;;  %v13051_v36 = vld [vmem:[#allocation134_spill] sm:$0xff] }
 0x659   :  { %4756 = vmatmul.mubr.bf16.gmra.mrb[156].mxu0 %v13012_v54 }
 0x65f   :  { %4603 = vmatmul.mubr.bf16.vlgmr.msra.gmra.mrb[96].mxu1 %v13015_v29 }
 0x660   :  { %6738 = vmatpush3.bf16.msra.mxu1 %v13016_v23  ;;  %4610 = vmatprep.mubr.bf16.mxu1 %v13019_v51  ;;  %v13052_v23 = vld [vmem:[#allocation401_spill] sm:$0xff] }
 0x661   :  { %6739 = vmatprep.subr.bf16.mxu1 %v13020_v31  ;;  %v13054_v9 = vpack.c.bf16 %v13052_v23, %v13053_v20  ;;  %v13055_v31 = vld [vmem:[#allocation421_spill] sm:$0xff] }
 0x664   :  { %6740 = vmatpush3.bf16.msra.mxu1 %v13021_v32  ;;  %v13056_v32 = vld [vmem:[#allocation419_spill] sm:$0xff] }
 0x665   :  { %6741 = vmatprep.subr.bf16.mxu1 %v13022_v27  ;;  %v13057_v27 = vpack.c.bf16 %v13055_v31, %v13056_v32  ;;  %v13071_v31 = vld [vmem:[#allocation411_spill] sm:$0xff] }
 0x667   :  { %4611 = vmatmul.mubr.bf16.gmra.mrb[100].mxu1 %v13025_v22 }
 0x668   :  { %4618 = vmatprep.mubr.bf16.mxu1 %v13028_v39  ;;  %6742 = vmatpush3.bf16.msra.mxu1 %v13029_v50 }
 0x669   :  { %6743 = vmatprep.subr.bf16.mxu1 %v13030_v21 }
 0x66c   :  { %6744 = vmatpush3.bf16.msra.mxu1 %v13031_v15 }
 0x66d   :  { %6745 = vmatprep.subr.bf16.mxu1 %v13032_v59 }
 0x66f   :  { %4619 = vmatmul.mubr.bf16.gmra.mrb[104].mxu1 %v13035_v26  ;;  %v13059_v26 = vld [vmem:[#allocation403_spill] sm:$0xff] }
 0x670   :  { %4626 = vmatprep.mubr.bf16.mxu1 %v13038_v37  ;;  %6746 = vmatpush3.bf16.msra.mxu1 %v13039_v56  ;;  %v13060_v58 = vpack.c.bf16 %v13058_v24, %v13059_v26  ;;  %v13061_v37 = vld [vmem:[#allocation425_spill] sm:$0xff]  ;;  %v13062_v56 = vld [vmem:[#allocation423_spill] sm:$0xff] }
 0x671   :  { %6747 = vmatprep.subr.bf16.mxu1 %v13040_v18  ;;  %v13063_v18 = vpack.c.bf16 %v13061_v37, %v13062_v56 }
 0x672   :  { %v6305_v13 = vpop.f32.mrb[0].mxu1 }
 0x673   :  { %v6306_v57 = vpop.f32.mrb[1].mxu1 }
 0x674   :  { %v10926_v10 = vadd.f32 %v6306_v57, %v6305_v13  ;;  %v6308_v46 = vpop.f32.mrb[2].mxu1  ;;  %6748 = vmatpush3.bf16.msra.mxu1 %v13041_v55  ;;  %v6433_v60 = vpop.f32.mrb[64].mxu0 }
 0x675   :  { %v6309_v3 = vpop.f32.mrb[3].mxu1  ;;  %6749 = vmatprep.subr.bf16.mxu1 %v13042_v6  ;;  %v6434_v35 = vpop.f32.mrb[65].mxu0 }
 0x676   :  { %v10930_v42 = vadd.f32 %v6309_v3, %v6308_v46  ;;  %v10932_v11 = vadd.f32 %v6434_v35, %v6433_v60  ;;  %v6436_v1 = vpop.f32.mrb[66].mxu0 }
 0x677   :  { %4627 = vmatmul.mubr.bf16.gmra.mrb[108].mxu1 %v13045_v48  ;;  %v6437_v19 = vpop.f32.mrb[67].mxu0  ;;  %v13064_v48 = vld [vmem:[#allocation409_spill] sm:$0xff] }
 0x678   :  { %4634 = vmatprep.mubr.bf16.mxu1 %v13048_v47  ;;  %6750 = vmatpush3.bf16.msra.mxu1 %v13049_v34  ;;  %v10941_v41 = vadd.f32 %v6437_v19, %v6436_v1  ;;  %v13065_v19 = vld [vmem:[#allocation407_spill] sm:$0xff]  ;;  %v13067_v47 = vld [vmem:[#allocation429_spill] sm:$0xff] }
 0x679   :  { %6751 = vmatprep.subr.bf16.mxu1 %v13050_v2  ;;  %v13066_v14 = vpack.c.bf16 %v13064_v48, %v13065_v19  ;;  %v13068_v34 = vld [vmem:[#allocation427_spill] sm:$0xff] }
 0x67a   :  { %v6311_v25 = vpop.f32.mrb[4].mxu1  ;;  %v13069_v2 = vpack.c.bf16 %v13067_v47, %v13068_v34 }
 0x67b   :  { %v6312_v28 = vpop.f32.mrb[5].mxu1 }
 0x67c   :  { %v10944_v4 = vadd.f32 %v6312_v28, %v6311_v25  ;;  %v6314_v53 = vpop.f32.mrb[6].mxu1  ;;  %6752 = vmatpush3.bf16.msra.mxu1 %v13051_v36  ;;  %v6439_v5 = vpop.f32.mrb[68].mxu0 }
 0x67d   :  { %v6315_v63 = vpop.f32.mrb[7].mxu1  ;;  %v6440_v54 = vpop.f32.mrb[69].mxu0 }
 0x67e   :  { %v10947_v52 = vadd.f32 %v6315_v63, %v6314_v53  ;;  %v10949_v44 = vadd.f32 %v6440_v54, %v6439_v5  ;;  %v6442_v29 = vpop.f32.mrb[70].mxu0 }
 0x67f   :  { %4635 = vmatmul.mubr.bf16.gmra.mrb[112].mxu1 %v13054_v9  ;;  %v6443_v51 = vpop.f32.mrb[71].mxu0 }
 0x680   :  { %4642 = vmatprep.mubr.bf16.mxu1 %v13057_v27  ;;  %v10957_v45 = vadd.f32 %v6443_v51, %v6442_v29  ;;  %v13070_v51 = vld [vmem:[#allocation413_spill] sm:$0xff] }
 0x681   :  { %v13072_v32 = vpack.c.bf16 %v13070_v51, %v13071_v31  ;;  %v13085_v31 = vld [vmem:[#allocation486_spill] sm:$0xff] }
 0x682   :  { %v6317_v17 = vpop.f32.mrb[8].mxu1 }
 0x683   :  { %v6318_v22 = vpop.f32.mrb[9].mxu1 }
 0x684   :  { %v10959_v30 = vadd.f32 %v6318_v22, %v6317_v17  ;;  %v6320_v61 = vpop.f32.mrb[10].mxu1  ;;  %v6445_v39 = vpop.f32.mrb[72].mxu0  ;;  %v13073_v17 = vld [vmem:[#allocation480_spill] sm:$0xff]  ;;  %v13074_v22 = vld [vmem:[#allocation478_spill] sm:$0xff] }
 0x685   :  { %v6321_v50 = vpop.f32.mrb[11].mxu1  ;;  %v6446_v21 = vpop.f32.mrb[73].mxu0 }
 0x686   :  { %v10961_v15 = vadd.f32 %v6321_v50, %v6320_v61  ;;  %v10963_v59 = vadd.f32 %v6446_v21, %v6445_v39  ;;  %v6448_v12 = vpop.f32.mrb[74].mxu0  ;;  %v13075_v61 = vpack.c.bf16 %v13073_v17, %v13074_v22 }
 0x687   :  { %4643 = vmatmul.mubr.bf16.gmra.mrb[116].mxu1 %v13060_v58  ;;  %v6449_v38 = vpop.f32.mrb[75].mxu0 }
 0x688   :  { %4650 = vmatprep.mubr.bf16.mxu1 %v13063_v18  ;;  %v10971_v13 = vadd.f32 %v6449_v38, %v6448_v12 }
 0x68a   :  { %v6323_v57 = vpop.f32.mrb[12].mxu1 }
 0x68b   :  { %v6324_v46 = vpop.f32.mrb[13].mxu1 }
 0x68c   :  { %v10973_v55 = vadd.f32 %v6324_v46, %v6323_v57  ;;  %v6326_v60 = vpop.f32.mrb[14].mxu1  ;;  %v6451_v3 = vpop.f32.mrb[76].mxu0  ;;  %v13076_v57 = vld [vmem:[#allocation464_spill] sm:$0xff]  ;;  %v13077_v46 = vld [vmem:[#allocation462_spill] sm:$0xff] }
 0x68d   :  { %v6327_v6 = vpop.f32.mrb[15].mxu1  ;;  %v6452_v35 = vpop.f32.mrb[77].mxu0 }
 0x68e   :  { %v10975_v1 = vadd.f32 %v6327_v6, %v6326_v60  ;;  %v10977_v49 = vadd.f32 %v6452_v35, %v6451_v3  ;;  %v6454_v7 = vpop.f32.mrb[78].mxu0  ;;  %v13078_v60 = vpack.c.bf16 %v13076_v57, %v13077_v46  ;;  %v13079_v6 = vld [vmem:[#allocation484_spill] sm:$0xff]  ;;  %v13080_v35 = vld [vmem:[#allocation482_spill] sm:$0xff] }
 0x68f   :  { %4651 = vmatmul.mubr.bf16.gmra.mrb[120].mxu1 %v13066_v14  ;;  %v6455_v8 = vpop.f32.mrb[79].mxu0  ;;  %v13087_v57 = vld [vmem:[#allocation472_spill] sm:$0xff]  ;;  %v13088_v46 = vld [vmem:[#allocation470_spill] sm:$0xff] }
 0x690   :  { %4658 = vmatprep.mubr.bf16.mxu1 %v13069_v2  ;;  %v10985_v25 = vadd.f32 %v6455_v8, %v6454_v7  ;;  %v13081_v7 = vpack.c.bf16 %v13079_v6, %v13080_v35 }
 0x692   :  { %v6329_v28 = vpop.f32.mrb[16].mxu1 }
 0x693   :  { %v6330_v53 = vpop.f32.mrb[17].mxu1 }
 0x694   :  { %v10987_v36 = vadd.f32 %v6330_v53, %v6329_v28  ;;  %v6332_v5 = vpop.f32.mrb[18].mxu1  ;;  %v6457_v63 = vpop.f32.mrb[80].mxu0 }
 0x695   :  { %v6333_v54 = vpop.f32.mrb[19].mxu1  ;;  %v6458_v29 = vpop.f32.mrb[81].mxu0 }
 0x696   :  { %v10989_v23 = vadd.f32 %v6333_v54, %v6332_v5  ;;  %v10991_v20 = vadd.f32 %v6458_v29, %v6457_v63  ;;  %v6460_v9 = vpop.f32.mrb[82].mxu0  ;;  %v13082_v54 = vld [vmem:[#allocation468_spill] sm:$0xff]  ;;  %v13083_v29 = vld [vmem:[#allocation466_spill] sm:$0xff] }
 0x697   :  { %4659 = vmatmul.mubr.bf16.gmra.mrb[124].mxu1 %v13072_v32  ;;  %v6461_v27 = vpop.f32.mrb[83].mxu0  ;;  %v13086_v32 = vpack.c.bf16 %v10474_v0, %v13085_v31 }
 0x698   :  { %4796 = vmatprep.mubr.bf16.mxu1 %v13075_v61  ;;  %v10999_v39 = vadd.f32 %v6461_v27, %v6460_v9  ;;  %v13084_v9 = vpack.c.bf16 %v13082_v54, %v13083_v29 }
 0x69a   :  { %v6335_v50 = vpop.f32.mrb[20].mxu1 }
 0x69b   :  { %v6336_v21 = vpop.f32.mrb[21].mxu1 }
 0x69c   :  { %v11001_v12 = vadd.f32 %v6336_v21, %v6335_v50  ;;  %v6338_v24 = vpop.f32.mrb[22].mxu1  ;;  %v6463_v26 = vpop.f32.mrb[84].mxu0 }
 0x69d   :  { %v6339_v58 = vpop.f32.mrb[23].mxu1  ;;  %v6464_v38 = vpop.f32.mrb[85].mxu0 }
 0x69e   :  { %v11003_v37 = vadd.f32 %v6339_v58, %v6338_v24  ;;  %v11005_v56 = vadd.f32 %v6464_v38, %v6463_v26  ;;  %v6466_v18 = vpop.f32.mrb[86].mxu0 }
 0x69f   :  { %4797 = vmatmul.mubr.bf16.vlgmr.msra.gmra.mrb[128].mxu1 %v13078_v60  ;;  %v6467_v3 = vpop.f32.mrb[87].mxu0  ;;  %v13089_v60 = vpack.c.bf16 %v13087_v57, %v13088_v46 }
 0x6a0   :  { %4804 = vmatprep.mubr.bf16.mxu1 %v13081_v7  ;;  %v11013_v48 = vadd.f32 %v6467_v3, %v6466_v18  ;;  %v13090_v3 = vpack.c.bf16 %v10486_v16, %v10482_v40 }
 0x6a2   :  { %v6341_v19 = vpop.f32.mrb[24].mxu1 }
 0x6a3   :  { %v6342_v14 = vpop.f32.mrb[25].mxu1 }
 0x6a4   :  { %v11015_v8 = vadd.f32 %v6342_v14, %v6341_v19  ;;  %v6344_v47 = vpop.f32.mrb[26].mxu1  ;;  %v6469_v34 = vpop.f32.mrb[88].mxu0 }
 0x6a5   :  { %v6345_v2 = vpop.f32.mrb[27].mxu1  ;;  %v6470_v28 = vpop.f32.mrb[89].mxu0 }
 0x6a6   :  { %v11017_v53 = vadd.f32 %v6345_v2, %v6344_v47  ;;  %v11019_v5 = vadd.f32 %v6470_v28, %v6469_v34  ;;  %v6472_v63 = vpop.f32.mrb[90].mxu0 }
 0x6a7   :  { %4805 = vmatmul.mubr.bf16.gmra.mrb[132].mxu1 %v13084_v9  ;;  %v6473_v51 = vpop.f32.mrb[91].mxu0  ;;  %v13091_v9 = vld [vmem:[#allocation476_spill] sm:$0xff] }
 0x6a8   :  { %4812 = vmatprep.mubr.bf16.mxu1 %v13086_v32  ;;  %v11027_v27 = vadd.f32 %v6473_v51, %v6472_v63  ;;  %v13092_v51 = vld [vmem:[#allocation474_spill] sm:$0xff] }
 0x6a9   :  { %v13093_v31 = vpack.c.bf16 %v13091_v9, %v13092_v51 }
 0x6aa   :  { %v6347_v17 = vpop.f32.mrb[28].mxu1 }
 0x6ab   :  { %v6348_v22 = vpop.f32.mrb[29].mxu1 }
 0x6ac   :  { %v11029_v61 = vadd.f32 %v6348_v22, %v6347_v17  ;;  %v6350_v50 = vpop.f32.mrb[30].mxu1  ;;  %v6475_v21 = vpop.f32.mrb[92].mxu0  ;;  %v13094_v17 = vld [vmem:[#allocation481_spill] sm:$0xff]  ;;  %v13095_v22 = vld [vmem:[#allocation479_spill] sm:$0xff] }
 0x6ad   :  { %v6351_v24 = vpop.f32.mrb[31].mxu1  ;;  %v6476_v26 = vpop.f32.mrb[93].mxu0 }
 0x6ae   :  { %v11031_v58 = vadd.f32 %v6351_v24, %v6350_v50  ;;  %v11033_v38 = vadd.f32 %v6476_v26, %v6475_v21  ;;  %v6478_v18 = vpop.f32.mrb[94].mxu0  ;;  %v13096_v50 = vpack.c.bf16 %v13094_v17, %v13095_v22 }
 0x6af   :  { %4813 = vmatmul.mubr.bf16.gmra.mrb[136].mxu1 %v13089_v60  ;;  %v6479_v0 = vpop.f32.mrb[95].mxu0 }
 0x6b0   :  { %4820 = vmatprep.mubr.bf16.mxu1 %v13090_v3  ;;  %v11041_v6 = vadd.f32 %v6479_v0, %v6478_v18 }
 0x6b2   :  { %v6369_v35 = vpop.f32.mrb[32].mxu1 }
 0x6b3   :  { %v6370_v7 = vpop.f32.mrb[33].mxu1 }
 0x6b4   :  { %v6371_v19 = vadd.f32 %v6370_v7, %v6369_v35  ;;  %v6372_v14 = vpop.f32.mrb[34].mxu1  ;;  %v6561_v47 = vpop.f32.mrb[96].mxu0  ;;  %v13097_v7 = vld [vmem:[#allocation465_spill] sm:$0xff] }
 0x6b5   :  { %v6373_v34 = vpop.f32.mrb[35].mxu1  ;;  %v6562_v2 = vpop.f32.mrb[97].mxu0 }
 0x6b6   :  { %v4217_v28 = vadd.f32 %v6371_v19, %v10926_v10  ;;  %v6374_v63 = vadd.f32 %v6373_v34, %v6372_v14  ;;  %v11044_v54 = vadd.f32 %v6562_v2, %v6561_v47  ;;  %v6564_v29 = vpop.f32.mrb[98].mxu0  ;;  %v13098_v19 = vld [vmem:[#allocation463_spill] sm:$0xff]  ;;  %v13100_v2 = vld [vmem:[#allocation485_spill] sm:$0xff] }
 0x6b7   :  { %4821 = vmatmul.mubr.bf16.gmra.mrb[140].mxu1 %v13093_v31  ;;  %v6565_v40 = vpop.f32.mrb[99].mxu0  ;;  %v13099_v14 = vpack.c.bf16 %v13097_v7, %v13098_v19 }
 0x6b8   :  { %v4220_v16 = vadd.f32 %v6374_v63, %v10930_v42  ;;  %v11051_v32 = vadd.f32 %v10932_v11, %v4217_v28  ;;  %4828 = vmatprep.mubr.bf16.mxu1 %v13096_v50  ;;  %v11056_v21 = vadd.f32 %v6565_v40, %v6564_v29  ;;  %v13101_v28 = vld [vmem:[#allocation483_spill] sm:$0xff] }
 0x6b9   :  { %v13102_v63 = vpack.c.bf16 %v13100_v2, %v13101_v28 }
 0x6ba   :  { %v11059_v10 = vadd.f32 %v10941_v41, %v4220_v16  ;;  %v6375_v24 = vpop.f32.mrb[36].mxu1 }
 0x6bb   :  { %v6376_v26 = vpop.f32.mrb[37].mxu1 }
 0x6bc   :  { %v6377_v18 = vadd.f32 %v6376_v26, %v6375_v24  ;;  %v6378_v57 = vpop.f32.mrb[38].mxu1  ;;  %v6567_v46 = vpop.f32.mrb[100].mxu0  ;;  %v13103_v26 = vld [vmem:[#allocation469_spill] sm:$0xff] }
 0x6bd   :  { %v6379_v60 = vpop.f32.mrb[39].mxu1  ;;  %v6568_v0 = vpop.f32.mrb[101].mxu0 }
 0x6be   :  { %v4225_v42 = vadd.f32 %v6377_v18, %v10944_v4  ;;  %v6380_v11 = vadd.f32 %v6379_v60, %v6378_v57  ;;  %v11062_v3 = vadd.f32 %v6568_v0, %v6567_v46  ;;  %v6570_v35 = vpop.f32.mrb[102].mxu0  ;;  %v13104_v18 = vld [vmem:[#allocation467_spill] sm:$0xff]  ;;  %v13106_v0 = vld [vmem:[#allocation488_spill] sm:$0xff] }
 0x6bf   :  { %4829 = vmatmul.mubr.bf16.gmra.mrb[144].mxu1 %v13099_v14  ;;  %v6571_v47 = vpop.f32.mrb[103].mxu0  ;;  %v13105_v57 = vpack.c.bf16 %v13103_v26, %v13104_v18 }
 0x6c0   :  { %v4228_v41 = vadd.f32 %v6380_v11, %v10947_v52  ;;  %v11069_v34 = vadd.f32 %v10949_v44, %v4225_v42  ;;  %4836 = vmatprep.mubr.bf16.mxu1 %v13102_v63  ;;  %v11074_v29 = vadd.f32 %v6571_v47, %v6570_v35  ;;  %v13107_v42 = vld [vmem:[#allocation487_spill] sm:$0xff] }
 0x6c1   :  { %v13108_v11 = vpack.c.bf16 %v13106_v0, %v13107_v42 }
 0x6c2   :  { %v11077_v4 = vadd.f32 %v10957_v45, %v4228_v41  ;;  %v6381_v9 = vpop.f32.mrb[40].mxu1 }
 0x6c3   :  { %v6382_v51 = vpop.f32.mrb[41].mxu1 }
 0x6c4   :  { %v6383_v31 = vadd.f32 %v6382_v51, %v6381_v9  ;;  %v6384_v40 = vpop.f32.mrb[42].mxu1  ;;  %v6573_v16 = vpop.f32.mrb[104].mxu0  ;;  %v13109_v51 = vld [vmem:[#allocation473_spill] sm:$0xff] }
 0x6c5   :  { %v6385_v17 = vpop.f32.mrb[43].mxu1  ;;  %v6574_v22 = vpop.f32.mrb[105].mxu0 }
 0x6c6   :  { %v4233_v52 = vadd.f32 %v6383_v31, %v10959_v30  ;;  %v6386_v44 = vadd.f32 %v6385_v17, %v6384_v40  ;;  %v11080_v50 = vadd.f32 %v6574_v22, %v6573_v16  ;;  %v6576_v24 = vpop.f32.mrb[106].mxu0  ;;  %v13110_v31 = vld [vmem:[#allocation471_spill] sm:$0xff] }
 0x6c7   :  { %4837 = vmatmul.mubr.bf16.gmra.mrb[148].mxu1 %v13105_v57  ;;  %v6577_v46 = vpop.f32.mrb[107].mxu0  ;;  %v13111_v40 = vpack.c.bf16 %v13109_v51, %v13110_v31 }
 0x6c8   :  { %v4236_v45 = vadd.f32 %v6386_v44, %v10961_v15  ;;  %v11087_v60 = vadd.f32 %v10963_v59, %v4233_v52  ;;  %4844 = vmatprep.mubr.bf16.mxu1 %v13108_v11  ;;  %v11092_v35 = vadd.f32 %v6577_v46, %v6576_v24 }
 0x6ca   :  { %v11095_v30 = vadd.f32 %v10971_v13, %v4236_v45  ;;  %v6387_v7 = vpop.f32.mrb[44].mxu1 }
 0x6cb   :  { %v6388_v19 = vpop.f32.mrb[45].mxu1 }
 0x6cc   :  { %v6389_v14 = vadd.f32 %v6388_v19, %v6387_v7  ;;  %v6390_v47 = vpop.f32.mrb[46].mxu1  ;;  %v6579_v41 = vpop.f32.mrb[108].mxu0 }
 0x6cd   :  { %v6391_v2 = vpop.f32.mrb[47].mxu1  ;;  %v6580_v28 = vpop.f32.mrb[109].mxu0 }
 0x6ce   :  { %v4241_v15 = vadd.f32 %v6389_v14, %v10973_v55  ;;  %v6392_v59 = vadd.f32 %v6391_v2, %v6390_v47  ;;  %v11098_v63 = vadd.f32 %v6580_v28, %v6579_v41  ;;  %v6582_v9 = vpop.f32.mrb[110].mxu0 }
 0x6cf   :  { %4845 = vmatmul.mubr.bf16.gmra.mrb[152].mxu1 %v13111_v40  ;;  %v6583_v16 = vpop.f32.mrb[111].mxu0 }
 0x6d0   :  { %v4244_v13 = vadd.f32 %v6392_v59, %v10975_v1  ;;  %v11105_v17 = vadd.f32 %v10977_v49, %v4241_v15  ;;  %4852 = vmatprep.mubr.bf16.mxu1 %v3952_v62  ;;  %v11110_v22 = vadd.f32 %v6583_v16, %v6582_v9  ;;  %v13113_v62 = vld [vmem:[#allocation475_spill] sm:$0xff] }
 0x6d1   :  { %v13114_v43 = vpack.c.bf16 %v13112_v33, %v13113_v62 }
 0x6d2   :  { %v11113_v55 = vadd.f32 %v10985_v25, %v4244_v13  ;;  %v6393_v52 = vpop.f32.mrb[48].mxu1 }
 0x6d3   :  { %v6394_v44 = vpop.f32.mrb[49].mxu1 }
 0x6d4   :  { %v6395_v24 = vadd.f32 %v6394_v44, %v6393_v52  ;;  %v6396_v26 = vpop.f32.mrb[50].mxu1  ;;  %v6585_v18 = vpop.f32.mrb[112].mxu0 }
 0x6d5   :  { %v6397_v57 = vpop.f32.mrb[51].mxu1  ;;  %v6586_v46 = vpop.f32.mrb[113].mxu0 }
 0x6d6   :  { %v4249_v1 = vadd.f32 %v6395_v24, %v10987_v36  ;;  %v6398_v49 = vadd.f32 %v6397_v57, %v6396_v26  ;;  %v11116_v45 = vadd.f32 %v6586_v46, %v6585_v18  ;;  %v6588_v0 = vpop.f32.mrb[114].mxu0 }
 0x6d7   :  { %4853 = vmatmul.mubr.bf16.gmra.mrb[156].mxu1 %v13114_v43  ;;  %v6589_v42 = vpop.f32.mrb[115].mxu0 }
 0x6d8   :  { %v4252_v25 = vadd.f32 %v6398_v49, %v10989_v23  ;;  %v11123_v11 = vadd.f32 %v10991_v20, %v4249_v1  ;;  %v11125_v7 = vadd.f32 %v6589_v42, %v6588_v0 }
 0x6da   :  { %v11128_v19 = vadd.f32 %v10999_v39, %v4252_v25  ;;  %v6399_v36 = vpop.f32.mrb[52].mxu1 }
 0x6db   :  { %v6400_v14 = vpop.f32.mrb[53].mxu1 }
 0x6dc   :  { %v6401_v47 = vadd.f32 %v6400_v14, %v6399_v36  ;;  %v6402_v41 = vpop.f32.mrb[54].mxu1  ;;  %v6591_v2 = vpop.f32.mrb[116].mxu0 }
 0x6dd   :  { %v6403_v28 = vpop.f32.mrb[55].mxu1  ;;  %v6592_v15 = vpop.f32.mrb[117].mxu0 }
 0x6de   :  { %v4257_v59 = vadd.f32 %v6401_v47, %v11001_v12  ;;  %v6404_v9 = vadd.f32 %v6403_v28, %v6402_v41  ;;  %v11131_v51 = vadd.f32 %v6592_v15, %v6591_v2  ;;  %v6594_v23 = vpop.f32.mrb[118].mxu0 }
 0x6df   :  { %v6595_v20 = vpop.f32.mrb[119].mxu0 }
 0x6e0   :  { %v4260_v31 = vadd.f32 %v6404_v9, %v11003_v37  ;;  %v11135_v40 = vadd.f32 %v11005_v56, %v4257_v59  ;;  %v11137_v39 = vadd.f32 %v6595_v20, %v6594_v23 }
 0x6e2   :  { %v11140_v16 = vadd.f32 %v11013_v48, %v4260_v31  ;;  %v6405_v13 = vpop.f32.mrb[56].mxu1 }
 0x6e3   :  { %v6406_v52 = vpop.f32.mrb[57].mxu1 }
 0x6e4   :  { %v6407_v44 = vadd.f32 %v6406_v52, %v6405_v13  ;;  %v6408_v24 = vpop.f32.mrb[58].mxu1  ;;  %v6597_v12 = vpop.f32.mrb[120].mxu0 }
 0x6e5   :  { %v6409_v26 = vpop.f32.mrb[59].mxu1  ;;  %v6598_v18 = vpop.f32.mrb[121].mxu0 }
 0x6e6   :  { %v4265_v57 = vadd.f32 %v6407_v44, %v11015_v8  ;;  %v6410_v46 = vadd.f32 %v6409_v26, %v6408_v24  ;;  %v11143_v1 = vadd.f32 %v6598_v18, %v6597_v12  ;;  %v6600_v37 = vpop.f32.mrb[122].mxu0 }
 0x6e7   :  { %v6601_v56 = vpop.f32.mrb[123].mxu0 }
 0x6e8   :  { %v4268_v49 = vadd.f32 %v6410_v46, %v11017_v53  ;;  %v11147_v0 = vadd.f32 %v11019_v5, %v4265_v57  ;;  %v11149_v48 = vadd.f32 %v6601_v56, %v6600_v37 }
 0x6ea   :  { %v11152_v33 = vadd.f32 %v11027_v27, %v4268_v49  ;;  %v6411_v62 = vpop.f32.mrb[60].mxu1 }
 0x6eb   :  { %v6412_v43 = vpop.f32.mrb[61].mxu1 }
 0x6ec   :  { %v6413_v42 = vadd.f32 %v6412_v43, %v6411_v62  ;;  %v6414_v25 = vpop.f32.mrb[62].mxu1  ;;  %v6603_v8 = vpop.f32.mrb[124].mxu0 }
 0x6ed   :  { %v6415_v36 = vpop.f32.mrb[63].mxu1  ;;  %v6604_v14 = vpop.f32.mrb[125].mxu0 }
 0x6ee   :  { %v4273_v47 = vadd.f32 %v6413_v42, %v11029_v61  ;;  %v6416_v41 = vadd.f32 %v6415_v36, %v6414_v25  ;;  %v11155_v2 = vadd.f32 %v6604_v14, %v6603_v8  ;;  %v6606_v53 = vpop.f32.mrb[126].mxu0 }
 0x6ef   :  { %v6607_v5 = vpop.f32.mrb[127].mxu0 }
 0x6f0   :  { %v4276_v28 = vadd.f32 %v6416_v41, %v11031_v58  ;;  %v11159_v15 = vadd.f32 %v11033_v38, %v4273_v47  ;;  %v11161_v27 = vadd.f32 %v6607_v5, %v6606_v53 }
 0x6f2   :  { %v11164_v59 = vadd.f32 %v11041_v6, %v4276_v28  ;;  %v6497_v9 = vpop.f32.mrb[64].mxu1 }
 0x6f3   :  { %v6498_v23 = vpop.f32.mrb[65].mxu1 }
 0x6f4   :  { %v6499_v20 = vadd.f32 %v6498_v23, %v6497_v9  ;;  %v6500_v31 = vpop.f32.mrb[66].mxu1  ;;  %v6689_v61 = vpop.f32.mrb[128].mxu0 }
 0x6f5   :  { %v6501_v13 = vpop.f32.mrb[67].mxu1  ;;  %v6690_v52 = vpop.f32.mrb[129].mxu0 }
 0x6f6   :  { %v4411_v44 = vadd.f32 %v6499_v20, %v11051_v32  ;;  %v6502_v24 = vadd.f32 %v6501_v13, %v6500_v31  ;;  %v11167_v12 = vadd.f32 %v6690_v52, %v6689_v61  ;;  %v6692_v58 = vpop.f32.mrb[130].mxu0 }
 0x6f7   :  { %v6693_v38 = vpop.f32.mrb[131].mxu0 }
 0x6f8   :  { %v4414_v26 = vadd.f32 %v6502_v24, %v11059_v10  ;;  %v11171_v18 = vadd.f32 %v11044_v54, %v4411_v44  ;;  %v11173_v6 = vadd.f32 %v6693_v38, %v6692_v58 }
 0x6fa   :  { %v11176_v57 = vadd.f32 %v11056_v21, %v4414_v26  ;;  %v6503_v46 = vpop.f32.mrb[68].mxu1 }
 0x6fb   :  { %v6504_v37 = vpop.f32.mrb[69].mxu1 }
 0x6fc   :  { %v6505_v56 = vadd.f32 %v6504_v37, %v6503_v46  ;;  %v6506_v49 = vpop.f32.mrb[70].mxu1  ;;  %v6695_v32 = vpop.f32.mrb[132].mxu0 }
 0x6fd   :  { %v6507_v62 = vpop.f32.mrb[71].mxu1  ;;  %v6696_v43 = vpop.f32.mrb[133].mxu0 }
 0x6fe   :  { %v4419_v42 = vadd.f32 %v6505_v56, %v11069_v34  ;;  %v6508_v25 = vadd.f32 %v6507_v62, %v6506_v49  ;;  %v11179_v8 = vadd.f32 %v6696_v43, %v6695_v32  ;;  %v6698_v10 = vpop.f32.mrb[134].mxu0 }
 0x6ff   :  { %v6699_v54 = vpop.f32.mrb[135].mxu0 }
 0x700   :  { %v4422_v36 = vadd.f32 %v6508_v25, %v11077_v4  ;;  %v11183_v14 = vadd.f32 %v11062_v3, %v4419_v42  ;;  %v11185_v21 = vadd.f32 %v6699_v54, %v6698_v10 }
 0x702   :  { %v11188_v47 = vadd.f32 %v11074_v29, %v4422_v36  ;;  %v6509_v41 = vpop.f32.mrb[72].mxu1 }
 0x703   :  { %v6510_v53 = vpop.f32.mrb[73].mxu1 }
 0x704   :  { %v6511_v5 = vadd.f32 %v6510_v53, %v6509_v41  ;;  %v6512_v28 = vpop.f32.mrb[74].mxu1  ;;  %v6701_v34 = vpop.f32.mrb[136].mxu0 }
 0x705   :  { %v6513_v9 = vpop.f32.mrb[75].mxu1  ;;  %v6702_v23 = vpop.f32.mrb[137].mxu0 }
 0x706   :  { %v4427_v20 = vadd.f32 %v6511_v5, %v11087_v60  ;;  %v6514_v31 = vadd.f32 %v6513_v9, %v6512_v28  ;;  %v11191_v61 = vadd.f32 %v6702_v23, %v6701_v34  ;;  %v6704_v4 = vpop.f32.mrb[138].mxu0 }
 0x707   :  { %v6705_v3 = vpop.f32.mrb[139].mxu0 }
 0x708   :  { %v4430_v13 = vadd.f32 %v6514_v31, %v11095_v30  ;;  %v11195_v52 = vadd.f32 %v11080_v50, %v4427_v20  ;;  %v11197_v29 = vadd.f32 %v6705_v3, %v6704_v4 }
 0x70a   :  { %v11200_v44 = vadd.f32 %v11092_v35, %v4430_v13  ;;  %v6515_v24 = vpop.f32.mrb[76].mxu1 }
 0x70b   :  { %v6516_v58 = vpop.f32.mrb[77].mxu1 }
 0x70c   :  { %v6517_v38 = vadd.f32 %v6516_v58, %v6515_v24  ;;  %v6518_v26 = vpop.f32.mrb[78].mxu1  ;;  %v6707_v60 = vpop.f32.mrb[140].mxu0 }
 0x70d   :  { %v6519_v46 = vpop.f32.mrb[79].mxu1  ;;  %v6708_v37 = vpop.f32.mrb[141].mxu0 }
 0x70e   :  { %v4435_v56 = vadd.f32 %v6517_v38, %v11105_v17  ;;  %v6520_v49 = vadd.f32 %v6519_v46, %v6518_v26  ;;  %v11203_v32 = vadd.f32 %v6708_v37, %v6707_v60  ;;  %v6710_v30 = vpop.f32.mrb[142].mxu0 }
 0x70f   :  { %v6711_v50 = vpop.f32.mrb[143].mxu0 }
 0x710   :  { %v4438_v62 = vadd.f32 %v6520_v49, %v11113_v55  ;;  %v11207_v43 = vadd.f32 %v11098_v63, %v4435_v56  ;;  %v11209_v35 = vadd.f32 %v6711_v50, %v6710_v30 }
 0x712   :  { %v11212_v42 = vadd.f32 %v11110_v22, %v4438_v62  ;;  %v6521_v25 = vpop.f32.mrb[80].mxu1 }
 0x713   :  { %v6522_v10 = vpop.f32.mrb[81].mxu1 }
 0x714   :  { %v6523_v54 = vadd.f32 %v6522_v10, %v6521_v25  ;;  %v6524_v36 = vpop.f32.mrb[82].mxu1  ;;  %v6713_v17 = vpop.f32.mrb[144].mxu0 }
 0x715   :  { %v6525_v41 = vpop.f32.mrb[83].mxu1  ;;  %v6714_v53 = vpop.f32.mrb[145].mxu0 }
 0x716   :  { %v4443_v5 = vadd.f32 %v6523_v54, %v11123_v11  ;;  %v6526_v28 = vadd.f32 %v6525_v41, %v6524_v36  ;;  %v11215_v34 = vadd.f32 %v6714_v53, %v6713_v17  ;;  %v6716_v55 = vpop.f32.mrb[146].mxu0 }
 0x717   :  { %v6717_v63 = vpop.f32.mrb[147].mxu0 }
 0x718   :  { %v4446_v9 = vadd.f32 %v6526_v28, %v11128_v19  ;;  %v11219_v23 = vadd.f32 %v11116_v45, %v4443_v5  ;;  %v11221_v22 = vadd.f32 %v6717_v63, %v6716_v55 }
 0x71a   :  { %v11224_v20 = vadd.f32 %v11125_v7, %v4446_v9  ;;  %v6527_v31 = vpop.f32.mrb[84].mxu1 }
 0x71b   :  { %v6528_v4 = vpop.f32.mrb[85].mxu1 }
 0x71c   :  { %v6529_v3 = vadd.f32 %v6528_v4, %v6527_v31  ;;  %v6530_v13 = vpop.f32.mrb[86].mxu1  ;;  %v6719_v11 = vpop.f32.mrb[148].mxu0 }
 0x71d   :  { %v6531_v24 = vpop.f32.mrb[87].mxu1  ;;  %v6720_v58 = vpop.f32.mrb[149].mxu0 }
 0x71e   :  { %v4451_v38 = vadd.f32 %v6529_v3, %v11135_v40  ;;  %v6532_v26 = vadd.f32 %v6531_v24, %v6530_v13  ;;  %v11227_v60 = vadd.f32 %v6720_v58, %v6719_v11  ;;  %v6722_v19 = vpop.f32.mrb[150].mxu0 }
 0x71f   :  { %v6723_v45 = vpop.f32.mrb[151].mxu0 }
 0x720   :  { %v4454_v46 = vadd.f32 %v6532_v26, %v11140_v16  ;;  %v11231_v37 = vadd.f32 %v11131_v51, %v4451_v38  ;;  %v11233_v7 = vadd.f32 %v6723_v45, %v6722_v19 }
 0x722   :  { %v11236_v56 = vadd.f32 %v11137_v39, %v4454_v46  ;;  %v6533_v49 = vpop.f32.mrb[88].mxu1 }
 0x723   :  { %v6534_v30 = vpop.f32.mrb[89].mxu1 }
 0x724   :  { %v6535_v50 = vadd.f32 %v6534_v30, %v6533_v49  ;;  %v6536_v62 = vpop.f32.mrb[90].mxu1  ;;  %v6725_v40 = vpop.f32.mrb[152].mxu0 }
 0x725   :  { %v6537_v25 = vpop.f32.mrb[91].mxu1  ;;  %v6726_v10 = vpop.f32.mrb[153].mxu0 }
 0x726   :  { %v4459_v54 = vadd.f32 %v6535_v50, %v11147_v0  ;;  %v6538_v36 = vadd.f32 %v6537_v25, %v6536_v62  ;;  %v11239_v17 = vadd.f32 %v6726_v10, %v6725_v40  ;;  %v6728_v16 = vpop.f32.mrb[154].mxu0 }
 0x727   :  { %v6729_v51 = vpop.f32.mrb[155].mxu0 }
 0x728   :  { %v4462_v41 = vadd.f32 %v6538_v36, %v11152_v33  ;;  %v11243_v53 = vadd.f32 %v11143_v1, %v4459_v54  ;;  %v11245_v39 = vadd.f32 %v6729_v51, %v6728_v16 }
 0x72a   :  { %v11248_v5 = vadd.f32 %v11149_v48, %v4462_v41  ;;  %v6539_v28 = vpop.f32.mrb[92].mxu1 }
 0x72b   :  { %v6540_v55 = vpop.f32.mrb[93].mxu1 }
 0x72c   :  { %v6541_v63 = vadd.f32 %v6540_v55, %v6539_v28  ;;  %v6542_v9 = vpop.f32.mrb[94].mxu1  ;;  %v6731_v0 = vpop.f32.mrb[156].mxu0 }
 0x72d   :  { %v6543_v31 = vpop.f32.mrb[95].mxu1  ;;  %v6732_v4 = vpop.f32.mrb[157].mxu0 }
 0x72e   :  { %v4467_v3 = vadd.f32 %v6541_v63, %v11159_v15  ;;  %v6544_v13 = vadd.f32 %v6543_v31, %v6542_v9  ;;  %v11251_v11 = vadd.f32 %v6732_v4, %v6731_v0  ;;  %v6734_v33 = vpop.f32.mrb[158].mxu0 }
 0x72f   :  { %v6735_v1 = vpop.f32.mrb[159].mxu0 }
 0x730   :  { %v4470_v24 = vadd.f32 %v6544_v13, %v11164_v59  ;;  %v11255_v58 = vadd.f32 %v11155_v2, %v4467_v3  ;;  %v11257_v48 = vadd.f32 %v6735_v1, %v6734_v33 }
 0x732   :  { %v11260_v38 = vadd.f32 %v11161_v27, %v4470_v24  ;;  %v6625_v26 = vpop.f32.mrb[96].mxu1 }
 0x733   :  { %v6626_v19 = vpop.f32.mrb[97].mxu1 }
 0x734   :  { %v6627_v45 = vadd.f32 %v6626_v19, %v6625_v26  ;;  %v6628_v46 = vpop.f32.mrb[98].mxu1 }
 0x735   :  { %v6629_v15 = vpop.f32.mrb[99].mxu1 }
 0x736   :  { %v4605_v49 = vadd.f32 %v6627_v45, %v11171_v18  ;;  %v6630_v30 = vadd.f32 %v6629_v15, %v6628_v46 }
 0x738   :  { %v4608_v50 = vadd.f32 %v6630_v30, %v11176_v57  ;;  %v11265_v59 = vadd.f32 %v11167_v12, %v4605_v49 }
 0x73a   :  { %v11268_v2 = vadd.f32 %v11173_v6, %v4608_v50  ;;  %v6631_v62 = vpop.f32.mrb[100].mxu1 }
 0x73b   :  { %v6632_v40 = vpop.f32.mrb[101].mxu1 }
 0x73c   :  { %v6633_v27 = vadd.f32 %v6632_v40, %v6631_v62  ;;  %v6634_v25 = vpop.f32.mrb[102].mxu1 }
 0x73d   :  { %v6635_v10 = vpop.f32.mrb[103].mxu1 }
 0x73e   :  { %v4613_v54 = vadd.f32 %v6633_v27, %v11183_v14  ;;  %v6636_v36 = vadd.f32 %v6635_v10, %v6634_v25 }
 0x740   :  { %v4616_v16 = vadd.f32 %v6636_v36, %v11188_v47  ;;  %v11273_v18 = vadd.f32 %v11179_v8, %v4613_v54 }
 0x742   :  { %v11276_v57 = vadd.f32 %v11185_v21, %v4616_v16  ;;  %v6637_v12 = vpop.f32.mrb[104].mxu1 }
 0x743   :  { %v6638_v51 = vpop.f32.mrb[105].mxu1 }
 0x744   :  { %v6639_v6 = vadd.f32 %v6638_v51, %v6637_v12  ;;  %v6640_v41 = vpop.f32.mrb[106].mxu1 }
 0x745   :  { %v6641_v28 = vpop.f32.mrb[107].mxu1 }
 0x746   :  { %v4621_v55 = vadd.f32 %v6639_v6, %v11195_v52  ;;  %v6642_v63 = vadd.f32 %v6641_v28, %v6640_v41 }
 0x748   :  { %v4624_v9 = vadd.f32 %v6642_v63, %v11200_v44  ;;  %v11281_v14 = vadd.f32 %v11191_v61, %v4621_v55 }
 0x74a   :  { %v11284_v47 = vadd.f32 %v11197_v29, %v4624_v9  ;;  %v6643_v8 = vpop.f32.mrb[108].mxu1 }
 0x74b   :  { %v6644_v0 = vpop.f32.mrb[109].mxu1 }
 0x74c   :  { %v6645_v21 = vadd.f32 %v6644_v0, %v6643_v8  ;;  %v6646_v31 = vpop.f32.mrb[110].mxu1 }
 0x74d   :  { %v6647_v4 = vpop.f32.mrb[111].mxu1 }
 0x74e   :  { %v4629_v3 = vadd.f32 %v6645_v21, %v11207_v43  ;;  %v6648_v13 = vadd.f32 %v6647_v4, %v6646_v31 }
 0x750   :  { %v4632_v33 = vadd.f32 %v6648_v13, %v11212_v42  ;;  %v11289_v52 = vadd.f32 %v11203_v32, %v4629_v3 }
 0x752   :  { %v11292_v44 = vadd.f32 %v11209_v35, %v4632_v33  ;;  %v6649_v61 = vpop.f32.mrb[112].mxu1 }
 0x753   :  { %v6650_v1 = vpop.f32.mrb[113].mxu1 }
 0x754   :  { %v6651_v29 = vadd.f32 %v6650_v1, %v6649_v61  ;;  %v6652_v24 = vpop.f32.mrb[114].mxu1 }
 0x755   :  { %v6653_v26 = vpop.f32.mrb[115].mxu1 }
 0x756   :  { %v4637_v19 = vadd.f32 %v6651_v29, %v11219_v23  ;;  %v6654_v45 = vadd.f32 %v6653_v26, %v6652_v24 }
 0x758   :  { %v4640_v46 = vadd.f32 %v6654_v45, %v11224_v20  ;;  %v11297_v43 = vadd.f32 %v11215_v34, %v4637_v19 }
 0x75a   :  { %v11300_v42 = vadd.f32 %v11221_v22, %v4640_v46  ;;  %v6655_v32 = vpop.f32.mrb[116].mxu1 }
 0x75b   :  { %v6656_v15 = vpop.f32.mrb[117].mxu1 }
 0x75c   :  { %v6657_v35 = vadd.f32 %v6656_v15, %v6655_v32  ;;  %v6658_v49 = vpop.f32.mrb[118].mxu1 }
 0x75d   :  { %v6659_v30 = vpop.f32.mrb[119].mxu1 }
 0x75e   :  { %v4645_v50 = vadd.f32 %v6657_v35, %v11231_v37  ;;  %v6660_v62 = vadd.f32 %v6659_v30, %v6658_v49 }
 0x760   :  { %v4648_v40 = vadd.f32 %v6660_v62, %v11236_v56  ;;  %v11305_v23 = vadd.f32 %v11227_v60, %v4645_v50 }
 0x762   :  { %v11308_v20 = vadd.f32 %v11233_v7, %v4648_v40  ;;  %v6661_v34 = vpop.f32.mrb[120].mxu1 }
 0x763   :  { %v6662_v27 = vpop.f32.mrb[121].mxu1 }
 0x764   :  { %v6663_v22 = vadd.f32 %v6662_v27, %v6661_v34  ;;  %v6664_v25 = vpop.f32.mrb[122].mxu1 }
 0x765   :  { %v6665_v10 = vpop.f32.mrb[123].mxu1 }
 0x766   :  { %v4653_v54 = vadd.f32 %v6663_v22, %v11243_v53  ;;  %v6666_v36 = vadd.f32 %v6665_v10, %v6664_v25 }
 0x768   :  { %v4656_v16 = vadd.f32 %v6666_v36, %v11248_v5  ;;  %v11313_v37 = vadd.f32 %v11239_v17, %v4653_v54 }
 0x76a   :  { %v11316_v56 = vadd.f32 %v11245_v39, %v4656_v16  ;;  %v6667_v60 = vpop.f32.mrb[124].mxu1 }
 0x76b   :  { %v6668_v12 = vpop.f32.mrb[125].mxu1 }
 0x76c   :  { %v6669_v7 = vadd.f32 %v6668_v12, %v6667_v60  ;;  %v6670_v51 = vpop.f32.mrb[126].mxu1 }
 0x76d   :  { %v6671_v6 = vpop.f32.mrb[127].mxu1 }
 0x76e   :  { %v4661_v41 = vadd.f32 %v6669_v7, %v11255_v58  ;;  %v6672_v28 = vadd.f32 %v6671_v6, %v6670_v51 }
 0x770   :  { %v4664_v55 = vadd.f32 %v6672_v28, %v11260_v38  ;;  %v11321_v53 = vadd.f32 %v11251_v11, %v4661_v41 }
 0x772   :  { %v11324_v5 = vadd.f32 %v11257_v48, %v4664_v55  ;;  %v6753_v17 = vpop.f32.mrb[128].mxu1 }
 0x773   :  { %v6754_v63 = vpop.f32.mrb[129].mxu1 }
 0x774   :  { %v6755_v39 = vadd.f32 %v6754_v63, %v6753_v17  ;;  %v6756_v9 = vpop.f32.mrb[130].mxu1 }
 0x775   :  { %v6757_v8 = vpop.f32.mrb[131].mxu1 }
 0x776   :  { %v11327_v0 = vadd.f32 %v6755_v39, %v11265_v59  ;;  %v6758_v21 = vadd.f32 %v6757_v8, %v6756_v9 }
 0x778   :  { %v11330_v58 = vadd.f32 %v6758_v21, %v11268_v2 }
 0x77a   :  { %v4863_v38 = vadd.f32 %v11330_v58, %v11327_v0  ;;  %v6759_v11 = vpop.f32.mrb[132].mxu1 }
 0x77b   :  { %v6760_v31 = vpop.f32.mrb[133].mxu1 }
 0x77c   :  { %v6761_v4 = vadd.f32 %v6760_v31, %v6759_v11  ;;  %v6762_v48 = vpop.f32.mrb[134].mxu1 }
 0x77d   :  { %v6763_v3 = vpop.f32.mrb[135].mxu1 }
 0x77e   :  { %v11335_v13 = vadd.f32 %v6761_v4, %v11273_v18  ;;  %v6764_v33 = vadd.f32 %v6763_v3, %v6762_v48 }
 0x780   :  { %v4864_v61 = vadd.f32 %v4863_v38, %v11335_v13  ;;  %v11339_v59 = vadd.f32 %v6764_v33, %v11276_v57 }
 0x782   :  { %v4865_v2 = vadd.f32 %v4864_v61, %v11339_v59  ;;  %v6765_v1 = vpop.f32.mrb[136].mxu1 }
 0x783   :  { %v6766_v29 = vpop.f32.mrb[137].mxu1 }
 0x784   :  { %v6767_v24 = vadd.f32 %v6766_v29, %v6765_v1  ;;  %v6768_v26 = vpop.f32.mrb[138].mxu1 }
 0x785   :  { %v6769_v19 = vpop.f32.mrb[139].mxu1 }
 0x786   :  { %v11343_v45 = vadd.f32 %v6767_v24, %v11281_v14  ;;  %v6770_v46 = vadd.f32 %v6769_v19, %v6768_v26 }
 0x788   :  { %v4866_v18 = vadd.f32 %v4865_v2, %v11343_v45  ;;  %v11347_v32 = vadd.f32 %v6770_v46, %v11284_v47 }
 0x78a   :  { %v4867_v15 = vadd.f32 %v4866_v18, %v11347_v32  ;;  %v6771_v57 = vpop.f32.mrb[140].mxu1 }
 0x78b   :  { %v6772_v35 = vpop.f32.mrb[141].mxu1 }
 0x78c   :  { %v6773_v49 = vadd.f32 %v6772_v35, %v6771_v57  ;;  %v6774_v30 = vpop.f32.mrb[142].mxu1 }
 0x78d   :  { %v6775_v50 = vpop.f32.mrb[143].mxu1 }
 0x78e   :  { %v4823_v62 = vadd.f32 %v6773_v49, %v11289_v52  ;;  %v6776_v40 = vadd.f32 %v6775_v50, %v6774_v30 }
 0x790   :  { %v4868_v34 = vadd.f32 %v4867_v15, %v4823_v62  ;;  %v4826_v14 = vadd.f32 %v6776_v40, %v11292_v44 }
 0x792   :  { %v4869_v27 = vadd.f32 %v4868_v34, %v4826_v14  ;;  %v6777_v22 = vpop.f32.mrb[144].mxu1 }
 0x793   :  { %v6778_v25 = vpop.f32.mrb[145].mxu1 }
 0x794   :  { %v6779_v10 = vadd.f32 %v6778_v25, %v6777_v22  ;;  %v6780_v54 = vpop.f32.mrb[146].mxu1 }
 0x795   :  { %v6781_v47 = vpop.f32.mrb[147].mxu1 }
 0x796   :  { %v4831_v36 = vadd.f32 %v6779_v10, %v11297_v43  ;;  %v6782_v16 = vadd.f32 %v6781_v47, %v6780_v54 }
 0x798   :  { %v4870_v60 = vadd.f32 %v4869_v27, %v4831_v36  ;;  %v4834_v12 = vadd.f32 %v6782_v16, %v11300_v42 }
 0x79a   :  { %v4871_v7 = vadd.f32 %v4870_v60, %v4834_v12  ;;  %v6783_v51 = vpop.f32.mrb[148].mxu1 }
 0x79b   :  { %v6784_v6 = vpop.f32.mrb[149].mxu1 }
 0x79c   :  { %v6785_v52 = vadd.f32 %v6784_v6, %v6783_v51  ;;  %v6786_v41 = vpop.f32.mrb[150].mxu1 }
 0x79d   :  { %v6787_v28 = vpop.f32.mrb[151].mxu1 }
 0x79e   :  { %v4839_v44 = vadd.f32 %v6785_v52, %v11305_v23  ;;  %v6788_v55 = vadd.f32 %v6787_v28, %v6786_v41 }
 0x7a0   :  { %v4872_v17 = vadd.f32 %v4871_v7, %v4839_v44  ;;  %v4842_v63 = vadd.f32 %v6788_v55, %v11308_v20 }
 0x7a2   :  { %v4873_v39 = vadd.f32 %v4872_v17, %v4842_v63  ;;  %v6789_v9 = vpop.f32.mrb[152].mxu1 }
 0x7a3   :  { %v6790_v8 = vpop.f32.mrb[153].mxu1 }
 0x7a4   :  { %v6791_v43 = vadd.f32 %v6790_v8, %v6789_v9  ;;  %v6792_v21 = vpop.f32.mrb[154].mxu1 }
 0x7a5   :  { %v6793_v38 = vpop.f32.mrb[155].mxu1 }
 0x7a6   :  { %v4847_v42 = vadd.f32 %v6791_v43, %v11313_v37  ;;  %v6794_v11 = vadd.f32 %v6793_v38, %v6792_v21 }
 0x7a8   :  { %v4874_v31 = vadd.f32 %v4873_v39, %v4847_v42  ;;  %v4850_v4 = vadd.f32 %v6794_v11, %v11316_v56 }
 0x7aa   :  { %v4875_v48 = vadd.f32 %v4874_v31, %v4850_v4  ;;  %v6795_v3 = vpop.f32.mrb[156].mxu1 }
 0x7ab   :  { %v6796_v33 = vpop.f32.mrb[157].mxu1 }
 0x7ac   :  { %v6797_v23 = vadd.f32 %v6796_v33, %v6795_v3  ;;  %v6798_v61 = vpop.f32.mrb[158].mxu1 }
 0x7ad   :  { %v6799_v2 = vpop.f32.mrb[159].mxu1 }
 0x7ae   :  { %v4855_v20 = vadd.f32 %v6797_v23, %v11321_v53  ;;  %v6800_v1 = vadd.f32 %v6799_v2, %v6798_v61 }
 0x7b0   :  { %v4876_v29 = vadd.f32 %v4875_v48, %v4855_v20  ;;  %v4858_v24 = vadd.f32 %v6800_v1, %v11324_v5 }
 0x7b2   :  { %v4877_v26 = vadd.f32 %v4876_v29, %v4858_v24 }
 0x7b4   :  { %v4878_v19 = vrot.slane %v4877_v26, 4 }
 0x7b6   :  { %v4879_v46 = vadd.f32 %v4878_v19, %v4877_v26 }
 0x7b8   :  { %v4880_v37 = vrot.slane %v4879_v46, 2 }
 0x7ba   :  { %v4881_v18 = vadd.f32 %v4880_v37, %v4879_v46 }
 0x7bc   :  { %v4882_v15 = vrot.slane %v4881_v18, 1 }
 0x7be   :  { %v4883_v57 = vadd.f32 %v4882_v15, %v4881_v18 }
 0x7c0   :  { %v4885_v56 = vmul.f32 0.0078125, %v4883_v57 }
 0x7c2   :  { %v4886_v35 = vsub.f32 %v11327_v0, %v4885_v56  ;;  %v4887_v49 = vsub.f32 %v11330_v58, %v4885_v56  ;;  %v4888_v30 = vsub.f32 %v11335_v13, %v4885_v56  ;;  %v4889_v53 = vsub.f32 %v11339_v59, %v4885_v56 }
 0x7c3   :  { %v4890_v50 = vsub.f32 %v11343_v45, %v4885_v56  ;;  %v4891_v5 = vsub.f32 %v11347_v32, %v4885_v56  ;;  %v4892_v40 = vsub.f32 %v4823_v62, %v4885_v56  ;;  %v4893_v34 = vsub.f32 %v4826_v14, %v4885_v56 }
 0x7c4   :  { %v4894_v27 = vsub.f32 %v4831_v36, %v4885_v56  ;;  %v4895_v22 = vsub.f32 %v4834_v12, %v4885_v56  ;;  %v4896_v25 = vsub.f32 %v4839_v44, %v4885_v56  ;;  %v4897_v10 = vsub.f32 %v4842_v63, %v4885_v56 }
 0x7c5   :  { %v4898_v54 = vsub.f32 %v4847_v42, %v4885_v56  ;;  %v4899_v47 = vsub.f32 %v4850_v4, %v4885_v56  ;;  %v4900_v16 = vsub.f32 %v4855_v20, %v4885_v56  ;;  %v4901_v0 = vsub.f32 %v4858_v24, %v4885_v56 }
 0x7c6   :  { %v4902_v60 = vmul.f32 %v4886_v35, %v4886_v35  ;;  %v4903_v58 = vmul.f32 %v4887_v49, %v4887_v49  ;;  %v4904_v7 = vmul.f32 %v4888_v30, %v4888_v30  ;;  %v4905_v51 = vmul.f32 %v4889_v53, %v4889_v53 }
 0x7c7   :  { %v4906_v6 = vmul.f32 %v4890_v50, %v4890_v50  ;;  %v4907_v52 = vmul.f32 %v4891_v5, %v4891_v5  ;;  %v4908_v62 = vmul.f32 %v4892_v40, %v4892_v40  ;;  %v4909_v36 = vmul.f32 %v4893_v34, %v4893_v34 }
 0x7c8   :  { %v4918_v13 = vadd.f32 %v4903_v58, %v4902_v60  ;;  %v4910_v41 = vmul.f32 %v4894_v27, %v4894_v27  ;;  %v4911_v44 = vmul.f32 %v4895_v22, %v4895_v22  ;;  %v4912_v17 = vmul.f32 %v4896_v25, %v4896_v25  ;;  %v6209_v60 = vld [vmem:[%s11885_s2] ss:$0 sm:$0xff] }
 0x7c9   :  { %v4913_v39 = vmul.f32 %v4897_v10, %v4897_v10  ;;  %v4914_v8 = vmul.f32 %v4898_v54, %v4898_v54  ;;  %v4915_v21 = vmul.f32 %v4899_v47, %v4899_v47  ;;  %v4916_v42 = vmul.f32 %v4900_v16, %v4900_v16 }
 0x7ca   :  { %v4919_v59 = vadd.f32 %v4918_v13, %v4904_v7  ;;  %v4917_v31 = vmul.f32 %v4901_v0, %v4901_v0 }
 0x7cc   :  { %v4920_v45 = vadd.f32 %v4919_v59, %v4905_v51 }
 0x7ce   :  { %v4921_v32 = vadd.f32 %v4920_v45, %v4906_v6 }
 0x7d0   :  { %v4922_v14 = vadd.f32 %v4921_v32, %v4907_v52 }
 0x7d2   :  { %v4923_v12 = vadd.f32 %v4922_v14, %v4908_v62 }
 0x7d4   :  { %v4924_v28 = vadd.f32 %v4923_v12, %v4909_v36 }
 0x7d6   :  { %v4925_v55 = vadd.f32 %v4924_v28, %v4910_v41 }
 0x7d8   :  { %v4926_v63 = vadd.f32 %v4925_v55, %v4911_v44 }
 0x7da   :  { %v4927_v9 = vadd.f32 %v4926_v63, %v4912_v17 }
 0x7dc   :  { %v4928_v43 = vadd.f32 %v4927_v9, %v4913_v39 }
 0x7de   :  { %v4929_v38 = vadd.f32 %v4928_v43, %v4914_v8 }
 0x7e0   :  { %v4930_v11 = vadd.f32 %v4929_v38, %v4915_v21 }
 0x7e2   :  { %v4931_v4 = vadd.f32 %v4930_v11, %v4916_v42 }
 0x7e4   :  { %v4932_v48 = vadd.f32 %v4931_v4, %v4917_v31 }
 0x7e6   :  { %v4933_v3 = vrot.slane %v4932_v48, 4 }
 0x7e8   :  { %v4934_v33 = vadd.f32 %v4933_v3, %v4932_v48 }
 0x7ea   :  { %v4935_v23 = vrot.slane %v4934_v33, 2 }
 0x7ec   :  { %v4936_v61 = vadd.f32 %v4935_v23, %v4934_v33 }
 0x7ee   :  { %v4937_v2 = vrot.slane %v4936_v61, 1 }
 0x7f0   :  { %v4938_v20 = vadd.f32 %v4937_v2, %v4936_v61 }
 0x7f2   :  { %v4939_v1 = vmul.f32 0.0078125, %v4938_v20 }
 0x7f4   :  { %v4940_v29 = vadd.f32 1e-05, %v4939_v1 }
 0x7f6   :  { %7274 = vrsqrt.f32 %v4940_v29 }
 0x800   :  { %v7275_v24 = vpop.eup %7274 }
 0x801   :  { %v4942_v26 = vmul.f32 %v7275_v24, %v4886_v35  ;;  %v4943_v19 = vmul.f32 %v7275_v24, %v4887_v49  ;;  %v4944_v46 = vmul.f32 %v7275_v24, %v4888_v30  ;;  %v4945_v37 = vmul.f32 %v7275_v24, %v4889_v53 }
 0x802   :  { %v4946_v18 = vmul.f32 %v7275_v24, %v4890_v50  ;;  %v4947_v15 = vmul.f32 %v7275_v24, %v4891_v5  ;;  %v4948_v57 = vmul.f32 %v7275_v24, %v4892_v40  ;;  %v4949_v56 = vmul.f32 %v7275_v24, %v4893_v34  ;;  %v6210_v50 = vld [vmem:[%s11886_s3] ss:$0 sm:$0xff] }
 0x803   :  { %v4950_v58 = vmul.f32 %v7275_v24, %v4894_v27  ;;  %v4951_v7 = vmul.f32 %v7275_v24, %v4895_v22  ;;  %v4952_v13 = vmul.f32 %v7275_v24, %v4896_v25  ;;  %v4953_v51 = vmul.f32 %v7275_v24, %v4897_v10 }
 0x804   :  { %v4954_v59 = vmul.f32 %v7275_v24, %v4898_v54  ;;  %v4955_v6 = vmul.f32 %v7275_v24, %v4899_v47  ;;  %v4956_v45 = vmul.f32 %v7275_v24, %v4900_v16  ;;  %v4957_v52 = vmul.f32 %v7275_v24, %v4901_v0 }
 0x805   :  { %v4964_v35 = vmul.f32 %v6209_v60, %v4942_v26  ;;  %v4965_v49 = vmul.f32 %v6209_v60, %v4943_v19  ;;  %v4966_v30 = vmul.f32 %v6209_v60, %v4944_v46  ;;  %v4967_v53 = vmul.f32 %v6209_v60, %v4945_v37 }
 0x806   :  { %v4968_v5 = vmul.f32 %v6209_v60, %v4946_v18  ;;  %v4969_v40 = vmul.f32 %v6209_v60, %v4947_v15  ;;  %v4970_v34 = vmul.f32 %v6209_v60, %v4948_v57  ;;  %v4971_v32 = vmul.f32 %v6209_v60, %v4949_v56 }
 0x807   :  { %v4972_v27 = vmul.f32 %v6209_v60, %v4950_v58  ;;  %v4973_v22 = vmul.f32 %v6209_v60, %v4951_v7  ;;  %v4974_v25 = vmul.f32 %v6209_v60, %v4952_v13  ;;  %v4975_v10 = vmul.f32 %v6209_v60, %v4953_v51 }
 0x808   :  { %v4976_v54 = vmul.f32 %v6209_v60, %v4954_v59  ;;  %v4977_v47 = vmul.f32 %v6209_v60, %v4955_v6  ;;  %v4978_v16 = vmul.f32 %v6209_v60, %v4956_v45  ;;  %v4979_v0 = vmul.f32 %v6209_v60, %v4957_v52 }
 0x809   :  { %v4986_v62 = vadd.f32 %v6210_v50, %v4964_v35  ;;  %v4987_v14 = vadd.f32 %v6210_v50, %v4965_v49  ;;  %v4988_v36 = vadd.f32 %v6210_v50, %v4966_v30  ;;  %v4989_v12 = vadd.f32 %v6210_v50, %v4967_v53 }
 0x80a   :  { %v4990_v41 = vadd.f32 %v6210_v50, %v4968_v5  ;;  %v4991_v28 = vadd.f32 %v6210_v50, %v4969_v40  ;;  %v4992_v44 = vadd.f32 %v6210_v50, %v4970_v34  ;;  %v4993_v55 = vadd.f32 %v6210_v50, %v4971_v32 }
 0x80b   :  { %v4994_v17 = vadd.f32 %v6210_v50, %v4972_v27  ;;  %v4995_v63 = vadd.f32 %v6210_v50, %v4973_v22  ;;  %v4996_v39 = vadd.f32 %v6210_v50, %v4974_v25  ;;  %v4997_v9 = vadd.f32 %v6210_v50, %v4975_v10 }
 0x80c   :  { %v4998_v8 = vadd.f32 %v6210_v50, %v4976_v54  ;;  %v4999_v43 = vadd.f32 %v6210_v50, %v4977_v47  ;;  %v5000_v21 = vadd.f32 %v6210_v50, %v4978_v16  ;;  %v5001_v38 = vadd.f32 %v6210_v50, %v4979_v0 }
 0x80d   :  { %vm5002_vm0 = vcmp.gt.f32.partialorder %v4986_v62, 0.0  ;;  %vm5003_vm1 = vcmp.gt.f32.partialorder %v4987_v14, 0.0  ;;  %vm5004_vm2 = vcmp.gt.f32.partialorder %v4988_v36, 0.0  ;;  %vm5005_vm3 = vcmp.gt.f32.partialorder %v4989_v12, 0.0 }
 0x80e   :  { %vm5006_vm4 = vcmp.gt.f32.partialorder %v4990_v41, 0.0  ;;  %vm5007_vm5 = vcmp.gt.f32.partialorder %v4991_v28, 0.0  ;;  %vm5008_vm6 = vcmp.gt.f32.partialorder %v4992_v44, 0.0  ;;  %vm5009_vm7 = vcmp.gt.f32.partialorder %v4993_v55, 0.0 }
 0x80f   :  { %vm5010_vm8 = vcmp.gt.f32.partialorder %v4994_v17, 0.0  ;;  %vm5011_vm9 = vcmp.gt.f32.partialorder %v4995_v63, 0.0  ;;  %vm5012_vm10 = vcmp.gt.f32.partialorder %v4996_v39, 0.0  ;;  %vm5013_vm11 = vcmp.gt.f32.partialorder %v4997_v9, 0.0 }
 0x810   :  { %vm5014_vm12 = vcmp.gt.f32.partialorder %v4998_v8, 0.0  ;;  %vm5015_vm13 = vcmp.gt.f32.partialorder %v4999_v43, 0.0  ;;  %vm5016_vm14 = vcmp.gt.f32.partialorder %v5000_v21, 0.0  ;;  %vm5017_vm15 = vcmp.gt.f32.partialorder %v5001_v38, 0.0 }
 0x811   :  { %v5018_v42 = vmul.f32 0.2, %v4986_v62  ;;  %v5019_v11 = vmul.f32 0.2, %v4987_v14  ;;  %v5020_v31 = vmul.f32 0.2, %v4988_v36 }
 0x812   :  { %v5021_v4 = vmul.f32 0.2, %v4989_v12  ;;  %v5022_v48 = vmul.f32 0.2, %v4990_v41  ;;  %v5023_v3 = vmul.f32 0.2, %v4991_v28 }
 0x813   :  { %v5024_v33 = vmul.f32 0.2, %v4992_v44  ;;  %v5025_v23 = vmul.f32 0.2, %v4993_v55  ;;  %v5026_v61 = vmul.f32 0.2, %v4994_v17  ;;  %v5034_v2 = vsel %vm5002_vm0, %v4986_v62, %v5018_v42 }
 0x814   :  { %v5027_v20 = vmul.f32 0.2, %v4995_v63  ;;  %v5028_v1 = vmul.f32 0.2, %v4996_v39  ;;  %v5029_v29 = vmul.f32 0.2, %v4997_v9  ;;  %v5035_v24 = vsel %vm5003_vm1, %v4987_v14, %v5019_v11 }
 0x815   :  { %v5030_v26 = vmul.f32 0.2, %v4998_v8  ;;  %v5031_v19 = vmul.f32 0.2, %v4999_v43  ;;  %v5032_v46 = vmul.f32 0.2, %v5000_v21  ;;  %v5036_v37 = vsel %vm5004_vm2, %v4988_v36, %v5020_v31 }
 0x816   :  { %v5033_v18 = vmul.f32 0.2, %v5001_v38  ;;  %v5037_v15 = vsel %vm5005_vm3, %v4989_v12, %v5021_v4  ;;  %v5038_v57 = vsel %vm5006_vm4, %v4990_v41, %v5022_v48  ;;  %v5039_v56 = vsel %vm5007_vm5, %v4991_v28, %v5023_v3 }
 0x817   :  { %v5040_v60 = vsel %vm5008_vm6, %v4992_v44, %v5024_v33  ;;  %v5041_v58 = vsel %vm5009_vm7, %v4993_v55, %v5025_v23  ;;  %v5042_v7 = vsel %vm5010_vm8, %v4994_v17, %v5026_v61  ;;  %v5043_v13 = vsel %vm5011_vm9, %v4995_v63, %v5027_v20 }
 0x818   :  { %v5044_v51 = vsel %vm5012_vm10, %v4996_v39, %v5028_v1  ;;  %v5045_v59 = vsel %vm5013_vm11, %v4997_v9, %v5029_v29  ;;  %v5046_v6 = vsel %vm5014_vm12, %v4998_v8, %v5030_v26  ;;  %v5047_v45 = vsel %vm5015_vm13, %v4999_v43, %v5031_v19 }
 0x819   :  { %v5048_v52 = vsel %vm5016_vm14, %v5000_v21, %v5032_v46  ;;  %v5049_v35 = vsel %vm5017_vm15, %v5001_v38, %v5033_v18  ;;  %v5050_v49 = vpack.c.bf16 %v5035_v24, %v5034_v2  ;;  %v5051_v30 = vpack.c.bf16 %v5037_v15, %v5036_v37 }
 0x81a   :  { %v5052_v53 = vpack.c.bf16 %v5039_v56, %v5038_v57  ;;  %v5053_v50 = vpack.c.bf16 %v5041_v58, %v5040_v60  ;;  %v5054_v5 = vpack.c.bf16 %v5043_v13, %v5042_v7  ;;  %v5055_v40 = vpack.c.bf16 %v5045_v59, %v5044_v51 }
 0x81b   :  { %v5056_v34 = vpack.c.bf16 %v5047_v45, %v5046_v6  ;;  %v5057_v32 = vpack.c.bf16 %v5049_v35, %v5048_v52  ;;  %7225 = vmatprep.subr.bf16.mxu1 %v5050_v49  ;;  %vm5078_vm0 = vcmask 523264   ;;  %7145 = vmatprep.subr.bf16.mxu0 %v5050_v49 }
 0x81c   :  { %7282 = dma.done.wait [#allocation6 + $0x2], 2048 }
 0x81d   :  { %7283 = vsyncadd [#allocation6 + $0x2], 4294965248  ;;  %7229 = vmatpush3.bf16.msra.mxu1 %v5050_v49  ;;  %v13115_v27 = vld [vmem:[#allocation155_spill] sm:$0xff]  ;;  %7146 = vmatpush3.bf16.msra.mxu0 %v5050_v49  ;;  %v13117_v25 = vld [vmem:[#allocation156_spill] sm:$0xff] }
 0x81e   :  { %7177 = vmatprep.mubr.msk.bf16.mxu1 %vm5078_vm0, %v13115_v27  ;;  %7226 = vmatprep.subr.bf16.mxu1 %v5051_v30  ;;  %v13116_v22 = vld [vmem:[#allocation143_spill] sm:$0xff]  ;;  %v13118_v10 = vld [vmem:[#allocation157_spill] sm:$0xff]  ;;  %v13119_v54 = vld [vmem:[#allocation144_spill] sm:$0xff] }
 0x81f   :  { %7147 = vmatprep.subr.bf16.mxu0 %v5051_v30  ;;  %7153 = vmatprep.mubr.msk.bf16.mxu0 %vm5078_vm0, %v13116_v22  ;;  %v13120_v47 = vld [vmem:[#allocation145_spill] sm:$0xff]  ;;  %v13121_v16 = vld [vmem:[#allocation158_spill] sm:$0xff]  ;;  %v13123_v62 = vld [vmem:[#allocation147_spill] sm:$0xff] }
 0x820   :  { %v13122_v0 = vld [vmem:[#allocation146_spill] sm:$0xff]  ;;  %v13124_v14 = vld [vmem:[#allocation148_spill] sm:$0xff]  ;;  %v13125_v36 = vld [vmem:[#allocation149_spill] sm:$0xff] }
 0x821   :  { %7230 = vmatpush3.bf16.msra.mxu1 %v5051_v30  ;;  %7148 = vmatpush3.bf16.msra.mxu0 %v5051_v30  ;;  %v13126_v12 = vld [vmem:[#allocation150_spill] sm:$0xff]  ;;  %v13127_v41 = vld [vmem:[#allocation151_spill] sm:$0xff]  ;;  %v13128_v28 = vld [vmem:[#allocation152_spill] sm:$0xff] }
 0x822   :  { %7227 = vmatprep.subr.bf16.mxu1 %v5052_v53  ;;  %7149 = vmatprep.subr.bf16.mxu0 %v5052_v53  ;;  %v13129_v44 = vld [vmem:[#allocation153_spill] sm:$0xff]  ;;  %v13130_v55 = vld [vmem:[#allocation154_spill] sm:$0xff] }
 0x825   :  { %7231 = vmatpush3.bf16.msra.mxu1 %v5052_v53  ;;  %7150 = vmatpush3.bf16.msra.mxu0 %v5052_v53 }
 0x826   :  { %7228 = vmatprep.subr.bf16.mxu1 %v5053_v50  ;;  %7151 = vmatprep.subr.bf16.mxu0 %v5053_v50 }
 0x829   :  { %7232 = vmatpush3.bf16.msra.mxu1 %v5053_v50  ;;  %7152 = vmatpush3.bf16.msra.mxu0 %v5053_v50 }
 0x82a   :  { %7185 = vmatprep.subr.bf16.mxu1 %v5054_v5 }
 0x82c   :  { %7178 = vmatmul.mubr.msk.bf16.vlgmr.msra.gmra.mrb[160].mxu1 %vm5078_vm0, %v13117_v25  ;;  %7154 = vmatmul.mubr.msk.bf16.vlgmr.msra.gmra.mrb[160].mxu0 %vm5078_vm0, %v13119_v54 }
 0x82d   :  { %7186 = vmatpush3.bf16.msra.mxu1 %v5054_v5  ;;  %7181 = vmatprep.mubr.msk.bf16.mxu1 %vm5078_vm0, %v13118_v10 }
 0x82e   :  { %7187 = vmatprep.subr.bf16.mxu1 %v5055_v40  ;;  %7157 = vmatprep.mubr.msk.bf16.mxu0 %vm5078_vm0, %v13120_v47 }
 0x831   :  { %7188 = vmatpush3.bf16.msra.mxu1 %v5055_v40 }
 0x832   :  { %7189 = vmatprep.subr.bf16.mxu1 %v5056_v34 }
 0x834   :  { %7182 = vmatmul.mubr.msk.bf16.gmra.mrb[164].mxu1 %vm5078_vm0, %v13121_v16  ;;  %7158 = vmatmul.mubr.msk.bf16.gmra.mrb[164].mxu0 %vm5078_vm0, %v13122_v0 }
 0x835   :  { %7190 = vmatpush3.bf16.msra.mxu1 %v5056_v34  ;;  %7193 = vmatprep.mubr.msk.bf16.mxu1 %vm5078_vm0, %v13116_v22 }
 0x836   :  { %7191 = vmatprep.subr.bf16.mxu1 %v5057_v32  ;;  %7161 = vmatprep.mubr.msk.bf16.mxu0 %vm5078_vm0, %v13123_v62 }
 0x839   :  { %7192 = vmatpush3.bf16.msra.mxu1 %v5057_v32 }
 0x83c   :  { %7194 = vmatmul.mubr.msk.bf16.vlgmr.msra.gmra.mrb[168].mxu1 %vm5078_vm0, %v13119_v54  ;;  %7162 = vmatmul.mubr.msk.bf16.gmra.mrb[168].mxu0 %vm5078_vm0, %v13124_v14 }
 0x83d   :  { %7197 = vmatprep.mubr.msk.bf16.mxu1 %vm5078_vm0, %v13120_v47  ;;  %7165 = vmatprep.mubr.msk.bf16.mxu0 %vm5078_vm0, %v13125_v36 }
 0x844   :  { %7198 = vmatmul.mubr.msk.bf16.gmra.mrb[172].mxu1 %vm5078_vm0, %v13122_v0  ;;  %7166 = vmatmul.mubr.msk.bf16.gmra.mrb[172].mxu0 %vm5078_vm0, %v13126_v12  ;;  %v13139_v0 = vld [vmem:[#allocation167_spill] sm:$0xff] }
 0x845   :  { %7201 = vmatprep.mubr.msk.bf16.mxu1 %vm5078_vm0, %v13123_v62  ;;  %7169 = vmatprep.mubr.msk.bf16.mxu0 %vm5078_vm0, %v13127_v41 }
 0x846   :  { %6841 = vmatprep.subr.bf16.mxu0 %v13139_v0 }
 0x84c   :  { %7202 = vmatmul.mubr.msk.bf16.gmra.mrb[176].mxu1 %vm5078_vm0, %v13124_v14  ;;  %7170 = vmatmul.mubr.msk.bf16.gmra.mrb[176].mxu0 %vm5078_vm0, %v13128_v28 }
 0x84d   :  { %7205 = vmatprep.mubr.msk.bf16.mxu1 %vm5078_vm0, %v13125_v36  ;;  %7173 = vmatprep.mubr.msk.bf16.mxu0 %vm5078_vm0, %v13129_v44 }
 0x854   :  { %7206 = vmatmul.mubr.msk.bf16.gmra.mrb[180].mxu1 %vm5078_vm0, %v13126_v12  ;;  %7174 = vmatmul.mubr.msk.bf16.gmra.mrb[180].mxu0 %vm5078_vm0, %v13130_v55 }
 0x855   :  { %7209 = vmatprep.mubr.msk.bf16.mxu1 %vm5078_vm0, %v13127_v41 }
 0x85c   :  { %7210 = vmatmul.mubr.msk.bf16.gmra.mrb[184].mxu1 %vm5078_vm0, %v13128_v28 }
 0x85d   :  { %7213 = vmatprep.mubr.msk.bf16.mxu1 %vm5078_vm0, %v13129_v44 }
 0x864   :  { %7214 = vmatmul.mubr.msk.bf16.gmra.mrb[188].mxu1 %vm5078_vm0, %v13130_v55 }
 0x865   :  { %7217 = vmatprep.mubr.msk.bf16.mxu1 %vm5078_vm0, %v13115_v27 }
 0x86c   :  { %7218 = vmatmul.mubr.msk.bf16.gmra.mrb[192].mxu1 %vm5078_vm0, %v13117_v25 }
 0x86d   :  { %7221 = vmatprep.mubr.msk.bf16.mxu1 %vm5078_vm0, %v13118_v10 }
 0x874   :  { %7222 = vmatmul.mubr.msk.bf16.gmra.mrb[196].mxu1 %vm5078_vm0, %v13121_v16 }
 0x8ff   :  { %v11452_v17 = vpop.f32.mrb[160].mxu1  ;;  %v11458_v9 = vpop.f32.mrb[160].mxu0 }
 0x900   :  { %v11454_v63 = vpop.f32.mrb[161].mxu1  ;;  %v11464_v21 = vpop.f32.mrb[161].mxu0 }
 0x901   :  { %v11456_v39 = vpop.f32.mrb[162].mxu1  ;;  %v11468_v42 = vpop.f32.mrb[162].mxu0 }
 0x902   :  { %v11462_v43 = vpop.f32.mrb[163].mxu1  ;;  %v11472_v31 = vpop.f32.mrb[163].mxu0 }
 0x907   :  { %v11476_v48 = vpop.f32.mrb[164].mxu1  ;;  %v11482_v23 = vpop.f32.mrb[164].mxu0 }
 0x908   :  { %13131 = vst [vmem:[#allocation23_spill] sm:$0xff] %v11476_v48  ;;  %v11478_v3 = vpop.f32.mrb[165].mxu1  ;;  %v11488_v20 = vpop.f32.mrb[165].mxu0 }
 0x909   :  { %13132 = vst [vmem:[#allocation15_spill] sm:$0xff] %v11478_v3  ;;  %v11480_v33 = vpop.f32.mrb[166].mxu1  ;;  %v11492_v29 = vpop.f32.mrb[166].mxu0 }
 0x90a   :  { %13133 = vst [vmem:[#allocation55_spill] sm:$0xff] %v11480_v33  ;;  %v11486_v2 = vpop.f32.mrb[167].mxu1  ;;  %v11496_v26 = vpop.f32.mrb[167].mxu0 }
 0x90b   :  { %13134 = vst [vmem:[#allocation24_spill] sm:$0xff] %v11486_v2 }
 0x90f   :  { %v11500_v46 = vpop.f32.mrb[168].mxu1  ;;  %v11506_v15 = vpop.f32.mrb[168].mxu0 }
 0x910   :  { %v11502_v37 = vpop.f32.mrb[169].mxu1  ;;  %v11512_v60 = vpop.f32.mrb[169].mxu0 }
 0x911   :  { %v11504_v18 = vpop.f32.mrb[170].mxu1  ;;  %v11516_v7 = vpop.f32.mrb[170].mxu0 }
 0x912   :  { %v11510_v56 = vpop.f32.mrb[171].mxu1  ;;  %v11520_v51 = vpop.f32.mrb[171].mxu0 }
 0x917   :  { %v11524_v6 = vpop.f32.mrb[172].mxu1  ;;  %v11530_v35 = vpop.f32.mrb[172].mxu0 }
 0x918   :  { %v11526_v45 = vpop.f32.mrb[173].mxu1  ;;  %v11536_v53 = vpop.f32.mrb[173].mxu0 }
 0x919   :  { %v11528_v52 = vpop.f32.mrb[174].mxu1  ;;  %v11540_v5 = vpop.f32.mrb[174].mxu0 }
 0x91a   :  { %v11534_v30 = vpop.f32.mrb[175].mxu1  ;;  %v11544_v34 = vpop.f32.mrb[175].mxu0 }
 0x91f   :  { %v11548_v27 = vpop.f32.mrb[176].mxu1  ;;  %v11554_v10 = vpop.f32.mrb[176].mxu0 }
 0x920   :  { %v11550_v22 = vpop.f32.mrb[177].mxu1  ;;  %v11560_v16 = vpop.f32.mrb[177].mxu0 }
 0x921   :  { %v11552_v25 = vpop.f32.mrb[178].mxu1  ;;  %v11564_v62 = vpop.f32.mrb[178].mxu0 }
 0x922   :  { %v11558_v47 = vpop.f32.mrb[179].mxu1  ;;  %v11568_v36 = vpop.f32.mrb[179].mxu0 }
 0x927   :  { %v11572_v41 = vpop.f32.mrb[180].mxu1  ;;  %v11578_v55 = vpop.f32.mrb[180].mxu0 }
 0x928   :  { %v11574_v28 = vpop.f32.mrb[181].mxu1  ;;  %v11584_v38 = vpop.f32.mrb[181].mxu0 }
 0x929   :  { %v11576_v44 = vpop.f32.mrb[182].mxu1  ;;  %v11588_v8 = vpop.f32.mrb[182].mxu0 }
 0x92a   :  { %v11582_v61 = vpop.f32.mrb[183].mxu1  ;;  %v11592_v50 = vpop.f32.mrb[183].mxu0 }
 0x92f   :  { %v11596_v49 = vpop.f32.mrb[184].mxu1 }
 0x930   :  { %v11598_v1 = vpop.f32.mrb[185].mxu1 }
 0x931   :  { %v11600_v19 = vpop.f32.mrb[186].mxu1 }
 0x932   :  { %v11604_v32 = vpop.f32.mrb[187].mxu1 }
 0x937   :  { %v11608_v40 = vpop.f32.mrb[188].mxu1 }
 0x938   :  { %13135 = vst [vmem:[#allocation47_spill] sm:$0xff] %v11608_v40  ;;  %v11610_v24 = vpop.f32.mrb[189].mxu1 }
 0x939   :  { %13136 = vst [vmem:[#allocation56_spill] sm:$0xff] %v11610_v24  ;;  %v11612_v58 = vpop.f32.mrb[190].mxu1  ;;  %v13140_v24 = vpack.c.bf16 %v11468_v42, %v11458_v9 }
 0x93a   :  { %v11616_v54 = vpop.f32.mrb[191].mxu1 }
 0x93b   :  { %13137 = vst [vmem:[#allocation16_spill] sm:$0xff] %v11616_v54  ;;  %5643 = vmatprep.mubr.bf16.mxu0 %v13140_v24 }
 0x93f   :  { %v11620_v14 = vpop.f32.mrb[192].mxu1 }
 0x940   :  { %v11622_v57 = vpop.f32.mrb[193].mxu1 }
 0x941   :  { %v11624_v4 = vpop.f32.mrb[194].mxu1 }
 0x942   :  { %v11628_v13 = vpop.f32.mrb[195].mxu1 }
 0x947   :  { %v11632_v12 = vpop.f32.mrb[196].mxu1 }
 0x948   :  { %13138 = vst [vmem:[#allocation25_spill] sm:$0xff] %v11632_v12  ;;  %v11634_v3 = vpop.f32.mrb[197].mxu1 }
 0x949   :  { %v11636_v2 = vpop.f32.mrb[198].mxu1 }
 0x94a   :  { %v11640_v48 = vpop.f32.mrb[199].mxu1 }
 0x94b   :  { %7284 = dma.done.wait [#allocation6 + $0x3], 16384 }
 0x94c   :  { %7285 = vsyncadd [#allocation6 + $0x3], 4294950912  ;;  %v13141_v11 = vld [vmem:[#allocation159_spill] sm:$0xff]  ;;  %v13143_v40 = vld [vmem:[#allocation168_spill] sm:$0xff]  ;;  %v13146_v33 = vpack.c.bf16 %v11516_v7, %v11506_v15  ;;  %vm6092_vm5 = vcmask 1040384   ;;  %vm6094_vm6 = vcmask 1041408  }
 0x94d   :  { %6842 = vmatpush3.bf16.msra.mxu0 %v13141_v11  ;;  %v13142_v54 = vld [vmem:[#allocation199_spill] sm:$0xff]  ;;  %v13145_v12 = vld [vmem:[#allocation200_spill] sm:$0xff]  ;;  %v13148_v9 = vld [vmem:[#allocation169_spill] sm:$0xff]  ;;  %vm6098_vm7 = vcmask 1024  }
 0x94e   :  { %6897 = vmatprep.subr.bf16.mxu1 %v13142_v54  ;;  %6843 = vmatprep.subr.bf16.mxu0 %v13143_v40  ;;  %v13144_v59 = vld [vmem:[#allocation191_spill] sm:$0xff]  ;;  %v13147_v0 = vld [vmem:[#allocation160_spill] sm:$0xff]  ;;  %v13150_v24 = vld [vmem:[#allocation201_spill] sm:$0xff] }
 0x94f   :  { %6898 = vmatpush3.bf16.msra.mxu1 %v13144_v59  ;;  %5741 = vmatprep.mubr.bf16.mxu1 %v13146_v33  ;;  %v13149_v42 = vld [vmem:[#allocation192_spill] sm:$0xff]  ;;  %v13151_v11 = vld [vmem:[#allocation161_spill] sm:$0xff]  ;;  %v13152_v54 = vld [vmem:[#allocation170_spill] sm:$0xff] }
 0x950   :  { %6899 = vmatprep.subr.bf16.mxu1 %v13145_v12  ;;  %v13153_v40 = vld [vmem:[#allocation193_spill] sm:$0xff]  ;;  %v13154_v59 = vld [vmem:[#allocation202_spill] sm:$0xff]  ;;  %v13156_v15 = vld [vmem:[#allocation171_spill] sm:$0xff] }
 0x951   :  { %6844 = vmatpush3.bf16.msra.mxu0 %v13147_v0  ;;  %v13155_v12 = vld [vmem:[#allocation162_spill] sm:$0xff]  ;;  %v13158_v7 = vld [vmem:[#allocation203_spill] sm:$0xff] }
 0x952   :  { %6845 = vmatprep.subr.bf16.mxu0 %v13148_v9  ;;  %v13157_v33 = vld [vmem:[#allocation194_spill] sm:$0xff]  ;;  %v13159_v0 = vld [vmem:[#allocation163_spill] sm:$0xff]  ;;  %v13160_v9 = vld [vmem:[#allocation172_spill] sm:$0xff] }
 0x953   :  { %6900 = vmatpush3.bf16.msra.mxu1 %v13149_v42  ;;  %v13161_v42 = vld [vmem:[#allocation195_spill] sm:$0xff] }
 0x954   :  { %6901 = vmatprep.subr.bf16.mxu1 %v13150_v24  ;;  %v13162_v24 = vld [vmem:[#allocation204_spill] sm:$0xff] }
 0x955   :  { %6846 = vmatpush3.bf16.msra.mxu0 %v13151_v11  ;;  %v13163_v11 = vld [vmem:[#allocation164_spill] sm:$0xff] }
 0x956   :  { %6847 = vmatprep.subr.bf16.mxu0 %v13152_v54  ;;  %v13164_v54 = vld [vmem:[#allocation173_spill] sm:$0xff] }
 0x957   :  { %6902 = vmatpush3.bf16.msra.mxu1 %v13153_v40  ;;  %v13165_v40 = vld [vmem:[#allocation196_spill] sm:$0xff] }
 0x958   :  { %6903 = vmatprep.subr.bf16.mxu1 %v13154_v59  ;;  %v13166_v59 = vld [vmem:[#allocation205_spill] sm:$0xff] }
 0x959   :  { %6848 = vmatpush3.bf16.msra.mxu0 %v13155_v12  ;;  %v13167_v12 = vld [vmem:[#allocation165_spill] sm:$0xff] }
 0x95a   :  { %6849 = vmatprep.subr.bf16.mxu0 %v13156_v15  ;;  %v13168_v15 = vld [vmem:[#allocation174_spill] sm:$0xff] }
 0x95b   :  { %6904 = vmatpush3.bf16.msra.mxu1 %v13157_v33  ;;  %v13169_v33 = vld [vmem:[#allocation197_spill] sm:$0xff] }
 0x95c   :  { %6905 = vmatprep.subr.bf16.mxu1 %v13158_v7  ;;  %v13170_v7 = vld [vmem:[#allocation206_spill] sm:$0xff] }
 0x95d   :  { %6850 = vmatpush3.bf16.msra.mxu0 %v13159_v0  ;;  %v13171_v0 = vld [vmem:[#allocation166_spill] sm:$0xff] }
 0x95e   :  { %6851 = vmatprep.subr.bf16.mxu0 %v13160_v9  ;;  %v13172_v9 = vld [vmem:[#allocation183_spill] sm:$0xff] }
 0x95f   :  { %6906 = vmatpush3.bf16.msra.mxu1 %v13161_v42  ;;  %v13173_v42 = vld [vmem:[#allocation198_spill] sm:$0xff] }
 0x960   :  { %6907 = vmatprep.subr.bf16.mxu1 %v13162_v24  ;;  %v13174_v24 = vld [vmem:[#allocation231_spill] sm:$0xff] }
 0x961   :  { %6852 = vmatpush3.bf16.msra.mxu0 %v13163_v11  ;;  %v13175_v11 = vpack.c.bf16 %v11472_v31, %v11464_v21  ;;  %v13182_v21 = vld [vmem:[#allocation232_spill] sm:$0xff] }
 0x962   :  { %6853 = vmatprep.subr.bf16.mxu0 %v13164_v54  ;;  %v13176_v54 = vld [vmem:[#allocation175_spill] sm:$0xff]  ;;  %v13183_v31 = vld [vmem:[#allocation176_spill] sm:$0xff] }
 0x963   :  { %6908 = vmatpush3.bf16.msra.mxu1 %v13165_v40  ;;  %v13177_v40 = vpack.c.bf16 %v11504_v18, %v11500_v46  ;;  %v13185_v46 = vld [vmem:[#allocation224_spill] sm:$0xff]  ;;  %v13186_v18 = vpack.c.bf16 %v11510_v56, %v11502_v37  ;;  %v13193_v37 = vpack.c.bf16 %v11564_v62, %v11554_v10  ;;  %v13194_v56 = vld [vmem:[#allocation234_spill] sm:$0xff]  ;;  %v13204_v62 = vld [vmem:[#allocation189_spill] sm:$0xff] }
 0x964   :  { %6909 = vmatprep.subr.bf16.mxu1 %v13166_v59  ;;  %v13178_v59 = vld [vmem:[#allocation184_spill] sm:$0xff] }
 0x965   :  { %6854 = vmatpush3.bf16.msra.mxu0 %v13167_v12  ;;  %v13179_v12 = vpack.c.bf16 %v11520_v51, %v11512_v60  ;;  %v13187_v60 = vld [vmem:[#allocation233_spill] sm:$0xff]  ;;  %v13203_v10 = vld [vmem:[#allocation180_spill] sm:$0xff] }
 0x966   :  { %6855 = vmatprep.subr.bf16.mxu0 %v13168_v15  ;;  %v13180_v15 = vld [vmem:[#allocation223_spill] sm:$0xff]  ;;  %v13188_v51 = vld [vmem:[#allocation177_spill] sm:$0xff] }
 0x967   :  { %6910 = vmatpush3.bf16.msra.mxu1 %v13169_v33  ;;  %v13181_v33 = vpack.c.bf16 %v11552_v25, %v11548_v27  ;;  %v13189_v27 = vpack.c.bf16 %v11492_v29, %v11482_v23  ;;  %v13190_v25 = vld [vmem:[#allocation186_spill] sm:$0xff]  ;;  %v13198_v29 = vld [vmem:[#allocation235_spill] sm:$0xff] }
 0x968   :  { %6911 = vmatprep.subr.bf16.mxu1 %v13170_v7  ;;  %v13184_v7 = vld [vmem:[#allocation185_spill] sm:$0xff]  ;;  %v13197_v23 = vld [vmem:[#allocation226_spill] sm:$0xff] }
 0x969   :  { %6856 = vmatpush3.bf16.msra.mxu0 %v13171_v0  ;;  %v13191_v0 = vpack.c.bf16 %v11558_v47, %v11550_v22  ;;  %v13200_v22 = vld [vmem:[#allocation188_spill] sm:$0xff]  ;;  %v13201_v47 = vld [vmem:[#allocation227_spill] sm:$0xff] }
 0x96a   :  { %6869 = vmatprep.subr.bf16.mxu0 %v13172_v9  ;;  %v13192_v9 = vld [vmem:[#allocation225_spill] sm:$0xff] }
 0x96b   :  { %6912 = vmatpush3.bf16.msra.mxu1 %v13173_v42  ;;  %v13195_v42 = vld [vmem:[#allocation178_spill] sm:$0xff] }
 0x96c   :  { %6953 = vmatprep.subr.bf16.mxu1 %v13174_v24  ;;  %5644 = vmatmul.mubr.bf16.vlgmr.msra.gmra.mrb[184].mxu0 %v13175_v11  ;;  %v13196_v24 = vld [vmem:[#allocation187_spill] sm:$0xff] }
 0x96d   :  { %6870 = vmatpush3.bf16.msra.mxu0 %v13176_v54  ;;  %5651 = vmatprep.mubr.bf16.mxu0 %v13177_v40  ;;  %v13199_v11 = vld [vmem:[#allocation179_spill] sm:$0xff]  ;;  %v13202_v54 = vld [vmem:[#allocation236_spill] sm:$0xff] }
 0x96e   :  { %6871 = vmatprep.subr.bf16.mxu0 %v13178_v59  ;;  %5742 = vmatmul.mubr.bf16.vlgmr.msra.gmra.mrb[200].mxu1 %v13179_v12  ;;  %v13205_v40 = vld [vmem:[#allocation228_spill] sm:$0xff]  ;;  %v13206_v59 = vld [vmem:[#allocation237_spill] sm:$0xff] }
 0x96f   :  { %6954 = vmatpush3.bf16.msra.mxu1 %v13180_v15  ;;  %5749 = vmatprep.mubr.bf16.mxu1 %v13181_v33  ;;  %v13207_v12 = vld [vmem:[#allocation181_spill] sm:$0xff]  ;;  %v13208_v15 = vld [vmem:[#allocation190_spill] sm:$0xff] }
 0x970   :  { %6955 = vmatprep.subr.bf16.mxu1 %v13182_v21  ;;  %v13209_v33 = vld [vmem:[#allocation229_spill] sm:$0xff]  ;;  %v13210_v21 = vld [vmem:[#allocation238_spill] sm:$0xff] }
 0x971   :  { %6872 = vmatpush3.bf16.msra.mxu0 %v13183_v31  ;;  %v13211_v31 = vld [vmem:[#allocation182_spill] sm:$0xff] }
 0x972   :  { %6873 = vmatprep.subr.bf16.mxu0 %v13184_v7  ;;  %v13212_v7 = vld [vmem:[#allocation215_spill] sm:$0xff] }
 0x973   :  { %6956 = vmatpush3.bf16.msra.mxu1 %v13185_v46  ;;  %v13213_v46 = vld [vmem:[#allocation230_spill] sm:$0xff] }
 0x974   :  { %5652 = vmatmul.mubr.bf16.gmra.mrb[188].mxu0 %v13186_v18  ;;  %6957 = vmatprep.subr.bf16.mxu1 %v13187_v60  ;;  %v13214_v18 = vpack.c.bf16 %v11496_v26, %v11488_v20  ;;  %v13215_v60 = vld [vmem:[#allocation263_spill] sm:$0xff]  ;;  %v13221_v20 = vpack.c.bf16 %v11600_v19, %v11596_v49  ;;  %v13222_v26 = vld [vmem:[#allocation264_spill] sm:$0xff]  ;;  %v13229_v19 = vpack.c.bf16 %v11540_v5, %v11530_v35  ;;  %v13230_v49 = vld [vmem:[#allocation218_spill] sm:$0xff] }
 0x975   :  { %6874 = vmatpush3.bf16.msra.mxu0 %v13188_v51  ;;  %5692 = vmatprep.mubr.bf16.mxu0 %v13189_v27  ;;  %v13216_v51 = vld [vmem:[#allocation207_spill] sm:$0xff]  ;;  %v13217_v27 = vpack.c.bf16 %v11528_v52, %v11524_v6  ;;  %v13225_v6 = vld [vmem:[#allocation256_spill] sm:$0xff]  ;;  %v13226_v52 = vpack.c.bf16 %v11534_v30, %v11526_v45  ;;  %v13233_v45 = vpack.c.bf16 %v11456_v39, %v11452_v17  ;;  %v13234_v30 = vld [vmem:[#allocation266_spill] sm:$0xff] }
 0x976   :  { %6875 = vmatprep.subr.bf16.mxu0 %v13190_v25  ;;  %5750 = vmatmul.mubr.bf16.gmra.mrb[204].mxu1 %v13191_v0  ;;  %v13218_v25 = vld [vmem:[#allocation216_spill] sm:$0xff]  ;;  %v13219_v0 = vpack.c.bf16 %v11568_v36, %v11560_v16  ;;  %v13227_v16 = vld [vmem:[#allocation265_spill] sm:$0xff]  ;;  %v13237_v35 = vld [vmem:[#allocation258_spill] sm:$0xff] }
 0x977   :  { %6958 = vmatpush3.bf16.msra.mxu1 %v13192_v9  ;;  %5839 = vmatprep.mubr.bf16.mxu1 %v13193_v37  ;;  %v13220_v9 = vld [vmem:[#allocation255_spill] sm:$0xff]  ;;  %v13223_v37 = vld [vmem:[#allocation208_spill] sm:$0xff]  ;;  %v13228_v36 = vld [vmem:[#allocation209_spill] sm:$0xff] }
 0x978   :  { %6959 = vmatprep.subr.bf16.mxu1 %v13194_v56  ;;  %v13224_v56 = vld [vmem:[#allocation217_spill] sm:$0xff]  ;;  %v13238_v5 = vld [vmem:[#allocation267_spill] sm:$0xff]  ;;  %v13243_v17 = vld [vmem:[#allocation212_spill] sm:$0xff] }
 0x979   :  { %6876 = vmatpush3.bf16.msra.mxu0 %v13195_v42  ;;  %v13231_v42 = vpack.c.bf16 %v11604_v32, %v11598_v1  ;;  %v13240_v1 = vld [vmem:[#allocation220_spill] sm:$0xff]  ;;  %v13241_v32 = vld [vmem:[#allocation259_spill] sm:$0xff]  ;;  %v13244_v39 = vld [vmem:[#allocation221_spill] sm:$0xff] }
 0x97a   :  { %6877 = vmatprep.subr.bf16.mxu0 %v13196_v24  ;;  %v13232_v24 = vld [vmem:[#allocation257_spill] sm:$0xff] }
 0x97b   :  { %6960 = vmatpush3.bf16.msra.mxu1 %v13197_v23  ;;  %v13235_v23 = vld [vmem:[#allocation210_spill] sm:$0xff] }
 0x97c   :  { %6961 = vmatprep.subr.bf16.mxu1 %v13198_v29  ;;  %v13236_v29 = vld [vmem:[#allocation219_spill] sm:$0xff] }
 0x97d   :  { %6878 = vmatpush3.bf16.msra.mxu0 %v13199_v11  ;;  %v13239_v11 = vld [vmem:[#allocation211_spill] sm:$0xff] }
 0x97e   :  { %6879 = vmatprep.subr.bf16.mxu0 %v13200_v22  ;;  %v13242_v22 = vld [vmem:[#allocation268_spill] sm:$0xff] }
 0x97f   :  { %6962 = vmatpush3.bf16.msra.mxu1 %v13201_v47  ;;  %v13245_v47 = vld [vmem:[#allocation260_spill] sm:$0xff] }
 0x980   :  { %6963 = vmatprep.subr.bf16.mxu1 %v13202_v54  ;;  %v13246_v54 = vld [vmem:[#allocation269_spill] sm:$0xff] }
 0x981   :  { %6880 = vmatpush3.bf16.msra.mxu0 %v13203_v10  ;;  %v13247_v10 = vld [vmem:[#allocation213_spill] sm:$0xff] }
 0x982   :  { %6881 = vmatprep.subr.bf16.mxu0 %v13204_v62  ;;  %v13248_v62 = vld [vmem:[#allocation222_spill] sm:$0xff] }
 0x983   :  { %6964 = vmatpush3.bf16.msra.mxu1 %v13205_v40  ;;  %v13249_v40 = vld [vmem:[#allocation261_spill] sm:$0xff] }
 0x984   :  { %6965 = vmatprep.subr.bf16.mxu1 %v13206_v59  ;;  %v13250_v59 = vld [vmem:[#allocation270_spill] sm:$0xff] }
 0x985   :  { %6882 = vmatpush3.bf16.msra.mxu0 %v13207_v12  ;;  %v13251_v12 = vld [vmem:[#allocation214_spill] sm:$0xff] }
 0x986   :  { %6883 = vmatprep.subr.bf16.mxu0 %v13208_v15  ;;  %v13252_v15 = vld [vmem:[#allocation247_spill] sm:$0xff] }
 0x987   :  { %6966 = vmatpush3.bf16.msra.mxu1 %v13209_v33  ;;  %v13253_v33 = vld [vmem:[#allocation262_spill] sm:$0xff] }
 0x988   :  { %6967 = vmatprep.subr.bf16.mxu1 %v13210_v21  ;;  %v13254_v21 = vpack.c.bf16 %v11544_v34, %v11536_v53  ;;  %v13261_v53 = vld [vmem:[#allocation249_spill] sm:$0xff]  ;;  %v13262_v34 = vpack.c.bf16 %v11582_v61, %v11574_v28  ;;  %v13270_v61 = vld [vmem:[#allocation252_spill] sm:$0xff] }
 0x989   :  { %6884 = vmatpush3.bf16.msra.mxu0 %v13211_v31  ;;  %v13255_v31 = vld [vmem:[#allocation239_spill] sm:$0xff]  ;;  %v13271_v28 = vld [vmem:[#allocation244_spill] sm:$0xff] }
 0x98a   :  { %6925 = vmatprep.subr.bf16.mxu0 %v13212_v7  ;;  %v13256_v7 = vpack.c.bf16 %v11576_v44, %v11572_v41  ;;  %v13263_v41 = vld [vmem:[#allocation241_spill] sm:$0xff]  ;;  %v13264_v44 = vpack.c.bf16 %v11588_v8, %v11578_v55  ;;  %v13274_v55 = vld [vmem:[#allocation254_spill] sm:$0xff] }
 0x98b   :  { %6968 = vmatpush3.bf16.msra.mxu1 %v13213_v46  ;;  %v13257_v46 = vld [vmem:[#allocation248_spill] sm:$0xff]  ;;  %v13273_v8 = vld [vmem:[#allocation245_spill] sm:$0xff] }
 0x98c   :  { %5693 = vmatmul.mubr.bf16.vlgmr.msra.gmra.mrb[192].mxu0 %v13214_v18  ;;  %7009 = vmatprep.subr.bf16.mxu1 %v13215_v60  ;;  %v13258_v18 = vpack.c.bf16 %v11462_v43, %v11454_v63  ;;  %v13259_v60 = vpack.c.bf16 %v11624_v4, %v11620_v14  ;;  %v13265_v63 = vld [vmem:[#allocation250_spill] sm:$0xff]  ;;  %v13266_v43 = vpack.c.bf16 %v11628_v13, %v11622_v57  ;;  %v13268_v14 = vld [vmem:[#allocation251_spill] sm:$0xff] }
 0x98d   :  { %6926 = vmatpush3.bf16.msra.mxu0 %v13216_v51  ;;  %5700 = vmatprep.mubr.bf16.mxu0 %v13217_v27  ;;  %v13260_v51 = vld [vmem:[#allocation240_spill] sm:$0xff]  ;;  %v13267_v4 = vld [vmem:[#allocation242_spill] sm:$0xff]  ;;  %v13269_v27 = vld [vmem:[#allocation243_spill] sm:$0xff]  ;;  %v13277_v13 = vpack.c.bf16 %v11592_v50, %v11584_v38 }
 0x98e   :  { %6927 = vmatprep.subr.bf16.mxu0 %v13218_v25  ;;  %5840 = vmatmul.mubr.bf16.vlgmr.msra.gmra.mrb[208].mxu1 %v13219_v0  ;;  %v13272_v25 = vld [vmem:[#allocation253_spill] sm:$0xff]  ;;  %v13275_v0 = vld [vmem:[#allocation246_spill] sm:$0xff]  ;;  %v13276_v57 = vld [vmem:[#allocation279_spill] sm:$0xff] }
 0x98f   :  { %7010 = vmatpush3.bf16.msra.mxu1 %v13220_v9  ;;  %5847 = vmatprep.mubr.bf16.mxu1 %v13221_v20  ;;  %v13278_v9 = vld [vmem:[#allocation271_spill] sm:$0xff] }
 0x990   :  { %7011 = vmatprep.subr.bf16.mxu1 %v13222_v26  ;;  %v13279_v20 = vld [vmem:[#allocation47_spill] sm:$0xff] }
 0x991   :  { %6928 = vmatpush3.bf16.msra.mxu0 %v13223_v37  ;;  %v13280_v26 = vpack.c.bf16 %v11612_v58, %v13279_v20  ;;  %v13281_v37 = vld [vmem:[#allocation280_spill] sm:$0xff]  ;;  %v13288_v38 = vld [vmem:[#allocation55_spill] sm:$0xff]  ;;  %v13292_v58 = vld [vmem:[#allocation274_spill] sm:$0xff] }
 0x992   :  { %6929 = vmatprep.subr.bf16.mxu0 %v13224_v56  ;;  %v13282_v56 = vld [vmem:[#allocation272_spill] sm:$0xff]  ;;  %v13289_v50 = vld [vmem:[#allocation23_spill] sm:$0xff] }
 0x993   :  { %7012 = vmatpush3.bf16.msra.mxu1 %v13225_v6  ;;  %v13283_v6 = vld [vmem:[#allocation281_spill] sm:$0xff] }
 0x994   :  { %5701 = vmatmul.mubr.bf16.gmra.mrb[196].mxu0 %v13226_v52  ;;  %7013 = vmatprep.subr.bf16.mxu1 %v13227_v16  ;;  %v13284_v52 = vld [vmem:[#allocation16_spill] sm:$0xff] }
 0x995   :  { %6930 = vmatpush3.bf16.msra.mxu0 %v13228_v36  ;;  %5790 = vmatprep.mubr.bf16.mxu0 %v13229_v19  ;;  %v13285_v16 = vld [vmem:[#allocation56_spill] sm:$0xff]  ;;  %v13287_v19 = vld [vmem:[#allocation273_spill] sm:$0xff] }
 0x996   :  { %6931 = vmatprep.subr.bf16.mxu0 %v13230_v49  ;;  %5848 = vmatmul.mubr.bf16.gmra.mrb[212].mxu1 %v13231_v42  ;;  %v13286_v36 = vpack.c.bf16 %v13284_v52, %v13285_v16  ;;  %v13290_v49 = vpack.c.bf16 %v13288_v38, %v13289_v50  ;;  %v13291_v42 = vld [vmem:[#allocation282_spill] sm:$0xff] }
 0x997   :  { %7014 = vmatpush3.bf16.msra.mxu1 %v13232_v24  ;;  %5937 = vmatprep.mubr.bf16.mxu1 %v13233_v45  ;;  %v13293_v24 = vld [vmem:[#allocation283_spill] sm:$0xff] }
 0x998   :  { %7015 = vmatprep.subr.bf16.mxu1 %v13234_v30  ;;  %v13294_v45 = vld [vmem:[#allocation275_spill] sm:$0xff]  ;;  %v13295_v30 = vld [vmem:[#allocation284_spill] sm:$0xff] }
 0x999   :  { %6932 = vmatpush3.bf16.msra.mxu0 %v13235_v23  ;;  %v13296_v23 = vld [vmem:[#allocation276_spill] sm:$0xff] }
 0x99a   :  { %6933 = vmatprep.subr.bf16.mxu0 %v13236_v29  ;;  %v13297_v29 = vld [vmem:[#allocation285_spill] sm:$0xff] }
 0x99b   :  { %7016 = vmatpush3.bf16.msra.mxu1 %v13237_v35  ;;  %v13298_v35 = vld [vmem:[#allocation277_spill] sm:$0xff] }
 0x99c   :  { %7017 = vmatprep.subr.bf16.mxu1 %v13238_v5  ;;  %v13299_v5 = vld [vmem:[#allocation286_spill] sm:$0xff] }
 0x99d   :  { %6934 = vmatpush3.bf16.msra.mxu0 %v13239_v11  ;;  %v13300_v11 = vld [vmem:[#allocation278_spill] sm:$0xff] }
 0x99e   :  { %6935 = vmatprep.subr.bf16.mxu0 %v13240_v1  ;;  %v13301_v1 = vld [vmem:[#allocation24_spill] sm:$0xff] }
 0x99f   :  { %7018 = vmatpush3.bf16.msra.mxu1 %v13241_v32  ;;  %v13302_v32 = vld [vmem:[#allocation15_spill] sm:$0xff] }
 0x9a0   :  { %7019 = vmatprep.subr.bf16.mxu1 %v13242_v22  ;;  %v13303_v22 = vpack.c.bf16 %v13301_v1, %v13302_v32 }
 0x9a1   :  { %6936 = vmatpush3.bf16.msra.mxu0 %v13243_v17  ;;  %v13304_v17 = vld [vmem:[#allocation25_spill] sm:$0xff] }
 0x9a2   :  { %6937 = vmatprep.subr.bf16.mxu0 %v13244_v39  ;;  %v13305_v39 = vpack.c.bf16 %v11636_v2, %v13304_v17 }
 0x9a3   :  { %7020 = vmatpush3.bf16.msra.mxu1 %v13245_v47  ;;  %v13306_v47 = vpack.c.bf16 %v11640_v48, %v11634_v3 }
 0x9a4   :  { %7021 = vmatprep.subr.bf16.mxu1 %v13246_v54 }
 0x9a5   :  { %6938 = vmatpush3.bf16.msra.mxu0 %v13247_v10 }
 0x9a6   :  { %6939 = vmatprep.subr.bf16.mxu0 %v13248_v62 }
 0x9a7   :  { %7022 = vmatpush3.bf16.msra.mxu1 %v13249_v40 }
 0x9a8   :  { %7023 = vmatprep.subr.bf16.mxu1 %v13250_v59 }
 0x9a9   :  { %6940 = vmatpush3.bf16.msra.mxu0 %v13251_v12 }
 0x9aa   :  { %6981 = vmatprep.subr.bf16.mxu0 %v13252_v15 }
 0x9ab   :  { %7024 = vmatpush3.bf16.msra.mxu1 %v13253_v33 }
 0x9ac   :  { %5791 = vmatmul.mubr.bf16.vlgmr.msra.gmra.mrb[200].mxu0 %v13254_v21 }
 0x9ad   :  { %6982 = vmatpush3.bf16.msra.mxu0 %v13255_v31  ;;  %5798 = vmatprep.mubr.bf16.mxu0 %v13256_v7 }
 0x9ae   :  { %6983 = vmatprep.subr.bf16.mxu0 %v13257_v46  ;;  %5938 = vmatmul.mubr.bf16.vlgmr.msra.gmra.mrb[216].mxu1 %v13258_v18 }
 0x9af   :  { %5945 = vmatprep.mubr.bf16.mxu1 %v13259_v60 }
 0x9b1   :  { %6984 = vmatpush3.bf16.msra.mxu0 %v13260_v51 }
 0x9b2   :  { %6985 = vmatprep.subr.bf16.mxu0 %v13261_v53 }
 0x9b4   :  { %5799 = vmatmul.mubr.bf16.gmra.mrb[204].mxu0 %v13262_v34 }
 0x9b5   :  { %6986 = vmatpush3.bf16.msra.mxu0 %v13263_v41  ;;  %5888 = vmatprep.mubr.bf16.mxu0 %v13264_v44 }
 0x9b6   :  { %6987 = vmatprep.subr.bf16.mxu0 %v13265_v63  ;;  %5946 = vmatmul.mubr.bf16.gmra.mrb[220].mxu1 %v13266_v43 }
 0x9b9   :  { %6988 = vmatpush3.bf16.msra.mxu0 %v13267_v4 }
 0x9ba   :  { %6989 = vmatprep.subr.bf16.mxu0 %v13268_v14 }
 0x9bd   :  { %6990 = vmatpush3.bf16.msra.mxu0 %v13269_v27 }
 0x9be   :  { %6991 = vmatprep.subr.bf16.mxu0 %v13270_v61 }
 0x9c1   :  { %6992 = vmatpush3.bf16.msra.mxu0 %v13271_v28 }
 0x9c2   :  { %6993 = vmatprep.subr.bf16.mxu0 %v13272_v25 }
 0x9c5   :  { %6994 = vmatpush3.bf16.msra.mxu0 %v13273_v8 }
 0x9c6   :  { %6995 = vmatprep.subr.bf16.mxu0 %v13274_v55 }
 0x9c9   :  { %6996 = vmatpush3.bf16.msra.mxu0 %v13275_v0 }
 0x9ca   :  { %7037 = vmatprep.subr.bf16.mxu0 %v13276_v57 }
 0x9cc   :  { %5889 = vmatmul.mubr.bf16.vlgmr.msra.gmra.mrb[208].mxu0 %v13277_v13 }
 0x9cd   :  { %7038 = vmatpush3.bf16.msra.mxu0 %v13278_v9  ;;  %5896 = vmatprep.mubr.bf16.mxu0 %v13280_v26 }
 0x9ce   :  { %7039 = vmatprep.subr.bf16.mxu0 %v13281_v37 }
 0x9d1   :  { %7040 = vmatpush3.bf16.msra.mxu0 %v13282_v56 }
 0x9d2   :  { %7041 = vmatprep.subr.bf16.mxu0 %v13283_v6 }
 0x9d4   :  { %5897 = vmatmul.mubr.bf16.gmra.mrb[212].mxu0 %v13286_v36 }
 0x9d5   :  { %7042 = vmatpush3.bf16.msra.mxu0 %v13287_v19  ;;  %5986 = vmatprep.mubr.bf16.mxu0 %v13290_v49 }
 0x9d6   :  { %7043 = vmatprep.subr.bf16.mxu0 %v13291_v42 }
 0x9d9   :  { %7044 = vmatpush3.bf16.msra.mxu0 %v13292_v58 }
 0x9da   :  { %7045 = vmatprep.subr.bf16.mxu0 %v13293_v24 }
 0x9dd   :  { %7046 = vmatpush3.bf16.msra.mxu0 %v13294_v45 }
 0x9de   :  { %7047 = vmatprep.subr.bf16.mxu0 %v13295_v30 }
 0x9e1   :  { %7048 = vmatpush3.bf16.msra.mxu0 %v13296_v23 }
 0x9e2   :  { %7049 = vmatprep.subr.bf16.mxu0 %v13297_v29 }
 0x9e5   :  { %7050 = vmatpush3.bf16.msra.mxu0 %v13298_v35 }
 0x9e6   :  { %7051 = vmatprep.subr.bf16.mxu0 %v13299_v5 }
 0x9e9   :  { %7052 = vmatpush3.bf16.msra.mxu0 %v13300_v11 }
 0x9ec   :  { %5987 = vmatmul.mubr.bf16.vlgmr.msra.gmra.mrb[216].mxu0 %v13303_v22 }
 0x9ed   :  { %5994 = vmatprep.mubr.bf16.mxu0 %v13305_v39 }
 0x9f4   :  { %5995 = vmatmul.mubr.bf16.gmra.mrb[220].mxu0 %v13306_v47 }
 0xa3f   :  { %v6857_v54 = vpop.f32.mrb[184].mxu0 }
 0xa40   :  { %v6858_v10 = vpop.f32.mrb[185].mxu0 }
 0xa41   :  { %v6859_v62 = vadd.f32 %v6858_v10, %v6857_v54  ;;  %v6860_v40 = vpop.f32.mrb[186].mxu0  ;;  %v6913_v59 = vpop.f32.mrb[200].mxu1 }
 0xa42   :  { %v6861_v12 = vpop.f32.mrb[187].mxu0  ;;  %v6914_v15 = vpop.f32.mrb[201].mxu1 }
 0xa43   :  { %v6862_v33 = vadd.f32 %v6861_v12, %v6860_v40  ;;  %v6915_v21 = vadd.f32 %v6914_v15, %v6913_v59  ;;  %v6916_v31 = vpop.f32.mrb[202].mxu1 }
 0xa44   :  { %v6917_v7 = vpop.f32.mrb[203].mxu1 }
 0xa45   :  { %v6918_v46 = vadd.f32 %v6917_v7, %v6916_v31 }
 0xa47   :  { %v6863_v18 = vpop.f32.mrb[188].mxu0 }
 0xa48   :  { %v6864_v60 = vpop.f32.mrb[189].mxu0 }
 0xa49   :  { %v6865_v2 = vadd.f32 %v6864_v60, %v6863_v18  ;;  %v6866_v51 = vpop.f32.mrb[190].mxu0  ;;  %v6919_v53 = vpop.f32.mrb[204].mxu1 }
 0xa4a   :  { %v6867_v34 = vpop.f32.mrb[191].mxu0  ;;  %v6920_v48 = vpop.f32.mrb[205].mxu1 }
 0xa4b   :  { %v6868_v3 = vadd.f32 %v6867_v34, %v6866_v51  ;;  %v6921_v41 = vadd.f32 %v6920_v48, %v6919_v53  ;;  %v6922_v44 = vpop.f32.mrb[206].mxu1 }
 0xa4c   :  { %v6923_v63 = vpop.f32.mrb[207].mxu1 }
 0xa4d   :  { %v6924_v43 = vadd.f32 %v6923_v63, %v6922_v44 }
 0xa5f   :  { %v6885_v4 = vpop.f32.mrb[192].mxu0 }
 0xa60   :  { %v6886_v14 = vpop.f32.mrb[193].mxu0 }
 0xa61   :  { %v6887_v27 = vadd.f32 %v6886_v14, %v6885_v4  ;;  %v6888_v61 = vpop.f32.mrb[194].mxu0  ;;  %v6969_v28 = vpop.f32.mrb[208].mxu1 }
 0xa62   :  { %v6889_v25 = vpop.f32.mrb[195].mxu0  ;;  %v6970_v8 = vpop.f32.mrb[209].mxu1 }
 0xa63   :  { %v5695_v55 = vadd.f32 %v6887_v27, %v6859_v62  ;;  %v6890_v0 = vadd.f32 %v6889_v25, %v6888_v61  ;;  %v6971_v57 = vadd.f32 %v6970_v8, %v6969_v28  ;;  %v6972_v13 = vpop.f32.mrb[210].mxu1 }
 0xa64   :  { %v6973_v9 = vpop.f32.mrb[211].mxu1 }
 0xa65   :  { %v5698_v20 = vadd.f32 %v6890_v0, %v6862_v33  ;;  %v5744_v26 = vadd.f32 %v6915_v21, %v5695_v55  ;;  %v6974_v37 = vadd.f32 %v6973_v9, %v6972_v13 }
 0xa67   :  { %v5747_v56 = vadd.f32 %v6918_v46, %v5698_v20  ;;  %v6891_v6 = vpop.f32.mrb[196].mxu0 }
 0xa68   :  { %v6892_v52 = vpop.f32.mrb[197].mxu0 }
 0xa69   :  { %v6893_v16 = vadd.f32 %v6892_v52, %v6891_v6  ;;  %v6894_v36 = vpop.f32.mrb[198].mxu0  ;;  %v6975_v19 = vpop.f32.mrb[212].mxu1 }
 0xa6a   :  { %v6895_v38 = vpop.f32.mrb[199].mxu0  ;;  %v6976_v50 = vpop.f32.mrb[213].mxu1 }
 0xa6b   :  { %v5703_v49 = vadd.f32 %v6893_v16, %v6865_v2  ;;  %v6896_v42 = vadd.f32 %v6895_v38, %v6894_v36  ;;  %v6977_v58 = vadd.f32 %v6976_v50, %v6975_v19  ;;  %v6978_v24 = vpop.f32.mrb[214].mxu1 }
 0xa6c   :  { %v6979_v45 = vpop.f32.mrb[215].mxu1 }
 0xa6d   :  { %v5706_v30 = vadd.f32 %v6896_v42, %v6868_v3  ;;  %v5752_v23 = vadd.f32 %v6921_v41, %v5703_v49  ;;  %v6980_v29 = vadd.f32 %v6979_v45, %v6978_v24 }
 0xa6f   :  { %v5755_v35 = vadd.f32 %v6924_v43, %v5706_v30 }
 0xa7f   :  { %v6941_v5 = vpop.f32.mrb[200].mxu0 }
 0xa80   :  { %v6942_v11 = vpop.f32.mrb[201].mxu0 }
 0xa81   :  { %v6943_v1 = vadd.f32 %v6942_v11, %v6941_v5  ;;  %v6944_v32 = vpop.f32.mrb[202].mxu0  ;;  %v7025_v22 = vpop.f32.mrb[216].mxu1 }
 0xa82   :  { %v6945_v17 = vpop.f32.mrb[203].mxu0  ;;  %v7026_v39 = vpop.f32.mrb[217].mxu1 }
 0xa83   :  { %v5793_v47 = vadd.f32 %v6943_v1, %v5744_v26  ;;  %v6946_v54 = vadd.f32 %v6945_v17, %v6944_v32  ;;  %v7027_v10 = vadd.f32 %v7026_v39, %v7025_v22  ;;  %v7028_v62 = vpop.f32.mrb[218].mxu1 }
 0xa84   :  { %v7029_v40 = vpop.f32.mrb[219].mxu1 }
 0xa85   :  { %v5796_v59 = vadd.f32 %v6946_v54, %v5747_v56  ;;  %v5842_v12 = vadd.f32 %v6971_v57, %v5793_v47  ;;  %v7030_v15 = vadd.f32 %v7029_v40, %v7028_v62 }
 0xa87   :  { %v5845_v33 = vadd.f32 %v6974_v37, %v5796_v59  ;;  %v6947_v21 = vpop.f32.mrb[204].mxu0 }
 0xa88   :  { %v6948_v31 = vpop.f32.mrb[205].mxu0 }
 0xa89   :  { %v6949_v7 = vadd.f32 %v6948_v31, %v6947_v21  ;;  %v6950_v46 = vpop.f32.mrb[206].mxu0  ;;  %v7031_v18 = vpop.f32.mrb[220].mxu1 }
 0xa8a   :  { %v6951_v60 = vpop.f32.mrb[207].mxu0  ;;  %v7032_v2 = vpop.f32.mrb[221].mxu1 }
 0xa8b   :  { %v5801_v51 = vadd.f32 %v6949_v7, %v5752_v23  ;;  %v6952_v53 = vadd.f32 %v6951_v60, %v6950_v46  ;;  %v7033_v34 = vadd.f32 %v7032_v2, %v7031_v18  ;;  %v7034_v48 = vpop.f32.mrb[222].mxu1 }
 0xa8c   :  { %v7035_v3 = vpop.f32.mrb[223].mxu1 }
 0xa8d   :  { %v5804_v41 = vadd.f32 %v6952_v53, %v5755_v35  ;;  %v5850_v44 = vadd.f32 %v6977_v58, %v5801_v51  ;;  %v7036_v63 = vadd.f32 %v7035_v3, %v7034_v48 }
 0xa8f   :  { %v5853_v43 = vadd.f32 %v6980_v29, %v5804_v41 }
 0xa9f   :  { %v6997_v4 = vpop.f32.mrb[208].mxu0 }
 0xaa0   :  { %v6998_v14 = vpop.f32.mrb[209].mxu0 }
 0xaa1   :  { %v6999_v27 = vadd.f32 %v6998_v14, %v6997_v4  ;;  %v7000_v61 = vpop.f32.mrb[210].mxu0 }
 0xaa2   :  { %v7001_v28 = vpop.f32.mrb[211].mxu0 }
 0xaa3   :  { %v5891_v25 = vadd.f32 %v6999_v27, %v5842_v12  ;;  %v7002_v8 = vadd.f32 %v7001_v28, %v7000_v61  ;;  %v6243_v27 = vld [vmem:[%s11887_s4] ss:$0 sm:$0xff] }
 0xaa5   :  { %v5894_v55 = vadd.f32 %v7002_v8, %v5845_v33  ;;  %v5940_v0 = vadd.f32 %v7027_v10, %v5891_v25 }
 0xaa7   :  { %v5943_v57 = vadd.f32 %v7030_v15, %v5894_v55  ;;  %v7003_v13 = vpop.f32.mrb[212].mxu0  ;;  %v6244_v55 = vld [vmem:[%s11888_s5] ss:$0 sm:$0xff] }
 0xaa8   :  { %v7004_v9 = vpop.f32.mrb[213].mxu0 }
 0xaa9   :  { %v7005_v20 = vadd.f32 %v7004_v9, %v7003_v13  ;;  %v7006_v26 = vpop.f32.mrb[214].mxu0 }
 0xaaa   :  { %v7007_v37 = vpop.f32.mrb[215].mxu0 }
 0xaab   :  { %v5899_v56 = vadd.f32 %v7005_v20, %v5850_v44  ;;  %v7008_v6 = vadd.f32 %v7007_v37, %v7006_v26 }
 0xaad   :  { %v5902_v52 = vadd.f32 %v7008_v6, %v5853_v43  ;;  %v5948_v16 = vadd.f32 %v7033_v34, %v5899_v56  ;;  %v6072_v6 = vld [vmem:[%s11889_s6] sm:$0xff] }
 0xaaf   :  { %v5951_v36 = vadd.f32 %v7036_v63, %v5902_v52  ;;  %v6073_v52 = vld [vmem:[%s11889_s6 + $0x8] sm:$0xff] }
 0xabf   :  { %v7053_v19 = vpop.f32.mrb[216].mxu0 }
 0xac0   :  { %v7054_v38 = vpop.f32.mrb[217].mxu0 }
 0xac1   :  { %v7055_v50 = vadd.f32 %v7054_v38, %v7053_v19  ;;  %v7056_v49 = vpop.f32.mrb[218].mxu0 }
 0xac2   :  { %v7057_v42 = vpop.f32.mrb[219].mxu0 }
 0xac3   :  { %v5989_v58 = vadd.f32 %v7055_v50, %v5940_v0  ;;  %v7058_v24 = vadd.f32 %v7057_v42, %v7056_v49 }
 0xac5   :  { %v5992_v45 = vadd.f32 %v7058_v24, %v5943_v57 }
 0xac7   :  { %v6005_v30 = vadd.f32 %v5992_v45, %v5989_v58  ;;  %v7059_v23 = vpop.f32.mrb[220].mxu0 }
 0xac8   :  { %v7060_v29 = vpop.f32.mrb[221].mxu0 }
 0xac9   :  { %v7061_v35 = vadd.f32 %v7060_v29, %v7059_v23  ;;  %v7062_v5 = vpop.f32.mrb[222].mxu0 }
 0xaca   :  { %v7063_v11 = vpop.f32.mrb[223].mxu0 }
 0xacb   :  { %v5997_v1 = vadd.f32 %v7061_v35, %v5948_v16  ;;  %v7064_v32 = vadd.f32 %v7063_v11, %v7062_v5 }
 0xacd   :  { %v6006_v22 = vadd.f32 %v6005_v30, %v5997_v1  ;;  %v6000_v17 = vadd.f32 %v7064_v32, %v5951_v36 }
 0xacf   :  { %v6007_v39 = vadd.f32 %v6006_v22, %v6000_v17 }
 0xad1   :  { %v6008_v47 = vrot.slane %v6007_v39, 4 }
 0xad3   :  { %v6009_v54 = vadd.f32 %v6008_v47, %v6007_v39 }
 0xad5   :  { %v6010_v10 = vrot.slane %v6009_v54, 2 }
 0xad7   :  { %v6011_v62 = vadd.f32 %v6010_v10, %v6009_v54 }
 0xad9   :  { %v6012_v40 = vrot.slane %v6011_v62, 1 }
 0xadb   :  { %v6013_v59 = vadd.f32 %v6012_v40, %v6011_v62 }
 0xadd   :  { %v6015_v12 = vmul.f32 0.03125, %v6013_v59 }
 0xadf   :  { %v6016_v15 = vsub.f32 %v5989_v58, %v6015_v12  ;;  %v6017_v33 = vsub.f32 %v5992_v45, %v6015_v12  ;;  %v6018_v21 = vsub.f32 %v5997_v1, %v6015_v12  ;;  %v6019_v31 = vsub.f32 %v6000_v17, %v6015_v12 }
 0xae1   :  { %v6020_v7 = vmul.f32 %v6016_v15, %v6016_v15  ;;  %v6021_v46 = vmul.f32 %v6017_v33, %v6017_v33  ;;  %v6022_v18 = vmul.f32 %v6018_v21, %v6018_v21  ;;  %v6023_v2 = vmul.f32 %v6019_v31, %v6019_v31 }
 0xae3   :  { %v6024_v60 = vadd.f32 %v6021_v46, %v6020_v7 }
 0xae5   :  { %v6025_v51 = vadd.f32 %v6024_v60, %v6022_v18 }
 0xae7   :  { %v6026_v53 = vadd.f32 %v6025_v51, %v6023_v2 }
 0xae9   :  { %v6027_v34 = vrot.slane %v6026_v53, 4 }
 0xaeb   :  { %v6028_v48 = vadd.f32 %v6027_v34, %v6026_v53 }
 0xaed   :  { %v6029_v3 = vrot.slane %v6028_v48, 2 }
 0xaef   :  { %v6030_v41 = vadd.f32 %v6029_v3, %v6028_v48 }
 0xaf1   :  { %v6031_v44 = vrot.slane %v6030_v41, 1 }
 0xaf3   :  { %v6032_v63 = vadd.f32 %v6031_v44, %v6030_v41 }
 0xaf5   :  { %v6033_v43 = vmul.f32 0.03125, %v6032_v63 }
 0xaf7   :  { %v6034_v4 = vadd.f32 1e-05, %v6033_v43 }
 0xaf9   :  { %7276 = vrsqrt.f32 %v6034_v4 }
 0xb03   :  { %v7277_v14 = vpop.eup %7276 }
 0xb04   :  { %v6036_v61 = vmul.f32 %v7277_v14, %v6016_v15  ;;  %v6037_v28 = vmul.f32 %v7277_v14, %v6017_v33  ;;  %v6038_v25 = vmul.f32 %v7277_v14, %v6018_v21  ;;  %v6039_v8 = vmul.f32 %v7277_v14, %v6019_v31 }
 0xb06   :  { %v6046_v0 = vmul.f32 %v6243_v27, %v6036_v61  ;;  %v6047_v57 = vmul.f32 %v6243_v27, %v6037_v28  ;;  %v6048_v13 = vmul.f32 %v6243_v27, %v6038_v25  ;;  %v6049_v9 = vmul.f32 %v6243_v27, %v6039_v8 }
 0xb08   :  { %v6056_v20 = vadd.f32 %v6244_v55, %v6046_v0  ;;  %v6057_v26 = vadd.f32 %v6244_v55, %v6047_v57  ;;  %v6058_v37 = vadd.f32 %v6244_v55, %v6048_v13  ;;  %v6059_v56 = vadd.f32 %v6244_v55, %v6049_v9 }
 0xb0a   :  { %vm6060_vm1 = vcmp.gt.f32.partialorder %v6056_v20, 0.0  ;;  %vm6061_vm2 = vcmp.gt.f32.partialorder %v6057_v26, 0.0  ;;  %vm6062_vm3 = vcmp.gt.f32.partialorder %v6058_v37, 0.0  ;;  %vm6063_vm4 = vcmp.gt.f32.partialorder %v6059_v56, 0.0 }
 0xb0b   :  { %v6064_v16 = vmul.f32 0.2, %v6056_v20  ;;  %v6065_v36 = vmul.f32 0.2, %v6057_v26  ;;  %v6066_v19 = vmul.f32 0.2, %v6058_v37 }
 0xb0c   :  { %v6067_v38 = vmul.f32 0.2, %v6059_v56 }
 0xb0d   :  { %v6068_v50 = vsel %vm6060_vm1, %v6056_v20, %v6064_v16  ;;  %v6069_v49 = vsel %vm6061_vm2, %v6057_v26, %v6065_v36  ;;  %v6070_v42 = vsel %vm6062_vm3, %v6058_v37, %v6066_v19 }
 0xb0e   :  { %v6071_v58 = vsel %vm6063_vm4, %v6059_v56, %v6067_v38  ;;  %v6074_v24 = vmul.f32 %v6072_v6, %v6068_v50  ;;  %v6075_v45 = vmul.f32 %v6073_v52, %v6069_v49  ;;  %v6083_v30 = vmul.f32 %v6072_v6, %v6070_v42 }
 0xb0f   :  { %v6084_v23 = vmul.f32 %v6073_v52, %v6071_v58 }
 0xb10   :  { %v6076_v29 = vadd.f32 %v6075_v45, %v6074_v24 }
 0xb11   :  { %v6085_v35 = vadd.f32 %v6084_v23, %v6083_v30 }
 0xb12   :  { %v6077_v5 = vrot.slane %v6076_v29, 4 }
 0xb13   :  { %v6086_v11 = vrot.slane %v6085_v35, 4 }
 0xb14   :  { %v6078_v1 = vadd.f32 %v6077_v5, %v6076_v29 }
 0xb15   :  { %v6087_v32 = vadd.f32 %v6086_v11, %v6085_v35 }
 0xb16   :  { %v6079_v22 = vrot.slane %v6078_v1, 2 }
 0xb17   :  { %v6088_v17 = vrot.slane %v6087_v32, 2 }
 0xb18   :  { %v6080_v39 = vadd.f32 %v6079_v22, %v6078_v1 }
 0xb19   :  { %v6089_v47 = vadd.f32 %v6088_v17, %v6087_v32 }
 0xb1a   :  { %v6081_v54 = vrot.slane %v6080_v39, 1 }
 0xb1b   :  { %v6090_v10 = vrot.slane %v6089_v47, 1 }
 0xb1c   :  { %v6082_v62 = vadd.f32 %v6081_v54, %v6080_v39 }
 0xb1d   :  { %v6091_v40 = vadd.f32 %v6090_v10, %v6089_v47 }
 0xb1f   :  { %v6093_v59 = vsel %vm6092_vm5, %v6082_v62, %v6091_v40 }
 0xb20   :  { %v6095_v12 = vsel %vm6094_vm6, %v6093_v59, 0.0 }
 0xb21   :  { %6096 = vadd.xlane.f32.xlu0 %v6095_v12 }
 0xbae   :  { %v6097_v15 = vpop.xlane.xlu0 %6096 }
 0xbaf   :  { %6099 = vst.msk [vmem:[%s11894_s11] sm:$0x3] %vm6098_vm7, %v6097_v15 }
 0xbb0   :  { %6104 = vsyncmov [#allocation6] }
 0xbb3   :  { %s6105_s16 = vpop.sfrf %6104 }
 0xbb4   :  { %p6245_p0 = scmp.ne.s32.totalorder %s6105_s16, 0 }
 0xbb6   :  { %6109 = shalt.err (%p6245_p0)  }
 0xbb7   :  { %6111 = vsyncmov [#allocation6 + $0x1] }
 0xbba   :  { %s6112_s9 = vpop.sfrf %6111 }
 0xbbb   :  { %p6246_p1 = scmp.ne.s32.totalorder %s6112_s9, 0 }
 0xbbd   :  { %6116 = shalt.err (%p6246_p1)  }
 0xbbe   :  { %6118 = vsyncmov [#allocation6 + $0x2] }
 0xbc1   :  { %s6119_s17 = vpop.sfrf %6118 }
 0xbc2   :  { %p6247_p2 = scmp.ne.s32.totalorder %s6119_s17, 0 }
 0xbc4   :  { %6123 = shalt.err (%p6247_p2)  }
 0xbc5   :  { %6125 = vsyncmov [#allocation6 + $0x3] }
 0xbc8   :  { %s6126_s18 = vpop.sfrf %6125 }
 0xbc9   :  { %p6248_p3 = scmp.ne.s32.totalorder %s6126_s18, 0 }
 0xbcb   :  { %6130 = shalt.err (%p6248_p3)  }

</bundles_post_ra>
